<compile_context>
chip_gen: v7x
topology: tpu7x:2x2x1
jax: 0.10.0
libtpu: 0.0.40
codegen_flags: <defaults>
</compile_context>

<pallas_src>
import functools

import jax
import jax.numpy as jnp
from jax import lax
from jax.experimental import pallas as pl
from jax.experimental.pallas import tpu as pltpu

_DILATIONS = (1, 2, 4, 8)
_DMAX = max(_DILATIONS)


def _dblock_fused_kernel(x_ref, w_ref, b_ref, out_ref, pbuf_ref, *, H, W, C):
    """Fused Dblock forward for one batch element.

    x_ref   : (1, H*W, C)  f32   input activation (channels-last, flattened)
    w_ref   : (36, C, C)   bf16  weights, index = 9*layer + 3*kh + kw
    b_ref   : (4, 1, C)    f32   per-layer bias
    out_ref : (1, H*W, C)  f32   x + relu(d1) + relu(d2) + relu(d3) + relu(d4)
    pbuf_ref: (H*W + 2*MARGIN, C) bf16 scratch -- flat activation with
              zero halo margins (the in-kernel padding buffer)
    """
    HW = H * W
    MARGIN = _DMAX * (W + 1)          # >= d*W + d for every dilation d

    # Zero only the halo margins (the centre is fully rewritten below).
    # Done every grid step: with "parallel" batch sharding each core owns its
    # own scratch, so a program_id==0 guard would be unsafe on multi-TC chips.
    pbuf_ref[0:MARGIN, :] = jnp.zeros((MARGIN, C), pbuf_ref.dtype)
    pbuf_ref[MARGIN + HW:MARGIN + HW + MARGIN, :] = jnp.zeros(
        (MARGIN, C), pbuf_ref.dtype)

    x_f32 = x_ref[0]                                   # (HW, C) f32
    pbuf_ref[MARGIN:MARGIN + HW, :] = x_f32.astype(pbuf_ref.dtype)

    # Output column coordinate w for every flattened row; hoisted out of the
    # layer loop (JAX does not CSE broadcast/iota).
    col = lax.broadcasted_iota(jnp.int32, (HW, 1), 0) % W

    total = x_f32                                      # residual sum, f32
    for layer, d in enumerate(_DILATIONS):
        # f32 accumulator initialized with the broadcast bias.
        acc = jnp.broadcast_to(b_ref[layer], (HW, C)).astype(jnp.float32)

        for kw in range(3):
            part = None
            for kh in range(3):
                # Source element for output (h, w) is the activation at
                # (h + (kh-1)*d, w + (kw-1)*d); in the flat halo buffer that
                # is a contiguous row-slab starting at the offset below.
                start = MARGIN + (kh - 1) * d * W + (kw - 1) * d
                slab = pbuf_ref[start:start + HW, :]            # (HW, C) bf16
                prod = jnp.dot(slab, w_ref[9 * layer + 3 * kh + kw],
                               preferred_element_type=jnp.float32)
                part = prod if part is None else part + prod
            # The flat column shift wraps across image rows; zero the
            # contributions whose source column falls outside [0, W)
            # (this implements the W-direction zero padding).
            if kw == 0:
                part = jnp.where(col >= d, part, 0.0)
            elif kw == 2:
                part = jnp.where(col < W - d, part, 0.0)
            acc = acc + part

        y = jnp.maximum(acc, 0.0)                      # ReLU, f32
        total = total + y
        if layer + 1 < len(_DILATIONS):
            # Next layer consumes this layer's activation (bf16).
            pbuf_ref[MARGIN:MARGIN + HW, :] = y.astype(pbuf_ref.dtype)

    out_ref[0] = total.astype(out_ref.dtype)


def _dblock_pallas(x_flat, w_all, b_all, H, W):
    B, HW, C = x_flat.shape
    MARGIN = _DMAX * (W + 1)
    kernel = functools.partial(_dblock_fused_kernel, H=H, W=W, C=C)
    return pl.pallas_call(
        kernel,
        grid=(B,),
        in_specs=[
            pl.BlockSpec((1, HW, C), lambda b: (b, 0, 0)),        # x (per batch)
            pl.BlockSpec((36, C, C), lambda b: (0, 0, 0)),        # weights (resident)
            pl.BlockSpec((4, 1, C), lambda b: (0, 0, 0)),         # biases (resident)
        ],
        out_specs=pl.BlockSpec((1, HW, C), lambda b: (b, 0, 0)),
        out_shape=jax.ShapeDtypeStruct((B, HW, C), jnp.float32),
        scratch_shapes=[pltpu.VMEM((HW + 2 * MARGIN, C), jnp.bfloat16)],
        compiler_params=pltpu.CompilerParams(
            dimension_semantics=("parallel",),        # both TCs on v7x
            vmem_limit_bytes=48 * 1024 * 1024,        # fits v7x 64 MiB physical VMEM
        ),
    )(x_flat, w_all, b_all)


def init_dblock_params(key, channel):
    """Deterministic synthetic weights; biases zeroed (as in Dblock.__init__)."""
    params = []
    for _ in range(4):
        key, sub = jax.random.split(key)
        fan_in = channel * 9
        w = jax.random.normal(sub, (3, 3, channel, channel), jnp.float32) \
            * (1.0 / jnp.sqrt(fan_in))                  # HWIO
        b = jnp.zeros((channel,), jnp.float32)
        params.append((w, b))
    return params


@jax.jit
def dblock_forward(x_nchw, params):
    B, C, H, W = x_nchw.shape
    x_flat = jnp.transpose(x_nchw, (0, 2, 3, 1)).reshape(B, H * W, C)   # NCHW->NHWC->flat
    # (kh, kw, ci, co) -> (tap, ci, co), stacked over the 4 layers; bf16 for the MXU.
    w_all = jnp.concatenate([w.reshape(9, C, C) for (w, _) in params],
                            axis=0).astype(jnp.bfloat16)                 # (36, C, C)
    b_all = jnp.stack([b.reshape(1, C) for (_, b) in params], axis=0)    # (4, 1, C) f32
    out_flat = _dblock_pallas(x_flat, w_all, b_all, H, W)
    return jnp.transpose(out_flat.reshape(B, H, W, C), (0, 3, 1, 2))     # NHWC -> NCHW


def dblock_reference(x_nchw, params):
    """Independent reference (lax.conv) mirroring the kernel's bf16/f32 precision."""
    cur = x_nchw.astype(jnp.bfloat16)
    out = x_nchw.astype(jnp.float32)
    for (w, b), d in zip(params, _DILATIONS):
        y = lax.conv_general_dilated(
            cur, w.astype(jnp.bfloat16),
            window_strides=(1, 1), padding=((d, d), (d, d)),
            rhs_dilation=(d, d),
            dimension_numbers=('NCHW', 'HWIO', 'NCHW'),
            preferred_element_type=jnp.float32)
        y = jnp.maximum(y + b.reshape(1, -1, 1, 1), 0.0)
        out = out + y
        cur = y.astype(jnp.bfloat16)
    return out


if __name__ == "__main__":
    key = jax.random.PRNGKey(0)
    kx, kp = jax.random.split(key)
    B, C, H, W = 2, 4, 16, 16
    x = jax.random.normal(kx, (B, C, H, W), jnp.float32)
    params = init_dblock_params(kp, C)

    out = dblock_forward(x, params)
    jax.block_until_ready(out)

    assert out.shape == x.shape
    ref = dblock_reference(x, params)
    err = float(jnp.max(jnp.abs(out - ref)))
    assert jnp.allclose(out, ref, atol=3e-2, rtol=3e-2), f"max abs err {err}"

    print("KERNEL_OK")
</pallas_src>

<mosaic_0001>
module attributes {stable_mosaic.version = 11 : i64} {
  func.func @_dblock_fused_kernel(%arg0: i32, %arg1: memref<1x256x4xf32, #tpu.memory_space<vmem>>, %arg2: memref<36x4x4xbf16, #tpu.memory_space<vmem>>, %arg3: memref<4x1x4xf32, #tpu.memory_space<vmem>>, %arg4: memref<1x256x4xf32, #tpu.memory_space<vmem>>, %arg5: memref<528x4xbf16, #tpu.memory_space<vmem>>) attributes {dimension_semantics = [#tpu.dimension_semantics<parallel>], iteration_bounds = array<i64: 2>, scalar_prefetch = 0 : i64, scratch_operands = 1 : i64, tpu.core_type = #tpu.core_type<tc>, window_params = [{transform_indices = @transform_0, window_bounds = array<i64: 1, 256, 4>}, {pipeline_mode = #tpu.pipeline_mode<synchronous>, transform_indices = @transform_1, window_bounds = array<i64: 36, 4, 4>}, {pipeline_mode = #tpu.pipeline_mode<synchronous>, transform_indices = @transform_2, window_bounds = array<i64: 4, 1, 4>}, {transform_indices = @transform_3, window_bounds = array<i64: 1, 256, 4>}]} {
    %cst = arith.constant 0.000000e+00 : bf16
    %0 = vector.broadcast %cst : bf16 to vector<136x4xbf16>
    %c0 = arith.constant 0 : index
    %c0_0 = arith.constant 0 : index
    %1 = vector.load %arg5[%c0, %c0_0] : memref<528x4xbf16, #tpu.memory_space<vmem>>, vector<136x4xbf16>
    tpu.vector_store %arg5[%c0, %c0_0], %0 {strides = array<i32>} : memref<528x4xbf16, #tpu.memory_space<vmem>>, vector<136x4xbf16>,
    %cst_1 = arith.constant 0.000000e+00 : bf16
    %2 = vector.broadcast %cst_1 : bf16 to vector<136x4xbf16>
    %c392 = arith.constant 392 : index
    %c0_2 = arith.constant 0 : index
    %3 = vector.load %arg5[%c392, %c0_2] : memref<528x4xbf16, #tpu.memory_space<vmem>>, vector<136x4xbf16>
    tpu.vector_store %arg5[%c392, %c0_2], %2 {strides = array<i32>} : memref<528x4xbf16, #tpu.memory_space<vmem>>, vector<136x4xbf16>,
    %c0_3 = arith.constant 0 : index
    %c0_4 = arith.constant 0 : index
    %c0_5 = arith.constant 0 : index
    %4 = vector.load %arg1[%c0_3, %c0_4, %c0_5] : memref<1x256x4xf32, #tpu.memory_space<vmem>>, vector<1x256x4xf32>
    %5 = vector.shape_cast %4 : vector<1x256x4xf32> to vector<256x4xf32>
    %6 = arith.truncf %5 : vector<256x4xf32> to vector<256x4xbf16>
    %c136 = arith.constant 136 : index
    %c0_6 = arith.constant 0 : index
    %7 = vector.load %arg5[%c136, %c0_6] : memref<528x4xbf16, #tpu.memory_space<vmem>>, vector<256x4xbf16>
    tpu.vector_store %arg5[%c136, %c0_6], %6 {strides = array<i32>} : memref<528x4xbf16, #tpu.memory_space<vmem>>, vector<256x4xbf16>,
    %8 = tpu.iota {dimensions = array<i32: 0>} : vector<256x1xi32>
    %c16_i32 = arith.constant 16 : i32
    %c0_i32 = arith.constant 0 : i32
    %9 = arith.cmpi eq, %c16_i32, %c0_i32 : i32
    %c1_i32 = arith.constant 1 : i32
    %10 = arith.select %9, %c1_i32, %c16_i32 : i32
    %11 = vector.broadcast %10 : i32 to vector<256x1xi32>
    %12 = arith.remsi %8, %11 : vector<256x1xi32>
    %c0_i32_7 = arith.constant 0 : i32
    %13 = vector.broadcast %c0_i32_7 : i32 to vector<256x1xi32>
    %14 = arith.cmpi ne, %12, %13 : vector<256x1xi32>
    %c0_i32_8 = arith.constant 0 : i32
    %15 = vector.broadcast %c0_i32_8 : i32 to vector<256x1xi32>
    %16 = arith.cmpi slt, %12, %15 : vector<256x1xi32>
    %c0_i32_9 = arith.constant 0 : i32
    %17 = arith.cmpi slt, %10, %c0_i32_9 : i32
    %18 = vector.broadcast %17 : i1 to vector<256x1xi1>
    %19 = vector.broadcast %18 : vector<256x1xi1> to vector<256x1xi1>
    %20 = arith.xori %16, %19 : vector<256x1xi1>
    %21 = arith.andi %20, %14 : vector<256x1xi1>
    %22 = vector.broadcast %10 : i32 to vector<256x1xi32>
    %23 = arith.addi %12, %22 : vector<256x1xi32>
    %24 = arith.select %21, %23, %12 : vector<256x1xi1>, vector<256x1xi32>
    %c0_10 = arith.constant 0 : index
    %c0_11 = arith.constant 0 : index
    %c0_12 = arith.constant 0 : index
    %25 = vector.load %arg3[%c0_10, %c0_11, %c0_12] : memref<4x1x4xf32, #tpu.memory_space<vmem>>, vector<1x1x4xf32>
    %26 = vector.shape_cast %25 : vector<1x1x4xf32> to vector<1x4xf32>
    %27 = vector.shape_cast %26 : vector<1x4xf32> to vector<1x4xf32>
    %28 = vector.broadcast %27 : vector<1x4xf32> to vector<256x4xf32>
    %c119 = arith.constant 119 : index
    %c0_13 = arith.constant 0 : index
    %29 = vector.load %arg5[%c119, %c0_13] : memref<528x4xbf16, #tpu.memory_space<vmem>>, vector<256x4xbf16>
    %c0_14 = arith.constant 0 : index
    %c0_15 = arith.constant 0 : index
    %c0_16 = arith.constant 0 : index
    %30 = vector.load %arg2[%c0_14, %c0_15, %c0_16] : memref<36x4x4xbf16, #tpu.memory_space<vmem>>, vector<1x4x4xbf16>
    %31 = vector.shape_cast %30 : vector<1x4x4xbf16> to vector<4x4xbf16>
    %cst_17 = arith.constant dense<0.000000e+00> : vector<256x4xf32>
    %32 = tpu.matmul %29, %31, %cst_17 {dimension_numbers = #tpu.dot_dimension_numbers<[1], [0], [0], [1], [0, 0, 1, 1], [], []>} : vector<256x4xbf16>, vector<4x4xbf16>, vector<256x4xf32> -> vector<256x4xf32>
    %c135 = arith.constant 135 : index
    %c0_18 = arith.constant 0 : index
    %33 = vector.load %arg5[%c135, %c0_18] : memref<528x4xbf16, #tpu.memory_space<vmem>>, vector<256x4xbf16>
    %c3 = arith.constant 3 : index
    %c0_19 = arith.constant 0 : index
    %c0_20 = arith.constant 0 : index
    %34 = vector.load %arg2[%c3, %c0_19, %c0_20] : memref<36x4x4xbf16, #tpu.memory_space<vmem>>, vector<1x4x4xbf16>
    %35 = vector.shape_cast %34 : vector<1x4x4xbf16> to vector<4x4xbf16>
    %cst_21 = arith.constant dense<0.000000e+00> : vector<256x4xf32>
    %36 = tpu.matmul %33, %35, %cst_21 {dimension_numbers = #tpu.dot_dimension_numbers<[1], [0], [0], [1], [0, 0, 1, 1], [], []>} : vector<256x4xbf16>, vector<4x4xbf16>, vector<256x4xf32> -> vector<256x4xf32>
    %37 = arith.addf %32, %36 : vector<256x4xf32>
    %c151 = arith.constant 151 : index
    %c0_22 = arith.constant 0 : index
    %38 = vector.load %arg5[%c151, %c0_22] : memref<528x4xbf16, #tpu.memory_space<vmem>>, vector<256x4xbf16>
    %c6 = arith.constant 6 : index
    %c0_23 = arith.constant 0 : index
    %c0_24 = arith.constant 0 : index
    %39 = vector.load %arg2[%c6, %c0_23, %c0_24] : memref<36x4x4xbf16, #tpu.memory_space<vmem>>, vector<1x4x4xbf16>
    %40 = vector.shape_cast %39 : vector<1x4x4xbf16> to vector<4x4xbf16>
    %cst_25 = arith.constant dense<0.000000e+00> : vector<256x4xf32>
    %41 = tpu.matmul %38, %40, %cst_25 {dimension_numbers = #tpu.dot_dimension_numbers<[1], [0], [0], [1], [0, 0, 1, 1], [], []>} : vector<256x4xbf16>, vector<4x4xbf16>, vector<256x4xf32> -> vector<256x4xf32>
    %42 = arith.addf %37, %41 : vector<256x4xf32>
    %c1_i32_26 = arith.constant 1 : i32
    %43 = vector.broadcast %c1_i32_26 : i32 to vector<256x1xi32>
    %44 = arith.cmpi sge, %24, %43 : vector<256x1xi32>
    %cst_27 = arith.constant 0.000000e+00 : f32
    %45 = vector.shape_cast %44 : vector<256x1xi1> to vector<256x1xi1>
    %46 = vector.broadcast %45 : vector<256x1xi1> to vector<256x4xi1>
    %47 = vector.broadcast %cst_27 : f32 to vector<256x4xf32>
    %48 = arith.select %46, %42, %47 : vector<256x4xi1>, vector<256x4xf32>
    %49 = arith.addf %28, %48 : vector<256x4xf32>
    %c120 = arith.constant 120 : index
    %c0_28 = arith.constant 0 : index
    %50 = vector.load %arg5[%c120, %c0_28] : memref<528x4xbf16, #tpu.memory_space<vmem>>, vector<256x4xbf16>
    %c1 = arith.constant 1 : index
    %c0_29 = arith.constant 0 : index
    %c0_30 = arith.constant 0 : index
    %51 = vector.load %arg2[%c1, %c0_29, %c0_30] : memref<36x4x4xbf16, #tpu.memory_space<vmem>>, vector<1x4x4xbf16>
    %52 = vector.shape_cast %51 : vector<1x4x4xbf16> to vector<4x4xbf16>
    %cst_31 = arith.constant dense<0.000000e+00> : vector<256x4xf32>
    %53 = tpu.matmul %50, %52, %cst_31 {dimension_numbers = #tpu.dot_dimension_numbers<[1], [0], [0], [1], [0, 0, 1, 1], [], []>} : vector<256x4xbf16>, vector<4x4xbf16>, vector<256x4xf32> -> vector<256x4xf32>
    %c136_32 = arith.constant 136 : index
    %c0_33 = arith.constant 0 : index
    %54 = vector.load %arg5[%c136_32, %c0_33] : memref<528x4xbf16, #tpu.memory_space<vmem>>, vector<256x4xbf16>
    %c4 = arith.constant 4 : index
    %c0_34 = arith.constant 0 : index
    %c0_35 = arith.constant 0 : index
    %55 = vector.load %arg2[%c4, %c0_34, %c0_35] : memref<36x4x4xbf16, #tpu.memory_space<vmem>>, vector<1x4x4xbf16>
    %56 = vector.shape_cast %55 : vector<1x4x4xbf16> to vector<4x4xbf16>
    %cst_36 = arith.constant dense<0.000000e+00> : vector<256x4xf32>
    %57 = tpu.matmul %54, %56, %cst_36 {dimension_numbers = #tpu.dot_dimension_numbers<[1], [0], [0], [1], [0, 0, 1, 1], [], []>} : vector<256x4xbf16>, vector<4x4xbf16>, vector<256x4xf32> -> vector<256x4xf32>
    %58 = arith.addf %53, %57 : vector<256x4xf32>
    %c152 = arith.constant 152 : index
    %c0_37 = arith.constant 0 : index
    %59 = vector.load %arg5[%c152, %c0_37] : memref<528x4xbf16, #tpu.memory_space<vmem>>, vector<256x4xbf16>
    %c7 = arith.constant 7 : index
    %c0_38 = arith.constant 0 : index
    %c0_39 = arith.constant 0 : index
    %60 = vector.load %arg2[%c7, %c0_38, %c0_39] : memref<36x4x4xbf16, #tpu.memory_space<vmem>>, vector<1x4x4xbf16>
    %61 = vector.shape_cast %60 : vector<1x4x4xbf16> to vector<4x4xbf16>
    %cst_40 = arith.constant dense<0.000000e+00> : vector<256x4xf32>
    %62 = tpu.matmul %59, %61, %cst_40 {dimension_numbers = #tpu.dot_dimension_numbers<[1], [0], [0], [1], [0, 0, 1, 1], [], []>} : vector<256x4xbf16>, vector<4x4xbf16>, vector<256x4xf32> -> vector<256x4xf32>
    %63 = arith.addf %58, %62 : vector<256x4xf32>
    %64 = arith.addf %49, %63 : vector<256x4xf32>
    %c121 = arith.constant 121 : index
    %c0_41 = arith.constant 0 : index
    %65 = vector.load %arg5[%c121, %c0_41] : memref<528x4xbf16, #tpu.memory_space<vmem>>, vector<256x4xbf16>
    %c2 = arith.constant 2 : index
    %c0_42 = arith.constant 0 : index
    %c0_43 = arith.constant 0 : index
    %66 = vector.load %arg2[%c2, %c0_42, %c0_43] : memref<36x4x4xbf16, #tpu.memory_space<vmem>>, vector<1x4x4xbf16>
    %67 = vector.shape_cast %66 : vector<1x4x4xbf16> to vector<4x4xbf16>
    %cst_44 = arith.constant dense<0.000000e+00> : vector<256x4xf32>
    %68 = tpu.matmul %65, %67, %cst_44 {dimension_numbers = #tpu.dot_dimension_numbers<[1], [0], [0], [1], [0, 0, 1, 1], [], []>} : vector<256x4xbf16>, vector<4x4xbf16>, vector<256x4xf32> -> vector<256x4xf32>
    %c137 = arith.constant 137 : index
    %c0_45 = arith.constant 0 : index
    %69 = vector.load %arg5[%c137, %c0_45] : memref<528x4xbf16, #tpu.memory_space<vmem>>, vector<256x4xbf16>
    %c5 = arith.constant 5 : index
    %c0_46 = arith.constant 0 : index
    %c0_47 = arith.constant 0 : index
    %70 = vector.load %arg2[%c5, %c0_46, %c0_47] : memref<36x4x4xbf16, #tpu.memory_space<vmem>>, vector<1x4x4xbf16>
    %71 = vector.shape_cast %70 : vector<1x4x4xbf16> to vector<4x4xbf16>
    %cst_48 = arith.constant dense<0.000000e+00> : vector<256x4xf32>
    %72 = tpu.matmul %69, %71, %cst_48 {dimension_numbers = #tpu.dot_dimension_numbers<[1], [0], [0], [1], [0, 0, 1, 1], [], []>} : vector<256x4xbf16>, vector<4x4xbf16>, vector<256x4xf32> -> vector<256x4xf32>
    %73 = arith.addf %68, %72 : vector<256x4xf32>
    %c153 = arith.constant 153 : index
    %c0_49 = arith.constant 0 : index
    %74 = vector.load %arg5[%c153, %c0_49] : memref<528x4xbf16, #tpu.memory_space<vmem>>, vector<256x4xbf16>
    %c8 = arith.constant 8 : index
    %c0_50 = arith.constant 0 : index
    %c0_51 = arith.constant 0 : index
    %75 = vector.load %arg2[%c8, %c0_50, %c0_51] : memref<36x4x4xbf16, #tpu.memory_space<vmem>>, vector<1x4x4xbf16>
    %76 = vector.shape_cast %75 : vector<1x4x4xbf16> to vector<4x4xbf16>
    %cst_52 = arith.constant dense<0.000000e+00> : vector<256x4xf32>
    %77 = tpu.matmul %74, %76, %cst_52 {dimension_numbers = #tpu.dot_dimension_numbers<[1], [0], [0], [1], [0, 0, 1, 1], [], []>} : vector<256x4xbf16>, vector<4x4xbf16>, vector<256x4xf32> -> vector<256x4xf32>
    %78 = arith.addf %73, %77 : vector<256x4xf32>
    %c15_i32 = arith.constant 15 : i32
    %79 = vector.broadcast %c15_i32 : i32 to vector<256x1xi32>
    %80 = arith.cmpi slt, %24, %79 : vector<256x1xi32>
    %cst_53 = arith.constant 0.000000e+00 : f32
    %81 = vector.shape_cast %80 : vector<256x1xi1> to vector<256x1xi1>
    %82 = vector.broadcast %81 : vector<256x1xi1> to vector<256x4xi1>
    %83 = vector.broadcast %cst_53 : f32 to vector<256x4xf32>
    %84 = arith.select %82, %78, %83 : vector<256x4xi1>, vector<256x4xf32>
    %85 = arith.addf %64, %84 : vector<256x4xf32>
    %cst_54 = arith.constant 0.000000e+00 : f32
    %86 = vector.broadcast %cst_54 : f32 to vector<256x4xf32>
    %87 = arith.maximumf %85, %86 : vector<256x4xf32>
    %88 = arith.addf %5, %87 : vector<256x4xf32>
    %89 = arith.truncf %87 : vector<256x4xf32> to vector<256x4xbf16>
    %c136_55 = arith.constant 136 : index
    %c0_56 = arith.constant 0 : index
    %90 = vector.load %arg5[%c136_55, %c0_56] : memref<528x4xbf16, #tpu.memory_space<vmem>>, vector<256x4xbf16>
    tpu.vector_store %arg5[%c136_55, %c0_56], %89 {strides = array<i32>} : memref<528x4xbf16, #tpu.memory_space<vmem>>, vector<256x4xbf16>,
    %c1_57 = arith.constant 1 : index
    %c0_58 = arith.constant 0 : index
    %c0_59 = arith.constant 0 : index
    %91 = vector.load %arg3[%c1_57, %c0_58, %c0_59] : memref<4x1x4xf32, #tpu.memory_space<vmem>>, vector<1x1x4xf32>
    %92 = vector.shape_cast %91 : vector<1x1x4xf32> to vector<1x4xf32>
    %93 = vector.shape_cast %92 : vector<1x4xf32> to vector<1x4xf32>
    %94 = vector.broadcast %93 : vector<1x4xf32> to vector<256x4xf32>
    %c102 = arith.constant 102 : index
    %c0_60 = arith.constant 0 : index
    %95 = vector.load %arg5[%c102, %c0_60] : memref<528x4xbf16, #tpu.memory_space<vmem>>, vector<256x4xbf16>
    %c9 = arith.constant 9 : index
    %c0_61 = arith.constant 0 : index
    %c0_62 = arith.constant 0 : index
    %96 = vector.load %arg2[%c9, %c0_61, %c0_62] : memref<36x4x4xbf16, #tpu.memory_space<vmem>>, vector<1x4x4xbf16>
    %97 = vector.shape_cast %96 : vector<1x4x4xbf16> to vector<4x4xbf16>
    %cst_63 = arith.constant dense<0.000000e+00> : vector<256x4xf32>
    %98 = tpu.matmul %95, %97, %cst_63 {dimension_numbers = #tpu.dot_dimension_numbers<[1], [0], [0], [1], [0, 0, 1, 1], [], []>} : vector<256x4xbf16>, vector<4x4xbf16>, vector<256x4xf32> -> vector<256x4xf32>
    %c134 = arith.constant 134 : index
    %c0_64 = arith.constant 0 : index
    %99 = vector.load %arg5[%c134, %c0_64] : memref<528x4xbf16, #tpu.memory_space<vmem>>, vector<256x4xbf16>
    %c12 = arith.constant 12 : index
    %c0_65 = arith.constant 0 : index
    %c0_66 = arith.constant 0 : index
    %100 = vector.load %arg2[%c12, %c0_65, %c0_66] : memref<36x4x4xbf16, #tpu.memory_space<vmem>>, vector<1x4x4xbf16>
    %101 = vector.shape_cast %100 : vector<1x4x4xbf16> to vector<4x4xbf16>
    %cst_67 = arith.constant dense<0.000000e+00> : vector<256x4xf32>
    %102 = tpu.matmul %99, %101, %cst_67 {dimension_numbers = #tpu.dot_dimension_numbers<[1], [0], [0], [1], [0, 0, 1, 1], [], []>} : vector<256x4xbf16>, vector<4x4xbf16>, vector<256x4xf32> -> vector<256x4xf32>
    %103 = arith.addf %98, %102 : vector<256x4xf32>
    %c166 = arith.constant 166 : index
    %c0_68 = arith.constant 0 : index
    %104 = vector.load %arg5[%c166, %c0_68] : memref<528x4xbf16, #tpu.memory_space<vmem>>, vector<256x4xbf16>
    %c15 = arith.constant 15 : index
    %c0_69 = arith.constant 0 : index
    %c0_70 = arith.constant 0 : index
    %105 = vector.load %arg2[%c15, %c0_69, %c0_70] : memref<36x4x4xbf16, #tpu.memory_space<vmem>>, vector<1x4x4xbf16>
    %106 = vector.shape_cast %105 : vector<1x4x4xbf16> to vector<4x4xbf16>
    %cst_71 = arith.constant dense<0.000000e+00> : vector<256x4xf32>
    %107 = tpu.matmul %104, %106, %cst_71 {dimension_numbers = #tpu.dot_dimension_numbers<[1], [0], [0], [1], [0, 0, 1, 1], [], []>} : vector<256x4xbf16>, vector<4x4xbf16>, vector<256x4xf32> -> vector<256x4xf32>
    %108 = arith.addf %103, %107 : vector<256x4xf32>
    %c2_i32 = arith.constant 2 : i32
    %109 = vector.broadcast %c2_i32 : i32 to vector<256x1xi32>
    %110 = arith.cmpi sge, %24, %109 : vector<256x1xi32>
    %cst_72 = arith.constant 0.000000e+00 : f32
    %111 = vector.shape_cast %110 : vector<256x1xi1> to vector<256x1xi1>
    %112 = vector.broadcast %111 : vector<256x1xi1> to vector<256x4xi1>
    %113 = vector.broadcast %cst_72 : f32 to vector<256x4xf32>
    %114 = arith.select %112, %108, %113 : vector<256x4xi1>, vector<256x4xf32>
    %115 = arith.addf %94, %114 : vector<256x4xf32>
    %c104 = arith.constant 104 : index
    %c0_73 = arith.constant 0 : index
    %116 = vector.load %arg5[%c104, %c0_73] : memref<528x4xbf16, #tpu.memory_space<vmem>>, vector<256x4xbf16>
    %c10 = arith.constant 10 : index
    %c0_74 = arith.constant 0 : index
    %c0_75 = arith.constant 0 : index
    %117 = vector.load %arg2[%c10, %c0_74, %c0_75] : memref<36x4x4xbf16, #tpu.memory_space<vmem>>, vector<1x4x4xbf16>
    %118 = vector.shape_cast %117 : vector<1x4x4xbf16> to vector<4x4xbf16>
    %cst_76 = arith.constant dense<0.000000e+00> : vector<256x4xf32>
    %119 = tpu.matmul %116, %118, %cst_76 {dimension_numbers = #tpu.dot_dimension_numbers<[1], [0], [0], [1], [0, 0, 1, 1], [], []>} : vector<256x4xbf16>, vector<4x4xbf16>, vector<256x4xf32> -> vector<256x4xf32>
    %c136_77 = arith.constant 136 : index
    %c0_78 = arith.constant 0 : index
    %120 = vector.load %arg5[%c136_77, %c0_78] : memref<528x4xbf16, #tpu.memory_space<vmem>>, vector<256x4xbf16>
    %c13 = arith.constant 13 : index
    %c0_79 = arith.constant 0 : index
    %c0_80 = arith.constant 0 : index
    %121 = vector.load %arg2[%c13, %c0_79, %c0_80] : memref<36x4x4xbf16, #tpu.memory_space<vmem>>, vector<1x4x4xbf16>
    %122 = vector.shape_cast %121 : vector<1x4x4xbf16> to vector<4x4xbf16>
    %cst_81 = arith.constant dense<0.000000e+00> : vector<256x4xf32>
    %123 = tpu.matmul %120, %122, %cst_81 {dimension_numbers = #tpu.dot_dimension_numbers<[1], [0], [0], [1], [0, 0, 1, 1], [], []>} : vector<256x4xbf16>, vector<4x4xbf16>, vector<256x4xf32> -> vector<256x4xf32>
    %124 = arith.addf %119, %123 : vector<256x4xf32>
    %c168 = arith.constant 168 : index
    %c0_82 = arith.constant 0 : index
    %125 = vector.load %arg5[%c168, %c0_82] : memref<528x4xbf16, #tpu.memory_space<vmem>>, vector<256x4xbf16>
    %c16 = arith.constant 16 : index
    %c0_83 = arith.constant 0 : index
    %c0_84 = arith.constant 0 : index
    %126 = vector.load %arg2[%c16, %c0_83, %c0_84] : memref<36x4x4xbf16, #tpu.memory_space<vmem>>, vector<1x4x4xbf16>
    %127 = vector.shape_cast %126 : vector<1x4x4xbf16> to vector<4x4xbf16>
    %cst_85 = arith.constant dense<0.000000e+00> : vector<256x4xf32>
    %128 = tpu.matmul %125, %127, %cst_85 {dimension_numbers = #tpu.dot_dimension_numbers<[1], [0], [0], [1], [0, 0, 1, 1], [], []>} : vector<256x4xbf16>, vector<4x4xbf16>, vector<256x4xf32> -> vector<256x4xf32>
    %129 = arith.addf %124, %128 : vector<256x4xf32>
    %130 = arith.addf %115, %129 : vector<256x4xf32>
    %c106 = arith.constant 106 : index
    %c0_86 = arith.constant 0 : index
    %131 = vector.load %arg5[%c106, %c0_86] : memref<528x4xbf16, #tpu.memory_space<vmem>>, vector<256x4xbf16>
    %c11 = arith.constant 11 : index
    %c0_87 = arith.constant 0 : index
    %c0_88 = arith.constant 0 : index
    %132 = vector.load %arg2[%c11, %c0_87, %c0_88] : memref<36x4x4xbf16, #tpu.memory_space<vmem>>, vector<1x4x4xbf16>
    %133 = vector.shape_cast %132 : vector<1x4x4xbf16> to vector<4x4xbf16>
    %cst_89 = arith.constant dense<0.000000e+00> : vector<256x4xf32>
    %134 = tpu.matmul %131, %133, %cst_89 {dimension_numbers = #tpu.dot_dimension_numbers<[1], [0], [0], [1], [0, 0, 1, 1], [], []>} : vector<256x4xbf16>, vector<4x4xbf16>, vector<256x4xf32> -> vector<256x4xf32>
    %c138 = arith.constant 138 : index
    %c0_90 = arith.constant 0 : index
    %135 = vector.load %arg5[%c138, %c0_90] : memref<528x4xbf16, #tpu.memory_space<vmem>>, vector<256x4xbf16>
    %c14 = arith.constant 14 : index
    %c0_91 = arith.constant 0 : index
    %c0_92 = arith.constant 0 : index
    %136 = vector.load %arg2[%c14, %c0_91, %c0_92] : memref<36x4x4xbf16, #tpu.memory_space<vmem>>, vector<1x4x4xbf16>
    %137 = vector.shape_cast %136 : vector<1x4x4xbf16> to vector<4x4xbf16>
    %cst_93 = arith.constant dense<0.000000e+00> : vector<256x4xf32>
    %138 = tpu.matmul %135, %137, %cst_93 {dimension_numbers = #tpu.dot_dimension_numbers<[1], [0], [0], [1], [0, 0, 1, 1], [], []>} : vector<256x4xbf16>, vector<4x4xbf16>, vector<256x4xf32> -> vector<256x4xf32>
    %139 = arith.addf %134, %138 : vector<256x4xf32>
    %c170 = arith.constant 170 : index
    %c0_94 = arith.constant 0 : index
    %140 = vector.load %arg5[%c170, %c0_94] : memref<528x4xbf16, #tpu.memory_space<vmem>>, vector<256x4xbf16>
    %c17 = arith.constant 17 : index
    %c0_95 = arith.constant 0 : index
    %c0_96 = arith.constant 0 : index
    %141 = vector.load %arg2[%c17, %c0_95, %c0_96] : memref<36x4x4xbf16, #tpu.memory_space<vmem>>, vector<1x4x4xbf16>
    %142 = vector.shape_cast %141 : vector<1x4x4xbf16> to vector<4x4xbf16>
    %cst_97 = arith.constant dense<0.000000e+00> : vector<256x4xf32>
    %143 = tpu.matmul %140, %142, %cst_97 {dimension_numbers = #tpu.dot_dimension_numbers<[1], [0], [0], [1], [0, 0, 1, 1], [], []>} : vector<256x4xbf16>, vector<4x4xbf16>, vector<256x4xf32> -> vector<256x4xf32>
    %144 = arith.addf %139, %143 : vector<256x4xf32>
    %c14_i32 = arith.constant 14 : i32
    %145 = vector.broadcast %c14_i32 : i32 to vector<256x1xi32>
    %146 = arith.cmpi slt, %24, %145 : vector<256x1xi32>
    %cst_98 = arith.constant 0.000000e+00 : f32
    %147 = vector.shape_cast %146 : vector<256x1xi1> to vector<256x1xi1>
    %148 = vector.broadcast %147 : vector<256x1xi1> to vector<256x4xi1>
    %149 = vector.broadcast %cst_98 : f32 to vector<256x4xf32>
    %150 = arith.select %148, %144, %149 : vector<256x4xi1>, vector<256x4xf32>
    %151 = arith.addf %130, %150 : vector<256x4xf32>
    %cst_99 = arith.constant 0.000000e+00 : f32
    %152 = vector.broadcast %cst_99 : f32 to vector<256x4xf32>
    %153 = arith.maximumf %151, %152 : vector<256x4xf32>
    %154 = arith.addf %88, %153 : vector<256x4xf32>
    %155 = arith.truncf %153 : vector<256x4xf32> to vector<256x4xbf16>
    %c136_100 = arith.constant 136 : index
    %c0_101 = arith.constant 0 : index
    %156 = vector.load %arg5[%c136_100, %c0_101] : memref<528x4xbf16, #tpu.memory_space<vmem>>, vector<256x4xbf16>
    tpu.vector_store %arg5[%c136_100, %c0_101], %155 {strides = array<i32>} : memref<528x4xbf16, #tpu.memory_space<vmem>>, vector<256x4xbf16>,
    %c2_102 = arith.constant 2 : index
    %c0_103 = arith.constant 0 : index
    %c0_104 = arith.constant 0 : index
    %157 = vector.load %arg3[%c2_102, %c0_103, %c0_104] : memref<4x1x4xf32, #tpu.memory_space<vmem>>, vector<1x1x4xf32>
    %158 = vector.shape_cast %157 : vector<1x1x4xf32> to vector<1x4xf32>
    %159 = vector.shape_cast %158 : vector<1x4xf32> to vector<1x4xf32>
    %160 = vector.broadcast %159 : vector<1x4xf32> to vector<256x4xf32>
    %c68 = arith.constant 68 : index
    %c0_105 = arith.constant 0 : index
    %161 = vector.load %arg5[%c68, %c0_105] : memref<528x4xbf16, #tpu.memory_space<vmem>>, vector<256x4xbf16>
    %c18 = arith.constant 18 : index
    %c0_106 = arith.constant 0 : index
    %c0_107 = arith.constant 0 : index
    %162 = vector.load %arg2[%c18, %c0_106, %c0_107] : memref<36x4x4xbf16, #tpu.memory_space<vmem>>, vector<1x4x4xbf16>
    %163 = vector.shape_cast %162 : vector<1x4x4xbf16> to vector<4x4xbf16>
    %cst_108 = arith.constant dense<0.000000e+00> : vector<256x4xf32>
    %164 = tpu.matmul %161, %163, %cst_108 {dimension_numbers = #tpu.dot_dimension_numbers<[1], [0], [0], [1], [0, 0, 1, 1], [], []>} : vector<256x4xbf16>, vector<4x4xbf16>, vector<256x4xf32> -> vector<256x4xf32>
    %c132 = arith.constant 132 : index
    %c0_109 = arith.constant 0 : index
    %165 = vector.load %arg5[%c132, %c0_109] : memref<528x4xbf16, #tpu.memory_space<vmem>>, vector<256x4xbf16>
    %c21 = arith.constant 21 : index
    %c0_110 = arith.constant 0 : index
    %c0_111 = arith.constant 0 : index
    %166 = vector.load %arg2[%c21, %c0_110, %c0_111] : memref<36x4x4xbf16, #tpu.memory_space<vmem>>, vector<1x4x4xbf16>
    %167 = vector.shape_cast %166 : vector<1x4x4xbf16> to vector<4x4xbf16>
    %cst_112 = arith.constant dense<0.000000e+00> : vector<256x4xf32>
    %168 = tpu.matmul %165, %167, %cst_112 {dimension_numbers = #tpu.dot_dimension_numbers<[1], [0], [0], [1], [0, 0, 1, 1], [], []>} : vector<256x4xbf16>, vector<4x4xbf16>, vector<256x4xf32> -> vector<256x4xf32>
    %169 = arith.addf %164, %168 : vector<256x4xf32>
    %c196 = arith.constant 196 : index
    %c0_113 = arith.constant 0 : index
    %170 = vector.load %arg5[%c196, %c0_113] : memref<528x4xbf16, #tpu.memory_space<vmem>>, vector<256x4xbf16>
    %c24 = arith.constant 24 : index
    %c0_114 = arith.constant 0 : index
    %c0_115 = arith.constant 0 : index
    %171 = vector.load %arg2[%c24, %c0_114, %c0_115] : memref<36x4x4xbf16, #tpu.memory_space<vmem>>, vector<1x4x4xbf16>
    %172 = vector.shape_cast %171 : vector<1x4x4xbf16> to vector<4x4xbf16>
    %cst_116 = arith.constant dense<0.000000e+00> : vector<256x4xf32>
    %173 = tpu.matmul %170, %172, %cst_116 {dimension_numbers = #tpu.dot_dimension_numbers<[1], [0], [0], [1], [0, 0, 1, 1], [], []>} : vector<256x4xbf16>, vector<4x4xbf16>, vector<256x4xf32> -> vector<256x4xf32>
    %174 = arith.addf %169, %173 : vector<256x4xf32>
    %c4_i32 = arith.constant 4 : i32
    %175 = vector.broadcast %c4_i32 : i32 to vector<256x1xi32>
    %176 = arith.cmpi sge, %24, %175 : vector<256x1xi32>
    %cst_117 = arith.constant 0.000000e+00 : f32
    %177 = vector.shape_cast %176 : vector<256x1xi1> to vector<256x1xi1>
    %178 = vector.broadcast %177 : vector<256x1xi1> to vector<256x4xi1>
    %179 = vector.broadcast %cst_117 : f32 to vector<256x4xf32>
    %180 = arith.select %178, %174, %179 : vector<256x4xi1>, vector<256x4xf32>
    %181 = arith.addf %160, %180 : vector<256x4xf32>
    %c72 = arith.constant 72 : index
    %c0_118 = arith.constant 0 : index
    %182 = vector.load %arg5[%c72, %c0_118] : memref<528x4xbf16, #tpu.memory_space<vmem>>, vector<256x4xbf16>
    %c19 = arith.constant 19 : index
    %c0_119 = arith.constant 0 : index
    %c0_120 = arith.constant 0 : index
    %183 = vector.load %arg2[%c19, %c0_119, %c0_120] : memref<36x4x4xbf16, #tpu.memory_space<vmem>>, vector<1x4x4xbf16>
    %184 = vector.shape_cast %183 : vector<1x4x4xbf16> to vector<4x4xbf16>
    %cst_121 = arith.constant dense<0.000000e+00> : vector<256x4xf32>
    %185 = tpu.matmul %182, %184, %cst_121 {dimension_numbers = #tpu.dot_dimension_numbers<[1], [0], [0], [1], [0, 0, 1, 1], [], []>} : vector<256x4xbf16>, vector<4x4xbf16>, vector<256x4xf32> -> vector<256x4xf32>
    %c136_122 = arith.constant 136 : index
    %c0_123 = arith.constant 0 : index
    %186 = vector.load %arg5[%c136_122, %c0_123] : memref<528x4xbf16, #tpu.memory_space<vmem>>, vector<256x4xbf16>
    %c22 = arith.constant 22 : index
    %c0_124 = arith.constant 0 : index
    %c0_125 = arith.constant 0 : index
    %187 = vector.load %arg2[%c22, %c0_124, %c0_125] : memref<36x4x4xbf16, #tpu.memory_space<vmem>>, vector<1x4x4xbf16>
    %188 = vector.shape_cast %187 : vector<1x4x4xbf16> to vector<4x4xbf16>
    %cst_126 = arith.constant dense<0.000000e+00> : vector<256x4xf32>
    %189 = tpu.matmul %186, %188, %cst_126 {dimension_numbers = #tpu.dot_dimension_numbers<[1], [0], [0], [1], [0, 0, 1, 1], [], []>} : vector<256x4xbf16>, vector<4x4xbf16>, vector<256x4xf32> -> vector<256x4xf32>
    %190 = arith.addf %185, %189 : vector<256x4xf32>
    %c200 = arith.constant 200 : index
    %c0_127 = arith.constant 0 : index
    %191 = vector.load %arg5[%c200, %c0_127] : memref<528x4xbf16, #tpu.memory_space<vmem>>, vector<256x4xbf16>
    %c25 = arith.constant 25 : index
    %c0_128 = arith.constant 0 : index
    %c0_129 = arith.constant 0 : index
    %192 = vector.load %arg2[%c25, %c0_128, %c0_129] : memref<36x4x4xbf16, #tpu.memory_space<vmem>>, vector<1x4x4xbf16>
    %193 = vector.shape_cast %192 : vector<1x4x4xbf16> to vector<4x4xbf16>
    %cst_130 = arith.constant dense<0.000000e+00> : vector<256x4xf32>
    %194 = tpu.matmul %191, %193, %cst_130 {dimension_numbers = #tpu.dot_dimension_numbers<[1], [0], [0], [1], [0, 0, 1, 1], [], []>} : vector<256x4xbf16>, vector<4x4xbf16>, vector<256x4xf32> -> vector<256x4xf32>
    %195 = arith.addf %190, %194 : vector<256x4xf32>
    %196 = arith.addf %181, %195 : vector<256x4xf32>
    %c76 = arith.constant 76 : index
    %c0_131 = arith.constant 0 : index
    %197 = vector.load %arg5[%c76, %c0_131] : memref<528x4xbf16, #tpu.memory_space<vmem>>, vector<256x4xbf16>
    %c20 = arith.constant 20 : index
    %c0_132 = arith.constant 0 : index
    %c0_133 = arith.constant 0 : index
    %198 = vector.load %arg2[%c20, %c0_132, %c0_133] : memref<36x4x4xbf16, #tpu.memory_space<vmem>>, vector<1x4x4xbf16>
    %199 = vector.shape_cast %198 : vector<1x4x4xbf16> to vector<4x4xbf16>
    %cst_134 = arith.constant dense<0.000000e+00> : vector<256x4xf32>
    %200 = tpu.matmul %197, %199, %cst_134 {dimension_numbers = #tpu.dot_dimension_numbers<[1], [0], [0], [1], [0, 0, 1, 1], [], []>} : vector<256x4xbf16>, vector<4x4xbf16>, vector<256x4xf32> -> vector<256x4xf32>
    %c140 = arith.constant 140 : index
    %c0_135 = arith.constant 0 : index
    %201 = vector.load %arg5[%c140, %c0_135] : memref<528x4xbf16, #tpu.memory_space<vmem>>, vector<256x4xbf16>
    %c23 = arith.constant 23 : index
    %c0_136 = arith.constant 0 : index
    %c0_137 = arith.constant 0 : index
    %202 = vector.load %arg2[%c23, %c0_136, %c0_137] : memref<36x4x4xbf16, #tpu.memory_space<vmem>>, vector<1x4x4xbf16>
    %203 = vector.shape_cast %202 : vector<1x4x4xbf16> to vector<4x4xbf16>
    %cst_138 = arith.constant dense<0.000000e+00> : vector<256x4xf32>
    %204 = tpu.matmul %201, %203, %cst_138 {dimension_numbers = #tpu.dot_dimension_numbers<[1], [0], [0], [1], [0, 0, 1, 1], [], []>} : vector<256x4xbf16>, vector<4x4xbf16>, vector<256x4xf32> -> vector<256x4xf32>
    %205 = arith.addf %200, %204 : vector<256x4xf32>
    %c204 = arith.constant 204 : index
    %c0_139 = arith.constant 0 : index
    %206 = vector.load %arg5[%c204, %c0_139] : memref<528x4xbf16, #tpu.memory_space<vmem>>, vector<256x4xbf16>
    %c26 = arith.constant 26 : index
    %c0_140 = arith.constant 0 : index
    %c0_141 = arith.constant 0 : index
    %207 = vector.load %arg2[%c26, %c0_140, %c0_141] : memref<36x4x4xbf16, #tpu.memory_space<vmem>>, vector<1x4x4xbf16>
    %208 = vector.shape_cast %207 : vector<1x4x4xbf16> to vector<4x4xbf16>
    %cst_142 = arith.constant dense<0.000000e+00> : vector<256x4xf32>
    %209 = tpu.matmul %206, %208, %cst_142 {dimension_numbers = #tpu.dot_dimension_numbers<[1], [0], [0], [1], [0, 0, 1, 1], [], []>} : vector<256x4xbf16>, vector<4x4xbf16>, vector<256x4xf32> -> vector<256x4xf32>
    %210 = arith.addf %205, %209 : vector<256x4xf32>
    %c12_i32 = arith.constant 12 : i32
    %211 = vector.broadcast %c12_i32 : i32 to vector<256x1xi32>
    %212 = arith.cmpi slt, %24, %211 : vector<256x1xi32>
    %cst_143 = arith.constant 0.000000e+00 : f32
    %213 = vector.shape_cast %212 : vector<256x1xi1> to vector<256x1xi1>
    %214 = vector.broadcast %213 : vector<256x1xi1> to vector<256x4xi1>
    %215 = vector.broadcast %cst_143 : f32 to vector<256x4xf32>
    %216 = arith.select %214, %210, %215 : vector<256x4xi1>, vector<256x4xf32>
    %217 = arith.addf %196, %216 : vector<256x4xf32>
    %cst_144 = arith.constant 0.000000e+00 : f32
    %218 = vector.broadcast %cst_144 : f32 to vector<256x4xf32>
    %219 = arith.maximumf %217, %218 : vector<256x4xf32>
    %220 = arith.addf %154, %219 : vector<256x4xf32>
    %221 = arith.truncf %219 : vector<256x4xf32> to vector<256x4xbf16>
    %c136_145 = arith.constant 136 : index
    %c0_146 = arith.constant 0 : index
    %222 = vector.load %arg5[%c136_145, %c0_146] : memref<528x4xbf16, #tpu.memory_space<vmem>>, vector<256x4xbf16>
    tpu.vector_store %arg5[%c136_145, %c0_146], %221 {strides = array<i32>} : memref<528x4xbf16, #tpu.memory_space<vmem>>, vector<256x4xbf16>,
    %c3_147 = arith.constant 3 : index
    %c0_148 = arith.constant 0 : index
    %c0_149 = arith.constant 0 : index
    %223 = vector.load %arg3[%c3_147, %c0_148, %c0_149] : memref<4x1x4xf32, #tpu.memory_space<vmem>>, vector<1x1x4xf32>
    %224 = vector.shape_cast %223 : vector<1x1x4xf32> to vector<1x4xf32>
    %225 = vector.shape_cast %224 : vector<1x4xf32> to vector<1x4xf32>
    %226 = vector.broadcast %225 : vector<1x4xf32> to vector<256x4xf32>
    %c0_150 = arith.constant 0 : index
    %c0_151 = arith.constant 0 : index
    %227 = vector.load %arg5[%c0_150, %c0_151] : memref<528x4xbf16, #tpu.memory_space<vmem>>, vector<256x4xbf16>
    %c27 = arith.constant 27 : index
    %c0_152 = arith.constant 0 : index
    %c0_153 = arith.constant 0 : index
    %228 = vector.load %arg2[%c27, %c0_152, %c0_153] : memref<36x4x4xbf16, #tpu.memory_space<vmem>>, vector<1x4x4xbf16>
    %229 = vector.shape_cast %228 : vector<1x4x4xbf16> to vector<4x4xbf16>
    %cst_154 = arith.constant dense<0.000000e+00> : vector<256x4xf32>
    %230 = tpu.matmul %227, %229, %cst_154 {dimension_numbers = #tpu.dot_dimension_numbers<[1], [0], [0], [1], [0, 0, 1, 1], [], []>} : vector<256x4xbf16>, vector<4x4xbf16>, vector<256x4xf32> -> vector<256x4xf32>
    %c128 = arith.constant 128 : index
    %c0_155 = arith.constant 0 : index
    %231 = vector.load %arg5[%c128, %c0_155] : memref<528x4xbf16, #tpu.memory_space<vmem>>, vector<256x4xbf16>
    %c30 = arith.constant 30 : index
    %c0_156 = arith.constant 0 : index
    %c0_157 = arith.constant 0 : index
    %232 = vector.load %arg2[%c30, %c0_156, %c0_157] : memref<36x4x4xbf16, #tpu.memory_space<vmem>>, vector<1x4x4xbf16>
    %233 = vector.shape_cast %232 : vector<1x4x4xbf16> to vector<4x4xbf16>
    %cst_158 = arith.constant dense<0.000000e+00> : vector<256x4xf32>
    %234 = tpu.matmul %231, %233, %cst_158 {dimension_numbers = #tpu.dot_dimension_numbers<[1], [0], [0], [1], [0, 0, 1, 1], [], []>} : vector<256x4xbf16>, vector<4x4xbf16>, vector<256x4xf32> -> vector<256x4xf32>
    %235 = arith.addf %230, %234 : vector<256x4xf32>
    %c256 = arith.constant 256 : index
    %c0_159 = arith.constant 0 : index
    %236 = vector.load %arg5[%c256, %c0_159] : memref<528x4xbf16, #tpu.memory_space<vmem>>, vector<256x4xbf16>
    %c33 = arith.constant 33 : index
    %c0_160 = arith.constant 0 : index
    %c0_161 = arith.constant 0 : index
    %237 = vector.load %arg2[%c33, %c0_160, %c0_161] : memref<36x4x4xbf16, #tpu.memory_space<vmem>>, vector<1x4x4xbf16>
    %238 = vector.shape_cast %237 : vector<1x4x4xbf16> to vector<4x4xbf16>
    %cst_162 = arith.constant dense<0.000000e+00> : vector<256x4xf32>
    %239 = tpu.matmul %236, %238, %cst_162 {dimension_numbers = #tpu.dot_dimension_numbers<[1], [0], [0], [1], [0, 0, 1, 1], [], []>} : vector<256x4xbf16>, vector<4x4xbf16>, vector<256x4xf32> -> vector<256x4xf32>
    %240 = arith.addf %235, %239 : vector<256x4xf32>
    %c8_i32 = arith.constant 8 : i32
    %241 = vector.broadcast %c8_i32 : i32 to vector<256x1xi32>
    %242 = arith.cmpi sge, %24, %241 : vector<256x1xi32>
    %cst_163 = arith.constant 0.000000e+00 : f32
    %243 = vector.shape_cast %242 : vector<256x1xi1> to vector<256x1xi1>
    %244 = vector.broadcast %243 : vector<256x1xi1> to vector<256x4xi1>
    %245 = vector.broadcast %cst_163 : f32 to vector<256x4xf32>
    %246 = arith.select %244, %240, %245 : vector<256x4xi1>, vector<256x4xf32>
    %247 = arith.addf %226, %246 : vector<256x4xf32>
    %c8_164 = arith.constant 8 : index
    %c0_165 = arith.constant 0 : index
    %248 = vector.load %arg5[%c8_164, %c0_165] : memref<528x4xbf16, #tpu.memory_space<vmem>>, vector<256x4xbf16>
    %c28 = arith.constant 28 : index
    %c0_166 = arith.constant 0 : index
    %c0_167 = arith.constant 0 : index
    %249 = vector.load %arg2[%c28, %c0_166, %c0_167] : memref<36x4x4xbf16, #tpu.memory_space<vmem>>, vector<1x4x4xbf16>
    %250 = vector.shape_cast %249 : vector<1x4x4xbf16> to vector<4x4xbf16>
    %cst_168 = arith.constant dense<0.000000e+00> : vector<256x4xf32>
    %251 = tpu.matmul %248, %250, %cst_168 {dimension_numbers = #tpu.dot_dimension_numbers<[1], [0], [0], [1], [0, 0, 1, 1], [], []>} : vector<256x4xbf16>, vector<4x4xbf16>, vector<256x4xf32> -> vector<256x4xf32>
    %c136_169 = arith.constant 136 : index
    %c0_170 = arith.constant 0 : index
    %252 = vector.load %arg5[%c136_169, %c0_170] : memref<528x4xbf16, #tpu.memory_space<vmem>>, vector<256x4xbf16>
    %c31 = arith.constant 31 : index
    %c0_171 = arith.constant 0 : index
    %c0_172 = arith.constant 0 : index
    %253 = vector.load %arg2[%c31, %c0_171, %c0_172] : memref<36x4x4xbf16, #tpu.memory_space<vmem>>, vector<1x4x4xbf16>
    %254 = vector.shape_cast %253 : vector<1x4x4xbf16> to vector<4x4xbf16>
    %cst_173 = arith.constant dense<0.000000e+00> : vector<256x4xf32>
    %255 = tpu.matmul %252, %254, %cst_173 {dimension_numbers = #tpu.dot_dimension_numbers<[1], [0], [0], [1], [0, 0, 1, 1], [], []>} : vector<256x4xbf16>, vector<4x4xbf16>, vector<256x4xf32> -> vector<256x4xf32>
    %256 = arith.addf %251, %255 : vector<256x4xf32>
    %c264 = arith.constant 264 : index
    %c0_174 = arith.constant 0 : index
    %257 = vector.load %arg5[%c264, %c0_174] : memref<528x4xbf16, #tpu.memory_space<vmem>>, vector<256x4xbf16>
    %c34 = arith.constant 34 : index
    %c0_175 = arith.constant 0 : index
    %c0_176 = arith.constant 0 : index
    %258 = vector.load %arg2[%c34, %c0_175, %c0_176] : memref<36x4x4xbf16, #tpu.memory_space<vmem>>, vector<1x4x4xbf16>
    %259 = vector.shape_cast %258 : vector<1x4x4xbf16> to vector<4x4xbf16>
    %cst_177 = arith.constant dense<0.000000e+00> : vector<256x4xf32>
    %260 = tpu.matmul %257, %259, %cst_177 {dimension_numbers = #tpu.dot_dimension_numbers<[1], [0], [0], [1], [0, 0, 1, 1], [], []>} : vector<256x4xbf16>, vector<4x4xbf16>, vector<256x4xf32> -> vector<256x4xf32>
    %261 = arith.addf %256, %260 : vector<256x4xf32>
    %262 = arith.addf %247, %261 : vector<256x4xf32>
    %c16_178 = arith.constant 16 : index
    %c0_179 = arith.constant 0 : index
    %263 = vector.load %arg5[%c16_178, %c0_179] : memref<528x4xbf16, #tpu.memory_space<vmem>>, vector<256x4xbf16>
    %c29 = arith.constant 29 : index
    %c0_180 = arith.constant 0 : index
    %c0_181 = arith.constant 0 : index
    %264 = vector.load %arg2[%c29, %c0_180, %c0_181] : memref<36x4x4xbf16, #tpu.memory_space<vmem>>, vector<1x4x4xbf16>
    %265 = vector.shape_cast %264 : vector<1x4x4xbf16> to vector<4x4xbf16>
    %cst_182 = arith.constant dense<0.000000e+00> : vector<256x4xf32>
    %266 = tpu.matmul %263, %265, %cst_182 {dimension_numbers = #tpu.dot_dimension_numbers<[1], [0], [0], [1], [0, 0, 1, 1], [], []>} : vector<256x4xbf16>, vector<4x4xbf16>, vector<256x4xf32> -> vector<256x4xf32>
    %c144 = arith.constant 144 : index
    %c0_183 = arith.constant 0 : index
    %267 = vector.load %arg5[%c144, %c0_183] : memref<528x4xbf16, #tpu.memory_space<vmem>>, vector<256x4xbf16>
    %c32 = arith.constant 32 : index
    %c0_184 = arith.constant 0 : index
    %c0_185 = arith.constant 0 : index
    %268 = vector.load %arg2[%c32, %c0_184, %c0_185] : memref<36x4x4xbf16, #tpu.memory_space<vmem>>, vector<1x4x4xbf16>
    %269 = vector.shape_cast %268 : vector<1x4x4xbf16> to vector<4x4xbf16>
    %cst_186 = arith.constant dense<0.000000e+00> : vector<256x4xf32>
    %270 = tpu.matmul %267, %269, %cst_186 {dimension_numbers = #tpu.dot_dimension_numbers<[1], [0], [0], [1], [0, 0, 1, 1], [], []>} : vector<256x4xbf16>, vector<4x4xbf16>, vector<256x4xf32> -> vector<256x4xf32>
    %271 = arith.addf %266, %270 : vector<256x4xf32>
    %c272 = arith.constant 272 : index
    %c0_187 = arith.constant 0 : index
    %272 = vector.load %arg5[%c272, %c0_187] : memref<528x4xbf16, #tpu.memory_space<vmem>>, vector<256x4xbf16>
    %c35 = arith.constant 35 : index
    %c0_188 = arith.constant 0 : index
    %c0_189 = arith.constant 0 : index
    %273 = vector.load %arg2[%c35, %c0_188, %c0_189] : memref<36x4x4xbf16, #tpu.memory_space<vmem>>, vector<1x4x4xbf16>
    %274 = vector.shape_cast %273 : vector<1x4x4xbf16> to vector<4x4xbf16>
    %cst_190 = arith.constant dense<0.000000e+00> : vector<256x4xf32>
    %275 = tpu.matmul %272, %274, %cst_190 {dimension_numbers = #tpu.dot_dimension_numbers<[1], [0], [0], [1], [0, 0, 1, 1], [], []>} : vector<256x4xbf16>, vector<4x4xbf16>, vector<256x4xf32> -> vector<256x4xf32>
    %276 = arith.addf %271, %275 : vector<256x4xf32>
    %c8_i32_191 = arith.constant 8 : i32
    %277 = vector.broadcast %c8_i32_191 : i32 to vector<256x1xi32>
    %278 = arith.cmpi slt, %24, %277 : vector<256x1xi32>
    %cst_192 = arith.constant 0.000000e+00 : f32
    %279 = vector.shape_cast %278 : vector<256x1xi1> to vector<256x1xi1>
    %280 = vector.broadcast %279 : vector<256x1xi1> to vector<256x4xi1>
    %281 = vector.broadcast %cst_192 : f32 to vector<256x4xf32>
    %282 = arith.select %280, %276, %281 : vector<256x4xi1>, vector<256x4xf32>
    %283 = arith.addf %262, %282 : vector<256x4xf32>
    %cst_193 = arith.constant 0.000000e+00 : f32
    %284 = vector.broadcast %cst_193 : f32 to vector<256x4xf32>
    %285 = arith.maximumf %283, %284 : vector<256x4xf32>
    %286 = arith.addf %220, %285 : vector<256x4xf32>
    %c0_194 = arith.constant 0 : index
    %c0_195 = arith.constant 0 : index
    %c0_196 = arith.constant 0 : index
    %287 = vector.load %arg4[%c0_194, %c0_195, %c0_196] : memref<1x256x4xf32, #tpu.memory_space<vmem>>, vector<1x256x4xf32>
    %288 = vector.shape_cast %287 : vector<1x256x4xf32> to vector<256x4xf32>
    %289 = vector.shape_cast %286 : vector<256x4xf32> to vector<1x256x4xf32>
    tpu.vector_store %arg4[%c0_194, %c0_195, %c0_196], %289 {strides = array<i32>} : memref<1x256x4xf32, #tpu.memory_space<vmem>>, vector<1x256x4xf32>,
    return
  }
  func.func @transform_0(%arg0: i32) -> (i32, i32, i32) {
    %c0_i32 = arith.constant 0 : i32
    %c0_i32_0 = arith.constant 0 : i32
    %c0_i32_1 = arith.constant 0 : i32
    return %arg0, %c0_i32, %c0_i32_0 : i32, i32, i32
  }
  func.func @transform_1(%arg0: i32) -> (i32, i32, i32) {
    %c0_i32 = arith.constant 0 : i32
    %c0_i32_0 = arith.constant 0 : i32
    %c0_i32_1 = arith.constant 0 : i32
    %c0_i32_2 = arith.constant 0 : i32
    return %c0_i32, %c0_i32_0, %c0_i32_1 : i32, i32, i32
  }
  func.func @transform_2(%arg0: i32) -> (i32, i32, i32) {
    %c0_i32 = arith.constant 0 : i32
    %c0_i32_0 = arith.constant 0 : i32
    %c0_i32_1 = arith.constant 0 : i32
    %c0_i32_2 = arith.constant 0 : i32
    return %c0_i32, %c0_i32_0, %c0_i32_1 : i32, i32, i32
  }
  func.func @transform_3(%arg0: i32) -> (i32, i32, i32) {
    %c0_i32 = arith.constant 0 : i32
    %c0_i32_0 = arith.constant 0 : i32
    %c0_i32_1 = arith.constant 0 : i32
    return %arg0, %c0_i32, %c0_i32_0 : i32, i32, i32
  }
}

</mosaic_0001>

<bundles_post_ra>
// kernel: dblock_forward.1
= control target key start
LH: loop header
LB: loop body
LE: loop exit
PB: predicated region body
PF: predicated region fallthrough
CT: control target
= control target key end

     0   :  { %s15342_s12 = smov 0   ;;  %s19500_s0 = inlined_call_operand.vmem [shape: f32[2,256,4], index: 0, kind: input, shape index: {}]   ;;  %s19501_s1 = inlined_call_operand.vmem [shape: bf16[36,4,4], index: 1, kind: input, shape index: {}]   ;;  %s19502_s2 = inlined_call_operand.vmem [shape: f32[4,1,4], index: 2, kind: input, shape index: {}]   ;;  %s19503_s3 = inlined_call_operand.vmem [shape: f32[2,256,4], index: 3, kind: output, shape index: {}]  }
   0x1 LB: > { %s12065_s13 = sadd.s32 4294967295, %s15319_s12   ;;  %p12069_p0 = scmp.ge.s32.totalorder %s15319_s12, 1  ;;  %s15319_s12 = sphi %s15342_s12, %s13_s12  }
   0x2   : > { %p137_p1 = scmp.lt.s32.totalorder %s15319_s12, 3 }
   0x4   : > { %p138_p2 = pnand %p12069_p0, %p137_p1 }
   0x6   : > { %141 = sbr.rel (%p138_p2) target bundleno = 2331 (0x91b), region = 32 }
   0xd   : > { %v12075_v0 = vld [vmem:[%s19501_s1 + $0x6] sm:$0x3]  ;;  %vm971_vm0 = vcmask 1041408   ;;  %v12126_v1 = vld [vmem:[%s19501_s1 + $0x8] sm:$0x3]  ;;  %p161_p3 = scmp.lt.s32.totalorder %s12065_s13, 1 }
   0xe   : > { %15236 = vmatprep.subr.msk.bf16.mxu0 %vm971_vm0, %v12075_v0  ;;  %v973_v2 = vsel %vm971_vm0, %v12075_v0, 0  ;;  %15239 = vmatprep.subr.msk.bf16.mxu1 %vm971_vm0, %v12126_v1  ;;  %vm172_vm1 = vcmask 31744   ;;  %vm181_vm2 = vcmask 27648   ;;  %v15362_v3 = vld [vmem:[%s19501_s1] sm:$0x3]  ;;  %v15321_v4 = vmov 0  }
   0xf   : > { %13309 = vmatpush3.bf16.msra.mxu0 %v973_v2  ;;  %s20089_s13 = smov (!%p161_p3, %s12065_s13), 1  ;;  %182 = vst.msk [vmem:[#allocation2 + $0x40] sm:$0xf] %vm181_vm2, %v15321_v4  ;;  %vm183_vm3 = vcmask 31748   ;;  %v2016_v5 = vsel %vm971_vm0, %v12126_v1, 0  ;;  %vm257_vm4 = vcmask 1043456  }
  0x10   : > { %173 = vst.msk [vmem:[#allocation2] sm:$0xff] %vm172_vm1, %v15321_v4  ;;  %174 = vst.msk [vmem:[#allocation2 + $0x8] sm:$0xff] %vm172_vm1, %v15321_v4  ;;  %15237 = vmatprep.subr.msk.bf16.mxu0 %vm971_vm0, %v15362_v3  ;;  %13411 = vmatpush3.bf16.msra.mxu1 %v2016_v5  ;;  %v15390_v6 = vld [vmem:[%s19501_s1 + $0x2] sm:$0x3]  ;;  %s12694_s22 = sshll.u32 %s20089_s13, 8 }
  0x11   : > { %175 = vst.msk [vmem:[#allocation2 + $0x10] sm:$0xff] %vm172_vm1, %v15321_v4  ;;  %176 = vst.msk [vmem:[#allocation2 + $0x18] sm:$0xff] %vm172_vm1, %v15321_v4  ;;  %15240 = vmatprep.subr.msk.bf16.mxu1 %vm971_vm0, %v15390_v6  ;;  %s15400_s25 = scalar_lea.vmem %s19500_s0, %s12694_s22  ;;  %vm770_vm5 = vsmask.f32 4352  ;;  %vm2696_vm6 = vsmask.f32 3328  ;;  %s19306_s29 = scalar_lea.vmem %s19503_s3, %s12694_s22 }
  0x12   : > { %177 = vst.msk [vmem:[#allocation2 + $0x20] sm:$0xff] %vm172_vm1, %v15321_v4  ;;  %178 = vst.msk [vmem:[#allocation2 + $0x28] sm:$0xff] %vm172_vm1, %v15321_v4  ;;  %v193_v7 = vld [vmem:[%s15400_s25] sm:$0xff]  ;;  %v194_v8 = vld [vmem:[%s15400_s25 + $0x8] sm:$0xff] }
  0x13   : > { %179 = vst.msk [vmem:[#allocation2 + $0x30] sm:$0xff] %vm172_vm1, %v15321_v4  ;;  %180 = vst.msk [vmem:[#allocation2 + $0x38] sm:$0xff] %vm172_vm1, %v15321_v4  ;;  %v195_v9 = vld [vmem:[%s15400_s25 + $0x10] sm:$0xff]  ;;  %v196_v10 = vld [vmem:[%s15400_s25 + $0x18] sm:$0xff]  ;;  %v225_v11 = vpack.c.bf16 %v194_v8, %v193_v7 }
  0x14   : > { %185 = vst.msk [vmem:[#allocation2 + $0xc8] sm:$0xff] %vm172_vm1, %v15321_v4  ;;  %186 = vst.msk [vmem:[#allocation2 + $0xd0] sm:$0xff] %vm172_vm1, %v15321_v4  ;;  %v197_v12 = vld [vmem:[%s15400_s25 + $0x20] sm:$0xff]  ;;  %v198_v13 = vld [vmem:[%s15400_s25 + $0x28] sm:$0xff]  ;;  %v226_v14 = vpack.c.bf16 %v196_v10, %v195_v9 }
  0x15   : > { %187 = vst.msk [vmem:[#allocation2 + $0xd8] sm:$0xff] %vm172_vm1, %v15321_v4  ;;  %188 = vst.msk [vmem:[#allocation2 + $0xe0] sm:$0xff] %vm172_vm1, %v15321_v4  ;;  %v227_v15 = vpack.c.bf16 %v198_v13, %v197_v12  ;;  %v199_v16 = vld [vmem:[%s15400_s25 + $0x30] sm:$0xff]  ;;  %v200_v17 = vld [vmem:[%s15400_s25 + $0x38] sm:$0xff]  ;;  %v258_v19 = vrot.slane %v225_v11, 4 }
  0x16   : > { %189 = vst.msk [vmem:[#allocation2 + $0xe8] sm:$0xff] %vm172_vm1, %v15321_v4  ;;  %190 = vst.msk [vmem:[#allocation2 + $0xf0] sm:$0xff] %vm172_vm1, %v15321_v4  ;;  %v201_v18 = vld [vmem:[%s15400_s25 + $0x40] sm:$0xff]  ;;  %v228_v20 = vpack.c.bf16 %v200_v17, %v199_v16  ;;  %v202_v21 = vld [vmem:[%s15400_s25 + $0x48] sm:$0xff]  ;;  %v259_v24 = vrot.slane %v226_v14, 4 }
  0x17   : > { %191 = vst.msk [vmem:[#allocation2 + $0xf8] sm:$0xff] %vm172_vm1, %v15321_v4  ;;  %192 = vst.msk [vmem:[#allocation2 + $0x100] sm:$0xff] %vm172_vm1, %v15321_v4  ;;  %v203_v22 = vld [vmem:[%s15400_s25 + $0x50] sm:$0xff]  ;;  %v204_v23 = vld [vmem:[%s15400_s25 + $0x58] sm:$0xff]  ;;  %v261_v25 = vrot.slane %v227_v15, 4  ;;  %v229_v26 = vpack.c.bf16 %v202_v21, %v201_v18 }
  0x18   : > { %184 = vst.msk [vmem:[#allocation2 + $0xc0] sm:$0xf0] %vm183_vm3, %v15321_v4  ;;  %v230_v27 = vpack.c.bf16 %v204_v23, %v203_v22  ;;  %v205_v28 = vld [vmem:[%s15400_s25 + $0x60] sm:$0xff]  ;;  %v206_v29 = vld [vmem:[%s15400_s25 + $0x68] sm:$0xff]  ;;  %v207_v30 = vld [vmem:[%s15400_s25 + $0x70] sm:$0xff]  ;;  %v263_v31 = vrot.slane %v228_v20, 4  ;;  %v260_v36 = vsel %vm257_vm4, %v258_v19, %v259_v24 }
  0x19   : > { %306 = vst.msk [vmem:[#allocation2 + $0x40] sm:$0xf0] %vm183_vm3, %v258_v19  ;;  %v231_v32 = vpack.c.bf16 %v206_v29, %v205_v28  ;;  %v208_v33 = vld [vmem:[%s15400_s25 + $0x78] sm:$0xff]  ;;  %v209_v34 = vld [vmem:[%s15400_s25 + $0x80] sm:$0xff]  ;;  %v210_v35 = vld [vmem:[%s15400_s25 + $0x88] sm:$0xff]  ;;  %v262_v37 = vsel %vm257_vm4, %v259_v24, %v261_v25  ;;  %v265_v38 = vrot.slane %v229_v26, 4 }
  0x1a   : > { %v267_v39 = vrot.slane %v230_v27, 4  ;;  %v211_v40 = vld [vmem:[%s15400_s25 + $0x90] sm:$0xff]  ;;  %v212_v41 = vld [vmem:[%s15400_s25 + $0x98] sm:$0xff]  ;;  %v213_v42 = vld [vmem:[%s15400_s25 + $0xa0] sm:$0xff]  ;;  %307 = vst.msk [vmem:[#allocation2 + $0x48] sm:$0xff] %vm172_vm1, %v260_v36  ;;  %v264_v43 = vsel %vm257_vm4, %v261_v25, %v263_v31  ;;  %v232_v45 = vpack.c.bf16 %v208_v33, %v207_v30  ;;  %v233_v46 = vpack.c.bf16 %v210_v35, %v209_v34 }
  0x1b   : > { %308 = vst.msk [vmem:[#allocation2 + $0x50] sm:$0xff] %vm172_vm1, %v262_v37  ;;  %v269_v44 = vrot.slane %v231_v32, 4  ;;  %v214_v47 = vld [vmem:[%s15400_s25 + $0xa8] sm:$0xff]  ;;  %v215_v48 = vld [vmem:[%s15400_s25 + $0xb0] sm:$0xff]  ;;  %v216_v49 = vld [vmem:[%s15400_s25 + $0xb8] sm:$0xff]  ;;  %v266_v50 = vsel %vm257_vm4, %v263_v31, %v265_v38  ;;  %v234_v52 = vpack.c.bf16 %v212_v41, %v211_v40  ;;  %v1173_v37 = vsel %vm971_vm0, %v15362_v3, 0 }
  0x1c   : > { %309 = vst.msk [vmem:[#allocation2 + $0x58] sm:$0xff] %vm172_vm1, %v264_v43  ;;  %v268_v51 = vsel %vm257_vm4, %v265_v38, %v267_v39  ;;  %v235_v53 = vpack.c.bf16 %v214_v47, %v213_v42  ;;  %v217_v54 = vld [vmem:[%s15400_s25 + $0xc0] sm:$0xff]  ;;  %v218_v55 = vld [vmem:[%s15400_s25 + $0xc8] sm:$0xff]  ;;  %v219_v56 = vld [vmem:[%s15400_s25 + $0xd0] sm:$0xff]  ;;  %v271_v58 = vrot.slane %v232_v45, 4  ;;  %v273_v59 = vrot.slane %v233_v46, 4 }
  0x1d   : > { %310 = vst.msk [vmem:[#allocation2 + $0x60] sm:$0xff] %vm172_vm1, %v266_v50  ;;  %311 = vst.msk [vmem:[#allocation2 + $0x68] sm:$0xff] %vm172_vm1, %v268_v51  ;;  %v270_v57 = vsel %vm257_vm4, %v267_v39, %v269_v44  ;;  %v236_v60 = vpack.c.bf16 %v216_v49, %v215_v48  ;;  %v220_v61 = vld [vmem:[%s15400_s25 + $0xd8] sm:$0xff]  ;;  %v275_v62 = vrot.slane %v234_v52, 4  ;;  %v237_v0 = vpack.c.bf16 %v218_v55, %v217_v54  ;;  %v15516_v46 = vld [vmem:[%s19501_s1 + $0xe] sm:$0x3] }
  0x1e   : > { %312 = vst.msk [vmem:[#allocation2 + $0x70] sm:$0xff] %vm172_vm1, %v270_v57  ;;  %v277_v63 = vrot.slane %v235_v53, 4  ;;  %v238_v1 = vpack.c.bf16 %v220_v61, %v219_v56  ;;  %v272_v2 = vsel %vm257_vm4, %v269_v44, %v271_v58  ;;  %v274_v4 = vsel %vm257_vm4, %v271_v58, %v273_v59  ;;  %v15544_v57 = vld [vmem:[%s19501_s1 + $0xc] sm:$0x3] }
  0x1f   : > { %v279_v5 = vrot.slane %v236_v60, 4  ;;  %313 = vst.msk [vmem:[#allocation2 + $0x78] sm:$0xff] %vm172_vm1, %v272_v2  ;;  %314 = vst.msk [vmem:[#allocation2 + $0x80] sm:$0xff] %vm172_vm1, %v274_v4  ;;  %v276_v9 = vsel %vm257_vm4, %v273_v59, %v275_v62  ;;  %v281_v11 = vrot.slane %v237_v0, 4  ;;  %v2198_v39 = vsel %vm971_vm0, %v15390_v6, 0 }
  0x20   : > { %v765_v7 = vld [vmem:[#allocation2 + $0x40] sm:$0xf8]  ;;  %v278_v10 = vsel %vm257_vm4, %v275_v62, %v277_v63  ;;  %v15451_v12 = vrot.slane %v238_v1, 4  ;;  %315 = vst.msk [vmem:[#allocation2 + $0x88] sm:$0xff] %vm172_vm1, %v276_v9 }
  0x21   : > { %v15445_v8 = vld [vmem:[#allocation2 + $0x40] sm:$0xf0]  ;;  %v772_v13 = vshrl.u32 %v765_v7, 16  ;;  %v775_v14 = vshll.u32 %v765_v7, 16  ;;  %316 = vst.msk [vmem:[#allocation2 + $0x90] sm:$0xff] %vm172_vm1, %v278_v10  ;;  %v280_v15 = vsel %vm257_vm4, %v277_v63, %v279_v5  ;;  %v15456_v16 = vld [vmem:[#allocation2 + $0x48] sm:$0xff]  ;;  %v282_v19 = vsel %vm257_vm4, %v279_v5, %v281_v11 }
  0x22   : > { %v15458_v17 = vld [vmem:[#allocation2 + $0x50] sm:$0xff]  ;;  %v1934_v18 = vrot.slane %v15445_v8, 4  ;;  %317 = vst.msk [vmem:[#allocation2 + $0x98] sm:$0xff] %vm172_vm1, %v280_v15  ;;  %v284_v20 = vsel %vm257_vm4, %v281_v11, %v15451_v12  ;;  %v19531_v23 = vshrl.u32 %v15456_v16, 16  ;;  %v19530_v24 = vshll.u32 %v15456_v16, 16  ;;  %318 = vst.msk [vmem:[#allocation2 + $0xa0] sm:$0xff] %vm172_vm1, %v282_v19 }
  0x23   : > { %v774_v21 = vrot.slane %v772_v13, 3  ;;  %v777_v22 = vrot.slane %v775_v14, 4  ;;  %v15467_v25 = vld [vmem:[#allocation2 + $0x58] sm:$0xff]  ;;  %319 = vst.msk [vmem:[#allocation2 + $0xa8] sm:$0xff] %vm172_vm1, %v284_v20  ;;  %v19529_v26 = vshrl.u32 %v15458_v17, 16  ;;  %v19524_v27 = vshll.u32 %v15458_v17, 16 }
  0x24   : > { %v15474_v28 = vrot.slane %v15456_v16, 4  ;;  %v15477_v29 = vrot.slane %v15458_v17, 4  ;;  %v782_v31 = vrot.slane %v19531_v23, 3  ;;  %v785_v32 = vrot.slane %v19530_v24, 4  ;;  %v15484_v34 = vld [vmem:[#allocation2 + $0x60] sm:$0xff]  ;;  %v15492_v38 = vld [vmem:[#allocation2 + $0x68] sm:$0xff] }
  0x25   : > { %v778_v30 = vor.u32 %v777_v22, %v774_v21  ;;  %v19523_v33 = vshrl.u32 %v15467_v25, 16  ;;  %v791_v35 = vrot.slane %v19529_v26, 3  ;;  %v794_v36 = vrot.slane %v19524_v27, 4  ;;  %v15525_v51 = vld [vmem:[#allocation2 + $0x70] sm:$0xff]  ;;  %v221_v21 = vld [vmem:[%s15400_s25 + $0xe0] sm:$0xff]  ;;  %v222_v22 = vld [vmem:[%s15400_s25 + $0xe8] sm:$0xff] }
  0x26   : > { %v15496_v40 = vor.u32 %v785_v32, %v782_v31  ;;  %v1936_v41 = vsel %vm257_vm4, %v1934_v18, %v15474_v28  ;;  %v15503_v42 = vsel %vm257_vm4, %v15474_v28, %v15477_v29  ;;  %v19522_v3 = vshll.u32 %v15467_v25, 16  ;;  %19705 = vst [vmem:[#allocation3_spill] sm:$0xff] %v15525_v51  ;;  %v15539_v56 = vld [vmem:[#allocation2 + $0x78] sm:$0xff]  ;;  %v15594_v20 = vld [vmem:[#allocation2 + $0x80] sm:$0xff] }
  0x27   : > { %v800_v43 = vrot.slane %v19523_v33, 3  ;;  %v15507_v44 = vor.u32 %v794_v36, %v791_v35  ;;  %13412 = vmatprep.mubr.msk.bf16.mxu1 %vm172_vm1, %v1936_v41  ;;  %v19521_v6 = vshrl.u32 %v15484_v34, 16  ;;  %v19519_v45 = vshll.u32 %v15484_v34, 16  ;;  %19706 = vst [vmem:[#allocation4_spill] sm:$0xff] %v15539_v56  ;;  %19707 = vst [vmem:[#allocation5_spill] sm:$0xff] %v15594_v20  ;;  %v15603_v32 = vld [vmem:[#allocation2 + $0x88] sm:$0xff] }
  0x28   : > { %v787_v47 = vsel %vm770_vm5, %v778_v30, %v15496_v40  ;;  %13413 = vmatmul.mubr.msk.bf16.vlgmr.msra.gmra.mrb[0].mxu1 %vm172_vm1, %v15503_v42  ;;  %v1939_v48 = vrot.slane %v15467_v25, 4  ;;  %v1941_v49 = vrot.slane %v15484_v34, 4  ;;  %v19518_v50 = vshrl.u32 %v15492_v38, 16  ;;  %19708 = vst [vmem:[#allocation6_spill] sm:$0xff] %v15603_v32 }
  0x29   : > { %13310 = vmatprep.mubr.msk.bf16.mxu0 %vm172_vm1, %v787_v47  ;;  %v15531_v52 = vsel %vm770_vm5, %v15496_v40, %v15507_v44  ;;  %v803_v53 = vrot.slane %v19522_v3, 4  ;;  %v809_v54 = vrot.slane %v19521_v6, 3  ;;  %v812_v55 = vrot.slane %v19519_v45, 4  ;;  %13445 = vmatpush3.bf16.msra.mxu1 %v2198_v39 }
  0x2a   : > { %13311 = vmatmul.mubr.msk.bf16.vlgmr.msra.gmra.mrb[0].mxu0 %vm172_vm1, %v15531_v52  ;;  %v15550_v58 = vsel %vm257_vm4, %v15477_v29, %v1939_v48  ;;  %v818_v59 = vrot.slane %v19518_v50, 3  ;;  %v19517_v60 = vshll.u32 %v15492_v38, 16  ;;  %15241 = vmatprep.subr.msk.bf16.mxu1 %vm971_vm0, %v15516_v46  ;;  %v19516_v63 = vshrl.u32 %v15525_v51, 16 }
  0x2b   : > { %13343 = vmatpush3.bf16.msra.mxu0 %v1173_v37  ;;  %v804_v61 = vor.u32 %v803_v53, %v800_v43  ;;  %v813_v62 = vor.u32 %v812_v55, %v809_v54  ;;  %13416 = vmatprep.mubr.msk.bf16.mxu1 %vm172_vm1, %v15550_v58  ;;  %v19510_v0 = vshll.u32 %v15525_v51, 16  ;;  %v1943_v2 = vrot.slane %v15492_v38, 4  ;;  %v223_v53 = vld [vmem:[%s15400_s25 + $0xf0] sm:$0xff]  ;;  %v224_v54 = vld [vmem:[%s15400_s25 + $0xf8] sm:$0xff] }
  0x2c   : > { %v821_v1 = vrot.slane %v19517_v60, 4  ;;  %v19509_v4 = vshrl.u32 %v15539_v56, 16  ;;  %15238 = vmatprep.subr.msk.bf16.mxu0 %vm971_vm0, %v15544_v57  ;;  %v15572_v7 = vsel %vm257_vm4, %v1939_v48, %v1941_v49  ;;  %v827_v13 = vrot.slane %v19516_v63, 3 }
  0x2d   : > { %v15569_v5 = vsel %vm770_vm5, %v15507_v44, %v804_v61  ;;  %v15577_v10 = vsel %vm257_vm4, %v1941_v49, %v1943_v2  ;;  %v15580_v11 = vsel %vm770_vm5, %v804_v61, %v813_v62  ;;  %v830_v14 = vrot.slane %v19510_v0, 4  ;;  %v1336_v0 = vld [vmem:[#allocation2 + $0x48] sm:$0xf8] }
  0x2e   : > { %13314 = vmatprep.mubr.msk.bf16.mxu0 %vm172_vm1, %v15569_v5  ;;  %v822_v9 = vor.u32 %v821_v1, %v818_v59  ;;  %v19508_v15 = vshll.u32 %v15539_v56, 16  ;;  %v836_v19 = vrot.slane %v19509_v4, 3  ;;  %v1945_v30 = vrot.slane %v15525_v51, 4  ;;  %v15629_v1 = vld [vmem:[#allocation2 + $0x90] sm:$0xff] }
  0x2f   : > { %v1947_v35 = vrot.slane %v15539_v56, 4  ;;  %v831_v36 = vor.u32 %v830_v14, %v827_v13  ;;  %v19507_v37 = vshrl.u32 %v15594_v20, 16  ;;  %v19506_v39 = vshll.u32 %v15594_v20, 16  ;;  %19709 = vst [vmem:[#allocation7_spill] sm:$0xff] %v15629_v1 }
  0x30   : > { %13417 = vmatmul.mubr.msk.bf16.gmra.mrb[4].mxu1 %vm172_vm1, %v15572_v7  ;;  %v15590_v18 = vsel %vm770_vm5, %v813_v62, %v822_v9  ;;  %v839_v31 = vrot.slane %v19508_v15, 4  ;;  %v239_v41 = vpack.c.bf16 %v222_v22, %v221_v21  ;;  %v19505_v47 = vshrl.u32 %v15603_v32, 16 }
  0x31   : > { %13420 = vmatprep.mubr.msk.bf16.mxu1 %vm172_vm1, %v15577_v10  ;;  %v19504_v48 = vshll.u32 %v15603_v32, 16  ;;  %v15615_v49 = vsel %vm257_vm4, %v1943_v2, %v1945_v30  ;;  %v15620_v55 = vsel %vm257_vm4, %v1945_v30, %v1947_v35  ;;  %v15623_v59 = vsel %vm770_vm5, %v822_v9, %v831_v36 }
  0x32   : > { %13315 = vmatmul.mubr.msk.bf16.gmra.mrb[4].mxu0 %vm172_vm1, %v15580_v11  ;;  %v840_v43 = vor.u32 %v839_v31, %v836_v19  ;;  %v845_v61 = vrot.slane %v19507_v37, 3  ;;  %v848_v62 = vrot.slane %v19506_v39, 4  ;;  %v285_v13 = vrot.slane %v239_v41, 4  ;;  %v15640_v19 = vld [vmem:[#allocation2 + $0x98] sm:$0xff]  ;;  %v15650_v41 = vld [vmem:[#allocation2 + $0x40] sm:$0xff] }
  0x33   : > { %13318 = vmatprep.mubr.msk.bf16.mxu0 %vm172_vm1, %v15590_v18  ;;  %v854_v14 = vrot.slane %v19505_v47, 3  ;;  %v857_v9 = vrot.slane %v19504_v48, 4  ;;  %19710 = vst [vmem:[#allocation8_spill] sm:$0xff] %v15640_v19  ;;  %v240_v21 = vpack.c.bf16 %v224_v54, %v223_v53  ;;  %v1949_v22 = vrot.slane %v15594_v20, 4  ;;  %19711 = vst [vmem:[#allocation9_spill] sm:$0xff] %v15650_v41 }
  0x34   : > { %v15634_v2 = vsel %vm770_vm5, %v831_v36, %v840_v43  ;;  %v19514_v30 = vshrl.u32 %v15629_v1, 16  ;;  %v19512_v31 = vshll.u32 %v15629_v1, 16  ;;  %v1951_v36 = vrot.slane %v15603_v32, 4 }
  0x35   : > { %v849_v53 = vor.u32 %v848_v62, %v845_v61  ;;  %v19511_v54 = vshrl.u32 %v15640_v19, 16  ;;  %v286_v48 = vsel %vm257_vm4, %v15451_v12, %v285_v13  ;;  %v858_v47 = vor.u32 %v857_v9, %v854_v14  ;;  %v15677_v9 = vld [vmem:[#allocation2 + $0xa0] sm:$0xff] }
  0x36   : > { %v19515_v39 = vshll.u32 %v15640_v19, 16  ;;  %320 = vst.msk [vmem:[#allocation2 + $0xb0] sm:$0xff] %vm172_vm1, %v286_v48  ;;  %v287_v37 = vrot.slane %v240_v21, 4  ;;  %v15660_v15 = vsel %vm257_vm4, %v1947_v35, %v1949_v22  ;;  %v19513_v4 = vshrl.u32 %v15650_v41, 16  ;;  %19712 = vst [vmem:[#allocation10_spill] sm:$0xff] %v15677_v9 }
  0x37   : > { %v863_v61 = vrot.slane %v19514_v30, 3  ;;  %v866_v62 = vrot.slane %v19512_v31, 4  ;;  %v15668_v12 = vsel %vm257_vm4, %v1949_v22, %v1951_v36  ;;  %v15673_v48 = vsel %vm770_vm5, %v840_v43, %v849_v53  ;;  %v15693_v31 = vld [vmem:[#allocation2 + $0xa8] sm:$0xff] }
  0x38   : > { %13421 = vmatmul.mubr.msk.bf16.gmra.mrb[8].mxu1 %vm172_vm1, %v15615_v49  ;;  %v288_v14 = vsel %vm257_vm4, %v285_v13, %v287_v37  ;;  %322 = vst.msk [vmem:[#allocation2 + $0xc0] sm:$0xf] %vm181_vm2, %v287_v37  ;;  %v872_v35 = vrot.slane %v19511_v54, 3  ;;  %v1147_v21 = vrot.slane %v19513_v4, 3  ;;  %v19520_v22 = vshll.u32 %v15650_v41, 16  ;;  %19713 = vst [vmem:[#allocation11_spill] sm:$0xff] %v15693_v31 }
  0x39   : > { %13424 = vmatprep.mubr.msk.bf16.mxu1 %vm172_vm1, %v15620_v55  ;;  %321 = vst.msk [vmem:[#allocation2 + $0xb8] sm:$0xff] %vm172_vm1, %v288_v14  ;;  %v15686_v37 = vsel %vm770_vm5, %v849_v53, %v858_v47  ;;  %v875_v43 = vrot.slane %v19515_v39, 4  ;;  %v1356_v13 = vshrl.u32 %v1336_v0, 16  ;;  %v1359_v54 = vshll.u32 %v1336_v0, 16 }
  0x3a   : > { %13319 = vmatmul.mubr.msk.bf16.gmra.mrb[8].mxu0 %vm172_vm1, %v15623_v59  ;;  %v1953_v14 = vrot.slane %v15629_v1, 4  ;;  %v1150_v4 = vrot.slane %v19520_v22, 4  ;;  %v867_v53 = vor.u32 %v866_v62, %v863_v61  ;;  %v19528_v30 = vshrl.u32 %v15677_v9, 16 }
  0x3b   : > { %13322 = vmatprep.mubr.msk.bf16.mxu0 %vm172_vm1, %v15634_v2  ;;  %v1955_v39 = vrot.slane %v15640_v19, 4  ;;  %v19525_v0 = vshll.u32 %v15677_v9, 16  ;;  %v1358_v50 = vrot.slane %v1356_v13, 3  ;;  %v1361_v45 = vrot.slane %v1359_v54, 4 }
  0x3c   : > { %v15706_v60 = vor.u32 %v1150_v4, %v1147_v21  ;;  %v876_v22 = vor.u32 %v875_v43, %v872_v35  ;;  %v19527_v6 = vshrl.u32 %v15693_v31, 16  ;;  %v19526_v61 = vshll.u32 %v15693_v31, 16 }
  0x3d   : > { %v15704_v63 = vld [vmem:[#allocation2 + $0xb0] sm:$0xff]  ;;  %v15711_v62 = vsel %vm257_vm4, %v1951_v36, %v1953_v14  ;;  %v15719_v33 = vsel %vm257_vm4, %v1953_v14, %v1955_v39  ;;  %v15726_v21 = vsel %vm770_vm5, %v858_v47, %v867_v53  ;;  %v881_v36 = vrot.slane %v19528_v30, 3 }
  0x3e   : > { %19714 = vst [vmem:[#allocation12_spill] sm:$0xff] %v15704_v63  ;;  %v15716_v3 = vsel %vm770_vm5, %v15706_v60, %v15496_v40  ;;  %v19536_v4 = vshrl.u32 %v15704_v63, 16  ;;  %v19539_v54 = vshll.u32 %v15704_v63, 16  ;;  %v884_v43 = vrot.slane %v19525_v0, 4 }
  0x3f   : > { %v1362_v40 = vor.u32 %v1361_v45, %v1358_v50  ;;  %v15735_v13 = vsel %vm770_vm5, %v867_v53, %v876_v22  ;;  %v890_v14 = vrot.slane %v19527_v6, 3  ;;  %v893_v47 = vrot.slane %v19526_v61, 4  ;;  %v15817_v32 = vld [vmem:[#allocation2 + $0xc0] sm:$0xff] }
  0x40   : > { %13425 = vmatmul.mubr.msk.bf16.gmra.mrb[12].mxu1 %vm172_vm1, %v15660_v15  ;;  %v15723_v35 = vld [vmem:[#allocation2 + $0xb8] sm:$0xf]  ;;  %v1957_v0 = vrot.slane %v15677_v9, 4  ;;  %v1959_v45 = vrot.slane %v15693_v31, 4  ;;  %v899_v53 = vrot.slane %v19536_v4, 3  ;;  %v902_v61 = vrot.slane %v19539_v54, 4 }
  0x41   : > { %13428 = vmatprep.mubr.msk.bf16.mxu1 %vm172_vm1, %v15668_v12  ;;  %v1155_v27 = vshrl.u32 %v15723_v35, 16  ;;  %v15746_v50 = vld [vmem:[#allocation2 + $0xb8] sm:$0xff]  ;;  %v1158_v30 = vshll.u32 %v15723_v35, 16  ;;  %v885_v26 = vor.u32 %v884_v43, %v881_v36  ;;  %v15759_v24 = vsel %vm770_vm5, %v1362_v40, %v15507_v44 }
  0x42   : > { %13323 = vmatmul.mubr.msk.bf16.gmra.mrb[12].mxu0 %vm172_vm1, %v15673_v48  ;;  %19715 = vst [vmem:[#allocation13_spill] sm:$0xff] %v15746_v50  ;;  %v894_v23 = vor.u32 %v893_v47, %v890_v14  ;;  %v19543_v31 = vshrl.u32 %v15746_v50, 16  ;;  %v19542_v9 = vshll.u32 %v15746_v50, 16  ;;  %v15764_v19 = vsel %vm257_vm4, %v1955_v39, %v1957_v0 }
  0x43   : > { %13326 = vmatprep.mubr.msk.bf16.mxu0 %vm172_vm1, %v15686_v37  ;;  %v1157_v6 = vrot.slane %v1155_v27, 3  ;;  %v1160_v4 = vrot.slane %v1158_v30, 4  ;;  %v903_v27 = vor.u32 %v902_v61, %v899_v53  ;;  %v15767_v54 = vsel %vm257_vm4, %v1957_v0, %v1959_v45  ;;  %v767_v61 = vld [vmem:[#allocation2 + $0xc0] sm:$0xf] }
  0x44   : > { %v15770_v36 = vsel %vm770_vm5, %v876_v22, %v885_v26  ;;  %v15775_v44 = vsel %vm770_vm5, %v885_v26, %v894_v23  ;;  %v908_v30 = vrot.slane %v19543_v31, 3  ;;  %v911_v39 = vrot.slane %v19542_v9, 4  ;;  %v747_v22 = vld [vmem:[#allocation2 + $0x38] sm:$0xf8] }
  0x45   : > { %v1161_v1 = vor.u32 %v1160_v4, %v1157_v6  ;;  %v15787_v6 = vrot.slane %v15704_v63, 4  ;;  %v15792_v26 = vrot.slane %v15746_v50, 4  ;;  %v915_v4 = vshrl.u32 %v767_v61, 16  ;;  %v15808_v63 = vld [vmem:[#allocation2 + $0x38] sm:$0xf0] }
  0x46   : > { %v918_v43 = vshll.u32 %v767_v61, 16  ;;  %v1137_v40 = vshrl.u32 %v747_v22, 16  ;;  %v1140_v14 = vshll.u32 %v747_v22, 16  ;;  %v15806_v9 = vsel %vm770_vm5, %v894_v23, %v903_v27  ;;  %19716 = vst [vmem:[#allocation14_spill] sm:$0xff] %v15808_v63 }
  0x47   : > { %v15782_v0 = vsel %vm770_vm5, %v903_v27, %v1161_v1  ;;  %v912_v1 = vor.u32 %v911_v39, %v908_v30  ;;  %v15798_v47 = vsel %vm257_vm4, %v1959_v45, %v15787_v6  ;;  %v15803_v53 = vsel %vm257_vm4, %v15787_v6, %v15792_v26 }
  0x48   : > { %13429 = vmatmul.mubr.msk.bf16.gmra.mrb[16].mxu1 %vm172_vm1, %v15711_v62  ;;  %v917_v31 = vrot.slane %v915_v4, 3  ;;  %v920_v50 = vrot.slane %v918_v43, 4  ;;  %v1139_v45 = vrot.slane %v1137_v40, 3  ;;  %v1142_v39 = vrot.slane %v1140_v14, 4 }
  0x49   : > { %13432 = vmatprep.mubr.msk.bf16.mxu1 %vm172_vm1, %v15719_v33  ;;  %v15813_v30 = vsel %vm770_vm5, %v903_v27, %v912_v1  ;;  %v1965_v22 = vrot.slane %v767_v61, 4  ;;  %v2182_v23 = vrot.slane %v15808_v63, 4  ;;  %v2183_v4 = vrot.slane %v15650_v41, 4 }
  0x4a   : > { %13327 = vmatmul.mubr.msk.bf16.gmra.mrb[16].mxu0 %vm172_vm1, %v15726_v21  ;;  %v1490_v43 = vshrl.u32 %v15817_v32, 16  ;;  %v1493_v27 = vshll.u32 %v15817_v32, 16  ;;  %v921_v40 = vor.u32 %v920_v50, %v917_v31  ;;  %v1143_v14 = vor.u32 %v1142_v39, %v1139_v45 }
  0x4b   : > { %13330 = vmatprep.mubr.msk.bf16.mxu0 %vm172_vm1, %v15735_v13  ;;  %v1966_v63 = vsel %vm257_vm4, %v15792_v26, %v1965_v22  ;;  %v2184_v41 = vsel %vm257_vm4, %v2182_v23, %v2183_v4  ;;  %v19718_v39 = vshll.u32 %v15456_v16, 16  ;;  %v19726_v23 = vshll.u32 %v15492_v38, 16 }
  0x4c   : > { %v1492_v61 = vrot.slane %v1490_v43, 3  ;;  %v1495_v20 = vrot.slane %v1493_v27, 4  ;;  %v922_v51 = vsel %vm770_vm5, %v912_v1, %v921_v40  ;;  %v1152_v31 = vsel %vm770_vm5, %v1143_v14, %v15706_v60  ;;  %v16036_v40 = vld [vmem:[%s19501_s1 + $0x10] sm:$0x3] }
  0x4d   : > { %v2706_v22 = vrot.slane %v19718_v39, 5 }
  0x4e   : > { %v15834_v56 = vor.u32 %v1495_v20, %v1492_v61  ;;  %v19717_v20 = vshrl.u32 %v15456_v16, 16  ;;  %v12177_v16 = vld [vmem:[%s19501_s1 + $0xa] sm:$0x3] }
  0x4f   : > { %v19727_v61 = vld [vmem:[#allocation3_spill] sm:$0xff] }
  0x50   : > { %13433 = vmatmul.mubr.msk.bf16.gmra.mrb[20].mxu1 %vm172_vm1, %v15764_v19  ;;  %v15842_v50 = vsel %vm770_vm5, %v912_v1, %v15834_v56  ;;  %v2705_v45 = vrot.slane %v19717_v20, 4  ;;  %v2463_v1 = vsel %vm971_vm0, %v15516_v46, 0  ;;  %v19729_v20 = vshll.u32 %v19727_v61, 16 }
  0x51   : > { %13436 = vmatprep.mubr.msk.bf16.mxu1 %vm172_vm1, %v15767_v54 }
  0x52   : > { %13331 = vmatmul.mubr.msk.bf16.gmra.mrb[20].mxu0 %vm172_vm1, %v15770_v36  ;;  %v15853_v60 = vor.u32 %v2706_v22, %v2705_v45  ;;  %v2726_v45 = vrot.slane %v19729_v20, 5  ;;  %v19730_v22 = vld [vmem:[#allocation4_spill] sm:$0xff] }
  0x53   : > { %13334 = vmatprep.mubr.msk.bf16.mxu0 %vm172_vm1, %v15775_v44 }
  0x58   : > { %13437 = vmatmul.mubr.msk.bf16.gmra.mrb[24].mxu1 %vm172_vm1, %v15798_v47 }
  0x59   : > { %13440 = vmatprep.mubr.msk.bf16.mxu1 %vm172_vm1, %v15803_v53 }
  0x5a   : > { %13335 = vmatmul.mubr.msk.bf16.gmra.mrb[24].mxu0 %vm172_vm1, %v15806_v9 }
  0x5b   : > { %13338 = vmatprep.mubr.msk.bf16.mxu0 %vm172_vm1, %v15813_v30 }
  0x60   : > { %13441 = vmatmul.mubr.msk.bf16.gmra.mrb[28].mxu1 %vm172_vm1, %v1966_v63  ;;  %v2185_v63 = vsel %vm257_vm4, %v2183_v4, %v15474_v28  ;;  %v15910_v28 = vld [vmem:[#allocation2 + $0x48] sm:$0xf0]  ;;  %v2722_v4 = vrot.slane %v19726_v23, 5 }
  0x61   : > { %13446 = vmatprep.mubr.msk.bf16.mxu1 %vm172_vm1, %v2184_v41  ;;  %v1556_v41 = vsel %vm971_vm0, %v15544_v57, 0 }
  0x62   : > { %13339 = vmatmul.mubr.msk.bf16.gmra.mrb[28].mxu0 %vm172_vm1, %v922_v51 }
  0x63   : > { %13344 = vmatprep.mubr.msk.bf16.mxu0 %vm172_vm1, %v1152_v31  ;;  %v19728_v31 = vshrl.u32 %v19727_v61, 16 }
  0x68   : > { %13447 = vmatmul.mubr.msk.bf16.vlgmr.msra.gmra.mrb[0].mxu1 %vm172_vm1, %v2185_v63  ;;  %v19731_v63 = vshrl.u32 %v19730_v22, 16 }
  0x69   : > { %13450 = vmatprep.mubr.msk.bf16.mxu1 %vm172_vm1, %v15503_v42  ;;  %13479 = vmatpush3.bf16.msra.mxu1 %v2463_v1  ;;  %v2186_v42 = vrot.slane %v15723_v35, 4 }
  0x6a   : > { %13345 = vmatmul.mubr.msk.bf16.vlgmr.msra.gmra.mrb[0].mxu0 %vm172_vm1, %v15716_v3  ;;  %v2381_v3 = vrot.slane %v15910_v28, 4  ;;  %v2729_v1 = vrot.slane %v19731_v63, 4 }
  0x6b   : > { %13377 = vmatpush3.bf16.msra.mxu0 %v1556_v41  ;;  %13348 = vmatprep.mubr.msk.bf16.mxu0 %vm172_vm1, %v15531_v52  ;;  %v2187_v46 = vsel %vm257_vm4, %v15787_v6, %v2186_v42  ;;  %v2823_v52 = vsel %vm971_vm0, %v12177_v16, 0  ;;  %v19724_v6 = vshll.u32 %v15484_v34, 16  ;;  %v19732_v41 = vshll.u32 %v19730_v22, 16 }
  0x6c   : > { %15242 = vmatprep.subr.msk.bf16.mxu0 %vm971_vm0, %v12177_v16  ;;  %v2383_v51 = vsel %vm257_vm4, %v2381_v3, %v15477_v29  ;;  %v12176_v29 = vld [vmem:[%s19501_s1 + $0x4] sm:$0x3] }
  0x6d   : > { %v2730_v16 = vrot.slane %v19732_v41, 5 }
  0x6f   : > { %v2731_v3 = vor.u32 %v2730_v16, %v2729_v1  ;;  %v19754_v1 = vld [vmem:[#allocation13_spill] sm:$0xff] }
  0x70   : > { %13451 = vmatmul.mubr.msk.bf16.gmra.mrb[4].mxu1 %vm172_vm1, %v15550_v58  ;;  %v19755_v41 = vshrl.u32 %v19754_v1, 16 }
  0x71   : > { %13454 = vmatprep.mubr.msk.bf16.mxu1 %vm172_vm1, %v15572_v7 }
  0x72   : > { %13349 = vmatmul.mubr.msk.bf16.gmra.mrb[4].mxu0 %vm172_vm1, %v15569_v5  ;;  %v2761_v16 = vrot.slane %v19755_v41, 4 }
  0x73   : > { %13352 = vmatprep.mubr.msk.bf16.mxu0 %vm172_vm1, %v15580_v11 }
  0x78   : > { %13455 = vmatmul.mubr.msk.bf16.gmra.mrb[8].mxu1 %vm172_vm1, %v15577_v10 }
  0x79   : > { %13458 = vmatprep.mubr.msk.bf16.mxu1 %vm172_vm1, %v15615_v49 }
  0x7a   : > { %13353 = vmatmul.mubr.msk.bf16.gmra.mrb[8].mxu0 %vm172_vm1, %v15590_v18 }
  0x7b   : > { %13356 = vmatprep.mubr.msk.bf16.mxu0 %vm172_vm1, %v15623_v59 }
  0x80   : > { %13459 = vmatmul.mubr.msk.bf16.gmra.mrb[12].mxu1 %vm172_vm1, %v15620_v55 }
  0x81   : > { %13462 = vmatprep.mubr.msk.bf16.mxu1 %vm172_vm1, %v15660_v15 }
  0x82   : > { %13357 = vmatmul.mubr.msk.bf16.gmra.mrb[12].mxu0 %vm172_vm1, %v15634_v2 }
  0x83   : > { %13360 = vmatprep.mubr.msk.bf16.mxu0 %vm172_vm1, %v15673_v48 }
  0x88   : > { %13463 = vmatmul.mubr.msk.bf16.gmra.mrb[16].mxu1 %vm172_vm1, %v15668_v12 }
  0x89   : > { %13466 = vmatprep.mubr.msk.bf16.mxu1 %vm172_vm1, %v15711_v62 }
  0x8a   : > { %13361 = vmatmul.mubr.msk.bf16.gmra.mrb[16].mxu0 %vm172_vm1, %v15686_v37 }
  0x8b   : > { %13364 = vmatprep.mubr.msk.bf16.mxu0 %vm172_vm1, %v15726_v21 }
  0x90   : > { %13467 = vmatmul.mubr.msk.bf16.gmra.mrb[20].mxu1 %vm172_vm1, %v15719_v33 }
  0x91   : > { %13470 = vmatprep.mubr.msk.bf16.mxu1 %vm172_vm1, %v15764_v19 }
  0x92   : > { %13365 = vmatmul.mubr.msk.bf16.gmra.mrb[20].mxu0 %vm172_vm1, %v15735_v13 }
  0x93   : > { %13368 = vmatprep.mubr.msk.bf16.mxu0 %vm172_vm1, %v15770_v36 }
  0x98   : > { %13471 = vmatmul.mubr.msk.bf16.gmra.mrb[24].mxu1 %vm172_vm1, %v15767_v54 }
  0x99   : > { %13474 = vmatprep.mubr.msk.bf16.mxu1 %vm172_vm1, %v15798_v47 }
  0x9a   : > { %13369 = vmatmul.mubr.msk.bf16.gmra.mrb[24].mxu0 %vm172_vm1, %v15775_v44 }
  0x9b   : > { %13372 = vmatprep.mubr.msk.bf16.mxu0 %vm172_vm1, %v15806_v9 }
  0xa0   : > { %13475 = vmatmul.mubr.msk.bf16.gmra.mrb[28].mxu1 %vm172_vm1, %v2187_v46 }
  0xa1   : > { %13480 = vmatprep.mubr.msk.bf16.mxu1 %vm172_vm1, %v2383_v51  ;;  %v19733_v51 = vld [vmem:[#allocation5_spill] sm:$0xff] }
  0xa2   : > { %13373 = vmatmul.mubr.msk.bf16.gmra.mrb[28].mxu0 %vm172_vm1, %v15782_v0 }
  0xa3   : > { %13378 = vmatprep.mubr.msk.bf16.mxu0 %vm172_vm1, %v15759_v24  ;;  %v1352_v24 = vld [vmem:[#allocation2 + $0xc8] sm:$0xf] }
  0xa4   : > { %v1499_v57 = vshrl.u32 %v1352_v24, 16 }
  0xa8   : > { %13481 = vmatmul.mubr.msk.bf16.vlgmr.msra.gmra.mrb[0].mxu1 %vm172_vm1, %v15550_v58  ;;  %v1502_v58 = vshll.u32 %v1352_v24, 16 }
  0xa9   : > { %13484 = vmatprep.mubr.msk.bf16.mxu1 %vm172_vm1, %v15572_v7  ;;  %v2701_v7 = vshll.u32 %v15445_v8, 16 }
  0xaa   : > { %13379 = vmatmul.mubr.msk.bf16.vlgmr.msra.gmra.mrb[0].mxu0 %vm172_vm1, %v15569_v5  ;;  %v2698_v5 = vshrl.u32 %v15445_v8, 16 }
  0xab   : > { %13513 = vmatpush3.bf16.msra.mxu0 %v2823_v52  ;;  %13382 = vmatprep.mubr.msk.bf16.mxu0 %vm172_vm1, %v15580_v11  ;;  %v1501_v11 = vrot.slane %v1499_v57, 3  ;;  %v19734_v52 = vshrl.u32 %v19733_v51, 16 }
  0xac   : > { %15243 = vmatprep.subr.msk.bf16.mxu0 %vm971_vm0, %v12176_v29 }
  0xb0   : > { %13485 = vmatmul.mubr.msk.bf16.gmra.mrb[4].mxu1 %vm172_vm1, %v15577_v10 }
  0xb1   : > { %13488 = vmatprep.mubr.msk.bf16.mxu1 %vm172_vm1, %v15615_v49  ;;  %v2703_v49 = vrot.slane %v2701_v7, 5 }
  0xb2   : > { %13383 = vmatmul.mubr.msk.bf16.gmra.mrb[4].mxu0 %vm172_vm1, %v15590_v18  ;;  %v2700_v18 = vrot.slane %v2698_v5, 4 }
  0xb3   : > { %13386 = vmatprep.mubr.msk.bf16.mxu0 %vm172_vm1, %v15623_v59 }
  0xb4   : > { %v2704_v59 = vor.u32 %v2703_v49, %v2700_v18 }
  0xb8   : > { %13489 = vmatmul.mubr.msk.bf16.gmra.mrb[8].mxu1 %vm172_vm1, %v15620_v55  ;;  %v2412_v55 = vrot.slane %v1352_v24, 4  ;;  %v19735_v24 = vshll.u32 %v19733_v51, 16 }
  0xb9   : > { %13492 = vmatprep.mubr.msk.bf16.mxu1 %vm172_vm1, %v15660_v15  ;;  %v1504_v15 = vrot.slane %v1502_v58, 4  ;;  %v19736_v58 = vld [vmem:[#allocation6_spill] sm:$0xff] }
  0xba   : > { %13387 = vmatmul.mubr.msk.bf16.gmra.mrb[8].mxu0 %vm172_vm1, %v15634_v2  ;;  %v19737_v5 = vshrl.u32 %v19736_v58, 16 }
  0xbb   : > { %13390 = vmatprep.mubr.msk.bf16.mxu0 %vm172_vm1, %v15673_v48  ;;  %v1505_v8 = vor.u32 %v1504_v15, %v1501_v11  ;;  %v19720_v48 = vshll.u32 %v15458_v17, 16 }
  0xbc   : > { %v2737_v7 = vrot.slane %v19737_v5, 4  ;;  %v19757_v5 = vld [vmem:[#allocation14_spill] sm:$0xff] }
  0xc0   : > { %13493 = vmatmul.mubr.msk.bf16.gmra.mrb[12].mxu1 %vm172_vm1, %v15668_v12 }
  0xc1   : > { %13496 = vmatprep.mubr.msk.bf16.mxu1 %vm172_vm1, %v15711_v62  ;;  %v2708_v62 = vsel %vm2696_vm6, %v2704_v59, %v15853_v60 }
  0xc2   : > { %13391 = vmatmul.mubr.msk.bf16.gmra.mrb[12].mxu0 %vm172_vm1, %v15686_v37  ;;  %v1506_v37 = vsel %vm770_vm5, %v15834_v56, %v1505_v8 }
  0xc3   : > { %13394 = vmatprep.mubr.msk.bf16.mxu0 %vm172_vm1, %v15726_v21  ;;  %v19722_v21 = vshll.u32 %v15467_v25, 16 }
  0xc8   : > { %13497 = vmatmul.mubr.msk.bf16.gmra.mrb[16].mxu1 %vm172_vm1, %v15719_v33  ;;  %v2410_v33 = vrot.slane %v15817_v32, 4 }
  0xc9   : > { %13500 = vmatprep.mubr.msk.bf16.mxu1 %vm172_vm1, %v15764_v19  ;;  %v19719_v19 = vshrl.u32 %v15458_v17, 16 }
  0xca   : > { %13395 = vmatmul.mubr.msk.bf16.gmra.mrb[16].mxu0 %vm172_vm1, %v15735_v13  ;;  %v2411_v10 = vsel %vm257_vm4, %v15792_v26, %v2410_v33  ;;  %v2413_v2 = vsel %vm257_vm4, %v2410_v33, %v2412_v55  ;;  %v2714_v13 = vrot.slane %v19722_v21, 5  ;;  %v2718_v26 = vrot.slane %v19724_v6, 5  ;;  %v19739_v55 = vld [vmem:[#allocation7_spill] sm:$0xff] }
  0xcb   : > { %13398 = vmatprep.mubr.msk.bf16.mxu0 %vm172_vm1, %v15770_v36  ;;  %v2709_v12 = vrot.slane %v19719_v19, 4  ;;  %v2734_v33 = vrot.slane %v19735_v24, 5  ;;  %v19740_v8 = vshrl.u32 %v19739_v55, 16 }
  0xcd   : > { %v2741_v59 = vrot.slane %v19740_v8, 4 }
  0xd0   : > { %13501 = vmatmul.mubr.msk.bf16.gmra.mrb[20].mxu1 %vm172_vm1, %v15767_v54  ;;  %v19721_v54 = vshrl.u32 %v15467_v25, 16  ;;  %v3018_v25 = vsel %vm971_vm0, %v12176_v29, 0  ;;  %v2733_v29 = vrot.slane %v19734_v52, 4  ;;  %v2693_v52 = vld [vmem:[#allocation2 + $0xc0] sm:$0x1f] }
  0xd1   : > { %13504 = vmatprep.mubr.msk.bf16.mxu1 %vm172_vm1, %v15798_v47 }
  0xd2   : > { %13399 = vmatmul.mubr.msk.bf16.gmra.mrb[20].mxu0 %vm172_vm1, %v15775_v44  ;;  %v2713_v35 = vrot.slane %v19721_v54, 4  ;;  %v19723_v44 = vshrl.u32 %v15484_v34, 16  ;;  %v2735_v15 = vor.u32 %v2734_v33, %v2733_v29  ;;  %v2766_v33 = vshrl.u32 %v2693_v52, 16 }
  0xd3   : > { %13402 = vmatprep.mubr.msk.bf16.mxu0 %vm172_vm1, %v15806_v9  ;;  %v2710_v9 = vrot.slane %v19720_v48, 5  ;;  %v19742_v48 = vld [vmem:[#allocation8_spill] sm:$0xff] }
  0xd4   : > { %v2715_v36 = vor.u32 %v2714_v13, %v2713_v35  ;;  %v2717_v0 = vrot.slane %v19723_v44, 4  ;;  %v16081_v49 = vsel %vm2696_vm6, %v2731_v3, %v2735_v15  ;;  %v19745_v13 = vld [vmem:[#allocation10_spill] sm:$0xff] }
  0xd5   : > { %v16013_v17 = vor.u32 %v2710_v9, %v2709_v12  ;;  %v19743_v9 = vshrl.u32 %v19742_v48, 16 }
  0xd6   : > { %v2719_v34 = vor.u32 %v2718_v26, %v2717_v0  ;;  %v19747_v0 = vshll.u32 %v19745_v13, 16 }
  0xd7   : > { %v16018_v56 = vsel %vm2696_vm6, %v15853_v60, %v16013_v17  ;;  %v16027_v47 = vsel %vm2696_vm6, %v16013_v17, %v2715_v36 }
  0xd8   : > { %13505 = vmatmul.mubr.msk.bf16.gmra.mrb[24].mxu1 %vm172_vm1, %v15803_v53  ;;  %v19725_v53 = vshrl.u32 %v15492_v38, 16  ;;  %v16045_v38 = vsel %vm2696_vm6, %v2715_v36, %v2719_v34  ;;  %v19746_v36 = vshrl.u32 %v19745_v13, 16  ;;  %v2750_v6 = vrot.slane %v19747_v0, 5 }
  0xd9   : > { %13508 = vmatprep.mubr.msk.bf16.mxu1 %vm172_vm1, %v2411_v10  ;;  %v19738_v10 = vshll.u32 %v19736_v58, 16  ;;  %v2769_v58 = vshll.u32 %v2693_v52, 16 }
  0xda   : > { %13403 = vmatmul.mubr.msk.bf16.gmra.mrb[24].mxu0 %vm172_vm1, %v15813_v30  ;;  %v2721_v30 = vrot.slane %v19725_v53, 4  ;;  %v2749_v44 = vrot.slane %v19746_v36, 4  ;;  %v19748_v53 = vld [vmem:[#allocation11_spill] sm:$0xff] }
  0xdb   : > { %13406 = vmatprep.mubr.msk.bf16.mxu0 %vm172_vm1, %v15842_v50  ;;  %v2725_v50 = vrot.slane %v19728_v31, 4  ;;  %v2738_v11 = vrot.slane %v19738_v10, 5  ;;  %v2990_v10 = vshll.u32 %v19757_v5, 16 }
  0xdc   : > { %v2723_v14 = vor.u32 %v2722_v4, %v2721_v30  ;;  %v19749_v30 = vshrl.u32 %v19748_v53, 16  ;;  %v19750_v4 = vshll.u32 %v19748_v53, 16  ;;  %v3185_v53 = vshrl.u32 %v15910_v28, 16 }
  0xdd   : > { %v2727_v42 = vor.u32 %v2726_v45, %v2725_v50  ;;  %v2739_v18 = vor.u32 %v2738_v11, %v2737_v7  ;;  %v19751_v50 = vld [vmem:[#allocation12_spill] sm:$0xff]  ;;  %v2987_v7 = vshrl.u32 %v19757_v5, 16 }
  0xde   : > { %v16052_v39 = vsel %vm2696_vm6, %v2719_v34, %v2723_v14  ;;  %v2753_v23 = vrot.slane %v19749_v30, 4  ;;  %v2754_v34 = vrot.slane %v19750_v4, 5  ;;  %v19752_v20 = vshrl.u32 %v19751_v50, 16 }
  0xdf   : > { %v16063_v46 = vsel %vm2696_vm6, %v2723_v14, %v2727_v42  ;;  %v16070_v57 = vsel %vm2696_vm6, %v2727_v42, %v2731_v3  ;;  %v16088_v12 = vsel %vm2696_vm6, %v2735_v15, %v2739_v18  ;;  %v2751_v14 = vor.u32 %v2750_v6, %v2749_v44 }
  0xe0   : > { %13509 = vmatmul.mubr.msk.bf16.gmra.mrb[28].mxu1 %vm172_vm1, %v2413_v2  ;;  %v19741_v2 = vshll.u32 %v19739_v55, 16  ;;  %v2755_v61 = vor.u32 %v2754_v34, %v2753_v23  ;;  %v2757_v45 = vrot.slane %v19752_v20, 4  ;;  %v19753_v22 = vshll.u32 %v19751_v50, 16 }
  0xe1   : > { %v19756_v42 = vshll.u32 %v19754_v1, 16  ;;  %v2771_v55 = vrot.slane %v2769_v58, 5  ;;  %v2989_v8 = vrot.slane %v2987_v7, 4  ;;  %v3310_v44 = vsel %vm971_vm0, %v16036_v40, 0 }
  0xe2   : > { %13407 = vmatmul.mubr.msk.bf16.gmra.mrb[28].mxu0 %vm172_vm1, %v1506_v37  ;;  %v2742_v19 = vrot.slane %v19741_v2, 5  ;;  %v2745_v37 = vrot.slane %v19743_v9, 4  ;;  %v2758_v63 = vrot.slane %v19753_v22, 5  ;;  %v16128_v51 = vsel %vm2696_vm6, %v2751_v14, %v2755_v61  ;;  %v19758_v2 = vld [vmem:[#allocation9_spill] sm:$0xff] }
  0xe3   : > { %13514 = vmatprep.mubr.msk.bf16.mxu0 %vm172_vm1, %v2708_v62  ;;  %v19744_v62 = vshll.u32 %v19742_v48, 16  ;;  %v2762_v3 = vrot.slane %v19756_v42, 5  ;;  %v19760_v9 = vshll.u32 %v19758_v2, 16  ;;  %v3188_v30 = vshll.u32 %v15910_v28, 16 }
  0xe4   : > { %v2743_v35 = vor.u32 %v2742_v19, %v2741_v59  ;;  %v2759_v29 = vor.u32 %v2758_v63, %v2757_v45  ;;  %v2992_v59 = vrot.slane %v2990_v10, 5  ;;  %v19759_v19 = vshrl.u32 %v19758_v2, 16 }
  0xe5   : > { %v2746_v54 = vrot.slane %v19744_v62, 5  ;;  %v16134_v24 = vor.u32 %v2762_v3, %v2761_v16  ;;  %v3187_v34 = vrot.slane %v3185_v53, 4  ;;  %v323_v28 = vlaneseq }
  0xe6   : > { %v16103_v26 = vsel %vm2696_vm6, %v2739_v18, %v2743_v35  ;;  %v16139_v11 = vsel %vm2696_vm6, %v2755_v61, %v2759_v29  ;;  %v2768_v18 = vrot.slane %v2766_v33, 4  ;;  %v2994_v48 = vrot.slane %v19759_v19, 4 }
  0xe7   : > { %v2747_v21 = vor.u32 %v2746_v54, %v2745_v37  ;;  %v16143_v15 = vsel %vm2696_vm6, %v2759_v29, %v16134_v24  ;;  %v2995_v37 = vrot.slane %v19760_v9, 5  ;;  %v2993_v54 = vor.u32 %v2992_v59, %v2989_v8 }
  0xe8   : > { %v2772_v62 = vor.u32 %v2771_v55, %v2768_v18  ;;  %v16205_v22 = vshrl.u32 %v323_v28, 7 }
  0xe9   : > { %v16117_v31 = vsel %vm2696_vm6, %v2747_v21, %v2751_v14  ;;  %v3190_v14 = vrot.slane %v3188_v30, 5 }
  0xea   : > { %13515 = vmatmul.mubr.msk.bf16.vlgmr.msra.gmra.mrb[32].mxu0 %vm172_vm1, %v16018_v56  ;;  %v16215_v1 = vand.u32 15, %v16205_v22  ;;  %v328_v41 = vadd.s32 32, %v16205_v22  ;;  %v334_v9 = vadd.s32 80, %v16205_v22 }
  0xeb   : > { %13547 = vmatpush3.bf16.msra.mxu0 %v3018_v25  ;;  %13518 = vmatprep.mubr.msk.bf16.mxu0 %vm172_vm1, %v16027_v47  ;;  %v16106_v25 = vsel %vm2696_vm6, %v2743_v35, %v2747_v21  ;;  %v2996_v35 = vor.u32 %v2995_v37, %v2994_v48  ;;  %v2773_v21 = vsel %vm2696_vm6, %v16134_v24, %v2772_v62  ;;  %v332_v62 = vadd.s32 64, %v16205_v22 }
  0xec   : > { %15244 = vmatprep.subr.msk.bf16.mxu0 %vm971_vm0, %v16036_v40  ;;  %v2690_v40 = vld [vmem:[#allocation2 + $0xb8] sm:$0x1f]  ;;  %v3191_v50 = vor.u32 %v3190_v14, %v3187_v34  ;;  %19762 = vst [vmem:[#allocation4_spill] sm:$0xff] %v16215_v1  ;;  %vm1751_vm8 = vcmp.ge.s32.totalorder %v16215_v1, 1  ;;  %v16235_v18 = vand.u32 15, %v328_v41 }
  0xed   : > { %v2997_v13 = vsel %vm2696_vm6, %v2993_v54, %v2996_v35  ;;  %v2998_v36 = vsel %vm2696_vm6, %v2996_v35, %v15853_v60  ;;  %v12230_v60 = vld [vmem:[%s19501_s1 + $0x18] sm:$0x3]  ;;  %v3000_v0 = vshrl.u32 %v2690_v40, 16  ;;  %v3003_v6 = vshll.u32 %v2690_v40, 16 }
  0xee   : > { %15245 = vmatprep.subr.msk.bf16.mxu1 %vm971_vm0, %v12230_v60  ;;  %v3195_v45 = vsel %vm2696_vm6, %v3191_v50, %v16013_v17  ;;  %v326_v17 = vadd.s32 16, %v16205_v22  ;;  %19764 = vst [vmem:[#allocation6_spill] sm:$0xff] %v16235_v18  ;;  %vm1755_vm10 = vcmp.ge.s32.totalorder %v16235_v18, 1  ;;  %v336_v50 = vadd.s32 96, %v16205_v22 }
  0xef   : > { %v3002_v23 = vrot.slane %v3000_v0, 4  ;;  %v3005_v4 = vrot.slane %v3003_v6, 5  ;;  %v16259_v6 = vand.u32 15, %v332_v62 }
  0xf0   : > { %v16212_v63 = vand.u32 15, %v326_v17 }
  0xf1   : > { %v3006_v61 = vor.u32 %v3005_v4, %v3002_v23  ;;  %19766 = vst [vmem:[#allocation8_spill] sm:$0xff] %v16259_v6  ;;  %vm1759_vm12 = vcmp.ge.s32.totalorder %v16259_v6, 1 }
  0xf2   : > { %13519 = vmatmul.mubr.msk.bf16.gmra.mrb[36].mxu0 %vm172_vm1, %v16045_v38  ;;  %19761 = vst [vmem:[#allocation3_spill] sm:$0xff] %v16212_v63  ;;  %vm1753_vm7 = vcmp.ge.s32.totalorder %v16212_v63, 1 }
  0xf3   : > { %13522 = vmatprep.mubr.msk.bf16.mxu0 %vm172_vm1, %v16052_v39  ;;  %v3007_v20 = vsel %vm2696_vm6, %v2759_v29, %v3006_v61  ;;  %v338_v61 = vadd.s32 112, %v16205_v22 }
  0xfa   : > { %13523 = vmatmul.mubr.msk.bf16.gmra.mrb[40].mxu0 %vm172_vm1, %v16063_v46 }
  0xfb   : > { %13526 = vmatprep.mubr.msk.bf16.mxu0 %vm172_vm1, %v16070_v57 }
 0x102   : > { %13527 = vmatmul.mubr.msk.bf16.gmra.mrb[44].mxu0 %vm172_vm1, %v16081_v49 }
 0x103   : > { %13530 = vmatprep.mubr.msk.bf16.mxu0 %vm172_vm1, %v16088_v12 }
 0x10a   : > { %13531 = vmatmul.mubr.msk.bf16.gmra.mrb[48].mxu0 %vm172_vm1, %v16103_v26 }
 0x10b   : > { %13534 = vmatprep.mubr.msk.bf16.mxu0 %vm172_vm1, %v16106_v25 }
 0x112   : > { %13535 = vmatmul.mubr.msk.bf16.gmra.mrb[52].mxu0 %vm172_vm1, %v16117_v31 }
 0x113   : > { %13538 = vmatprep.mubr.msk.bf16.mxu0 %vm172_vm1, %v16128_v51 }
 0x11a   : > { %13539 = vmatmul.mubr.msk.bf16.gmra.mrb[56].mxu0 %vm172_vm1, %v16139_v11 }
 0x11b   : > { %13542 = vmatprep.mubr.msk.bf16.mxu0 %vm172_vm1, %v16143_v15 }
 0x122   : > { %13543 = vmatmul.mubr.msk.bf16.gmra.mrb[60].mxu0 %vm172_vm1, %v2773_v21 }
 0x123   : > { %13548 = vmatprep.mubr.msk.bf16.mxu0 %vm172_vm1, %v2997_v13 }
 0x12a   : > { %13549 = vmatmul.mubr.msk.bf16.vlgmr.msra.gmra.mrb[32].mxu0 %vm172_vm1, %v2998_v36 }
 0x12b   : > { %13581 = vmatpush3.bf16.msra.mxu0 %v3310_v44  ;;  %13552 = vmatprep.mubr.msk.bf16.mxu0 %vm172_vm1, %v16018_v56  ;;  %v3959_v56 = vsel %vm971_vm0, %v12230_v60, 0 }
 0x12c   : > { %13615 = vmatpush3.bf16.msra.mxu1 %v3959_v56  ;;  %v16255_v56 = vand.u32 15, %v334_v9 }
 0x12e   : > { %19765 = vst [vmem:[#allocation7_spill] sm:$0xff] %v16255_v56  ;;  %vm1761_vm11 = vcmp.ge.s32.totalorder %v16255_v56, 1 }
 0x132   : > { %13553 = vmatmul.mubr.msk.bf16.gmra.mrb[36].mxu0 %vm172_vm1, %v16027_v47 }
 0x133   : > { %13556 = vmatprep.mubr.msk.bf16.mxu0 %vm172_vm1, %v16045_v38 }
 0x13a   : > { %13557 = vmatmul.mubr.msk.bf16.gmra.mrb[40].mxu0 %vm172_vm1, %v16052_v39 }
 0x13b   : > { %13560 = vmatprep.mubr.msk.bf16.mxu0 %vm172_vm1, %v16063_v46 }
 0x142   : > { %13561 = vmatmul.mubr.msk.bf16.gmra.mrb[44].mxu0 %vm172_vm1, %v16070_v57 }
 0x143   : > { %13564 = vmatprep.mubr.msk.bf16.mxu0 %vm172_vm1, %v16081_v49 }
 0x14a   : > { %13565 = vmatmul.mubr.msk.bf16.gmra.mrb[48].mxu0 %vm172_vm1, %v16088_v12 }
 0x14b   : > { %13568 = vmatprep.mubr.msk.bf16.mxu0 %vm172_vm1, %v16103_v26 }
 0x152   : > { %13569 = vmatmul.mubr.msk.bf16.gmra.mrb[52].mxu0 %vm172_vm1, %v16106_v25 }
 0x153   : > { %13572 = vmatprep.mubr.msk.bf16.mxu0 %vm172_vm1, %v16117_v31 }
 0x15a   : > { %13573 = vmatmul.mubr.msk.bf16.gmra.mrb[56].mxu0 %vm172_vm1, %v16128_v51 }
 0x15b   : > { %13576 = vmatprep.mubr.msk.bf16.mxu0 %vm172_vm1, %v16139_v11 }
 0x162   : > { %13577 = vmatmul.mubr.msk.bf16.gmra.mrb[60].mxu0 %vm172_vm1, %v3007_v20 }
 0x163   : > { %13582 = vmatprep.mubr.msk.bf16.mxu0 %vm172_vm1, %v3195_v45 }
 0x16a   : > { %13583 = vmatmul.mubr.msk.bf16.vlgmr.msra.gmra.mrb[32].mxu0 %vm172_vm1, %v16027_v47 }
 0x16b   : > { %13586 = vmatprep.mubr.msk.bf16.mxu0 %vm172_vm1, %v16045_v38  ;;  %v330_v38 = vadd.s32 48, %v16205_v22 }
 0x16d   : > { %v16231_v58 = vand.u32 15, %v330_v38 }
 0x16f   : > { %19763 = vst [vmem:[#allocation5_spill] sm:$0xff] %v16231_v58  ;;  %vm1757_vm9 = vcmp.ge.s32.totalorder %v16231_v58, 1 }
 0x172   : > { %13587 = vmatmul.mubr.msk.bf16.gmra.mrb[36].mxu0 %vm172_vm1, %v16052_v39  ;;  %v16226_v39 = vld [vmem:[%s19502_s2] ss:$0 sm:$0xff] }
 0x173   : > { %13590 = vmatprep.mubr.msk.bf16.mxu0 %vm172_vm1, %v16063_v46 }
 0x17a   : > { %13591 = vmatmul.mubr.msk.bf16.gmra.mrb[40].mxu0 %vm172_vm1, %v16070_v57 }
 0x17b   : > { %v13482_v47 = vpop.f32.mrb[0].mxu1  ;;  %13594 = vmatprep.mubr.msk.bf16.mxu0 %vm172_vm1, %v16081_v49 }
 0x17c   : > { %v2499_v46 = vpop.f32.mrb[1].mxu1 }
 0x17d   : > { %v13380_v16 = vpop.f32.mrb[0].mxu0  ;;  %v13483_v57 = vpop.f32.mrb[2].mxu1 }
 0x17e   : > { %v1849_v42 = vsel %vm1753_vm7, %v13380_v16, 0.0  ;;  %v1592_v3 = vpop.f32.mrb[1].mxu0  ;;  %v2502_v52 = vpop.f32.mrb[3].mxu1  ;;  %v16279_v16 = vand.u32 15, %v338_v61 }
 0x17f   : > { %v1881_v29 = vadd.f32 %v16226_v39, %v1849_v42  ;;  %v1847_v49 = vsel %vm1751_vm8, %v1592_v3, 0.0  ;;  %v13381_v33 = vpop.f32.mrb[2].mxu0 }
 0x180   : > { %v1879_v5 = vadd.f32 %v16226_v39, %v1847_v49  ;;  %v1882_v7 = vadd.f32 %v13381_v33, %v16226_v39  ;;  %v1595_v10 = vpop.f32.mrb[3].mxu0  ;;  %19767 = vst [vmem:[#allocation10_spill] sm:$0xff] %v16279_v16  ;;  %v3181_v49 = vld [vmem:[#allocation2 + $0xc8] sm:$0x1f]  ;;  %vm1765_vm13 = vcmp.ge.s32.totalorder %v16279_v16, 1 }
 0x181   : > { %v16237_v55 = vadd.f32 %v13482_v47, %v1881_v29  ;;  %v1880_v8 = vadd.f32 %v16226_v39, %v1595_v10  ;;  %v3249_v29 = vrot.slane %v1493_v27, 5  ;;  %v3256_v27 = vshll.u32 %v3181_v49, 16 }
 0x182   : > { %v16240_v59 = vadd.f32 %v2499_v46, %v1879_v5  ;;  %v16242_v2 = vadd.f32 %v13483_v57, %v1882_v7  ;;  %13595 = vmatmul.mubr.msk.bf16.gmra.mrb[44].mxu0 %vm172_vm1, %v16088_v12  ;;  %v16281_v57 = vand.u32 15, %v336_v50 }
 0x183   : > { %v16246_v19 = vadd.f32 %v2502_v52, %v1880_v8  ;;  %v13486_v48 = vpop.f32.mrb[4].mxu1  ;;  %13598 = vmatprep.mubr.msk.bf16.mxu0 %vm172_vm1, %v16103_v26  ;;  %v3248_v52 = vrot.slane %v1490_v43, 4  ;;  %v342_v8 = vadd.s32 144, %v16205_v22  ;;  %v3253_v43 = vshrl.u32 %v3181_v49, 16 }
 0x184   : > { %v2515_v37 = vpop.f32.mrb[5].mxu1  ;;  %19768 = vst [vmem:[#allocation11_spill] sm:$0xff] %v16281_v57  ;;  %vm1763_vm14 = vcmp.ge.s32.totalorder %v16281_v57, 1  ;;  %v4783_v57 = vld [vmem:[#allocation2 + $0x30] sm:$0xf0] }
 0x185   : > { %v13384_v54 = vpop.f32.mrb[4].mxu0  ;;  %v13487_v35 = vpop.f32.mrb[6].mxu1  ;;  %v3250_v62 = vor.u32 %v3249_v29, %v3248_v52  ;;  %v5040_v56 = vrot.slane %v4783_v57, 4 }
 0x186   : > { %v1853_v21 = vsel %vm1757_vm9, %v13384_v54, 0.0  ;;  %v1608_v13 = vpop.f32.mrb[5].mxu0  ;;  %v2518_v12 = vpop.f32.mrb[7].mxu1 }
 0x187   : > { %v1885_v36 = vadd.f32 %v16226_v39, %v1853_v21  ;;  %v1851_v44 = vsel %vm1755_vm10, %v1608_v13, 0.0  ;;  %v13385_v60 = vpop.f32.mrb[6].mxu0  ;;  %v3251_v61 = vsel %vm2696_vm6, %v16134_v24, %v3250_v62  ;;  %v346_v24 = vadd.s32 176, %v16205_v22 }
 0x188   : > { %v1883_v26 = vadd.f32 %v16226_v39, %v1851_v44  ;;  %v1886_v40 = vadd.f32 %v13385_v60, %v16226_v39  ;;  %v1611_v0 = vpop.f32.mrb[7].mxu0 }
 0x189   : > { %v16261_v53 = vadd.f32 %v13486_v48, %v1885_v36  ;;  %v1884_v30 = vadd.f32 %v16226_v39, %v1611_v0 }
 0x18a   : > { %v16264_v23 = vadd.f32 %v2515_v37, %v1883_v26  ;;  %v16266_v4 = vadd.f32 %v13487_v35, %v1886_v40  ;;  %13599 = vmatmul.mubr.msk.bf16.gmra.mrb[48].mxu0 %vm172_vm1, %v16106_v25  ;;  %v340_v37 = vadd.s32 128, %v16205_v22  ;;  %v3258_v26 = vrot.slane %v3256_v27, 5 }
 0x18b   : > { %v16270_v34 = vadd.f32 %v2518_v12, %v1884_v30  ;;  %v13490_v14 = vpop.f32.mrb[8].mxu1  ;;  %13602 = vmatprep.mubr.msk.bf16.mxu0 %vm172_vm1, %v16117_v31  ;;  %v16306_v12 = vand.u32 15, %v342_v8  ;;  %v16333_v8 = vand.u32 15, %v346_v24 }
 0x18c   : > { %v2531_v20 = vpop.f32.mrb[9].mxu1 }
 0x18d   : > { %v13388_v45 = vpop.f32.mrb[8].mxu0  ;;  %v13491_v28 = vpop.f32.mrb[10].mxu1  ;;  %19769 = vst [vmem:[#allocation12_spill] sm:$0xff] %v16306_v12  ;;  %vm1769_vm15 = vcmp.ge.s32.totalorder %v16306_v12, 1  ;;  %19771 = vst [vmem:[#allocation14_spill] sm:$0xff] %v16333_v8 }
 0x18e   : > { %v1857_v17 = vsel %vm1761_vm11, %v13388_v45, 0.0  ;;  %v1624_v47 = vpop.f32.mrb[9].mxu0  ;;  %v2534_v25 = vpop.f32.mrb[11].mxu1  ;;  %v3834_v12 = vld [vmem:[#allocation2 + $0x30] sm:$0xf8] }
 0x18f   : > { %v1889_v38 = vadd.f32 %v16226_v39, %v1857_v17  ;;  %v1855_v46 = vsel %vm1759_vm12, %v1624_v47, 0.0  ;;  %v13389_v41 = vpop.f32.mrb[10].mxu0 }
 0x190   : > { %v1887_v31 = vadd.f32 %v16226_v39, %v1855_v46  ;;  %v1890_v42 = vadd.f32 %v13389_v41, %v16226_v39  ;;  %v1627_v3 = vpop.f32.mrb[11].mxu0  ;;  %v344_v46 = vadd.s32 160, %v16205_v22 }
 0x191   : > { %v16289_v33 = vadd.f32 %v13490_v14, %v1889_v38  ;;  %v1888_v5 = vadd.f32 %v16226_v39, %v1627_v3  ;;  %v16311_v14 = vand.u32 15, %v340_v37 }
 0x192   : > { %v16292_v7 = vadd.f32 %v2531_v20, %v1887_v31  ;;  %v16294_v10 = vadd.f32 %v13491_v28, %v1890_v42  ;;  %13603 = vmatmul.mubr.msk.bf16.gmra.mrb[52].mxu0 %vm172_vm1, %v16128_v51 }
 0x193   : > { %v16299_v48 = vadd.f32 %v2534_v25, %v1888_v5  ;;  %v13494_v32 = vpop.f32.mrb[12].mxu1  ;;  %13606 = vmatprep.mubr.msk.bf16.mxu0 %vm172_vm1, %v16139_v11  ;;  %v3255_v11 = vrot.slane %v3253_v43, 4  ;;  %19770 = vst [vmem:[#allocation13_spill] sm:$0xff] %v16311_v14  ;;  %vm1767_vm5 = vcmp.ge.s32.totalorder %v16311_v14, 1 }
 0x194   : > { %v2547_v9 = vpop.f32.mrb[13].mxu1 }
 0x195   : > { %v13392_v54 = vpop.f32.mrb[12].mxu0  ;;  %v13495_v51 = vpop.f32.mrb[14].mxu1  ;;  %v3259_v25 = vor.u32 %v3258_v26, %v3255_v11 }
 0x196   : > { %v1861_v35 = vsel %vm1765_vm13, %v13392_v54, 0.0  ;;  %v1640_v21 = vpop.f32.mrb[13].mxu0  ;;  %v2550_v13 = vpop.f32.mrb[15].mxu1 }
 0x197   : > { %v1893_v36 = vadd.f32 %v16226_v39, %v1861_v35  ;;  %v1859_v44 = vsel %vm1763_vm14, %v1640_v21, 0.0  ;;  %v13393_v60 = vpop.f32.mrb[14].mxu0  ;;  %v3260_v5 = vsel %vm2696_vm6, %v3250_v62, %v3259_v25  ;;  %vm1773_vm6 = vcmp.ge.s32.totalorder %v16333_v8, 1 }
 0x198   : > { %v1891_v40 = vadd.f32 %v16226_v39, %v1859_v44  ;;  %v1894_v0 = vadd.f32 %v13393_v60, %v16226_v39  ;;  %v1643_v30 = vpop.f32.mrb[15].mxu0  ;;  %v348_v44 = vadd.s32 192, %v16205_v22 }
 0x199   : > { %v16315_v50 = vadd.f32 %v13494_v32, %v1893_v36  ;;  %v1892_v20 = vadd.f32 %v16226_v39, %v1643_v30 }
 0x19a   : > { %v16318_v45 = vadd.f32 %v2547_v9, %v1891_v40  ;;  %v16320_v28 = vadd.f32 %v13495_v51, %v1894_v0  ;;  %13607 = vmatmul.mubr.msk.bf16.gmra.mrb[56].mxu0 %vm172_vm1, %v16143_v15  ;;  %v16337_v9 = vand.u32 15, %v344_v46  ;;  %v16358_v46 = vand.u32 15, %v348_v44 }
 0x19b   : > { %v16324_v17 = vadd.f32 %v2550_v13, %v1892_v20  ;;  %v13498_v47 = vpop.f32.mrb[16].mxu1  ;;  %13610 = vmatprep.mubr.msk.bf16.mxu0 %vm172_vm1, %v3251_v61  ;;  %v350_v13 = vadd.s32 208, %v16205_v22 }
 0x19c   : > { %v2563_v38 = vpop.f32.mrb[17].mxu1  ;;  %19772 = vst [vmem:[#allocation9_spill] sm:$0xff] %v16337_v9  ;;  %vm1771_vm7 = vcmp.ge.s32.totalorder %v16337_v9, 1  ;;  %19774 = vst [vmem:[#allocation16_spill] sm:$0xff] %v16358_v46  ;;  %vm1775_vm9 = vcmp.ge.s32.totalorder %v16358_v46, 1 }
 0x19d   : > { %v13396_v41 = vpop.f32.mrb[16].mxu0  ;;  %v13499_v31 = vpop.f32.mrb[18].mxu1 }
 0x19e   : > { %v1865_v42 = vsel %vm1769_vm15, %v13396_v41, 0.0  ;;  %v1656_v3 = vpop.f32.mrb[17].mxu0  ;;  %v2566_v15 = vpop.f32.mrb[19].mxu1 }
 0x19f   : > { %v1897_v52 = vadd.f32 %v16226_v39, %v1865_v42  ;;  %v1863_v29 = vsel %vm1767_vm5, %v1656_v3, 0.0  ;;  %v13397_v49 = vpop.f32.mrb[18].mxu0 }
 0x1a0   : > { %v1895_v32 = vadd.f32 %v16226_v39, %v1863_v29  ;;  %v1898_v43 = vadd.f32 %v13397_v49, %v16226_v39  ;;  %v1659_v27 = vpop.f32.mrb[19].mxu0  ;;  %v354_v29 = vadd.s32 240, %v16205_v22 }
 0x1a1   : > { %v16339_v37 = vadd.f32 %v13498_v47, %v1897_v52  ;;  %v1896_v54 = vadd.f32 %v16226_v39, %v1659_v27  ;;  %v16354_v47 = vand.u32 15, %v350_v13 }
 0x1a2   : > { %v16342_v51 = vadd.f32 %v2563_v38, %v1895_v32  ;;  %v16344_v35 = vadd.f32 %v13499_v31, %v1898_v43  ;;  %13611 = vmatmul.mubr.msk.bf16.gmra.mrb[60].mxu0 %vm172_vm1, %v3260_v5  ;;  %v352_v5 = vadd.s32 224, %v16205_v22 }
 0x1a3   : > { %v16347_v62 = vadd.f32 %v2566_v15, %v1896_v54  ;;  %v13502_v21 = vpop.f32.mrb[20].mxu1  ;;  %19773 = vst [vmem:[#allocation15_spill] sm:$0xff] %v16354_v47  ;;  %vm1777_vm8 = vcmp.ge.s32.totalorder %v16354_v47, 1 }
 0x1a4   : > { %v2579_v36 = vpop.f32.mrb[21].mxu1 }
 0x1a5   : > { %v13400_v60 = vpop.f32.mrb[20].mxu0  ;;  %v13503_v11 = vpop.f32.mrb[22].mxu1 }
 0x1a6   : > { %v1869_v26 = vsel %vm1773_vm6, %v13400_v60, 0.0  ;;  %v1672_v40 = vpop.f32.mrb[21].mxu0  ;;  %v2582_v0 = vpop.f32.mrb[23].mxu1  ;;  %v16374_v60 = vand.u32 15, %v354_v29 }
 0x1a7   : > { %v1901_v30 = vadd.f32 %v16226_v39, %v1869_v26  ;;  %v1867_v61 = vsel %vm1771_vm7, %v1672_v40, 0.0  ;;  %v13401_v20 = vpop.f32.mrb[22].mxu0  ;;  %vm3876_vm7 = vcmask 1044480  }
 0x1a8   : > { %v1899_v25 = vadd.f32 %v16226_v39, %v1867_v61  ;;  %v1902_v24 = vadd.f32 %v13401_v20, %v16226_v39  ;;  %v1675_v38 = vpop.f32.mrb[23].mxu0  ;;  %19775 = vst [vmem:[#allocation17_spill] sm:$0xff] %v16374_v60  ;;  %vm1781_vm10 = vcmp.ge.s32.totalorder %v16374_v60, 1 }
 0x1a9   : > { %v16360_v41 = vadd.f32 %v13502_v21, %v1901_v30  ;;  %v1900_v31 = vadd.f32 %v16226_v39, %v1675_v38 }
 0x1aa   : > { %v16363_v42 = vadd.f32 %v2579_v36, %v1899_v25  ;;  %v16365_v3 = vadd.f32 %v13503_v11, %v1902_v24 }
 0x1ab   : > { %v16367_v15 = vadd.f32 %v2582_v0, %v1900_v31  ;;  %v13506_v52 = vpop.f32.mrb[24].mxu1  ;;  %v16378_v0 = vand.u32 15, %v352_v5 }
 0x1ac   : > { %v2595_v49 = vpop.f32.mrb[25].mxu1 }
 0x1ad   : > { %v13404_v32 = vpop.f32.mrb[24].mxu0  ;;  %v13507_v43 = vpop.f32.mrb[26].mxu1  ;;  %19776 = vst [vmem:[#allocation18_spill] sm:$0xff] %v16378_v0  ;;  %vm1779_vm11 = vcmp.ge.s32.totalorder %v16378_v0, 1 }
 0x1ae   : > { %v1873_v27 = vsel %vm1777_vm8, %v13404_v32, 0.0  ;;  %v1688_v54 = vpop.f32.mrb[25].mxu0  ;;  %v2598_v21 = vpop.f32.mrb[27].mxu1 }
 0x1af   : > { %v1905_v13 = vadd.f32 %v16226_v39, %v1873_v27  ;;  %v1871_v36 = vsel %vm1775_vm9, %v1688_v54, 0.0  ;;  %v13405_v44 = vpop.f32.mrb[26].mxu0 }
 0x1b0   : > { %v1903_v11 = vadd.f32 %v16226_v39, %v1871_v36  ;;  %v1906_v26 = vadd.f32 %v13405_v44, %v16226_v39  ;;  %v1691_v40 = vpop.f32.mrb[27].mxu0 }
 0x1b1   : > { %v16380_v30 = vadd.f32 %v13506_v52, %v1905_v13  ;;  %v1904_v61 = vadd.f32 %v16226_v39, %v1691_v40 }
 0x1b2   : > { %v16383_v20 = vadd.f32 %v2595_v49, %v1903_v11  ;;  %v16385_v25 = vadd.f32 %v13507_v43, %v1906_v26 }
 0x1b3   : > { %v16387_v24 = vadd.f32 %v2598_v21, %v1904_v61  ;;  %v13510_v38 = vpop.f32.mrb[28].mxu1 }
 0x1b4   : > { %v2611_v31 = vpop.f32.mrb[29].mxu1 }
 0x1b5   : > { %v13408_v29 = vpop.f32.mrb[28].mxu0  ;;  %v13511_v32 = vpop.f32.mrb[30].mxu1 }
 0x1b6   : > { %v1877_v5 = vsel %vm1781_vm10, %v13408_v29, 0.0  ;;  %v1704_v27 = vpop.f32.mrb[29].mxu0  ;;  %v2614_v52 = vpop.f32.mrb[31].mxu1  ;;  %v12281_v29 = vld [vmem:[%s19501_s1 + $0x1a] sm:$0x3] }
 0x1b7   : > { %v1909_v54 = vadd.f32 %v16226_v39, %v1877_v5  ;;  %v1875_v13 = vsel %vm1779_vm11, %v1704_v27, 0.0  ;;  %v13409_v49 = vpop.f32.mrb[30].mxu0  ;;  %15248 = vmatprep.subr.msk.bf16.mxu0 %vm971_vm0, %v12281_v29  ;;  %v4875_v5 = vsel %vm971_vm0, %v12281_v29, 0 }
 0x1b8   : > { %v1907_v43 = vadd.f32 %v16226_v39, %v1875_v13  ;;  %v1910_v21 = vadd.f32 %v13409_v49, %v16226_v39  ;;  %v1707_v36 = vpop.f32.mrb[31].mxu0  ;;  %13717 = vmatpush3.bf16.msra.mxu0 %v4875_v5  ;;  %v331_v13 = vadd.s32 56, %v16205_v22 }
 0x1b9   : > { %v16394_v44 = vadd.f32 %v13510_v38, %v1909_v54  ;;  %v1908_v11 = vadd.f32 %v16226_v39, %v1707_v36  ;;  %v16411_v38 = vld [vmem:[%s19501_s1 + $0x12] sm:$0x3]  ;;  %v16418_v39 = vld [vmem:[%s19501_s1 + $0x14] sm:$0x3] }
 0x1ba   : > { %v16397_v26 = vadd.f32 %v2611_v31, %v1907_v43  ;;  %v16399_v40 = vadd.f32 %v13511_v32, %v1910_v21  ;;  %15246 = vmatprep.subr.msk.bf16.mxu1 %vm971_vm0, %v16411_v38  ;;  %15249 = vmatprep.subr.msk.bf16.mxu0 %vm971_vm0, %v16418_v39  ;;  %v327_v31 = vadd.s32 24, %v16205_v22  ;;  %v325_v32 = vadd.s32 8, %v16205_v22 }
 0x1bb   : > { %v16401_v61 = vadd.f32 %v2614_v52, %v1908_v11  ;;  %v329_v21 = vadd.s32 40, %v16205_v22 }
 0x1bc   : > { %v16424_v27 = vand.u32 15, %v327_v31  ;;  %v16426_v52 = vand.u32 15, %v325_v32 }
 0x1be   : > { %19777 = vst [vmem:[#allocation19_spill] sm:$0xff] %v16424_v27  ;;  %19778 = vst [vmem:[#allocation20_spill] sm:$0xff] %v16426_v52  ;;  %vm3508_vm12 = vcmp.lt.s32.totalorder %v16424_v27, 15  ;;  %vm3506_vm13 = vcmp.lt.s32.totalorder %v16426_v52, 15  ;;  %v16441_v27 = vand.u32 15, %v331_v13 }
 0x1c0   : > { %19782 = vst [vmem:[#allocation24_spill] sm:$0xff] %v16441_v27  ;;  %vm3512_vm14 = vcmp.lt.s32.totalorder %v16441_v27, 15 }
 0x23d   : > { %v13584_v54 = vpop.f32.mrb[32].mxu0 }
 0x23e   : > { %v16431_v49 = vadd.f32 %v13584_v54, %v16237_v55  ;;  %v3346_v43 = vpop.f32.mrb[33].mxu0  ;;  %v16446_v54 = vand.u32 15, %v329_v21 }
 0x23f   : > { %v16436_v36 = vadd.f32 %v3346_v43, %v16240_v59  ;;  %v13585_v11 = vpop.f32.mrb[34].mxu0 }
 0x240   : > { %19779 = vst [vmem:[#allocation21_spill] sm:$0xff] %v16431_v49  ;;  %v3604_v29 = vsel %vm3508_vm12, %v13585_v11, 0.0  ;;  %v3349_v5 = vpop.f32.mrb[35].mxu0  ;;  %19784 = vst [vmem:[#allocation26_spill] sm:$0xff] %v16446_v54  ;;  %v19567_v52 = vmax.f32 %v16431_v49, 0.0  ;;  %vm3510_vm15 = vcmp.lt.s32.totalorder %v16446_v54, 15 }
 0x241   : > { %19780 = vst [vmem:[#allocation22_spill] sm:$0xff] %v16436_v36  ;;  %v16439_v31 = vadd.f32 %v3604_v29, %v16242_v2  ;;  %v3602_v32 = vsel %vm3506_vm13, %v3349_v5, 0.0  ;;  %v19574_v59 = vmax.f32 %v16436_v36, 0.0  ;;  %v333_v5 = vadd.s32 72, %v16205_v22 }
 0x242   : > { %v16444_v55 = vadd.f32 %v3602_v32, %v16246_v19  ;;  %v335_v19 = vadd.s32 88, %v16205_v22 }
 0x243   : > { %19781 = vst [vmem:[#allocation23_spill] sm:$0xff] %v16439_v31  ;;  %v19566_v0 = vmax.f32 %v16439_v31, 0.0 }
 0x244   : > { %19783 = vst [vmem:[#allocation25_spill] sm:$0xff] %v16444_v55  ;;  %v19573_v43 = vmax.f32 %v16444_v55, 0.0 }
 0x245   : > { %v3730_v2 = vpack.c.bf16 %v19566_v0, %v19567_v52  ;;  %v13588_v13 = vpop.f32.mrb[36].mxu0 }
 0x246   : > { %v3729_v21 = vpack.c.bf16 %v19573_v43, %v19574_v59  ;;  %v16463_v11 = vadd.f32 %v13588_v13, %v16261_v53  ;;  %v3362_v29 = vpop.f32.mrb[37].mxu0  ;;  %v16473_v59 = vand.u32 15, %v335_v19  ;;  %v337_v19 = vadd.s32 104, %v16205_v22 }
 0x247   : > { %v3762_v32 = vrot.slane %v3730_v2, 4  ;;  %v16468_v0 = vadd.f32 %v3362_v29, %v16264_v23  ;;  %v13589_v52 = vpop.f32.mrb[38].mxu0  ;;  %v16480_v2 = vand.u32 15, %v333_v5  ;;  %v343_v5 = vadd.s32 152, %v16205_v22 }
 0x248   : > { %19785 = vst [vmem:[#allocation27_spill] sm:$0xff] %v16463_v11  ;;  %v3761_v27 = vrot.slane %v3729_v21, 4  ;;  %v3608_v31 = vsel %vm3512_vm14, %v13589_v52, 0.0  ;;  %v3365_v49 = vpop.f32.mrb[39].mxu0  ;;  %19788 = vst [vmem:[#allocation30_spill] sm:$0xff] %v16473_v59  ;;  %v19576_v23 = vmax.f32 %v16463_v11, 0.0 }
 0x249   : > { %19786 = vst [vmem:[#allocation28_spill] sm:$0xff] %v16468_v0  ;;  %v16471_v36 = vadd.f32 %v3608_v31, %v16266_v4  ;;  %v3606_v43 = vsel %vm3510_vm15, %v3365_v49, 0.0  ;;  %19790 = vst [vmem:[#allocation32_spill] sm:$0xff] %v16480_v2  ;;  %v19584_v4 = vmax.f32 %v16468_v0, 0.0  ;;  %v339_v31 = vadd.s32 120, %v16205_v22 }
 0x24a   : > { %v3763_v53 = vsel %vm257_vm4, %v3761_v27, %v3762_v32  ;;  %3809 = vst.msk [vmem:[#allocation2 + $0x40] sm:$0xf0] %vm183_vm3, %v3761_v27  ;;  %v16478_v13 = vadd.f32 %v3606_v43, %v16270_v34  ;;  %vm3516_vm5 = vcmp.lt.s32.totalorder %v16473_v59, 15  ;;  %vm3514_vm6 = vcmp.lt.s32.totalorder %v16480_v2, 15 }
 0x24b   : > { %19787 = vst [vmem:[#allocation29_spill] sm:$0xff] %v16471_v36  ;;  %3810 = vst.msk [vmem:[#allocation2 + $0x48] sm:$0xff] %vm172_vm1, %v3763_v53  ;;  %v19575_v52 = vmax.f32 %v16471_v36, 0.0 }
 0x24c   : > { %19789 = vst [vmem:[#allocation31_spill] sm:$0xff] %v16478_v13  ;;  %v19583_v49 = vmax.f32 %v16478_v13, 0.0  ;;  %v16509_v13 = vand.u32 15, %v339_v31  ;;  %v16524_v31 = vand.u32 15, %v343_v5 }
 0x24d   : > { %v16493_v34 = vpack.c.bf16 %v19575_v52, %v19576_v23  ;;  %v13592_v27 = vpop.f32.mrb[40].mxu0 }
 0x24e   : > { %v3731_v43 = vpack.c.bf16 %v19583_v49, %v19584_v4  ;;  %v16501_v21 = vadd.f32 %v13592_v27, %v16289_v33  ;;  %v3378_v29 = vpop.f32.mrb[41].mxu0  ;;  %19793 = vst [vmem:[#allocation35_spill] sm:$0xff] %v16509_v13  ;;  %v16511_v49 = vand.u32 15, %v337_v19  ;;  %19797 = vst [vmem:[#allocation39_spill] sm:$0xff] %v16524_v31  ;;  %vm3520_vm8 = vcmp.lt.s32.totalorder %v16509_v13, 15 }
 0x24f   : > { %v3766_v53 = vrot.slane %v16493_v34, 4  ;;  %v16507_v52 = vadd.f32 %v3378_v29, %v16292_v7  ;;  %v13593_v23 = vpop.f32.mrb[42].mxu0  ;;  %v341_v34 = vadd.s32 136, %v16205_v22  ;;  %vm3524_vm10 = vcmp.lt.s32.totalorder %v16524_v31, 15 }
 0x250   : > { %19791 = vst [vmem:[#allocation33_spill] sm:$0xff] %v16501_v21  ;;  %v3764_v59 = vrot.slane %v3731_v43, 4  ;;  %v3612_v54 = vsel %vm3516_vm5, %v13593_v23, 0.0  ;;  %v3381_v36 = vpop.f32.mrb[43].mxu0  ;;  %19794 = vst [vmem:[#allocation36_spill] sm:$0xff] %v16511_v49  ;;  %vm3518_vm9 = vcmp.lt.s32.totalorder %v16511_v49, 15 }
 0x251   : > { %19792 = vst [vmem:[#allocation34_spill] sm:$0xff] %v16507_v52  ;;  %v16514_v33 = vadd.f32 %v3612_v54, %v16294_v10  ;;  %v3610_v27 = vsel %vm3514_vm6, %v3381_v36, 0.0  ;;  %v3853_v4 = vld [vmem:[#allocation2 + $0x40] sm:$0xf8]  ;;  %v19589_v10 = vmax.f32 %v16501_v21, 0.0 }
 0x252   : > { %v4787_v2 = vld [vmem:[#allocation2 + $0x40] sm:$0xf0]  ;;  %v3765_v7 = vsel %vm257_vm4, %v3762_v32, %v3764_v59  ;;  %v3767_v29 = vsel %vm257_vm4, %v3764_v59, %v3766_v53  ;;  %v16520_v43 = vadd.f32 %v3610_v27, %v16299_v48  ;;  %v16522_v23 = vld [vmem:[#allocation2 + $0x48] sm:$0xff]  ;;  %v3877_v54 = vrot.slane %v3853_v4, 3 }
 0x253   : > { %19795 = vst [vmem:[#allocation37_spill] sm:$0xff] %v16514_v33  ;;  %3811 = vst.msk [vmem:[#allocation2 + $0x50] sm:$0xff] %vm172_vm1, %v3765_v7  ;;  %v19588_v36 = vmax.f32 %v16514_v33, 0.0  ;;  %v16531_v32 = vrot.slane %v16522_v23, 3  ;;  %v19593_v59 = vmax.f32 %v16507_v52, 0.0  ;;  %v4793_v19 = vrot.slane %v4787_v2, 4 }
 0x254   : > { %19796 = vst [vmem:[#allocation38_spill] sm:$0xff] %v16520_v43  ;;  %3812 = vst.msk [vmem:[#allocation2 + $0x58] sm:$0xff] %vm172_vm1, %v3767_v29  ;;  %v19592_v48 = vmax.f32 %v16520_v43, 0.0  ;;  %v16536_v5 = vrot.slane %v16522_v23, 4  ;;  %v16997_v57 = vld [vmem:[#allocation2 + $0x40] sm:$0xff] }
 0x255   : > { %v16542_v27 = vpack.c.bf16 %v19588_v36, %v19589_v10  ;;  %v13596_v7 = vpop.f32.mrb[44].mxu0  ;;  %v3879_v4 = vsel %vm3876_vm7, %v3877_v54, %v16531_v32 }
 0x256   : > { %v3733_v2 = vpack.c.bf16 %v19592_v48, %v19593_v59  ;;  %v16552_v29 = vadd.f32 %v13596_v7, %v16315_v50  ;;  %v3394_v0 = vpop.f32.mrb[45].mxu0  ;;  %13616 = vmatprep.mubr.msk.bf16.mxu1 %vm172_vm1, %v3879_v4  ;;  %v4795_v36 = vsel %vm257_vm4, %v4793_v19, %v16536_v5  ;;  %v16563_v48 = vand.u32 15, %v341_v34 }
 0x257   : > { %v3770_v54 = vrot.slane %v16542_v27, 4  ;;  %v16560_v10 = vadd.f32 %v3394_v0, %v16318_v45  ;;  %13718 = vmatprep.mubr.msk.bf16.mxu0 %vm172_vm1, %v4795_v36  ;;  %v13597_v13 = vpop.f32.mrb[46].mxu0  ;;  %v4147_v4 = vsel %vm971_vm0, %v16411_v38, 0  ;;  %v347_v45 = vadd.s32 184, %v16205_v22 }
 0x258   : > { %19798 = vst [vmem:[#allocation40_spill] sm:$0xff] %v16552_v29  ;;  %19800 = vst [vmem:[#allocation42_spill] sm:$0xff] %v16563_v48  ;;  %v3768_v50 = vrot.slane %v3733_v2, 4  ;;  %v3616_v7 = vsel %vm3520_vm8, %v13597_v13, 0.0  ;;  %v3397_v59 = vpop.f32.mrb[47].mxu0  ;;  %v345_v0 = vadd.s32 168, %v16205_v22 }
 0x259   : > { %19799 = vst [vmem:[#allocation41_spill] sm:$0xff] %v16560_v10  ;;  %v16569_v19 = vadd.f32 %v3616_v7, %v16320_v28  ;;  %v3614_v27 = vsel %vm3518_vm9, %v3397_v59, 0.0  ;;  %v5061_v28 = vsel %vm971_vm0, %v16418_v39, 0  ;;  %v19602_v59 = vmax.f32 %v16552_v29, 0.0 }
 0x25a   : > { %v3769_v36 = vsel %vm257_vm4, %v3766_v53, %v3768_v50  ;;  %v3771_v34 = vsel %vm257_vm4, %v3768_v50, %v3770_v54  ;;  %v16576_v13 = vadd.f32 %v3614_v27, %v16324_v17  ;;  %v16578_v2 = vld [vmem:[#allocation2 + $0x50] sm:$0xff]  ;;  %v16612_v7 = vand.u32 15, %v347_v45  ;;  %v16629_v45 = vld [vmem:[%s19501_s1 + $0x1e] sm:$0x3] }
 0x25b   : > { %19801 = vst [vmem:[#allocation43_spill] sm:$0xff] %v16569_v19  ;;  %v16580_v38 = vld [vmem:[#allocation2 + $0x58] sm:$0xff]  ;;  %3813 = vst.msk [vmem:[#allocation2 + $0x60] sm:$0xff] %vm172_vm1, %v3769_v36  ;;  %v19601_v53 = vmax.f32 %v16569_v19, 0.0  ;;  %v3880_v50 = vrot.slane %v16578_v2, 3  ;;  %v4796_v17 = vrot.slane %v16578_v2, 4 }
 0x25c   : > { %19802 = vst [vmem:[#allocation44_spill] sm:$0xff] %v16576_v13  ;;  %3814 = vst.msk [vmem:[#allocation2 + $0x68] sm:$0xff] %vm172_vm1, %v3771_v34  ;;  %v16593_v49 = vrot.slane %v16580_v38, 3  ;;  %v16596_v39 = vrot.slane %v16580_v38, 4  ;;  %v19804_v33 = vmax.f32 %v16560_v10, 0.0  ;;  %v19805_v52 = vmax.f32 %v16576_v13, 0.0 }
 0x25d   : > { %v16602_v36 = vpack.c.bf16 %v19601_v53, %v19602_v59  ;;  %v13600_v34 = vpop.f32.mrb[48].mxu0  ;;  %v16606_v43 = vsel %vm3876_vm7, %v16531_v32, %v3880_v50  ;;  %v16610_v27 = vsel %vm257_vm4, %v16536_v5, %v4796_v17  ;;  %19803 = vst [vmem:[#allocation45_spill] sm:$0xff] %v16612_v7  ;;  %vm3522_vm11 = vcmp.lt.s32.totalorder %v16563_v48, 15 }
 0x25e   : > { %v3735_v29 = vpack.c.bf16 %v19805_v52, %v19804_v33  ;;  %v16619_v19 = vadd.f32 %v13600_v34, %v16339_v37  ;;  %v3410_v53 = vpop.f32.mrb[49].mxu0  ;;  %13617 = vmatmul.mubr.msk.bf16.vlgmr.msra.gmra.mrb[32].mxu1 %vm172_vm1, %v16606_v43  ;;  %13719 = vmatmul.mubr.msk.bf16.vlgmr.msra.gmra.mrb[64].mxu0 %vm172_vm1, %v16610_v27  ;;  %v16634_v52 = vld [vmem:[%s19501_s1 + $0x20] sm:$0x3]  ;;  %v16642_v59 = vsel %vm3876_vm7, %v3880_v50, %v16593_v49  ;;  %vm3528_vm12 = vcmp.lt.s32.totalorder %v16612_v7, 15 }
 0x25f   : > { %v3774_v37 = vrot.slane %v16602_v36, 4  ;;  %v16638_v33 = vadd.f32 %v3410_v53, %v16342_v51  ;;  %13649 = vmatpush3.bf16.msra.mxu1 %v4147_v4  ;;  %v13601_v34 = vpop.f32.mrb[50].mxu0  ;;  %v16646_v13 = vsel %vm257_vm4, %v4796_v17, %v16596_v39  ;;  %13751 = vmatpush3.bf16.msra.mxu0 %v5061_v28  ;;  %v16660_v28 = vand.u32 15, %v345_v0 }
 0x260   : > { %19806 = vst [vmem:[#allocation46_spill] sm:$0xff] %v16619_v19  ;;  %v3772_v10 = vrot.slane %v3735_v29, 4  ;;  %v3620_v21 = vsel %vm3524_vm10, %v13601_v34, 0.0  ;;  %13620 = vmatprep.mubr.msk.bf16.mxu1 %vm172_vm1, %v16642_v59  ;;  %13722 = vmatprep.mubr.msk.bf16.mxu0 %vm172_vm1, %v16646_v13  ;;  %v3413_v51 = vpop.f32.mrb[51].mxu0  ;;  %v351_v0 = vadd.s32 216, %v16205_v22  ;;  %v19615_v36 = vmax.f32 %v16619_v19, 0.0 }
 0x261   : > { %19807 = vst [vmem:[#allocation47_spill] sm:$0xff] %v16638_v33  ;;  %v16655_v4 = vadd.f32 %v3620_v21, %v16344_v35  ;;  %v3618_v53 = vsel %vm3522_vm11, %v3413_v51, 0.0  ;;  %19809 = vst [vmem:[#allocation49_spill] sm:$0xff] %v16660_v28  ;;  %15247 = vmatprep.subr.msk.bf16.mxu1 %vm971_vm0, %v16629_v45  ;;  %15250 = vmatprep.subr.msk.bf16.mxu0 %vm971_vm0, %v16634_v52  ;;  %v349_v51 = vadd.s32 200, %v16205_v22  ;;  %v19811_v11 = vmax.f32 %v16638_v33, 0.0 }
 0x262   : > { %v3773_v29 = vsel %vm257_vm4, %v3770_v54, %v3772_v10  ;;  %v3775_v50 = vsel %vm257_vm4, %v3772_v10, %v3774_v37  ;;  %v16669_v35 = vadd.f32 %v3618_v53, %v16347_v62  ;;  %v16671_v21 = vld [vmem:[#allocation2 + $0x60] sm:$0xff]  ;;  %vm3526_vm13 = vcmp.lt.s32.totalorder %v16660_v28, 15 }
 0x263   : > { %19808 = vst [vmem:[#allocation48_spill] sm:$0xff] %v16655_v4  ;;  %v16673_v17 = vld [vmem:[#allocation2 + $0x68] sm:$0xff]  ;;  %3815 = vst.msk [vmem:[#allocation2 + $0x70] sm:$0xff] %vm172_vm1, %v3773_v29  ;;  %v19614_v34 = vmax.f32 %v16655_v4, 0.0  ;;  %v3884_v54 = vrot.slane %v16671_v21, 3  ;;  %v4800_v10 = vrot.slane %v16671_v21, 4 }
 0x264   : > { %19810 = vst [vmem:[#allocation50_spill] sm:$0xff] %v16669_v35  ;;  %3816 = vst.msk [vmem:[#allocation2 + $0x78] sm:$0xff] %vm172_vm1, %v3775_v50  ;;  %v3886_v53 = vrot.slane %v16673_v17, 3  ;;  %v4802_v48 = vrot.slane %v16673_v17, 4  ;;  %v19812_v55 = vmax.f32 %v16669_v35, 0.0  ;;  %vm5549_vm8 = vcmask 1042432  }
 0x265   : > { %v16690_v29 = vpack.c.bf16 %v19614_v34, %v19615_v36  ;;  %v13604_v50 = vpop.f32.mrb[52].mxu0  ;;  %v16694_v31 = vsel %vm3876_vm7, %v16593_v49, %v3884_v54  ;;  %v16698_v62 = vsel %vm257_vm4, %v16596_v39, %v4800_v10  ;;  %v16713_v36 = vand.u32 15, %v351_v0 }
 0x266   : > { %v3737_v19 = vpack.c.bf16 %v19812_v55, %v19811_v11  ;;  %v16706_v4 = vadd.f32 %v13604_v50, %v16360_v41  ;;  %v3426_v34 = vpop.f32.mrb[53].mxu0  ;;  %13621 = vmatmul.mubr.msk.bf16.gmra.mrb[36].mxu1 %vm172_vm1, %v16694_v31  ;;  %13723 = vmatmul.mubr.msk.bf16.gmra.mrb[68].mxu0 %vm172_vm1, %v16698_v62  ;;  %v16720_v41 = vsel %vm3876_vm7, %v3884_v54, %v3886_v53  ;;  %v16734_v54 = vand.u32 15, %v349_v51 }
 0x267   : > { %19814 = vst [vmem:[#allocation52_spill] sm:$0xff] %v16713_v36  ;;  %v3778_v60 = vrot.slane %v16690_v29, 4  ;;  %v16717_v33 = vadd.f32 %v3426_v34, %v16363_v42  ;;  %v13605_v55 = vpop.f32.mrb[54].mxu0  ;;  %v16723_v11 = vsel %vm257_vm4, %v4800_v10, %v4802_v48  ;;  %13624 = vmatprep.mubr.msk.bf16.mxu1 %vm172_vm1, %v16720_v41  ;;  %vm3532_vm14 = vcmp.lt.s32.totalorder %v16713_v36, 15 }
 0x268   : > { %19813 = vst [vmem:[#allocation51_spill] sm:$0xff] %v16706_v4  ;;  %v3776_v50 = vrot.slane %v3737_v19, 4  ;;  %v3624_v35 = vsel %vm3528_vm12, %v13605_v55, 0.0  ;;  %13726 = vmatprep.mubr.msk.bf16.mxu0 %vm172_vm1, %v16723_v11  ;;  %v3429_v0 = vpop.f32.mrb[55].mxu0  ;;  %19817 = vst [vmem:[#allocation55_spill] sm:$0xff] %v16734_v54  ;;  %vm3530_vm15 = vcmp.lt.s32.totalorder %v16734_v54, 15 }
 0x269   : > { %19815 = vst [vmem:[#allocation53_spill] sm:$0xff] %v16717_v33  ;;  %v16732_v42 = vadd.f32 %v3624_v35, %v16365_v3  ;;  %v3622_v34 = vsel %vm3526_vm13, %v3429_v0, 0.0  ;;  %v19633_v3 = vmax.f32 %v16706_v4, 0.0 }
 0x26a   : > { %v3777_v10 = vsel %vm257_vm4, %v3774_v37, %v3776_v50  ;;  %v3779_v19 = vsel %vm257_vm4, %v3776_v50, %v3778_v60  ;;  %v16739_v29 = vadd.f32 %v3622_v34, %v16367_v15  ;;  %v16741_v55 = vld [vmem:[#allocation2 + $0x70] sm:$0xff]  ;;  %v355_v15 = vadd.s32 248, %v16205_v22 }
 0x26b   : > { %19816 = vst [vmem:[#allocation54_spill] sm:$0xff] %v16732_v42  ;;  %v16744_v28 = vld [vmem:[#allocation2 + $0x78] sm:$0xff]  ;;  %3817 = vst.msk [vmem:[#allocation2 + $0x80] sm:$0xff] %vm172_vm1, %v3777_v10  ;;  %v19632_v35 = vmax.f32 %v16732_v42, 0.0  ;;  %v3888_v37 = vrot.slane %v16741_v55, 3  ;;  %v4804_v51 = vrot.slane %v16741_v55, 4 }
 0x26c   : > { %19818 = vst [vmem:[#allocation56_spill] sm:$0xff] %v16739_v29  ;;  %3818 = vst.msk [vmem:[#allocation2 + $0x88] sm:$0xff] %vm172_vm1, %v3779_v19  ;;  %v3890_v0 = vrot.slane %v16744_v28, 3  ;;  %v4806_v34 = vrot.slane %v16744_v28, 4  ;;  %v19819_v50 = vmax.f32 %v16717_v33, 0.0  ;;  %v19820_v47 = vmax.f32 %v16739_v29, 0.0 }
 0x26d   : > { %v16760_v10 = vpack.c.bf16 %v19632_v35, %v19633_v3  ;;  %v13608_v19 = vpop.f32.mrb[56].mxu0  ;;  %v16763_v7 = vsel %vm3876_vm7, %v3886_v53, %v3888_v37  ;;  %v16766_v46 = vsel %vm257_vm4, %v4802_v48, %v4804_v51  ;;  %v353_v48 = vadd.s32 232, %v16205_v22 }
 0x26e   : > { %v3739_v9 = vpack.c.bf16 %v19820_v47, %v19819_v50  ;;  %v16774_v4 = vadd.f32 %v13608_v19, %v16380_v30  ;;  %v3442_v42 = vpop.f32.mrb[57].mxu0  ;;  %13625 = vmatmul.mubr.msk.bf16.gmra.mrb[40].mxu1 %vm172_vm1, %v16763_v7  ;;  %13727 = vmatmul.mubr.msk.bf16.gmra.mrb[72].mxu0 %vm172_vm1, %v16766_v46  ;;  %v16787_v30 = vsel %vm3876_vm7, %v3888_v37, %v3890_v0  ;;  %v16801_v37 = vand.u32 15, %v355_v15 }
 0x26f   : > { %v3782_v53 = vrot.slane %v16760_v10, 4  ;;  %v16784_v35 = vadd.f32 %v3442_v42, %v16383_v20  ;;  %v13609_v47 = vpop.f32.mrb[58].mxu0  ;;  %v16790_v50 = vsel %vm257_vm4, %v4804_v51, %v4806_v34  ;;  %13628 = vmatprep.mubr.msk.bf16.mxu1 %vm172_vm1, %v16787_v30  ;;  %v16812_v36 = vand.u32 15, %v353_v48 }
 0x270   : > { %19821 = vst [vmem:[#allocation57_spill] sm:$0xff] %v16774_v4  ;;  %v3780_v19 = vrot.slane %v3739_v9, 4  ;;  %v3628_v3 = vsel %vm3532_vm14, %v13609_v47, 0.0  ;;  %13730 = vmatprep.mubr.msk.bf16.mxu0 %vm172_vm1, %v16790_v50  ;;  %v3445_v22 = vpop.f32.mrb[59].mxu0  ;;  %19824 = vst [vmem:[#allocation60_spill] sm:$0xff] %v16801_v37  ;;  %vm3536_vm5 = vcmp.lt.s32.totalorder %v16801_v37, 15 }
 0x271   : > { %19822 = vst [vmem:[#allocation58_spill] sm:$0xff] %v16784_v35  ;;  %v16799_v20 = vadd.f32 %v3628_v3, %v16385_v25  ;;  %v3626_v42 = vsel %vm3530_vm15, %v3445_v22, 0.0  ;;  %19826 = vst [vmem:[#allocation62_spill] sm:$0xff] %v16812_v36  ;;  %v19644_v25 = vmax.f32 %v16774_v4, 0.0  ;;  %vm3534_vm6 = vcmp.lt.s32.totalorder %v16812_v36, 15 }
 0x272   : > { %v3781_v51 = vsel %vm257_vm4, %v3778_v60, %v3780_v19  ;;  %v3783_v9 = vsel %vm257_vm4, %v3780_v19, %v3782_v53  ;;  %v16806_v10 = vadd.f32 %v3626_v42, %v16387_v24  ;;  %v16808_v47 = vld [vmem:[#allocation2 + $0x80] sm:$0xff]  ;;  %v19646_v24 = vmax.f32 %v16784_v35, 0.0 }
 0x273   : > { %19823 = vst [vmem:[#allocation59_spill] sm:$0xff] %v16799_v20  ;;  %v16810_v54 = vld [vmem:[#allocation2 + $0x88] sm:$0xff]  ;;  %3819 = vst.msk [vmem:[#allocation2 + $0x90] sm:$0xff] %vm172_vm1, %v3781_v51  ;;  %v19643_v3 = vmax.f32 %v16799_v20, 0.0  ;;  %v3892_v60 = vrot.slane %v16808_v47, 3  ;;  %v4808_v15 = vrot.slane %v16808_v47, 4 }
 0x274   : > { %19825 = vst [vmem:[#allocation61_spill] sm:$0xff] %v16806_v10  ;;  %3820 = vst.msk [vmem:[#allocation2 + $0x98] sm:$0xff] %vm172_vm1, %v3783_v9  ;;  %v19645_v19 = vmax.f32 %v16806_v10, 0.0  ;;  %v3894_v22 = vrot.slane %v16810_v54, 3  ;;  %v4810_v48 = vrot.slane %v16810_v54, 4 }
 0x275   : > { %v3742_v42 = vpack.c.bf16 %v19643_v3, %v19644_v25  ;;  %v13612_v51 = vpop.f32.mrb[60].mxu0  ;;  %v16829_v9 = vsel %vm3876_vm7, %v3890_v0, %v3892_v60  ;;  %v16832_v29 = vsel %vm257_vm4, %v4806_v34, %v4808_v15 }
 0x276   : > { %v3741_v33 = vpack.c.bf16 %v19645_v19, %v19646_v24  ;;  %v16840_v8 = vadd.f32 %v13612_v51, %v16394_v44  ;;  %v3458_v4 = vpop.f32.mrb[61].mxu0  ;;  %13629 = vmatmul.mubr.msk.bf16.gmra.mrb[44].mxu1 %vm172_vm1, %v16829_v9  ;;  %13731 = vmatmul.mubr.msk.bf16.gmra.mrb[76].mxu0 %vm172_vm1, %v16832_v29  ;;  %v16851_v25 = vsel %vm3876_vm7, %v3892_v60, %v3894_v22 }
 0x277   : > { %v3786_v0 = vrot.slane %v3742_v42, 4  ;;  %v16848_v34 = vadd.f32 %v3458_v4, %v16397_v26  ;;  %v13613_v3 = vpop.f32.mrb[62].mxu0  ;;  %v16854_v44 = vsel %vm257_vm4, %v4808_v15, %v4810_v48  ;;  %13632 = vmatprep.mubr.msk.bf16.mxu1 %vm172_vm1, %v16851_v25 }
 0x278   : > { %19827 = vst [vmem:[#allocation63_spill] sm:$0xff] %v16840_v8  ;;  %v3784_v51 = vrot.slane %v3741_v33, 4  ;;  %v3632_v19 = vsel %vm3536_vm5, %v13613_v3, 0.0  ;;  %13734 = vmatprep.mubr.msk.bf16.mxu0 %vm172_vm1, %v16854_v44  ;;  %v3461_v24 = vpop.f32.mrb[63].mxu0  ;;  %v19656_v36 = vmax.f32 %v16840_v8, 0.0 }
 0x279   : > { %19828 = vst [vmem:[#allocation64_spill] sm:$0xff] %v16848_v34  ;;  %v16861_v42 = vadd.f32 %v3632_v19, %v16399_v40  ;;  %v3630_v26 = vsel %vm3534_vm6, %v3461_v24, 0.0  ;;  %v19655_v19 = vmax.f32 %v16848_v34, 0.0 }
 0x27a   : > { %v3785_v4 = vsel %vm257_vm4, %v3782_v53, %v3784_v51  ;;  %v3787_v60 = vsel %vm257_vm4, %v3784_v51, %v3786_v0  ;;  %v16866_v15 = vadd.f32 %v3630_v26, %v16401_v61  ;;  %v16868_v33 = vld [vmem:[#allocation2 + $0x90] sm:$0xff] }
 0x27b   : > { %19829 = vst [vmem:[#allocation65_spill] sm:$0xff] %v16861_v42  ;;  %v16870_v3 = vld [vmem:[#allocation2 + $0x98] sm:$0xff]  ;;  %3821 = vst.msk [vmem:[#allocation2 + $0xa0] sm:$0xff] %vm172_vm1, %v3785_v4  ;;  %v19653_v40 = vmax.f32 %v16861_v42, 0.0  ;;  %v3896_v24 = vrot.slane %v16868_v33, 3  ;;  %v4812_v53 = vrot.slane %v16868_v33, 4 }
 0x27c   : > { %19830 = vst [vmem:[#allocation66_spill] sm:$0xff] %v16866_v15  ;;  %3822 = vst.msk [vmem:[#allocation2 + $0xa8] sm:$0xff] %vm172_vm1, %v3787_v60  ;;  %v19654_v61 = vmax.f32 %v16866_v15, 0.0  ;;  %v3898_v51 = vrot.slane %v16870_v3, 3  ;;  %v4814_v26 = vrot.slane %v16870_v3, 4 }
 0x27d   : > { %v3744_v4 = vpack.c.bf16 %v19653_v40, %v19656_v36  ;;  %v16887_v60 = vsel %vm3876_vm7, %v3894_v22, %v3896_v24  ;;  %v16890_v37 = vsel %vm257_vm4, %v4810_v48, %v4812_v53 }
 0x27e   : > { %v3743_v10 = vpack.c.bf16 %v19654_v61, %v19655_v19  ;;  %13633 = vmatmul.mubr.msk.bf16.gmra.mrb[48].mxu1 %vm172_vm1, %v16887_v60  ;;  %13735 = vmatmul.mubr.msk.bf16.gmra.mrb[80].mxu0 %vm172_vm1, %v16890_v37  ;;  %v16901_v42 = vsel %vm3876_vm7, %v3896_v24, %v3898_v51  ;;  %v16906_v22 = vsel %vm257_vm4, %v4812_v53, %v4814_v26 }
 0x27f   : > { %v3790_v40 = vrot.slane %v3744_v4, 4  ;;  %13636 = vmatprep.mubr.msk.bf16.mxu1 %vm172_vm1, %v16901_v42  ;;  %13738 = vmatprep.mubr.msk.bf16.mxu0 %vm172_vm1, %v16906_v22 }
 0x280   : > { %v3788_v48 = vrot.slane %v3743_v10, 4 }
 0x281   : > { %3825 = vst.msk [vmem:[#allocation2 + $0xc0] sm:$0xf] %vm181_vm2, %v3790_v40 }
 0x282   : > { %v3789_v61 = vsel %vm257_vm4, %v3786_v0, %v3788_v48  ;;  %v3791_v19 = vsel %vm257_vm4, %v3788_v48, %v3790_v40  ;;  %v16913_v36 = vld [vmem:[#allocation2 + $0xa0] sm:$0xff] }
 0x283   : > { %19831 = vst [vmem:[#allocation67_spill] sm:$0xff] %v16913_v36  ;;  %v16915_v24 = vld [vmem:[#allocation2 + $0xa8] sm:$0xff]  ;;  %3823 = vst.msk [vmem:[#allocation2 + $0xb0] sm:$0xff] %vm172_vm1, %v3789_v61  ;;  %v3900_v53 = vrot.slane %v16913_v36, 3  ;;  %v4816_v10 = vrot.slane %v16913_v36, 4 }
 0x284   : > { %19832 = vst [vmem:[#allocation68_spill] sm:$0xff] %v16915_v24  ;;  %3824 = vst.msk [vmem:[#allocation2 + $0xb8] sm:$0xff] %vm172_vm1, %v3791_v19  ;;  %v16922_v4 = vrot.slane %v16915_v24, 3  ;;  %v16925_v15 = vrot.slane %v16915_v24, 4 }
 0x285   : > { %v16928_v0 = vsel %vm3876_vm7, %v3898_v51, %v3900_v53  ;;  %v16931_v40 = vsel %vm257_vm4, %v4814_v26, %v4816_v10 }
 0x286   : > { %v16935_v61 = vsel %vm3876_vm7, %v3900_v53, %v16922_v4  ;;  %v16939_v19 = vsel %vm257_vm4, %v4816_v10, %v16925_v15  ;;  %13637 = vmatmul.mubr.msk.bf16.gmra.mrb[52].mxu1 %vm172_vm1, %v16928_v0  ;;  %13739 = vmatmul.mubr.msk.bf16.gmra.mrb[84].mxu0 %vm172_vm1, %v16931_v40 }
 0x287   : > { %13640 = vmatprep.mubr.msk.bf16.mxu1 %vm172_vm1, %v16935_v61  ;;  %13742 = vmatprep.mubr.msk.bf16.mxu0 %vm172_vm1, %v16939_v19 }
 0x288   : > { %v3856_v16 = vld [vmem:[#allocation2 + $0xc0] sm:$0x7] }
 0x289   : > { %v4788_v6 = vld [vmem:[#allocation2 + $0xc0] sm:$0xf]  ;;  %v3908_v1 = vrot.slane %v3856_v16, 3 }
 0x28a   : > { %v16949_v51 = vld [vmem:[#allocation2 + $0xb0] sm:$0xff]  ;;  %v4824_v63 = vrot.slane %v4788_v6, 4  ;;  %v4129_v6 = vrot.slane %v16997_v57, 3 }
 0x28b   : > { %19833 = vst [vmem:[#allocation69_spill] sm:$0xff] %v16949_v51  ;;  %v16951_v26 = vld [vmem:[#allocation2 + $0xb8] sm:$0xff]  ;;  %v3904_v48 = vrot.slane %v16949_v51, 3  ;;  %v4820_v53 = vrot.slane %v16949_v51, 4 }
 0x28c   : > { %19834 = vst [vmem:[#allocation70_spill] sm:$0xff] %v16951_v26  ;;  %v16956_v10 = vrot.slane %v16951_v26, 3  ;;  %v16959_v34 = vrot.slane %v16951_v26, 4 }
 0x28d   : > { %v16963_v8 = vsel %vm3876_vm7, %v16922_v4, %v3904_v48  ;;  %v16967_v20 = vsel %vm257_vm4, %v16925_v15, %v4820_v53 }
 0x28e   : > { %v16971_v35 = vsel %vm3876_vm7, %v3904_v48, %v16956_v10  ;;  %v16975_v14 = vsel %vm257_vm4, %v4820_v53, %v16959_v34  ;;  %13641 = vmatmul.mubr.msk.bf16.gmra.mrb[56].mxu1 %vm172_vm1, %v16963_v8  ;;  %13743 = vmatmul.mubr.msk.bf16.gmra.mrb[88].mxu0 %vm172_vm1, %v16967_v20  ;;  %v16985_v48 = vld [vmem:[#allocation2 + $0x38] sm:$0xff]  ;;  %v4126_v53 = vrot.slane %v3834_v12, 3  ;;  %v3909_v24 = vsel %vm3876_vm7, %v16956_v10, %v3908_v1 }
 0x28f   : > { %13644 = vmatprep.mubr.msk.bf16.mxu1 %vm172_vm1, %v16971_v35  ;;  %13746 = vmatprep.mubr.msk.bf16.mxu0 %vm172_vm1, %v16975_v14  ;;  %v4127_v18 = vrot.slane %v16985_v48, 3  ;;  %v5041_v58 = vrot.slane %v16985_v48, 4  ;;  %v4825_v36 = vsel %vm257_vm4, %v16959_v34, %v4824_v63  ;;  %v4428_v1 = vsel %vm971_vm0, %v16629_v45, 0 }
 0x290   : > { %v5312_v12 = vsel %vm971_vm0, %v16634_v52, 0 }
 0x291   : > { %v4128_v26 = vsel %vm3876_vm7, %v4126_v53, %v4127_v18  ;;  %v5042_v51 = vsel %vm257_vm4, %v5040_v56, %v5041_v58  ;;  %v5043_v56 = vrot.slane %v16997_v57, 4  ;;  %v4130_v16 = vsel %vm3876_vm7, %v4127_v18, %v4129_v6  ;;  %v3850_v18 = vld [vmem:[#allocation2 + $0xb0] sm:$0x7] }
 0x293   : > { %v5044_v63 = vsel %vm257_vm4, %v5041_v58, %v5043_v56  ;;  %v5045_v58 = vsel %vm257_vm4, %v5043_v56, %v16536_v5  ;;  %v5224_v5 = vld [vmem:[#allocation2 + $0x50] sm:$0xf0]  ;;  %v5565_v56 = vrot.slane %v16808_v47, 5 }
 0x294   : > { %v5230_v45 = vrot.slane %v5224_v5, 4 }
 0x296   : > { %13645 = vmatmul.mubr.msk.bf16.gmra.mrb[60].mxu1 %vm172_vm1, %v3909_v24  ;;  %13747 = vmatmul.mubr.msk.bf16.gmra.mrb[92].mxu0 %vm172_vm1, %v4825_v36  ;;  %v4131_v36 = vsel %vm3876_vm7, %v4129_v6, %v16531_v32  ;;  %v12332_v24 = vld [vmem:[%s19501_s1 + $0x1c] sm:$0x3]  ;;  %v4310_v32 = vld [vmem:[#allocation2 + $0x50] sm:$0xf8]  ;;  %v5232_v53 = vsel %vm257_vm4, %v5230_v45, %v16596_v39  ;;  %v5544_v45 = vld [vmem:[#allocation2 + $0xc0] sm:$0x1f] }
 0x297   : > { %13650 = vmatprep.mubr.msk.bf16.mxu1 %vm172_vm1, %v4128_v26  ;;  %13752 = vmatprep.mubr.msk.bf16.mxu0 %vm172_vm1, %v5042_v51  ;;  %v5632_v6 = vsel %vm971_vm0, %v12332_v24, 0 }
 0x29e   : > { %13651 = vmatmul.mubr.msk.bf16.vlgmr.msra.gmra.mrb[32].mxu1 %vm172_vm1, %v4130_v16  ;;  %13753 = vmatmul.mubr.msk.bf16.vlgmr.msra.gmra.mrb[64].mxu0 %vm172_vm1, %v5044_v63  ;;  %v5569_v16 = vrot.slane %v16868_v33, 5  ;;  %v5571_v63 = vrot.slane %v16870_v3, 5 }
 0x29f   : > { %13683 = vmatpush3.bf16.msra.mxu1 %v4428_v1  ;;  %13654 = vmatprep.mubr.msk.bf16.mxu1 %vm172_vm1, %v4131_v36  ;;  %v5567_v1 = vrot.slane %v16810_v54, 5 }
 0x2a0   : > { %13756 = vmatprep.mubr.msk.bf16.mxu0 %vm172_vm1, %v5045_v58  ;;  %13785 = vmatpush3.bf16.msra.mxu0 %v5312_v12  ;;  %v17222_v54 = vsel %vm5549_vm8, %v5569_v16, %v5571_v63  ;;  %v19835_v12 = vld [vmem:[#allocation67_spill] sm:$0xff] }
 0x2a1   : > { %15251 = vmatprep.subr.msk.bf16.mxu1 %vm971_vm0, %v12332_v24  ;;  %v17217_v47 = vsel %vm5549_vm8, %v5567_v1, %v5569_v16  ;;  %v5573_v36 = vrot.slane %v19835_v12, 5  ;;  %v19836_v24 = vld [vmem:[#allocation68_spill] sm:$0xff] }
 0x2a2   : > { %v5575_v58 = vrot.slane %v19836_v24, 5 }
 0x2a3   : > { %v17229_v33 = vsel %vm5549_vm8, %v5571_v63, %v5573_v36 }
 0x2a4   : > { %v17234_v3 = vsel %vm5549_vm8, %v5573_v36, %v5575_v58 }
 0x2a6   : > { %13655 = vmatmul.mubr.msk.bf16.gmra.mrb[36].mxu1 %vm172_vm1, %v16606_v43  ;;  %13757 = vmatmul.mubr.msk.bf16.gmra.mrb[68].mxu0 %vm172_vm1, %v16610_v27  ;;  %v4784_v43 = vld [vmem:[#allocation2 + $0xb0] sm:$0xf]  ;;  %v4346_v27 = vrot.slane %v4310_v32, 3  ;;  %v19838_v32 = vld [vmem:[#allocation70_spill] sm:$0xff] }
 0x2a7   : > { %13658 = vmatprep.mubr.msk.bf16.mxu1 %vm172_vm1, %v16642_v59  ;;  %13760 = vmatprep.mubr.msk.bf16.mxu0 %vm172_vm1, %v16646_v13  ;;  %v4132_v13 = vrot.slane %v3850_v18, 3  ;;  %v5046_v59 = vrot.slane %v4784_v43, 4  ;;  %v19837_v18 = vld [vmem:[#allocation69_spill] sm:$0xff]  ;;  %v17240_v5 = vrot.slane %v19838_v32, 5 }
 0x2a8   : > { %v4348_v26 = vsel %vm3876_vm7, %v4346_v27, %v16593_v49  ;;  %v17136_v49 = vld [vmem:[#allocation2 + $0xc8] sm:$0xff]  ;;  %v5577_v43 = vrot.slane %v19837_v18, 5 }
 0x2a9   : > { %v4133_v52 = vsel %vm3876_vm7, %v16922_v4, %v4132_v13  ;;  %v5047_v51 = vsel %vm257_vm4, %v16925_v15, %v5046_v59  ;;  %v12331_v15 = vld [vmem:[%s19501_s1 + $0x16] sm:$0x3]  ;;  %v4375_v39 = vrot.slane %v17136_v49, 3  ;;  %v12365_v4 = vld [vmem:[%s19501_s1 + $0x22] sm:$0x3] }
 0x2aa   : > { %v17243_v13 = vsel %vm5549_vm8, %v5575_v58, %v5577_v43  ;;  %v5539_v59 = vld [vmem:[#allocation2 + $0x30] sm:$0xe0]  ;;  %v17249_v27 = vsel %vm5549_vm8, %v5577_v43, %v17240_v5 }
 0x2ae   : > { %13659 = vmatmul.mubr.msk.bf16.gmra.mrb[40].mxu1 %vm172_vm1, %v16694_v31  ;;  %13761 = vmatmul.mubr.msk.bf16.gmra.mrb[72].mxu0 %vm172_vm1, %v16698_v62 }
 0x2af   : > { %13662 = vmatprep.mubr.msk.bf16.mxu1 %vm172_vm1, %v16720_v41  ;;  %13764 = vmatprep.mubr.msk.bf16.mxu0 %vm172_vm1, %v16723_v11 }
 0x2b6   : > { %13663 = vmatmul.mubr.msk.bf16.gmra.mrb[44].mxu1 %vm172_vm1, %v16763_v7  ;;  %13765 = vmatmul.mubr.msk.bf16.gmra.mrb[76].mxu0 %vm172_vm1, %v16766_v46 }
 0x2b7   : > { %13666 = vmatprep.mubr.msk.bf16.mxu1 %vm172_vm1, %v16787_v30  ;;  %13768 = vmatprep.mubr.msk.bf16.mxu0 %vm172_vm1, %v16790_v50 }
 0x2be   : > { %13667 = vmatmul.mubr.msk.bf16.gmra.mrb[48].mxu1 %vm172_vm1, %v16829_v9  ;;  %13769 = vmatmul.mubr.msk.bf16.gmra.mrb[80].mxu0 %vm172_vm1, %v16832_v29 }
 0x2bf   : > { %13670 = vmatprep.mubr.msk.bf16.mxu1 %vm172_vm1, %v16851_v25  ;;  %13772 = vmatprep.mubr.msk.bf16.mxu0 %vm172_vm1, %v16854_v44 }
 0x2c6   : > { %13671 = vmatmul.mubr.msk.bf16.gmra.mrb[52].mxu1 %vm172_vm1, %v16887_v60  ;;  %13773 = vmatmul.mubr.msk.bf16.gmra.mrb[84].mxu0 %vm172_vm1, %v16890_v37 }
 0x2c7   : > { %13674 = vmatprep.mubr.msk.bf16.mxu1 %vm172_vm1, %v16901_v42  ;;  %13776 = vmatprep.mubr.msk.bf16.mxu0 %vm172_vm1, %v16906_v22 }
 0x2ce   : > { %13675 = vmatmul.mubr.msk.bf16.gmra.mrb[56].mxu1 %vm172_vm1, %v16928_v0  ;;  %13777 = vmatmul.mubr.msk.bf16.gmra.mrb[88].mxu0 %vm172_vm1, %v16931_v40 }
 0x2cf   : > { %13678 = vmatprep.mubr.msk.bf16.mxu1 %vm172_vm1, %v16935_v61  ;;  %13780 = vmatprep.mubr.msk.bf16.mxu0 %vm172_vm1, %v16939_v19 }
 0x2d6   : > { %13679 = vmatmul.mubr.msk.bf16.gmra.mrb[60].mxu1 %vm172_vm1, %v4133_v52  ;;  %13781 = vmatmul.mubr.msk.bf16.gmra.mrb[92].mxu0 %vm172_vm1, %v5047_v51  ;;  %v5797_v52 = vrot.slane %v5539_v59, 5  ;;  %v5798_v51 = vrot.slane %v16985_v48, 5 }
 0x2d7   : > { %13684 = vmatprep.mubr.msk.bf16.mxu1 %vm172_vm1, %v4348_v26  ;;  %13786 = vmatprep.mubr.msk.bf16.mxu0 %vm172_vm1, %v5232_v53  ;;  %v5581_v26 = vrot.slane %v5544_v45, 5 }
 0x2d8   : > { %v5799_v53 = vsel %vm5549_vm8, %v5797_v52, %v5798_v51 }
 0x2de   : > { %13685 = vmatmul.mubr.msk.bf16.vlgmr.msra.gmra.mrb[32].mxu1 %vm172_vm1, %v16694_v31  ;;  %13787 = vmatmul.mubr.msk.bf16.vlgmr.msra.gmra.mrb[64].mxu0 %vm172_vm1, %v16698_v62  ;;  %v4326_v62 = vld [vmem:[#allocation2 + $0xd0] sm:$0x7] }
 0x2df   : > { %13819 = vmatpush3.bf16.msra.mxu1 %v5632_v6  ;;  %13688 = vmatprep.mubr.msk.bf16.mxu1 %vm172_vm1, %v16720_v41  ;;  %v5225_v41 = vld [vmem:[#allocation2 + $0xd0] sm:$0xf]  ;;  %v5582_v6 = vsel %vm5549_vm8, %v17240_v5, %v5581_v26 }
 0x2e0   : > { %13790 = vmatprep.mubr.msk.bf16.mxu0 %vm172_vm1, %v16723_v11  ;;  %15252 = vmatprep.subr.msk.bf16.mxu1 %vm971_vm0, %v12331_v15  ;;  %v19844_v26 = vld [vmem:[#allocation8_spill] sm:$0xff] }
 0x2e1   : > { %vm4631_vm13 = vcmp.ge.s32.totalorder %v19844_v26, 2 }
 0x2e6   : > { %13689 = vmatmul.mubr.msk.bf16.gmra.mrb[36].mxu1 %vm172_vm1, %v16763_v7  ;;  %13791 = vmatmul.mubr.msk.bf16.gmra.mrb[68].mxu0 %vm172_vm1, %v16766_v46  ;;  %v17134_v46 = vld [vmem:[#allocation2 + $0xc0] sm:$0xff] }
 0x2e7   : > { %13692 = vmatprep.mubr.msk.bf16.mxu1 %vm172_vm1, %v16787_v30  ;;  %13794 = vmatprep.mubr.msk.bf16.mxu0 %vm172_vm1, %v16790_v50  ;;  %v4373_v31 = vrot.slane %v17134_v46, 3  ;;  %v5257_v7 = vrot.slane %v17134_v46, 4  ;;  %v4377_v30 = vrot.slane %v4326_v62, 3  ;;  %v5261_v50 = vrot.slane %v5225_v41, 4  ;;  %v5981_v62 = vld [vmem:[#allocation2 + $0x50] sm:$0xe0] }
 0x2e9   : > { %v4374_v11 = vsel %vm3876_vm7, %v16956_v10, %v4373_v31  ;;  %v5563_v10 = vrot.slane %v16744_v28, 5  ;;  %v17210_v28 = vsel %vm5549_vm8, %v5565_v56, %v5567_v1 }
 0x2ee   : > { %13693 = vmatmul.mubr.msk.bf16.gmra.mrb[40].mxu1 %vm172_vm1, %v16829_v9  ;;  %13795 = vmatmul.mubr.msk.bf16.gmra.mrb[72].mxu0 %vm172_vm1, %v16832_v29  ;;  %v4376_v29 = vsel %vm3876_vm7, %v4373_v31, %v4375_v39  ;;  %v4378_v9 = vsel %vm3876_vm7, %v4375_v39, %v4377_v30  ;;  %v6069_v31 = vsel %vm971_vm0, %v12365_v4, 0  ;;  %v17314_v30 = vld [vmem:[%s19502_s2 + $0x1] ss:$0 sm:$0xff] }
 0x2ef   : > { %13696 = vmatprep.mubr.msk.bf16.mxu1 %vm172_vm1, %v16851_v25  ;;  %13798 = vmatprep.mubr.msk.bf16.mxu0 %vm172_vm1, %v16854_v44  ;;  %v17153_v25 = vrot.slane %v16522_v23, 5  ;;  %v5818_v23 = vsel %vm971_vm0, %v12331_v15, 0  ;;  %v5800_v15 = vrot.slane %v16997_v57, 5  ;;  %v12385_v57 = vld [vmem:[%s19501_s1 + $0x2a] sm:$0x3] }
 0x2f0   : > { %15254 = vmatprep.subr.msk.bf16.mxu0 %vm971_vm0, %v12385_v57  ;;  %v6720_v39 = vsel %vm971_vm0, %v12385_v57, 0 }
 0x2f1   : > { %v5802_v48 = vsel %vm5549_vm8, %v5800_v15, %v17153_v25  ;;  %13921 = vmatpush3.bf16.msra.mxu0 %v6720_v39 }
 0x2f6   : > { %13697 = vmatmul.mubr.msk.bf16.gmra.mrb[44].mxu1 %vm172_vm1, %v16887_v60  ;;  %13799 = vmatmul.mubr.msk.bf16.gmra.mrb[76].mxu0 %vm172_vm1, %v16890_v37  ;;  %v17164_v60 = vrot.slane %v16580_v38, 5  ;;  %v5559_v38 = vrot.slane %v16673_v17, 5 }
 0x2f7   : > { %13700 = vmatprep.mubr.msk.bf16.mxu1 %vm172_vm1, %v16901_v42  ;;  %13802 = vmatprep.mubr.msk.bf16.mxu0 %vm172_vm1, %v16906_v22  ;;  %v5553_v42 = vrot.slane %v16578_v2, 5  ;;  %v5557_v2 = vrot.slane %v16671_v21, 5 }
 0x2f9   : > { %v5554_v22 = vsel %vm5549_vm8, %v17153_v25, %v5553_v42 }
 0x2fe   : > { %13701 = vmatmul.mubr.msk.bf16.gmra.mrb[48].mxu1 %vm172_vm1, %v16928_v0  ;;  %13803 = vmatmul.mubr.msk.bf16.gmra.mrb[80].mxu0 %vm172_vm1, %v16931_v40  ;;  %v5556_v0 = vsel %vm5549_vm8, %v5553_v42, %v17164_v60  ;;  %v17181_v40 = vsel %vm5549_vm8, %v17164_v60, %v5557_v2 }
 0x2ff   : > { %13704 = vmatprep.mubr.msk.bf16.mxu1 %vm172_vm1, %v16935_v61  ;;  %13806 = vmatprep.mubr.msk.bf16.mxu0 %vm172_vm1, %v16939_v19  ;;  %v17186_v61 = vsel %vm5549_vm8, %v5557_v2, %v5559_v38  ;;  %v5561_v19 = vrot.slane %v16741_v55, 5  ;;  %v17205_v55 = vsel %vm5549_vm8, %v5563_v10, %v5565_v56 }
 0x301   : > { %v17193_v21 = vsel %vm5549_vm8, %v5559_v38, %v5561_v19  ;;  %v17198_v17 = vsel %vm5549_vm8, %v5561_v19, %v5563_v10 }
 0x306   : > { %13705 = vmatmul.mubr.msk.bf16.gmra.mrb[52].mxu1 %vm172_vm1, %v16963_v8  ;;  %13807 = vmatmul.mubr.msk.bf16.gmra.mrb[84].mxu0 %vm172_vm1, %v16967_v20  ;;  %v5259_v8 = vrot.slane %v17136_v49, 4  ;;  %v5543_v20 = vld [vmem:[#allocation2 + $0x40] sm:$0xe0] }
 0x307   : > { %13708 = vmatprep.mubr.msk.bf16.mxu1 %vm172_vm1, %v16971_v35  ;;  %13810 = vmatprep.mubr.msk.bf16.mxu0 %vm172_vm1, %v16975_v14  ;;  %v5258_v14 = vsel %vm257_vm4, %v16959_v34, %v5257_v7  ;;  %v5550_v37 = vrot.slane %v5543_v20, 5 }
 0x308   : > { %v5260_v35 = vsel %vm257_vm4, %v5257_v7, %v5259_v8  ;;  %v5262_v34 = vsel %vm257_vm4, %v5259_v8, %v5261_v50  ;;  %v5801_v7 = vsel %vm5549_vm8, %v5798_v51, %v5800_v15  ;;  %v5540_v8 = vld [vmem:[#allocation2 + $0xb0] sm:$0x1f]  ;;  %v19843_v51 = vld [vmem:[#allocation7_spill] sm:$0xff] }
 0x309   : > { %v5552_v44 = vsel %vm5549_vm8, %v5550_v37, %v17153_v25  ;;  %v5803_v41 = vrot.slane %v5540_v8, 5  ;;  %v19840_v50 = vld [vmem:[#allocation4_spill] sm:$0xff]  ;;  %vm4633_vm12 = vcmp.ge.s32.totalorder %v19843_v51, 2  ;;  %v7556_v51 = vld [vmem:[#allocation2 + $0x20] sm:$0xf0] }
 0x30a   : > { %vm4623_vm9 = vcmp.ge.s32.totalorder %v19840_v50, 2 }
 0x30e   : > { %13709 = vmatmul.mubr.msk.bf16.gmra.mrb[56].mxu1 %vm172_vm1, %v4374_v11  ;;  %13811 = vmatmul.mubr.msk.bf16.gmra.mrb[88].mxu0 %vm172_vm1, %v5258_v14  ;;  %v5987_v11 = vrot.slane %v5981_v62, 5  ;;  %v5804_v14 = vsel %vm5549_vm8, %v5575_v58, %v5803_v41 }
 0x30f   : > { %13712 = vmatprep.mubr.msk.bf16.mxu1 %vm172_vm1, %v4376_v29  ;;  %13814 = vmatprep.mubr.msk.bf16.mxu0 %vm172_vm1, %v5260_v35  ;;  %v19839_v35 = vld [vmem:[#allocation3_spill] sm:$0xff] }
 0x310   : > { %v5989_v29 = vsel %vm5549_vm8, %v5987_v11, %v17164_v60  ;;  %vm4625_vm7 = vcmp.ge.s32.totalorder %v19839_v35, 2 }
 0x316   : > { %13713 = vmatmul.mubr.msk.bf16.gmra.mrb[60].mxu1 %vm172_vm1, %v4378_v9  ;;  %13815 = vmatmul.mubr.msk.bf16.gmra.mrb[92].mxu0 %vm172_vm1, %v5262_v34 }
 0x317   : > { %13820 = vmatprep.mubr.msk.bf16.mxu1 %vm172_vm1, %v5552_v44 }
 0x31e   : > { %13821 = vmatmul.mubr.msk.bf16.vlgmr.msra.gmra.mrb[64].mxu1 %vm172_vm1, %v5554_v22 }
 0x31f   : > { %13853 = vmatpush3.bf16.msra.mxu1 %v5818_v23  ;;  %13824 = vmatprep.mubr.msk.bf16.mxu1 %vm172_vm1, %v5556_v0 }
 0x320   : > { %15253 = vmatprep.subr.msk.bf16.mxu1 %vm971_vm0, %v12365_v4 }
 0x326   : > { %13825 = vmatmul.mubr.msk.bf16.gmra.mrb[68].mxu1 %vm172_vm1, %v17181_v40 }
 0x327   : > { %13828 = vmatprep.mubr.msk.bf16.mxu1 %vm172_vm1, %v17186_v61 }
 0x32e   : > { %13829 = vmatmul.mubr.msk.bf16.gmra.mrb[72].mxu1 %vm172_vm1, %v17193_v21 }
 0x32f   : > { %13832 = vmatprep.mubr.msk.bf16.mxu1 %vm172_vm1, %v17198_v17 }
 0x336   : > { %13833 = vmatmul.mubr.msk.bf16.gmra.mrb[76].mxu1 %vm172_vm1, %v17205_v55 }
 0x337   : > { %13836 = vmatprep.mubr.msk.bf16.mxu1 %vm172_vm1, %v17210_v28 }
 0x33e   : > { %13837 = vmatmul.mubr.msk.bf16.gmra.mrb[80].mxu1 %vm172_vm1, %v17217_v47 }
 0x33f   : > { %13840 = vmatprep.mubr.msk.bf16.mxu1 %vm172_vm1, %v17222_v54 }
 0x346   : > { %13841 = vmatmul.mubr.msk.bf16.gmra.mrb[84].mxu1 %vm172_vm1, %v17229_v33 }
 0x347   : > { %13844 = vmatprep.mubr.msk.bf16.mxu1 %vm172_vm1, %v17234_v3 }
 0x34e   : > { %13845 = vmatmul.mubr.msk.bf16.gmra.mrb[88].mxu1 %vm172_vm1, %v17243_v13 }
 0x34f   : > { %13848 = vmatprep.mubr.msk.bf16.mxu1 %vm172_vm1, %v17249_v27 }
 0x356   : > { %13849 = vmatmul.mubr.msk.bf16.gmra.mrb[92].mxu1 %vm172_vm1, %v5582_v6 }
 0x357   : > { %13854 = vmatprep.mubr.msk.bf16.mxu1 %vm172_vm1, %v5799_v53 }
 0x35e   : > { %13855 = vmatmul.mubr.msk.bf16.vlgmr.msra.gmra.mrb[64].mxu1 %vm172_vm1, %v5801_v7 }
 0x35f   : > { %13887 = vmatpush3.bf16.msra.mxu1 %v6069_v31  ;;  %13858 = vmatprep.mubr.msk.bf16.mxu1 %vm172_vm1, %v5802_v48 }
 0x366   : > { %13859 = vmatmul.mubr.msk.bf16.gmra.mrb[68].mxu1 %vm172_vm1, %v5554_v22 }
 0x367   : > { %13862 = vmatprep.mubr.msk.bf16.mxu1 %vm172_vm1, %v5556_v0 }
 0x36e   : > { %13863 = vmatmul.mubr.msk.bf16.gmra.mrb[72].mxu1 %vm172_vm1, %v17181_v40 }
 0x36f   : > { %13866 = vmatprep.mubr.msk.bf16.mxu1 %vm172_vm1, %v17186_v61 }
 0x376   : > { %13867 = vmatmul.mubr.msk.bf16.gmra.mrb[76].mxu1 %vm172_vm1, %v17193_v21 }
 0x377   : > { %13870 = vmatprep.mubr.msk.bf16.mxu1 %vm172_vm1, %v17198_v17 }
 0x37e   : > { %13871 = vmatmul.mubr.msk.bf16.gmra.mrb[80].mxu1 %vm172_vm1, %v17205_v55 }
 0x37f   : > { %13874 = vmatprep.mubr.msk.bf16.mxu1 %vm172_vm1, %v17210_v28 }
 0x386   : > { %13875 = vmatmul.mubr.msk.bf16.gmra.mrb[84].mxu1 %vm172_vm1, %v17217_v47 }
 0x387   : > { %13878 = vmatprep.mubr.msk.bf16.mxu1 %vm172_vm1, %v17222_v54 }
 0x38e   : > { %13879 = vmatmul.mubr.msk.bf16.gmra.mrb[88].mxu1 %vm172_vm1, %v17229_v33 }
 0x38f   : > { %13882 = vmatprep.mubr.msk.bf16.mxu1 %vm172_vm1, %v17234_v3 }
 0x396   : > { %13883 = vmatmul.mubr.msk.bf16.gmra.mrb[92].mxu1 %vm172_vm1, %v5804_v14 }
 0x397   : > { %13888 = vmatprep.mubr.msk.bf16.mxu1 %vm172_vm1, %v5989_v29 }
 0x39e   : > { %13889 = vmatmul.mubr.msk.bf16.vlgmr.msra.gmra.mrb[64].mxu1 %vm172_vm1, %v17181_v40 }
 0x39f   : > { %13892 = vmatprep.mubr.msk.bf16.mxu1 %vm172_vm1, %v17186_v61 }
 0x3a6   : > { %13893 = vmatmul.mubr.msk.bf16.gmra.mrb[68].mxu1 %vm172_vm1, %v17193_v21  ;;  %v19841_v21 = vld [vmem:[#allocation5_spill] sm:$0xff] }
 0x3a7   : > { %13896 = vmatprep.mubr.msk.bf16.mxu1 %vm172_vm1, %v17198_v17  ;;  %vm4629_vm10 = vcmp.ge.s32.totalorder %v19841_v21, 2  ;;  %v19842_v17 = vld [vmem:[#allocation6_spill] sm:$0xff] }
 0x3a8   : > { %vm4627_vm11 = vcmp.ge.s32.totalorder %v19842_v17, 2 }
 0x3ae   : > { %13897 = vmatmul.mubr.msk.bf16.gmra.mrb[72].mxu1 %vm172_vm1, %v17205_v55 }
 0x3af   : > { %13900 = vmatprep.mubr.msk.bf16.mxu1 %vm172_vm1, %v17210_v28 }
 0x3b1   : > { %v13686_v20 = vpop.f32.mrb[32].mxu1  ;;  %v13788_v37 = vpop.f32.mrb[64].mxu0 }
 0x3b2   : > { %v4721_v25 = vsel %vm4625_vm7, %v13686_v20, 0.0  ;;  %v4464_v9 = vpop.f32.mrb[33].mxu1  ;;  %v5348_v34 = vpop.f32.mrb[65].mxu0 }
 0x3b3   : > { %v4753_v44 = vadd.f32 %v17314_v30, %v4721_v25  ;;  %v4719_v42 = vsel %vm4623_vm9, %v4464_v9, 0.0  ;;  %v13687_v60 = vpop.f32.mrb[34].mxu1  ;;  %v13789_v23 = vpop.f32.mrb[66].mxu0  ;;  %v19845_v25 = vld [vmem:[#allocation10_spill] sm:$0xff]  ;;  %v19846_v9 = vld [vmem:[#allocation11_spill] sm:$0xff] }
 0x3b4   : > { %v4751_v22 = vadd.f32 %v17314_v30, %v4719_v42  ;;  %v4754_v4 = vadd.f32 %v13687_v60, %v17314_v30  ;;  %v4467_v0 = vpop.f32.mrb[35].mxu1  ;;  %v5351_v2 = vpop.f32.mrb[67].mxu0  ;;  %vm4637_vm14 = vcmp.ge.s32.totalorder %v19845_v25, 2  ;;  %vm4635_vm15 = vcmp.ge.s32.totalorder %v19846_v9, 2  ;;  %v15301_v9 = vld [vmem:[%s15400_s25 + $0xb0] sm:$0xff]  ;;  %v19910_v25 = vld [vmem:[#allocation51_spill] sm:$0xff] }
 0x3b5   : > { %v17320_v38 = vadd.f32 %v13788_v37, %v4753_v44  ;;  %v4752_v40 = vadd.f32 %v17314_v30, %v4467_v0 }
 0x3b6   : > { %v17323_v61 = vadd.f32 %v5348_v34, %v4751_v22  ;;  %v17325_v19 = vadd.f32 %v13789_v23, %v4754_v4  ;;  %13901 = vmatmul.mubr.msk.bf16.gmra.mrb[76].mxu1 %vm172_vm1, %v17217_v47  ;;  %v6014_v22 = vrot.slane %v17134_v46, 5  ;;  %v6016_v4 = vrot.slane %v17136_v49, 5 }
 0x3b7   : > { %v17329_v10 = vadd.f32 %v5351_v2, %v4752_v40  ;;  %13904 = vmatprep.mubr.msk.bf16.mxu1 %vm172_vm1, %v17222_v54 }
 0x3b8   : > { %v6015_v46 = vsel %vm5549_vm8, %v17240_v5, %v6014_v22 }
 0x3b9   : > { %v13690_v56 = vpop.f32.mrb[36].mxu1  ;;  %v13792_v1 = vpop.f32.mrb[68].mxu0 }
 0x3ba   : > { %v4725_v55 = vsel %vm4629_vm10, %v13690_v56, 0.0  ;;  %v4480_v28 = vpop.f32.mrb[37].mxu1  ;;  %v5364_v16 = vpop.f32.mrb[69].mxu0 }
 0x3bb   : > { %v4757_v63 = vadd.f32 %v17314_v30, %v4725_v55  ;;  %v4723_v12 = vsel %vm4627_vm11, %v4480_v28, 0.0  ;;  %v13691_v36 = vpop.f32.mrb[38].mxu1  ;;  %v13793_v24 = vpop.f32.mrb[70].mxu0  ;;  %v5982_v28 = vld [vmem:[#allocation2 + $0xd0] sm:$0x1f] }
 0x3bc   : > { %v4755_v47 = vadd.f32 %v17314_v30, %v4723_v12  ;;  %v4758_v58 = vadd.f32 %v13691_v36, %v17314_v30  ;;  %v4483_v18 = vpop.f32.mrb[39].mxu1  ;;  %v5367_v54 = vpop.f32.mrb[71].mxu0  ;;  %v6017_v36 = vsel %vm5549_vm8, %v6014_v22, %v6016_v4 }
 0x3bd   : > { %v17338_v43 = vadd.f32 %v13792_v1, %v4757_v63  ;;  %v4756_v32 = vadd.f32 %v17314_v30, %v4483_v18  ;;  %v19848_v18 = vld [vmem:[#allocation13_spill] sm:$0xff] }
 0x3be   : > { %v17341_v59 = vadd.f32 %v5364_v16, %v4755_v47  ;;  %v17343_v45 = vadd.f32 %v13793_v24, %v4758_v58  ;;  %13905 = vmatmul.mubr.msk.bf16.gmra.mrb[80].mxu1 %vm172_vm1, %v17229_v33  ;;  %v19847_v47 = vld [vmem:[#allocation12_spill] sm:$0xff]  ;;  %v6018_v58 = vrot.slane %v5982_v28, 5  ;;  %vm4639_vm6 = vcmp.ge.s32.totalorder %v19848_v18, 2 }
 0x3bf   : > { %v17347_v52 = vadd.f32 %v5367_v54, %v4756_v32  ;;  %13908 = vmatprep.mubr.msk.bf16.mxu1 %vm172_vm1, %v17234_v3  ;;  %vm4641_vm5 = vcmp.ge.s32.totalorder %v19847_v47, 2 }
 0x3c1   : > { %v13694_v53 = vpop.f32.mrb[40].mxu1  ;;  %v13796_v6 = vpop.f32.mrb[72].mxu0 }
 0x3c2   : > { %v4729_v15 = vsel %vm4633_vm12, %v13694_v53, 0.0  ;;  %v4496_v31 = vpop.f32.mrb[41].mxu1  ;;  %v5380_v7 = vpop.f32.mrb[73].mxu0 }
 0x3c3   : > { %v4761_v48 = vadd.f32 %v17314_v30, %v4729_v15  ;;  %v4727_v57 = vsel %vm4631_vm13, %v4496_v31, 0.0  ;;  %v13695_v39 = vpop.f32.mrb[42].mxu1  ;;  %v13797_v8 = vpop.f32.mrb[74].mxu0 }
 0x3c4   : > { %v4759_v33 = vadd.f32 %v17314_v30, %v4727_v57  ;;  %v4762_v62 = vadd.f32 %v13695_v39, %v17314_v30  ;;  %v4499_v41 = vpop.f32.mrb[43].mxu1  ;;  %v5383_v3 = vpop.f32.mrb[75].mxu0  ;;  %v6019_v57 = vsel %vm5549_vm8, %v6016_v4, %v6018_v58 }
 0x3c5   : > { %v17356_v11 = vadd.f32 %v13796_v6, %v4761_v48  ;;  %v4760_v14 = vadd.f32 %v17314_v30, %v4499_v41 }
 0x3c6   : > { %v17359_v29 = vadd.f32 %v5380_v7, %v4759_v33  ;;  %v17361_v20 = vadd.f32 %v13797_v8, %v4762_v62  ;;  %13909 = vmatmul.mubr.msk.bf16.gmra.mrb[84].mxu1 %vm172_vm1, %v17243_v13 }
 0x3c7   : > { %v17365_v37 = vadd.f32 %v5383_v3, %v4760_v14  ;;  %13912 = vmatprep.mubr.msk.bf16.mxu1 %vm172_vm1, %v17249_v27 }
 0x3c9   : > { %v13698_v34 = vpop.f32.mrb[44].mxu1  ;;  %v13800_v44 = vpop.f32.mrb[76].mxu0 }
 0x3ca   : > { %v4733_v42 = vsel %vm4637_vm14, %v13698_v34, 0.0  ;;  %v4512_v60 = vpop.f32.mrb[45].mxu1  ;;  %v5396_v23 = vpop.f32.mrb[77].mxu0 }
 0x3cb   : > { %v4765_v13 = vadd.f32 %v17314_v30, %v4733_v42  ;;  %v4731_v0 = vsel %vm4635_vm15, %v4512_v60, 0.0  ;;  %v13699_v2 = vpop.f32.mrb[46].mxu1  ;;  %v13801_v40 = vpop.f32.mrb[78].mxu0  ;;  %v19849_v42 = vld [vmem:[#allocation14_spill] sm:$0xff]  ;;  %v19850_v60 = vld [vmem:[#allocation9_spill] sm:$0xff] }
 0x3cc   : > { %v4763_v27 = vadd.f32 %v17314_v30, %v4731_v0  ;;  %v4766_v56 = vadd.f32 %v13699_v2, %v17314_v30  ;;  %v4515_v1 = vpop.f32.mrb[47].mxu1  ;;  %v5399_v55 = vpop.f32.mrb[79].mxu0  ;;  %vm4645_vm8 = vcmp.ge.s32.totalorder %v19849_v42, 2  ;;  %vm4643_vm7 = vcmp.ge.s32.totalorder %v19850_v60, 2  ;;  %v15284_v60 = vld [vmem:[%s15400_s25 + $0x8] sm:$0xff]  ;;  %v19865_v42 = vld [vmem:[#allocation25_spill] sm:$0xff] }
 0x3cd   : > { %v17376_v16 = vadd.f32 %v13800_v44, %v4765_v13  ;;  %v4764_v63 = vadd.f32 %v17314_v30, %v4515_v1 }
 0x3ce   : > { %v17381_v49 = vadd.f32 %v5396_v23, %v4763_v27  ;;  %v17383_v12 = vadd.f32 %v13801_v40, %v4766_v56  ;;  %13913 = vmatmul.mubr.msk.bf16.gmra.mrb[88].mxu1 %vm172_vm1, %v6015_v46 }
 0x3cf   : > { %v17387_v24 = vadd.f32 %v5399_v55, %v4764_v63  ;;  %13916 = vmatprep.mubr.msk.bf16.mxu1 %vm172_vm1, %v6017_v36 }
 0x3d1   : > { %v13702_v54 = vpop.f32.mrb[48].mxu1  ;;  %v13804_v32 = vpop.f32.mrb[80].mxu0 }
 0x3d2   : > { %v4737_v5 = vsel %vm4641_vm5, %v13702_v54, 0.0  ;;  %v4528_v53 = vpop.f32.mrb[49].mxu1  ;;  %v5412_v6 = vpop.f32.mrb[81].mxu0 }
 0x3d3   : > { %v4769_v15 = vadd.f32 %v17314_v30, %v4737_v5  ;;  %v4735_v31 = vsel %vm4639_vm6, %v4528_v53, 0.0  ;;  %v13703_v7 = vpop.f32.mrb[50].mxu1  ;;  %v13805_v48 = vpop.f32.mrb[82].mxu0  ;;  %v19851_v5 = vld [vmem:[#allocation15_spill] sm:$0xff]  ;;  %v19852_v53 = vld [vmem:[#allocation16_spill] sm:$0xff] }
 0x3d4   : > { %v4767_v39 = vadd.f32 %v17314_v30, %v4735_v31  ;;  %v4770_v8 = vadd.f32 %v13703_v7, %v17314_v30  ;;  %v4531_v33 = vpop.f32.mrb[51].mxu1  ;;  %v5415_v62 = vpop.f32.mrb[83].mxu0  ;;  %vm4649_vm9 = vcmp.ge.s32.totalorder %v19851_v5, 2  ;;  %vm4647_vm10 = vcmp.ge.s32.totalorder %v19852_v53, 2  ;;  %v15283_v53 = vld [vmem:[%s15400_s25 + $0x18] sm:$0xff] }
 0x3d5   : > { %v17396_v41 = vadd.f32 %v13804_v32, %v4769_v15  ;;  %v4768_v3 = vadd.f32 %v17314_v30, %v4531_v33 }
 0x3d6   : > { %v17399_v14 = vadd.f32 %v5412_v6, %v4767_v39  ;;  %v17401_v34 = vadd.f32 %v13805_v48, %v4770_v8  ;;  %13917 = vmatmul.mubr.msk.bf16.gmra.mrb[92].mxu1 %vm172_vm1, %v6019_v57 }
 0x3d7   : > { %v17404_v44 = vadd.f32 %v5415_v62, %v4768_v3 }
 0x3d9   : > { %v13706_v23 = vpop.f32.mrb[52].mxu1  ;;  %v13808_v22 = vpop.f32.mrb[84].mxu0 }
 0x3da   : > { %v4741_v4 = vsel %vm4645_vm8, %v13706_v23, 0.0  ;;  %v4544_v13 = vpop.f32.mrb[53].mxu1  ;;  %v5428_v0 = vpop.f32.mrb[85].mxu0 }
 0x3db   : > { %v4773_v2 = vadd.f32 %v17314_v30, %v4741_v4  ;;  %v4739_v40 = vsel %vm4643_vm7, %v4544_v13, 0.0  ;;  %v13707_v27 = vpop.f32.mrb[54].mxu1  ;;  %v13809_v56 = vpop.f32.mrb[86].mxu0  ;;  %vm6637_vm7 = vcmask 1045504  }
 0x3dc   : > { %v4771_v1 = vadd.f32 %v17314_v30, %v4739_v40  ;;  %v4774_v55 = vadd.f32 %v13707_v27, %v17314_v30  ;;  %v4547_v28 = vpop.f32.mrb[55].mxu1  ;;  %v5431_v63 = vpop.f32.mrb[87].mxu0  ;;  %v19853_v27 = vld [vmem:[#allocation17_spill] sm:$0xff] }
 0x3dd   : > { %v17411_v46 = vadd.f32 %v13808_v22, %v4773_v2  ;;  %v4772_v36 = vadd.f32 %v17314_v30, %v4547_v28  ;;  %vm4653_vm11 = vcmp.ge.s32.totalorder %v19853_v27, 2 }
 0x3de   : > { %v17414_v58 = vadd.f32 %v5428_v0, %v4771_v1  ;;  %v17416_v54 = vadd.f32 %v13809_v56, %v4774_v55  ;;  %v19854_v56 = vld [vmem:[#allocation18_spill] sm:$0xff] }
 0x3df   : > { %v17418_v32 = vadd.f32 %v5431_v63, %v4772_v36  ;;  %vm4651_vm12 = vcmp.ge.s32.totalorder %v19854_v56, 2  ;;  %v19859_v56 = vld [vmem:[#allocation22_spill] sm:$0xff] }
 0x3e1   : > { %v13710_v6 = vpop.f32.mrb[56].mxu1  ;;  %v13812_v15 = vpop.f32.mrb[88].mxu0 }
 0x3e2   : > { %v4745_v31 = vsel %vm4649_vm9, %v13710_v6, 0.0  ;;  %v4560_v7 = vpop.f32.mrb[57].mxu1  ;;  %v5444_v48 = vpop.f32.mrb[89].mxu0 }
 0x3e3   : > { %v4777_v57 = vadd.f32 %v17314_v30, %v4745_v31  ;;  %v4743_v39 = vsel %vm4647_vm10, %v4560_v7, 0.0  ;;  %v13711_v8 = vpop.f32.mrb[58].mxu1  ;;  %v13813_v33 = vpop.f32.mrb[90].mxu0 }
 0x3e4   : > { %v4775_v62 = vadd.f32 %v17314_v30, %v4743_v39  ;;  %v4778_v3 = vadd.f32 %v13711_v8, %v17314_v30  ;;  %v4563_v23 = vpop.f32.mrb[59].mxu1  ;;  %v5447_v22 = vpop.f32.mrb[91].mxu0 }
 0x3e5   : > { %v17425_v4 = vadd.f32 %v13812_v15, %v4777_v57  ;;  %v4776_v13 = vadd.f32 %v17314_v30, %v4563_v23 }
 0x3e6   : > { %v17428_v0 = vadd.f32 %v5444_v48, %v4775_v62  ;;  %v17430_v2 = vadd.f32 %v13813_v33, %v4778_v3 }
 0x3e7   : > { %v17432_v40 = vadd.f32 %v5447_v22, %v4776_v13  ;;  %v12436_v13 = vld [vmem:[%s19501_s1 + $0x2c] sm:$0x3] }
 0x3e8   : > { %15257 = vmatprep.subr.msk.bf16.mxu1 %vm971_vm0, %v12436_v13 }
 0x3e9   : > { %v13714_v1 = vpop.f32.mrb[60].mxu1  ;;  %v13816_v55 = vpop.f32.mrb[92].mxu0 }
 0x3ea   : > { %v4749_v28 = vsel %vm4653_vm11, %v13714_v1, 0.0  ;;  %v4576_v63 = vpop.f32.mrb[61].mxu1  ;;  %v5460_v36 = vpop.f32.mrb[93].mxu0  ;;  %v17454_v1 = vld [vmem:[%s19501_s1 + $0x24] sm:$0x3] }
 0x3eb   : > { %v4781_v6 = vadd.f32 %v17314_v30, %v4749_v28  ;;  %v4747_v15 = vsel %vm4651_vm12, %v4576_v63, 0.0  ;;  %v13715_v31 = vpop.f32.mrb[62].mxu1  ;;  %v13817_v7 = vpop.f32.mrb[94].mxu0  ;;  %15255 = vmatprep.subr.msk.bf16.mxu0 %vm971_vm0, %v17454_v1  ;;  %v19855_v63 = vld [vmem:[#allocation19_spill] sm:$0xff] }
 0x3ec   : > { %v4779_v48 = vadd.f32 %v17314_v30, %v4747_v15  ;;  %v4782_v57 = vadd.f32 %v13715_v31, %v17314_v30  ;;  %v4579_v39 = vpop.f32.mrb[63].mxu1  ;;  %v5463_v8 = vpop.f32.mrb[95].mxu0  ;;  %vm6267_vm13 = vcmp.lt.s32.totalorder %v19855_v63, 14  ;;  %v19856_v15 = vld [vmem:[#allocation20_spill] sm:$0xff]  ;;  %v15282_v63 = vld [vmem:[%s15400_s25] sm:$0xff] }
 0x3ed   : > { %v17439_v33 = vadd.f32 %v13816_v55, %v4781_v6  ;;  %v4780_v62 = vadd.f32 %v17314_v30, %v4579_v39  ;;  %v7648_v30 = vsel %vm971_vm0, %v12436_v13, 0  ;;  %v17463_v55 = vld [vmem:[%s19501_s1 + $0x26] sm:$0x3]  ;;  %vm6265_vm14 = vcmp.lt.s32.totalorder %v19856_v15, 14 }
 0x3ee   : > { %v17442_v3 = vadd.f32 %v5460_v36, %v4779_v48  ;;  %v17444_v23 = vadd.f32 %v13817_v7, %v4782_v57  ;;  %14023 = vmatpush3.bf16.msra.mxu1 %v7648_v30  ;;  %v15281_v48 = vld [vmem:[%s15400_s25 + $0x10] sm:$0xff]  ;;  %v19857_v57 = vld [vmem:[#allocation21_spill] sm:$0xff] }
 0x3ef   : > { %v17446_v22 = vadd.f32 %v5463_v8, %v4780_v62  ;;  %15258 = vmatprep.subr.msk.bf16.mxu1 %vm971_vm0, %v17463_v55  ;;  %v19858_v39 = vmax.f32 %v19857_v57, 0.0 }
 0x3f1   : > { %v3699_v8 = vadd.f32 %v15281_v48, %v19858_v39  ;;  %v19862_v48 = vld [vmem:[#allocation23_spill] sm:$0xff] }
 0x471   : > { %v13890_v28 = vpop.f32.mrb[64].mxu1 }
 0x472   : > { %v6394_v36 = vadd.f32 %v13890_v28, %v17320_v38  ;;  %v6105_v6 = vpop.f32.mrb[65].mxu1  ;;  %v19860_v38 = vmax.f32 %v19859_v56, 0.0  ;;  %v19866_v56 = vmax.f32 %v19865_v42, 0.0 }
 0x473   : > { %v6392_v31 = vadd.f32 %v6105_v6, %v17323_v61  ;;  %v13891_v7 = vpop.f32.mrb[66].mxu1 }
 0x474   : > { %v6426_v62 = vmax.f32 %v6394_v36, 0.0  ;;  %v6363_v13 = vsel %vm6267_vm13, %v13891_v7, 0.0  ;;  %v6108_v30 = vpop.f32.mrb[67].mxu1  ;;  %v3697_v28 = vadd.f32 %v15282_v63, %v19860_v38  ;;  %v19863_v36 = vmax.f32 %v19862_v48, 0.0  ;;  %v19867_v38 = vld [vmem:[#allocation27_spill] sm:$0xff]  ;;  %v15287_v48 = vld [vmem:[%s15400_s25 + $0x38] sm:$0xff] }
 0x475   : > { %v6424_v27 = vmax.f32 %v6392_v31, 0.0  ;;  %v6395_v15 = vadd.f32 %v6363_v13, %v17325_v19  ;;  %v6361_v61 = vsel %vm6265_vm14, %v6108_v30, 0.0  ;;  %v3698_v63 = vadd.f32 %v15284_v60, %v19866_v56  ;;  %v15285_v31 = vld [vmem:[%s15400_s25 + $0x30] sm:$0xff] }
 0x476   : > { %v17478_v6 = vadd.f32 %v6426_v62, %v3699_v8  ;;  %v6393_v57 = vadd.f32 %v6361_v61, %v17329_v10  ;;  %v3700_v39 = vadd.f32 %v15283_v53, %v19863_v36  ;;  %v19868_v18 = vmax.f32 %v19867_v38, 0.0  ;;  %v15286_v8 = vld [vmem:[%s15400_s25 + $0x20] sm:$0xff]  ;;  %v19869_v13 = vld [vmem:[#allocation28_spill] sm:$0xff]  ;;  %v19871_v53 = vld [vmem:[#allocation29_spill] sm:$0xff] }
 0x477   : > { %v17484_v7 = vadd.f32 %v6424_v27, %v3697_v28  ;;  %v6427_v5 = vmax.f32 %v6395_v15, 0.0  ;;  %v19870_v30 = vmax.f32 %v19869_v13, 0.0  ;;  %v19872_v28 = vmax.f32 %v19871_v53, 0.0  ;;  %v19874_v56 = vld [vmem:[#allocation24_spill] sm:$0xff]  ;;  %v15288_v13 = vld [vmem:[%s15400_s25 + $0x28] sm:$0xff] }
 0x478   : > { %19861 = vst [vmem:[#allocation67_spill] sm:$0xff] %v17478_v6  ;;  %v3703_v19 = vadd.f32 %v15285_v31, %v19868_v18  ;;  %v6425_v61 = vmax.f32 %v6393_v57, 0.0  ;;  %vm6271_vm15 = vcmp.lt.s32.totalorder %v19874_v56, 14  ;;  %v19876_v57 = vld [vmem:[#allocation26_spill] sm:$0xff]  ;;  %v15289_v53 = vld [vmem:[%s15400_s25 + $0x50] sm:$0xff] }
 0x479   : > { %19864 = vst [vmem:[#allocation68_spill] sm:$0xff] %v17484_v7  ;;  %v3701_v10 = vadd.f32 %v15286_v8, %v19870_v30  ;;  %v3704_v36 = vadd.f32 %v15287_v48, %v19872_v28  ;;  %v17498_v15 = vadd.f32 %v6427_v5, %v3700_v39  ;;  %v17500_v42 = vpack.c.bf16 %v6427_v5, %v6426_v62  ;;  %v13894_v60 = vpop.f32.mrb[68].mxu1  ;;  %v19877_v30 = vld [vmem:[#allocation31_spill] sm:$0xff]  ;;  %v19879_v28 = vld [vmem:[#allocation33_spill] sm:$0xff] }
 0x47a   : > { %v17503_v38 = vadd.f32 %v6425_v61, %v3698_v63  ;;  %v6488_v18 = vpack.c.bf16 %v6425_v61, %v6424_v27  ;;  %v6398_v31 = vadd.f32 %v13894_v60, %v17338_v43  ;;  %v6121_v8 = vpop.f32.mrb[69].mxu1  ;;  %vm6269_vm5 = vcmp.lt.s32.totalorder %v19876_v57, 14  ;;  %v15290_v43 = vld [vmem:[%s15400_s25 + $0x40] sm:$0xff] }
 0x47b   : > { %19873 = vst [vmem:[#allocation69_spill] sm:$0xff] %v17498_v15  ;;  %v19878_v48 = vmax.f32 %v19877_v30, 0.0  ;;  %v19880_v5 = vmax.f32 %v19879_v28, 0.0  ;;  %v6396_v27 = vadd.f32 %v6121_v8, %v17341_v59  ;;  %v13895_v61 = vpop.f32.mrb[70].mxu1  ;;  %v19881_v60 = vld [vmem:[#allocation34_spill] sm:$0xff]  ;;  %v19883_v28 = vld [vmem:[#allocation37_spill] sm:$0xff] }
 0x47c   : > { %19875 = vst [vmem:[#allocation70_spill] sm:$0xff] %v17503_v38  ;;  %v19882_v38 = vmax.f32 %v19881_v60, 0.0  ;;  %v6520_v7 = vrot.slane %v6488_v18, 4  ;;  %v6430_v30 = vmax.f32 %v6398_v31, 0.0  ;;  %v15292_v18 = vld [vmem:[%s15400_s25 + $0x48] sm:$0xff]  ;;  %v19885_v31 = vld [vmem:[#allocation38_spill] sm:$0xff] }
 0x47d   : > { %v3702_v39 = vadd.f32 %v15288_v13, %v19878_v48  ;;  %v17513_v62 = vadd.f32 %v15289_v53, %v19880_v5  ;;  %v6367_v13 = vsel %vm6271_vm15, %v13895_v61, 0.0  ;;  %v6124_v48 = vpop.f32.mrb[71].mxu1  ;;  %v15291_v53 = vld [vmem:[%s15400_s25 + $0x58] sm:$0xff]  ;;  %v19884_v5 = vmax.f32 %v19883_v28, 0.0 }
 0x47e   : > { %v17520_v15 = vadd.f32 %v15290_v43, %v19882_v38  ;;  %v6428_v59 = vmax.f32 %v6396_v27, 0.0  ;;  %v6399_v8 = vadd.f32 %v6367_v13, %v17343_v45  ;;  %v6365_v38 = vsel %vm6269_vm5, %v6124_v48, 0.0  ;;  %6568 = vst.msk [vmem:[#allocation2 + $0x40] sm:$0xf0] %vm183_vm3, %v6520_v7  ;;  %v15293_v13 = vld [vmem:[%s15400_s25 + $0x70] sm:$0xff] }
 0x47f   : > { %v17527_v63 = vadd.f32 %v15291_v53, %v19884_v5  ;;  %v19886_v43 = vmax.f32 %v19885_v31, 0.0  ;;  %v19887_v61 = vrot.slane %v17500_v42, 4  ;;  %v17541_v27 = vadd.f32 %v6430_v30, %v3703_v19  ;;  %v19889_v48 = vld [vmem:[#allocation40_spill] sm:$0xff]  ;;  %v15294_v31 = vld [vmem:[%s15400_s25 + $0x60] sm:$0xff]  ;;  %v15295_v19 = vld [vmem:[%s15400_s25 + $0x78] sm:$0xff] }
 0x480   : > { %v6397_v45 = vadd.f32 %v6365_v38, %v17347_v52  ;;  %v19890_v53 = vmax.f32 %v19889_v48, 0.0  ;;  %v15296_v52 = vld [vmem:[%s15400_s25 + $0x68] sm:$0xff]  ;;  %v19896_v38 = vld [vmem:[#allocation44_spill] sm:$0xff] }
 0x481   : > { %v17535_v60 = vadd.f32 %v15292_v18, %v19886_v43  ;;  %v6522_v28 = vsel %vm257_vm4, %v6520_v7, %v19887_v61  ;;  %19888 = vst [vmem:[#allocation21_spill] sm:$0xff] %v17541_v27  ;;  %v19891_v18 = vld [vmem:[#allocation41_spill] sm:$0xff]  ;;  %v17555_v61 = vadd.f32 %v6428_v59, %v3701_v10  ;;  %v6431_v7 = vmax.f32 %v6399_v8, 0.0  ;;  %v19894_v27 = vld [vmem:[#allocation43_spill] sm:$0xff] }
 0x482   : > { %v17547_v5 = vadd.f32 %v15293_v13, %v19890_v53  ;;  %v19892_v43 = vmax.f32 %v19891_v18, 0.0  ;;  %6569 = vst.msk [vmem:[#allocation2 + $0x48] sm:$0xff] %vm172_vm1, %v6522_v28  ;;  %v19895_v56 = vmax.f32 %v19894_v27, 0.0  ;;  %v19897_v48 = vmax.f32 %v19896_v38, 0.0  ;;  %v15297_v53 = vld [vmem:[%s15400_s25 + $0x90] sm:$0xff]  ;;  %v19898_v18 = vld [vmem:[#allocation46_spill] sm:$0xff] }
 0x483   : > { %19893 = vst [vmem:[#allocation22_spill] sm:$0xff] %v17555_v61  ;;  %v6429_v10 = vmax.f32 %v6397_v45, 0.0  ;;  %v15298_v28 = vld [vmem:[%s15400_s25 + $0x80] sm:$0xff]  ;;  %v19900_v8 = vld [vmem:[#allocation47_spill] sm:$0xff]  ;;  %v17579_v27 = vpack.c.bf16 %v6431_v7, %v6430_v30  ;;  %v19905_v45 = vld [vmem:[#allocation32_spill] sm:$0xff] }
 0x484   : > { %v17552_v57 = vadd.f32 %v15294_v31, %v19892_v43  ;;  %v17560_v6 = vadd.f32 %v15295_v19, %v19895_v56  ;;  %v17565_v13 = vadd.f32 %v15296_v52, %v19897_v48  ;;  %v19899_v31 = vmax.f32 %v19898_v18, 0.0  ;;  %v13898_v19 = vpop.f32.mrb[72].mxu1  ;;  %v19903_v38 = vld [vmem:[#allocation30_spill] sm:$0xff] }
 0x485   : > { %v19901_v61 = vmax.f32 %v19900_v8, 0.0  ;;  %v17577_v56 = vadd.f32 %v6431_v7, %v3704_v36  ;;  %vm6275_vm6 = vcmp.lt.s32.totalorder %v19903_v38, 14  ;;  %v17582_v52 = vadd.f32 %v6429_v10, %v3702_v39  ;;  %v6137_v18 = vpop.f32.mrb[73].mxu1  ;;  %v19906_v8 = vld [vmem:[#allocation48_spill] sm:$0xff]  ;;  %v15300_v36 = vld [vmem:[%s15400_s25 + $0x88] sm:$0xff]  ;;  %v19908_v30 = vld [vmem:[#allocation50_spill] sm:$0xff] }
 0x486   : > { %v17570_v43 = vadd.f32 %v15297_v53, %v19899_v31  ;;  %v6490_v48 = vpack.c.bf16 %v6429_v10, %v6428_v59  ;;  %v6402_v53 = vadd.f32 %v13898_v19, %v17356_v11  ;;  %vm6273_vm8 = vcmp.lt.s32.totalorder %v19905_v45, 14  ;;  %v15299_v31 = vld [vmem:[%s15400_s25 + $0x98] sm:$0xff]  ;;  %v13899_v10 = vpop.f32.mrb[74].mxu1 }
 0x487   : > { %v17575_v47 = vadd.f32 %v15298_v28, %v19901_v61  ;;  %19902 = vst [vmem:[#allocation23_spill] sm:$0xff] %v17577_v56  ;;  %19904 = vst [vmem:[#allocation25_spill] sm:$0xff] %v17582_v52  ;;  %v19907_v61 = vmax.f32 %v19906_v8, 0.0  ;;  %v19909_v7 = vmax.f32 %v19908_v30, 0.0  ;;  %v6525_v39 = vrot.slane %v17579_v27, 4  ;;  %v6140_v38 = vpop.f32.mrb[75].mxu1 }
 0x488   : > { %v6400_v59 = vadd.f32 %v6137_v18, %v17359_v29  ;;  %v6523_v52 = vrot.slane %v6490_v48, 4  ;;  %v6434_v11 = vmax.f32 %v6402_v53, 0.0  ;;  %v6371_v19 = vsel %vm6275_vm6, %v13899_v10, 0.0  ;;  %v6612_v27 = vld [vmem:[#allocation2 + $0x40] sm:$0xfc]  ;;  %v19915_v10 = vld [vmem:[#allocation35_spill] sm:$0xff] }
 0x489   : > { %v17589_v28 = vadd.f32 %v15299_v31, %v19907_v61  ;;  %v17594_v56 = vadd.f32 %v15300_v36, %v19909_v7  ;;  %v19911_v8 = vmax.f32 %v19910_v25, 0.0  ;;  %v6403_v30 = vadd.f32 %v6371_v19, %v17361_v20  ;;  %v7560_v7 = vld [vmem:[#allocation2 + $0x40] sm:$0xf0] }
 0x48a   : > { %v6432_v61 = vmax.f32 %v6400_v59, 0.0  ;;  %v6369_v36 = vsel %vm6273_vm8, %v6140_v38, 0.0  ;;  %v19912_v29 = vrot.slane %v17500_v42, 4  ;;  %v6526_v53 = vsel %vm257_vm4, %v6523_v52, %v6525_v39 }
 0x48b   : > { %v17601_v31 = vadd.f32 %v15301_v9, %v19911_v8  ;;  %v17611_v18 = vadd.f32 %v6434_v11, %v17513_v62  ;;  %v6401_v25 = vadd.f32 %v6369_v36, %v17365_v37  ;;  %v17614_v9 = vld [vmem:[#allocation2 + $0x48] sm:$0xff]  ;;  %6571 = vst.msk [vmem:[#allocation2 + $0x58] sm:$0xff] %vm172_vm1, %v6526_v53  ;;  %v6435_v38 = vmax.f32 %v6403_v30, 0.0  ;;  %v19917_v36 = vld [vmem:[#allocation36_spill] sm:$0xff]  ;;  %v19919_v53 = vld [vmem:[#allocation53_spill] sm:$0xff] }
 0x48c   : > { %v6524_v48 = vsel %vm257_vm4, %v19912_v29, %v6523_v52  ;;  %v17619_v20 = vadd.f32 %v6432_v61, %v17520_v15  ;;  %v6638_v42 = vrot.slane %v6612_v27, 2  ;;  %v17622_v59 = vrot.slane %v17614_v9, 2  ;;  %v13902_v15 = vpop.f32.mrb[76].mxu1 }
 0x48d   : > { %19913 = vst [vmem:[#allocation27_spill] sm:$0xff] %v17611_v18  ;;  %6570 = vst.msk [vmem:[#allocation2 + $0x50] sm:$0xff] %vm172_vm1, %v6524_v48  ;;  %v6433_v52 = vmax.f32 %v6401_v25, 0.0  ;;  %v7566_v62 = vrot.slane %v7560_v7, 4  ;;  %v17625_v37 = vrot.slane %v17614_v9, 4  ;;  %vm6279_vm9 = vcmp.lt.s32.totalorder %v19915_v10, 14 }
 0x48e   : > { %19914 = vst [vmem:[#allocation28_spill] sm:$0xff] %v17619_v20  ;;  %v17629_v19 = vadd.f32 %v6435_v38, %v17527_v63  ;;  %v17631_v8 = vpack.c.bf16 %v6435_v38, %v6434_v11  ;;  %v6640_v30 = vsel %vm6637_vm7, %v6638_v42, %v17622_v59  ;;  %vm6277_vm10 = vcmp.lt.s32.totalorder %v19917_v36, 14  ;;  %v6153_v48 = vpop.f32.mrb[77].mxu1  ;;  %v15302_v11 = vld [vmem:[%s15400_s25 + $0xa0] sm:$0xff]  ;;  %v15303_v42 = vld [vmem:[%s15400_s25 + $0xb8] sm:$0xff] }
 0x48f   : > { %v17637_v27 = vadd.f32 %v6433_v52, %v17535_v60  ;;  %v6492_v7 = vpack.c.bf16 %v6433_v52, %v6432_v61  ;;  %v6406_v29 = vadd.f32 %v13902_v15, %v17376_v16  ;;  %13922 = vmatprep.mubr.msk.bf16.mxu0 %vm172_vm1, %v6640_v30  ;;  %v7568_v63 = vsel %vm257_vm4, %v7566_v62, %v17625_v37  ;;  %v13903_v61 = vpop.f32.mrb[78].mxu1 }
 0x490   : > { %19916 = vst [vmem:[#allocation29_spill] sm:$0xff] %v17629_v19  ;;  %v19920_v25 = vmax.f32 %v19919_v53, 0.0  ;;  %v19921_v19 = vld [vmem:[#allocation54_spill] sm:$0xff]  ;;  %v19688_v60 = vrot.slane %v17631_v8, 4  ;;  %v6404_v16 = vadd.f32 %v6153_v48, %v17381_v49  ;;  %14024 = vmatprep.mubr.msk.bf16.mxu1 %vm172_vm1, %v7568_v63  ;;  %v6375_v62 = vsel %vm6279_vm9, %v13903_v61, 0.0  ;;  %v6156_v30 = vpop.f32.mrb[79].mxu1 }
 0x491   : > { %19918 = vst [vmem:[#allocation31_spill] sm:$0xff] %v17637_v27  ;;  %v19922_v20 = vmax.f32 %v19921_v19, 0.0  ;;  %v6527_v52 = vrot.slane %v6492_v7, 4  ;;  %v6438_v15 = vmax.f32 %v6406_v29, 0.0  ;;  %v6407_v19 = vadd.f32 %v6375_v62, %v17383_v12 }
 0x492   : > { %v17646_v38 = vadd.f32 %v15302_v11, %v19920_v25  ;;  %v19923_v11 = vld [vmem:[#allocation39_spill] sm:$0xff]  ;;  %v6436_v53 = vmax.f32 %v6404_v16, 0.0  ;;  %v6920_v49 = vsel %vm971_vm0, %v17454_v1, 0  ;;  %v17674_v12 = vld [vmem:[#allocation2 + $0x58] sm:$0xff] }
 0x493   : > { %v17651_v18 = vadd.f32 %v15303_v42, %v19922_v20  ;;  %vm6283_vm11 = vcmp.lt.s32.totalorder %v19923_v11, 14  ;;  %v6373_v20 = vsel %vm6277_vm10, %v6156_v30, 0.0  ;;  %v6528_v48 = vsel %vm257_vm4, %v6525_v39, %v6527_v52 }
 0x494   : > { %v6530_v7 = vsel %vm257_vm4, %v6527_v52, %v19688_v60  ;;  %v17669_v29 = vadd.f32 %v6438_v15, %v17547_v5  ;;  %v6405_v63 = vadd.f32 %v6373_v20, %v17387_v24  ;;  %v17672_v25 = vld [vmem:[#allocation2 + $0x50] sm:$0xff]  ;;  %6572 = vst.msk [vmem:[#allocation2 + $0x60] sm:$0xff] %vm172_vm1, %v6528_v48  ;;  %v17679_v1 = vadd.f32 %v6436_v53, %v17552_v57  ;;  %v13906_v57 = vpop.f32.mrb[80].mxu1  ;;  %v15304_v60 = vld [vmem:[%s15400_s25 + $0xa8] sm:$0xff] }
 0x495   : > { %6573 = vst.msk [vmem:[#allocation2 + $0x68] sm:$0xff] %vm172_vm1, %v6530_v7  ;;  %v6439_v39 = vmax.f32 %v6407_v19, 0.0  ;;  %v6641_v42 = vrot.slane %v17672_v25, 2  ;;  %v7569_v16 = vrot.slane %v17672_v25, 4  ;;  %v6643_v61 = vrot.slane %v17674_v12, 2 }
 0x496   : > { %19924 = vst [vmem:[#allocation33_spill] sm:$0xff] %v17669_v29  ;;  %19925 = vst [vmem:[#allocation34_spill] sm:$0xff] %v17679_v1  ;;  %v6437_v5 = vmax.f32 %v6405_v63, 0.0  ;;  %v7571_v24 = vrot.slane %v17674_v12, 4  ;;  %v7844_v52 = vsel %vm971_vm0, %v17463_v55, 0  ;;  %v6410_v55 = vadd.f32 %v13906_v57, %v17396_v41 }
 0x497   : > { %v17688_v62 = vadd.f32 %v6439_v39, %v17560_v6  ;;  %v17690_v30 = vpack.c.bf16 %v6439_v39, %v6438_v15  ;;  %v17694_v19 = vsel %vm6637_vm7, %v17622_v59, %v6641_v42  ;;  %v17698_v20 = vsel %vm257_vm4, %v17625_v37, %v7569_v16  ;;  %v6169_v6 = vpop.f32.mrb[81].mxu1  ;;  %v19928_v15 = vld [vmem:[#allocation42_spill] sm:$0xff]  ;;  %v17712_v63 = vld [vmem:[%s19501_s1 + $0x30] sm:$0x3] }
 0x498   : > { %v17701_v48 = vadd.f32 %v6437_v5, %v17565_v13  ;;  %v6494_v7 = vpack.c.bf16 %v6437_v5, %v6436_v53  ;;  %13923 = vmatmul.mubr.msk.bf16.vlgmr.msra.gmra.mrb[96].mxu0 %vm172_vm1, %v17694_v19  ;;  %14025 = vmatmul.mubr.msk.bf16.vlgmr.msra.gmra.mrb[96].mxu1 %vm172_vm1, %v17698_v20  ;;  %vm6281_vm12 = vcmp.lt.s32.totalorder %v19928_v15, 14  ;;  %v17717_v13 = vld [vmem:[%s19501_s1 + $0x32] sm:$0x3]  ;;  %v6408_v53 = vadd.f32 %v6169_v6, %v17399_v14  ;;  %v13907_v39 = vpop.f32.mrb[82].mxu1 }
 0x499   : > { %19926 = vst [vmem:[#allocation37_spill] sm:$0xff] %v17688_v62  ;;  %13955 = vmatpush3.bf16.msra.mxu0 %v6920_v49  ;;  %v17722_v5 = vsel %vm6637_vm7, %v6641_v42, %v6643_v61  ;;  %v17725_v57 = vsel %vm257_vm4, %v7569_v16, %v7571_v24  ;;  %14057 = vmatpush3.bf16.msra.mxu1 %v7844_v52  ;;  %v6442_v36 = vmax.f32 %v6410_v55, 0.0  ;;  %v6379_v41 = vsel %vm6283_vm11, %v13907_v39, 0.0  ;;  %v6172_v14 = vpop.f32.mrb[83].mxu1  ;;  %v15305_v49 = vld [vmem:[%s15400_s25 + $0xd0] sm:$0xff]  ;;  %v19931_v42 = vld [vmem:[#allocation57_spill] sm:$0xff] }
 0x49a   : > { %19927 = vst [vmem:[#allocation38_spill] sm:$0xff] %v17701_v48  ;;  %v19929_v48 = vld [vmem:[#allocation56_spill] sm:$0xff]  ;;  %v6531_v29 = vrot.slane %v6494_v7, 4  ;;  %13926 = vmatprep.mubr.msk.bf16.mxu0 %vm172_vm1, %v17722_v5  ;;  %14028 = vmatprep.mubr.msk.bf16.mxu1 %vm172_vm1, %v17725_v57  ;;  %v19932_v16 = vmax.f32 %v19931_v42, 0.0  ;;  %v19933_v7 = vrot.slane %v17631_v8, 4  ;;  %v19934_v6 = vrot.slane %v17690_v30, 4 }
 0x49b   : > { %v19930_v62 = vmax.f32 %v19929_v48, 0.0  ;;  %v6440_v48 = vmax.f32 %v6408_v53, 0.0  ;;  %15256 = vmatprep.subr.msk.bf16.mxu0 %vm971_vm0, %v17712_v63  ;;  %15259 = vmatprep.subr.msk.bf16.mxu1 %vm971_vm0, %v17717_v13  ;;  %v17757_v53 = vadd.f32 %v6442_v36, %v17570_v43 }
 0x49c   : > { %v17741_v52 = vadd.f32 %v15305_v49, %v19932_v16  ;;  %v6532_v55 = vsel %vm257_vm4, %v19933_v7, %v6531_v29  ;;  %v6534_v39 = vsel %vm257_vm4, %v6531_v29, %v19934_v6  ;;  %v19937_v16 = vld [vmem:[#allocation45_spill] sm:$0xff] }
 0x49d   : > { %v17730_v1 = vadd.f32 %v15304_v60, %v19930_v62  ;;  %v6411_v60 = vadd.f32 %v6379_v41, %v17401_v34  ;;  %v6377_v62 = vsel %vm6281_vm12, %v6172_v14, 0.0  ;;  %19935 = vst [vmem:[#allocation40_spill] sm:$0xff] %v17757_v53  ;;  %v17760_v41 = vld [vmem:[#allocation2 + $0x60] sm:$0xff]  ;;  %v17762_v14 = vld [vmem:[#allocation2 + $0x68] sm:$0xff]  ;;  %6574 = vst.msk [vmem:[#allocation2 + $0x70] sm:$0xff] %vm172_vm1, %v6532_v55  ;;  %v17767_v8 = vadd.f32 %v6440_v48, %v17575_v47  ;;  %v13910_v47 = vpop.f32.mrb[84].mxu1 }
 0x49e   : > { %v6409_v34 = vadd.f32 %v6377_v62, %v17404_v44  ;;  %6575 = vst.msk [vmem:[#allocation2 + $0x78] sm:$0xff] %vm172_vm1, %v6534_v39  ;;  %v6645_v42 = vrot.slane %v17760_v41, 2  ;;  %v7573_v29 = vrot.slane %v17760_v41, 4  ;;  %vm6287_vm13 = vcmp.lt.s32.totalorder %v19937_v16, 14  ;;  %v6185_v53 = vpop.f32.mrb[85].mxu1 }
 0x49f   : > { %19936 = vst [vmem:[#allocation41_spill] sm:$0xff] %v17767_v8  ;;  %v6443_v49 = vmax.f32 %v6411_v60, 0.0  ;;  %v17773_v44 = vrot.slane %v17762_v14, 2  ;;  %v17776_v62 = vrot.slane %v17762_v14, 4  ;;  %v6414_v8 = vadd.f32 %v13910_v47, %v17411_v46 }
 0x4a0   : > { %v6441_v43 = vmax.f32 %v6409_v34, 0.0  ;;  %v17784_v60 = vsel %vm6637_vm7, %v6643_v61, %v6645_v42  ;;  %v17787_v6 = vsel %vm257_vm4, %v7571_v24, %v7573_v29  ;;  %v6412_v61 = vadd.f32 %v6185_v53, %v17414_v58  ;;  %v13911_v24 = vpop.f32.mrb[86].mxu1  ;;  %v15307_v53 = vld [vmem:[%s15400_s25 + $0xd8] sm:$0xff] }
 0x4a1   : > { %v17779_v7 = vadd.f32 %v6443_v49, %v17589_v28  ;;  %v17781_v55 = vpack.c.bf16 %v6443_v49, %v6442_v36  ;;  %13927 = vmatmul.mubr.msk.bf16.gmra.mrb[100].mxu0 %vm172_vm1, %v17784_v60  ;;  %14029 = vmatmul.mubr.msk.bf16.gmra.mrb[100].mxu1 %vm172_vm1, %v17787_v6  ;;  %v19940_v28 = vld [vmem:[#allocation49_spill] sm:$0xff]  ;;  %v17806_v46 = vsel %vm257_vm4, %v7573_v29, %v17776_v62  ;;  %v19941_v49 = vld [vmem:[#allocation58_spill] sm:$0xff]  ;;  %v6383_v36 = vsel %vm6287_vm13, %v13911_v24, 0.0  ;;  %v6188_v58 = vpop.f32.mrb[87].mxu1 }
 0x4a2   : > { %v17790_v39 = vadd.f32 %v6441_v43, %v17594_v56  ;;  %v6496_v34 = vpack.c.bf16 %v6441_v43, %v6440_v48  ;;  %vm6285_vm14 = vcmp.lt.s32.totalorder %v19940_v28, 14  ;;  %v17802_v56 = vsel %vm6637_vm7, %v6645_v42, %v17773_v44  ;;  %v15306_v48 = vld [vmem:[%s15400_s25 + $0xc0] sm:$0xff]  ;;  %14032 = vmatprep.mubr.msk.bf16.mxu1 %vm172_vm1, %v17806_v46  ;;  %v19943_v42 = vld [vmem:[#allocation59_spill] sm:$0xff] }
 0x4a3   : > { %19938 = vst [vmem:[#allocation43_spill] sm:$0xff] %v17779_v7  ;;  %v19942_v43 = vmax.f32 %v19941_v49, 0.0  ;;  %v6446_v7 = vmax.f32 %v6414_v8, 0.0  ;;  %13930 = vmatprep.mubr.msk.bf16.mxu0 %vm172_vm1, %v17802_v56  ;;  %v19944_v29 = vmax.f32 %v19943_v42, 0.0  ;;  %v6444_v49 = vmax.f32 %v6412_v61, 0.0 }
 0x4a4   : > { %19939 = vst [vmem:[#allocation44_spill] sm:$0xff] %v17790_v39  ;;  %v6535_v39 = vrot.slane %v6496_v34, 4  ;;  %v6381_v8 = vsel %vm6285_vm14, %v6188_v58, 0.0  ;;  %v19945_v34 = vrot.slane %v17690_v30, 4  ;;  %v17837_v42 = vld [vmem:[#allocation2 + $0x70] sm:$0xff] }
 0x4a5   : > { %v17811_v47 = vadd.f32 %v15306_v48, %v19942_v43  ;;  %v17822_v15 = vadd.f32 %v15307_v53, %v19944_v29  ;;  %v6415_v48 = vadd.f32 %v6383_v36, %v17416_v54  ;;  %v19946_v43 = vrot.slane %v17781_v55, 4  ;;  %v17839_v61 = vld [vmem:[#allocation2 + $0x78] sm:$0xff]  ;;  %v19949_v58 = vld [vmem:[#allocation52_spill] sm:$0xff] }
 0x4a6   : > { %v6536_v24 = vsel %vm257_vm4, %v19945_v34, %v6535_v39  ;;  %v17834_v11 = vadd.f32 %v6446_v7, %v17601_v31  ;;  %v6413_v53 = vadd.f32 %v6381_v8, %v17418_v32  ;;  %v17844_v54 = vadd.f32 %v6444_v49, %v17646_v38  ;;  %v13914_v38 = vpop.f32.mrb[88].mxu1 }
 0x4a7   : > { %v6538_v16 = vsel %vm257_vm4, %v6535_v39, %v19946_v43  ;;  %6576 = vst.msk [vmem:[#allocation2 + $0x80] sm:$0xff] %vm172_vm1, %v6536_v24  ;;  %v6447_v30 = vmax.f32 %v6415_v48, 0.0  ;;  %v6649_v36 = vrot.slane %v17837_v42, 2  ;;  %v7577_v39 = vrot.slane %v17837_v42, 4 }
 0x4a8   : > { %19947 = vst [vmem:[#allocation46_spill] sm:$0xff] %v17834_v11  ;;  %6577 = vst.msk [vmem:[#allocation2 + $0x88] sm:$0xff] %vm172_vm1, %v6538_v16  ;;  %v6445_v31 = vmax.f32 %v6413_v53, 0.0  ;;  %vm6291_vm15 = vcmp.lt.s32.totalorder %v19949_v58, 14  ;;  %v6651_v32 = vrot.slane %v17839_v61, 2  ;;  %v7579_v29 = vrot.slane %v17839_v61, 4 }
 0x4a9   : > { %19948 = vst [vmem:[#allocation47_spill] sm:$0xff] %v17844_v54  ;;  %v17852_v8 = vadd.f32 %v6447_v30, %v17651_v18  ;;  %v17854_v34 = vpack.c.bf16 %v6447_v30, %v6446_v7  ;;  %v17858_v16 = vsel %vm6637_vm7, %v17773_v44, %v6649_v36  ;;  %v17862_v48 = vsel %vm257_vm4, %v17776_v62, %v7577_v39  ;;  %v6201_v18 = vpop.f32.mrb[89].mxu1  ;;  %v19952_v7 = vld [vmem:[#allocation55_spill] sm:$0xff] }
 0x4aa   : > { %v17865_v24 = vadd.f32 %v6445_v31, %v17730_v1  ;;  %v6498_v43 = vpack.c.bf16 %v6445_v31, %v6444_v49  ;;  %v6418_v53 = vadd.f32 %v13914_v38, %v17425_v4  ;;  %13931 = vmatmul.mubr.msk.bf16.gmra.mrb[104].mxu0 %vm172_vm1, %v17858_v16  ;;  %14033 = vmatmul.mubr.msk.bf16.gmra.mrb[104].mxu1 %vm172_vm1, %v17862_v48  ;;  %vm6289_vm5 = vcmp.lt.s32.totalorder %v19952_v7, 14  ;;  %v13915_v54 = vpop.f32.mrb[90].mxu1  ;;  %v15308_v49 = vld [vmem:[%s15400_s25 + $0xc8] sm:$0xff]  ;;  %v19953_v31 = vld [vmem:[#allocation61_spill] sm:$0xff] }
 0x4ab   : > { %19950 = vst [vmem:[#allocation48_spill] sm:$0xff] %v17852_v8  ;;  %v6416_v8 = vadd.f32 %v6201_v18, %v17428_v0  ;;  %v17876_v1 = vsel %vm6637_vm7, %v6649_v36, %v6651_v32  ;;  %v17879_v4 = vsel %vm257_vm4, %v7577_v39, %v7579_v29  ;;  %v19954_v38 = vmax.f32 %v19953_v31, 0.0  ;;  %v6204_v0 = vpop.f32.mrb[91].mxu1  ;;  %v15309_v36 = vld [vmem:[%s15400_s25 + $0xf0] sm:$0xff]  ;;  %v19955_v18 = vld [vmem:[#allocation63_spill] sm:$0xff] }
 0x4ac   : > { %19951 = vst [vmem:[#allocation50_spill] sm:$0xff] %v17865_v24  ;;  %v6539_v11 = vrot.slane %v6498_v43, 4  ;;  %v6450_v28 = vmax.f32 %v6418_v53, 0.0  ;;  %v6387_v27 = vsel %vm6291_vm15, %v13915_v54, 0.0  ;;  %13934 = vmatprep.mubr.msk.bf16.mxu0 %vm172_vm1, %v17876_v1  ;;  %14036 = vmatprep.mubr.msk.bf16.mxu1 %vm172_vm1, %v17879_v4  ;;  %v19956_v39 = vmax.f32 %v19955_v18, 0.0 }
 0x4ad   : > { %v3722_v24 = vadd.f32 %v15308_v49, %v19954_v38  ;;  %v6448_v10 = vmax.f32 %v6416_v8, 0.0  ;;  %v6419_v31 = vadd.f32 %v6387_v27, %v17430_v2  ;;  %v6385_v43 = vsel %vm6289_vm5, %v6204_v0, 0.0  ;;  %v19961_v0 = vld [vmem:[#allocation60_spill] sm:$0xff] }
 0x4ae   : > { %v3727_v30 = vadd.f32 %v15309_v36, %v19956_v39  ;;  %v19957_v53 = vrot.slane %v17781_v55, 4  ;;  %v19958_v49 = vrot.slane %v17854_v34, 4  ;;  %v17903_v58 = vadd.f32 %v6450_v28, %v17741_v52  ;;  %v17906_v36 = vld [vmem:[#allocation2 + $0x80] sm:$0xff] }
 0x4af   : > { %v6417_v18 = vadd.f32 %v6385_v43, %v17432_v40  ;;  %v17908_v8 = vld [vmem:[#allocation2 + $0x88] sm:$0xff]  ;;  %v17913_v2 = vadd.f32 %v6448_v10, %v17811_v47  ;;  %v6451_v27 = vmax.f32 %v6419_v31, 0.0  ;;  %v6653_v55 = vrot.slane %v17906_v36, 2  ;;  %v13918_v47 = vpop.f32.mrb[92].mxu1 }
 0x4b0   : > { %v6540_v54 = vsel %vm257_vm4, %v19957_v53, %v6539_v11  ;;  %v6542_v38 = vsel %vm257_vm4, %v6539_v11, %v19958_v49  ;;  %19959 = vst [vmem:[#allocation51_spill] sm:$0xff] %v17903_v58  ;;  %v7581_v11 = vrot.slane %v17906_v36, 4  ;;  %vm6295_vm6 = vcmp.lt.s32.totalorder %v19961_v0, 14 }
 0x4b1   : > { %6578 = vst.msk [vmem:[#allocation2 + $0x90] sm:$0xff] %vm172_vm1, %v6540_v54  ;;  %6579 = vst.msk [vmem:[#allocation2 + $0x98] sm:$0xff] %vm172_vm1, %v6542_v38  ;;  %v6449_v52 = vmax.f32 %v6417_v18, 0.0  ;;  %v6655_v40 = vrot.slane %v17908_v8, 2  ;;  %v7583_v39 = vrot.slane %v17908_v8, 4  ;;  %v17921_v43 = vadd.f32 %v6451_v27, %v17822_v15  ;;  %v19964_v15 = vld [vmem:[#allocation62_spill] sm:$0xff] }
 0x4b2   : > { %19960 = vst [vmem:[#allocation53_spill] sm:$0xff] %v17913_v2  ;;  %v17923_v53 = vpack.c.bf16 %v6451_v27, %v6450_v28  ;;  %v17926_v31 = vsel %vm6637_vm7, %v6651_v32, %v6653_v55  ;;  %v17929_v54 = vsel %vm257_vm4, %v7579_v29, %v7581_v11  ;;  %v6422_v18 = vadd.f32 %v13918_v47, %v17439_v33  ;;  %v6217_v2 = vpop.f32.mrb[93].mxu1  ;;  %v19965_v27 = vld [vmem:[#allocation64_spill] sm:$0xff] }
 0x4b3   : > { %19962 = vst [vmem:[#allocation54_spill] sm:$0xff] %v17921_v43  ;;  %v17931_v49 = vadd.f32 %v6449_v52, %v3722_v24  ;;  %v6500_v38 = vpack.c.bf16 %v6449_v52, %v6448_v10  ;;  %13935 = vmatmul.mubr.msk.bf16.gmra.mrb[108].mxu0 %vm172_vm1, %v17926_v31  ;;  %14037 = vmatmul.mubr.msk.bf16.gmra.mrb[108].mxu1 %vm172_vm1, %v17929_v54  ;;  %vm6293_vm8 = vcmp.lt.s32.totalorder %v19964_v15, 14  ;;  %v13919_v29 = vpop.f32.mrb[94].mxu1  ;;  %v15310_v10 = vld [vmem:[%s15400_s25 + $0xe0] sm:$0xff]  ;;  %v19966_v52 = vmax.f32 %v19965_v27, 0.0 }
 0x4b4   : > { %v6545_v28 = vrot.slane %v17923_v53, 4  ;;  %v6420_v32 = vadd.f32 %v6217_v2, %v17442_v3  ;;  %v17942_v24 = vsel %vm6637_vm7, %v6653_v55, %v6655_v40  ;;  %v17945_v33 = vsel %vm257_vm4, %v7581_v11, %v7583_v39  ;;  %v6220_v3 = vpop.f32.mrb[95].mxu1  ;;  %v15311_v2 = vld [vmem:[%s15400_s25 + $0xf8] sm:$0xff] }
 0x4b5   : > { %19963 = vst [vmem:[#allocation56_spill] sm:$0xff] %v17931_v49  ;;  %v3725_v47 = vadd.f32 %v15310_v10, %v19966_v52  ;;  %v6543_v49 = vrot.slane %v6500_v38, 4  ;;  %v6454_v43 = vmax.f32 %v6422_v18, 0.0  ;;  %v6391_v58 = vsel %vm6295_vm6, %v13919_v29, 0.0  ;;  %13938 = vmatprep.mubr.msk.bf16.mxu0 %vm172_vm1, %v17942_v24  ;;  %14040 = vmatprep.mubr.msk.bf16.mxu1 %vm172_vm1, %v17945_v33  ;;  %v19967_v55 = vld [vmem:[#allocation65_spill] sm:$0xff] }
 0x4b6   : > { %v19968_v11 = vmax.f32 %v19967_v55, 0.0  ;;  %v6452_v7 = vmax.f32 %v6420_v32, 0.0  ;;  %v6423_v10 = vadd.f32 %v6391_v58, %v17444_v23  ;;  %v6389_v38 = vsel %vm6293_vm8, %v6220_v3, 0.0 }
 0x4b7   : > { %v19969_v18 = vrot.slane %v17854_v34, 4  ;;  %v6546_v27 = vsel %vm257_vm4, %v6543_v49, %v6545_v28  ;;  %v17966_v52 = vadd.f32 %v6454_v43, %v3727_v30  ;;  %v6421_v0 = vadd.f32 %v6389_v38, %v17446_v22  ;;  %v19972_v30 = vld [vmem:[#allocation66_spill] sm:$0xff] }
 0x4b8   : > { %v3728_v53 = vadd.f32 %v15311_v2, %v19968_v11  ;;  %v17969_v45 = vld [vmem:[#allocation2 + $0x90] sm:$0xff]  ;;  %v17971_v2 = vld [vmem:[#allocation2 + $0x98] sm:$0xff]  ;;  %6581 = vst.msk [vmem:[#allocation2 + $0xa8] sm:$0xff] %vm172_vm1, %v6546_v27  ;;  %v17975_v23 = vadd.f32 %v6452_v7, %v3725_v47  ;;  %v6455_v58 = vmax.f32 %v6423_v10, 0.0  ;;  %v19973_v3 = vmax.f32 %v19972_v30, 0.0 }
 0x4b9   : > { %v6544_v29 = vsel %vm257_vm4, %v19969_v18, %v6543_v49  ;;  %19970 = vst [vmem:[#allocation57_spill] sm:$0xff] %v17966_v52  ;;  %v6657_v34 = vrot.slane %v17969_v45, 2  ;;  %v7585_v32 = vrot.slane %v17969_v45, 4  ;;  %v15312_v49 = vld [vmem:[%s15400_s25 + $0xe8] sm:$0xff]  ;;  %v6453_v22 = vmax.f32 %v6421_v0, 0.0 }
 0x4ba   : > { %6580 = vst.msk [vmem:[#allocation2 + $0xa0] sm:$0xff] %vm172_vm1, %v6544_v29  ;;  %19971 = vst [vmem:[#allocation58_spill] sm:$0xff] %v17975_v23  ;;  %v3726_v55 = vadd.f32 %v15312_v49, %v19973_v3  ;;  %v17983_v11 = vrot.slane %v17971_v2, 2  ;;  %v17986_v38 = vrot.slane %v17971_v2, 4  ;;  %v17988_v18 = vadd.f32 %v6455_v58, %v3728_v53 }
 0x4bb   : > { %v6503_v47 = vpack.c.bf16 %v6455_v58, %v6454_v43  ;;  %v17991_v10 = vsel %vm6637_vm7, %v6655_v40, %v6657_v34  ;;  %v17994_v29 = vsel %vm257_vm4, %v7583_v39, %v7585_v32  ;;  %v6502_v30 = vpack.c.bf16 %v6453_v22, %v6452_v7 }
 0x4bc   : > { %19974 = vst [vmem:[#allocation59_spill] sm:$0xff] %v17988_v18  ;;  %v17996_v27 = vadd.f32 %v6453_v22, %v3726_v55  ;;  %13939 = vmatmul.mubr.msk.bf16.gmra.mrb[112].mxu0 %vm172_vm1, %v17991_v10  ;;  %14041 = vmatmul.mubr.msk.bf16.gmra.mrb[112].mxu1 %vm172_vm1, %v17994_v29  ;;  %v18004_v0 = vsel %vm6637_vm7, %v6657_v34, %v17983_v11  ;;  %v18061_v18 = vld [vmem:[#allocation2 + $0x28] sm:$0xff] }
 0x4bd   : > { %v6549_v43 = vrot.slane %v6503_v47, 4  ;;  %13942 = vmatprep.mubr.msk.bf16.mxu0 %vm172_vm1, %v18004_v0  ;;  %v18010_v40 = vsel %vm257_vm4, %v7585_v32, %v17986_v38  ;;  %v6547_v39 = vrot.slane %v6502_v30, 4  ;;  %v7814_v21 = vrot.slane %v18061_v18, 4 }
 0x4be   : > { %19975 = vst [vmem:[#allocation61_spill] sm:$0xff] %v17996_v27  ;;  %14044 = vmatprep.mubr.msk.bf16.mxu1 %vm172_vm1, %v18010_v40  ;;  %v6593_v27 = vld [vmem:[#allocation2 + $0x20] sm:$0xfc] }
 0x4bf   : > { %6584 = vst.msk [vmem:[#allocation2 + $0xc0] sm:$0xf] %vm181_vm2, %v6549_v43  ;;  %v6548_v7 = vsel %vm257_vm4, %v6545_v28, %v6547_v39  ;;  %v6550_v53 = vsel %vm257_vm4, %v6547_v39, %v6549_v43  ;;  %v18019_v34 = vld [vmem:[#allocation2 + $0xa8] sm:$0xff] }
 0x4c0   : > { %19977 = vst [vmem:[#allocation64_spill] sm:$0xff] %v18019_v34  ;;  %6582 = vst.msk [vmem:[#allocation2 + $0xb0] sm:$0xff] %vm172_vm1, %v6548_v7  ;;  %v6663_v3 = vrot.slane %v18019_v34, 2  ;;  %v7591_v55 = vrot.slane %v18019_v34, 4  ;;  %v18089_v34 = vld [vmem:[#allocation2 + $0x30] sm:$0xff] }
 0x4c1   : > { %v18017_v58 = vld [vmem:[#allocation2 + $0xa0] sm:$0xff]  ;;  %6583 = vst.msk [vmem:[#allocation2 + $0xb8] sm:$0xff] %vm172_vm1, %v6550_v53  ;;  %19980 = vst [vmem:[#allocation71_spill] sm:$0xff] %v18089_v34 }
 0x4c2   : > { %19976 = vst [vmem:[#allocation63_spill] sm:$0xff] %v18017_v58  ;;  %v6661_v32 = vrot.slane %v18017_v58, 2  ;;  %v7589_v49 = vrot.slane %v18017_v58, 4 }
 0x4c4   : > { %v18029_v28 = vsel %vm6637_vm7, %v17983_v11, %v6661_v32  ;;  %v18033_v22 = vsel %vm257_vm4, %v17986_v38, %v7589_v49  ;;  %v18036_v47 = vsel %vm6637_vm7, %v6661_v32, %v6663_v3  ;;  %v18039_v30 = vsel %vm257_vm4, %v7589_v49, %v7591_v55 }
 0x4c5   : > { %13943 = vmatmul.mubr.msk.bf16.gmra.mrb[116].mxu0 %vm172_vm1, %v18029_v28  ;;  %14045 = vmatmul.mubr.msk.bf16.gmra.mrb[116].mxu1 %vm172_vm1, %v18033_v22 }
 0x4c6   : > { %13946 = vmatprep.mubr.msk.bf16.mxu0 %vm172_vm1, %v18036_v47  ;;  %14048 = vmatprep.mubr.msk.bf16.mxu1 %vm172_vm1, %v18039_v30  ;;  %v7561_v17 = vld [vmem:[#allocation2 + $0xc0] sm:$0xf] }
 0x4c7   : > { %v18049_v43 = vld [vmem:[#allocation2 + $0xb0] sm:$0xff]  ;;  %v7597_v35 = vrot.slane %v7561_v17, 4  ;;  %v6892_v17 = vrot.slane %v18089_v34, 2 }
 0x4c8   : > { %19978 = vst [vmem:[#allocation65_spill] sm:$0xff] %v18049_v43  ;;  %v18051_v39 = vld [vmem:[#allocation2 + $0xb8] sm:$0xff]  ;;  %v6665_v7 = vrot.slane %v18049_v43, 2  ;;  %v7593_v53 = vrot.slane %v18049_v43, 4 }
 0x4c9   : > { %19979 = vst [vmem:[#allocation66_spill] sm:$0xff] %v18051_v39  ;;  %v18056_v32 = vrot.slane %v18051_v39, 2  ;;  %v18059_v49 = vrot.slane %v18051_v39, 4 }
 0x4ca   : > { %v18064_v23 = vsel %vm6637_vm7, %v6663_v3, %v6665_v7  ;;  %v18067_v52 = vsel %vm257_vm4, %v7591_v55, %v7593_v53  ;;  %v6889_v3 = vrot.slane %v6593_v27, 2  ;;  %v6890_v55 = vrot.slane %v18061_v18, 2 }
 0x4cb   : > { %v18071_v15 = vsel %vm6637_vm7, %v6665_v7, %v18056_v32  ;;  %v18075_v26 = vsel %vm257_vm4, %v7593_v53, %v18059_v49  ;;  %v6617_v7 = vld [vmem:[#allocation2 + $0xc0] sm:$0x3]  ;;  %v7813_v53 = vrot.slane %v7556_v51, 4  ;;  %v7598_v27 = vsel %vm257_vm4, %v18059_v49, %v7597_v35 }
 0x4cc   : > { %v6669_v50 = vrot.slane %v6617_v7, 2  ;;  %v6891_v39 = vsel %vm6637_vm7, %v6889_v3, %v6890_v55  ;;  %v7816_v51 = vrot.slane %v18089_v34, 4  ;;  %v18101_v3 = vld [vmem:[#allocation2 + $0x38] sm:$0xff]  ;;  %v18115_v34 = vld [vmem:[#allocation2 + $0x40] sm:$0xff] }
 0x4cd   : > { %13947 = vmatmul.mubr.msk.bf16.gmra.mrb[120].mxu0 %vm172_vm1, %v18064_v23  ;;  %14049 = vmatmul.mubr.msk.bf16.gmra.mrb[120].mxu1 %vm172_vm1, %v18067_v52  ;;  %v7815_v43 = vsel %vm257_vm4, %v7813_v53, %v7814_v21  ;;  %v6894_v7 = vrot.slane %v18101_v3, 2  ;;  %v7201_v53 = vsel %vm971_vm0, %v17712_v63, 0  ;;  %v6896_v63 = vrot.slane %v18115_v34, 2 }
 0x4ce   : > { %13950 = vmatprep.mubr.msk.bf16.mxu0 %vm172_vm1, %v18071_v15  ;;  %14052 = vmatprep.mubr.msk.bf16.mxu1 %vm172_vm1, %v18075_v26  ;;  %v6670_v58 = vsel %vm6637_vm7, %v18056_v32, %v6669_v50  ;;  %v6893_v50 = vsel %vm6637_vm7, %v6890_v55, %v6892_v17  ;;  %v7817_v35 = vsel %vm257_vm4, %v7814_v21, %v7816_v51  ;;  %v12487_v21 = vld [vmem:[%s19501_s1 + $0x2e] sm:$0x3] }
 0x4cf   : > { %v6897_v55 = vsel %vm6637_vm7, %v6894_v7, %v6896_v63 }
 0x4d5   : > { %13951 = vmatmul.mubr.msk.bf16.gmra.mrb[124].mxu0 %vm172_vm1, %v6670_v58  ;;  %14053 = vmatmul.mubr.msk.bf16.gmra.mrb[124].mxu1 %vm172_vm1, %v7598_v27  ;;  %v7818_v58 = vrot.slane %v18101_v3, 4  ;;  %v8095_v27 = vsel %vm971_vm0, %v17717_v13, 0  ;;  %v7820_v13 = vrot.slane %v18115_v34, 4 }
 0x4d6   : > { %13956 = vmatprep.mubr.msk.bf16.mxu0 %vm172_vm1, %v6891_v39  ;;  %14058 = vmatprep.mubr.msk.bf16.mxu1 %vm172_vm1, %v7815_v43  ;;  %v6895_v39 = vsel %vm6637_vm7, %v6892_v17, %v6894_v7 }
 0x4d7   : > { %v7819_v43 = vsel %vm257_vm4, %v7816_v51, %v7818_v58  ;;  %v7821_v17 = vsel %vm257_vm4, %v7818_v58, %v7820_v13  ;;  %v6898_v51 = vsel %vm6637_vm7, %v6896_v63, %v17622_v59  ;;  %v6609_v59 = vld [vmem:[#allocation2 + $0xa0] sm:$0x3]  ;;  %v8415_v58 = vsel %vm971_vm0, %v12487_v21, 0 }
 0x4d8   : > { %v8336_v63 = vrot.slane %v17672_v25, 6  ;;  %v8340_v25 = vrot.slane %v17760_v41, 6 }
 0x4dd   : > { %13957 = vmatmul.mubr.msk.bf16.vlgmr.msra.gmra.mrb[96].mxu0 %vm172_vm1, %v6893_v50  ;;  %14059 = vmatmul.mubr.msk.bf16.vlgmr.msra.gmra.mrb[96].mxu1 %vm172_vm1, %v7817_v35  ;;  %v7822_v50 = vsel %vm257_vm4, %v7820_v13, %v17625_v37  ;;  %v7557_v37 = vld [vmem:[#allocation2 + $0xa0] sm:$0xf]  ;;  %v8338_v13 = vrot.slane %v17674_v12, 6  ;;  %v18300_v12 = vrot.slane %v17762_v14, 6  ;;  %v8348_v14 = vrot.slane %v17906_v36, 6 }
 0x4de   : > { %13989 = vmatpush3.bf16.msra.mxu0 %v7201_v53  ;;  %13960 = vmatprep.mubr.msk.bf16.mxu0 %vm172_vm1, %v6895_v39  ;;  %v18270_v39 = vrot.slane %v17614_v9, 6 }
 0x4df   : > { %14062 = vmatprep.mubr.msk.bf16.mxu1 %vm172_vm1, %v7819_v43  ;;  %14091 = vmatpush3.bf16.msra.mxu1 %v8095_v27 }
 0x4e0   : > { %15260 = vmatprep.subr.msk.bf16.mxu0 %vm971_vm0, %v12487_v21 }
 0x4e5   : > { %13961 = vmatmul.mubr.msk.bf16.gmra.mrb[100].mxu0 %vm172_vm1, %v6897_v55  ;;  %14063 = vmatmul.mubr.msk.bf16.gmra.mrb[100].mxu1 %vm172_vm1, %v7821_v17  ;;  %v18285_v55 = vsel %vm971_vm0, %v18270_v39, %v8336_v63  ;;  %v12520_v17 = vld [vmem:[%s19501_s1 + $0x34] sm:$0x3] }
 0x4e6   : > { %13964 = vmatprep.mubr.msk.bf16.mxu0 %vm172_vm1, %v6898_v51  ;;  %14066 = vmatprep.mubr.msk.bf16.mxu1 %vm172_vm1, %v7822_v50  ;;  %v18293_v51 = vsel %vm971_vm0, %v8336_v63, %v8338_v13  ;;  %v8341_v50 = vsel %vm971_vm0, %v8338_v13, %v8340_v25  ;;  %v19987_v63 = vld [vmem:[#allocation4_spill] sm:$0xff] }
 0x4e7   : > { %vm7396_vm9 = vcmp.ge.s32.totalorder %v19987_v63, 4 }
 0x4ed   : > { %13965 = vmatmul.mubr.msk.bf16.gmra.mrb[104].mxu0 %vm172_vm1, %v17694_v19  ;;  %14067 = vmatmul.mubr.msk.bf16.gmra.mrb[104].mxu1 %vm172_vm1, %v17698_v20  ;;  %v7083_v19 = vld [vmem:[#allocation2 + $0x60] sm:$0xfc] }
 0x4ee   : > { %13968 = vmatprep.mubr.msk.bf16.mxu0 %vm172_vm1, %v17722_v5  ;;  %14070 = vmatprep.mubr.msk.bf16.mxu1 %vm172_vm1, %v17725_v57  ;;  %v8007_v20 = vld [vmem:[#allocation2 + $0x60] sm:$0xf0]  ;;  %v6899_v5 = vrot.slane %v6609_v59, 2  ;;  %v7823_v57 = vrot.slane %v7557_v37, 4  ;;  %v8343_v59 = vsel %vm971_vm0, %v8340_v25, %v18300_v12  ;;  %v8344_v37 = vrot.slane %v17837_v42, 6 }
 0x4f5   : > { %13969 = vmatmul.mubr.msk.bf16.gmra.mrb[108].mxu0 %vm172_vm1, %v17784_v60  ;;  %14071 = vmatmul.mubr.msk.bf16.gmra.mrb[108].mxu1 %vm172_vm1, %v17787_v6  ;;  %v7119_v60 = vrot.slane %v7083_v19, 2  ;;  %v8013_v6 = vrot.slane %v8007_v20, 4  ;;  %v8346_v19 = vrot.slane %v17839_v61, 6  ;;  %v18311_v20 = vsel %vm971_vm0, %v18300_v12, %v8344_v37 }
 0x4f6   : > { %13972 = vmatprep.mubr.msk.bf16.mxu0 %vm172_vm1, %v17802_v56  ;;  %14074 = vmatprep.mubr.msk.bf16.mxu1 %vm172_vm1, %v17806_v46  ;;  %v6900_v56 = vsel %vm6637_vm7, %v17983_v11, %v6899_v5  ;;  %v7824_v46 = vsel %vm257_vm4, %v17986_v38, %v7823_v57  ;;  %v18191_v11 = vld [vmem:[%s19501_s1 + $0x28] sm:$0x3]  ;;  %v8350_v5 = vrot.slane %v17908_v8, 6  ;;  %v8352_v57 = vrot.slane %v17969_v45, 6 }
 0x4f7   : > { %v7121_v7 = vsel %vm6637_vm7, %v7119_v60, %v17773_v44  ;;  %v8015_v35 = vsel %vm257_vm4, %v8013_v6, %v17776_v62  ;;  %v18235_v44 = vld [vmem:[#allocation2 + $0xc0] sm:$0xff]  ;;  %v18237_v62 = vld [vmem:[#allocation2 + $0xc8] sm:$0xff]  ;;  %v8611_v9 = vsel %vm971_vm0, %v18191_v11, 0  ;;  %v18316_v41 = vsel %vm971_vm0, %v8344_v37, %v8346_v19 }
 0x4f8   : > { %v18323_v42 = vsel %vm971_vm0, %v8346_v19, %v8348_v14  ;;  %v18328_v61 = vsel %vm971_vm0, %v8348_v14, %v8350_v5  ;;  %v8354_v60 = vrot.slane %v17971_v2, 6  ;;  %v18335_v36 = vsel %vm971_vm0, %v8350_v5, %v8352_v57  ;;  %v19981_v6 = vld [vmem:[#allocation63_spill] sm:$0xff] }
 0x4fa   : > { %v18340_v8 = vsel %vm971_vm0, %v8352_v57, %v8354_v60 }
 0x4fd   : > { %13973 = vmatmul.mubr.msk.bf16.gmra.mrb[112].mxu0 %vm172_vm1, %v17858_v16  ;;  %14075 = vmatmul.mubr.msk.bf16.gmra.mrb[112].mxu1 %vm172_vm1, %v17862_v48 }
 0x4fe   : > { %13976 = vmatprep.mubr.msk.bf16.mxu0 %vm172_vm1, %v17876_v1  ;;  %14078 = vmatprep.mubr.msk.bf16.mxu1 %vm172_vm1, %v17879_v4 }
 0x505   : > { %13977 = vmatmul.mubr.msk.bf16.gmra.mrb[116].mxu0 %vm172_vm1, %v17926_v31  ;;  %14079 = vmatmul.mubr.msk.bf16.gmra.mrb[116].mxu1 %vm172_vm1, %v17929_v54 }
 0x506   : > { %13980 = vmatprep.mubr.msk.bf16.mxu0 %vm172_vm1, %v17942_v24  ;;  %14082 = vmatprep.mubr.msk.bf16.mxu1 %vm172_vm1, %v17945_v33 }
 0x50d   : > { %13981 = vmatmul.mubr.msk.bf16.gmra.mrb[120].mxu0 %vm172_vm1, %v17991_v10  ;;  %14083 = vmatmul.mubr.msk.bf16.gmra.mrb[120].mxu1 %vm172_vm1, %v17994_v29 }
 0x50e   : > { %13984 = vmatprep.mubr.msk.bf16.mxu0 %vm172_vm1, %v18004_v0  ;;  %14086 = vmatprep.mubr.msk.bf16.mxu1 %vm172_vm1, %v18010_v40 }
 0x515   : > { %13985 = vmatmul.mubr.msk.bf16.gmra.mrb[124].mxu0 %vm172_vm1, %v6900_v56  ;;  %14087 = vmatmul.mubr.msk.bf16.gmra.mrb[124].mxu1 %vm172_vm1, %v7824_v46  ;;  %v8356_v56 = vrot.slane %v19981_v6, 6  ;;  %v19982_v46 = vld [vmem:[#allocation64_spill] sm:$0xff] }
 0x516   : > { %13990 = vmatprep.mubr.msk.bf16.mxu0 %vm172_vm1, %v7121_v7  ;;  %14092 = vmatprep.mubr.msk.bf16.mxu1 %vm172_vm1, %v8015_v35  ;;  %v8358_v7 = vrot.slane %v19982_v46, 6  ;;  %v19983_v35 = vld [vmem:[#allocation65_spill] sm:$0xff] }
 0x517   : > { %v18347_v45 = vsel %vm971_vm0, %v8354_v60, %v8356_v56 }
 0x518   : > { %v18352_v2 = vsel %vm971_vm0, %v8356_v56, %v8358_v7 }
 0x51d   : > { %13991 = vmatmul.mubr.msk.bf16.vlgmr.msra.gmra.mrb[96].mxu0 %vm172_vm1, %v17858_v16  ;;  %14093 = vmatmul.mubr.msk.bf16.vlgmr.msra.gmra.mrb[96].mxu1 %vm172_vm1, %v17862_v48  ;;  %v7142_v16 = vrot.slane %v18235_v44, 2  ;;  %v8036_v48 = vrot.slane %v18235_v44, 4 }
 0x51e   : > { %14125 = vmatpush3.bf16.msra.mxu0 %v8415_v58  ;;  %13994 = vmatprep.mubr.msk.bf16.mxu0 %vm172_vm1, %v17876_v1  ;;  %v7144_v1 = vrot.slane %v18237_v62, 2  ;;  %v8360_v58 = vrot.slane %v19983_v35, 6 }
 0x51f   : > { %14096 = vmatprep.mubr.msk.bf16.mxu1 %vm172_vm1, %v17879_v4  ;;  %15261 = vmatprep.subr.msk.bf16.mxu0 %vm971_vm0, %v18191_v11  ;;  %v8038_v4 = vrot.slane %v18237_v62, 4  ;;  %v19984_v11 = vld [vmem:[#allocation66_spill] sm:$0xff] }
 0x525   : > { %13995 = vmatmul.mubr.msk.bf16.gmra.mrb[100].mxu0 %vm172_vm1, %v17926_v31  ;;  %14097 = vmatmul.mubr.msk.bf16.gmra.mrb[100].mxu1 %vm172_vm1, %v17929_v54  ;;  %v18243_v31 = vld [vmem:[#allocation2 + $0xd0] sm:$0xff]  ;;  %v7143_v54 = vsel %vm6637_vm7, %v18056_v32, %v7142_v16 }
 0x526   : > { %13998 = vmatprep.mubr.msk.bf16.mxu0 %vm172_vm1, %v17942_v24  ;;  %14100 = vmatprep.mubr.msk.bf16.mxu1 %vm172_vm1, %v17945_v33  ;;  %v7145_v24 = vsel %vm6637_vm7, %v7142_v16, %v7144_v1  ;;  %v8039_v33 = vsel %vm257_vm4, %v8036_v48, %v8038_v4  ;;  %v18358_v16 = vrot.slane %v19984_v11, 6 }
 0x52d   : > { %13999 = vmatmul.mubr.msk.bf16.gmra.mrb[104].mxu0 %vm172_vm1, %v17991_v10  ;;  %14101 = vmatmul.mubr.msk.bf16.gmra.mrb[104].mxu1 %vm172_vm1, %v17994_v29 }
 0x52e   : > { %14002 = vmatprep.mubr.msk.bf16.mxu0 %vm172_vm1, %v18004_v0  ;;  %14104 = vmatprep.mubr.msk.bf16.mxu1 %vm172_vm1, %v18010_v40 }
 0x535   : > { %14003 = vmatmul.mubr.msk.bf16.gmra.mrb[108].mxu0 %vm172_vm1, %v18029_v28  ;;  %14105 = vmatmul.mubr.msk.bf16.gmra.mrb[108].mxu1 %vm172_vm1, %v18033_v22  ;;  %v7099_v22 = vld [vmem:[#allocation2 + $0xe0] sm:$0x3] }
 0x536   : > { %14006 = vmatprep.mubr.msk.bf16.mxu0 %vm172_vm1, %v18036_v47  ;;  %14108 = vmatprep.mubr.msk.bf16.mxu1 %vm172_vm1, %v18039_v30  ;;  %v8008_v47 = vld [vmem:[#allocation2 + $0xe0] sm:$0xf]  ;;  %v7150_v30 = vrot.slane %v7099_v22, 2 }
 0x537   : > { %v8044_v32 = vrot.slane %v8008_v47, 4  ;;  %v12540_v47 = vld [vmem:[%s19501_s1 + $0x3c] sm:$0x3] }
 0x538   : > { %15263 = vmatprep.subr.msk.bf16.mxu1 %vm971_vm0, %v12540_v47 }
 0x53d   : > { %14007 = vmatmul.mubr.msk.bf16.gmra.mrb[112].mxu0 %vm172_vm1, %v18064_v23  ;;  %14109 = vmatmul.mubr.msk.bf16.gmra.mrb[112].mxu1 %vm172_vm1, %v18067_v52  ;;  %v7146_v52 = vrot.slane %v18243_v31, 2  ;;  %v8040_v23 = vrot.slane %v18243_v31, 4 }
 0x53e   : > { %14010 = vmatprep.mubr.msk.bf16.mxu0 %vm172_vm1, %v18071_v15  ;;  %14112 = vmatprep.mubr.msk.bf16.mxu1 %vm172_vm1, %v18075_v26  ;;  %v8037_v26 = vsel %vm257_vm4, %v18059_v49, %v8036_v48  ;;  %v18249_v15 = vld [vmem:[#allocation2 + $0xd8] sm:$0xff]  ;;  %v8326_v49 = vld [vmem:[#allocation2 + $0x40] sm:$0xc0]  ;;  %v18361_v48 = vsel %vm971_vm0, %v8358_v7, %v8360_v58 }
 0x53f   : > { %v7148_v38 = vrot.slane %v18249_v15, 2  ;;  %v8042_v10 = vrot.slane %v18249_v15, 4  ;;  %v7147_v29 = vsel %vm6637_vm7, %v7144_v1, %v7146_v52  ;;  %v8041_v0 = vsel %vm257_vm4, %v8038_v4, %v8040_v23  ;;  %v8322_v1 = vld [vmem:[#allocation2 + $0x20] sm:$0xc0] }
 0x540   : > { %v8333_v53 = vrot.slane %v8326_v49, 6  ;;  %v18367_v4 = vsel %vm971_vm0, %v8360_v58, %v18358_v16 }
 0x541   : > { %v7149_v40 = vsel %vm6637_vm7, %v7146_v52, %v7148_v38  ;;  %v8043_v28 = vsel %vm257_vm4, %v8040_v23, %v8042_v10  ;;  %v7151_v43 = vsel %vm6637_vm7, %v7148_v38, %v7150_v30  ;;  %v8045_v27 = vsel %vm257_vm4, %v8042_v10, %v8044_v32  ;;  %v19985_v38 = vld [vmem:[#allocation71_spill] sm:$0xff]  ;;  %v8323_v30 = vld [vmem:[#allocation2 + $0xa0] sm:$0x3f]  ;;  %v8774_v32 = vld [vmem:[#allocation2 + $0x60] sm:$0xc0] }
 0x542   : > { %v8335_v21 = vsel %vm971_vm0, %v8333_v53, %v18270_v39  ;;  %v8583_v10 = vrot.slane %v19985_v38, 6  ;;  %v8590_v49 = vrot.slane %v8323_v30, 6  ;;  %v8780_v53 = vrot.slane %v8774_v32, 6 }
 0x545   : > { %14011 = vmatmul.mubr.msk.bf16.gmra.mrb[116].mxu0 %vm172_vm1, %v7143_v54  ;;  %14113 = vmatmul.mubr.msk.bf16.gmra.mrb[116].mxu1 %vm172_vm1, %v8037_v26  ;;  %v8327_v54 = vld [vmem:[#allocation2 + $0xc0] sm:$0x3f]  ;;  %v8580_v26 = vrot.slane %v8322_v1, 6 }
 0x546   : > { %14014 = vmatprep.mubr.msk.bf16.mxu0 %vm172_vm1, %v7145_v24  ;;  %14116 = vmatprep.mubr.msk.bf16.mxu1 %vm172_vm1, %v8039_v33  ;;  %v8581_v24 = vrot.slane %v18061_v18, 6  ;;  %v8364_v33 = vrot.slane %v8327_v54, 6 }
 0x548   : > { %v8582_v52 = vsel %vm971_vm0, %v8580_v26, %v8581_v24  ;;  %v8365_v23 = vsel %vm971_vm0, %v18358_v16, %v8364_v33 }
 0x54d   : > { %14015 = vmatmul.mubr.msk.bf16.gmra.mrb[120].mxu0 %vm172_vm1, %v7147_v29  ;;  %14117 = vmatmul.mubr.msk.bf16.gmra.mrb[120].mxu1 %vm172_vm1, %v8041_v0  ;;  %v8585_v29 = vrot.slane %v18101_v3, 6  ;;  %v8584_v0 = vsel %vm971_vm0, %v8581_v24, %v8583_v10 }
 0x54e   : > { %14018 = vmatprep.mubr.msk.bf16.mxu0 %vm172_vm1, %v7149_v40  ;;  %14120 = vmatprep.mubr.msk.bf16.mxu1 %vm172_vm1, %v8043_v28  ;;  %v8862_v40 = vsel %vm971_vm0, %v12520_v17, 0  ;;  %v8587_v28 = vrot.slane %v18115_v34, 6  ;;  %v9463_v34 = vsel %vm971_vm0, %v12540_v47, 0  ;;  %v8805_v47 = vrot.slane %v18237_v62, 6 }
 0x54f   : > { %v8586_v18 = vsel %vm971_vm0, %v8583_v10, %v8585_v29  ;;  %14227 = vmatpush3.bf16.msra.mxu1 %v9463_v34  ;;  %v19990_v10 = vld [vmem:[#allocation7_spill] sm:$0xff] }
 0x550   : > { %v8588_v22 = vsel %vm971_vm0, %v8585_v29, %v8587_v28  ;;  %v8589_v3 = vsel %vm971_vm0, %v8587_v28, %v18270_v39  ;;  %v8591_v39 = vsel %vm971_vm0, %v8354_v60, %v8590_v49  ;;  %v19988_v60 = vld [vmem:[#allocation5_spill] sm:$0xff]  ;;  %vm7406_vm12 = vcmp.ge.s32.totalorder %v19990_v10, 4  ;;  %v19991_v29 = vld [vmem:[#allocation8_spill] sm:$0xff] }
 0x551   : > { %vm7402_vm10 = vcmp.ge.s32.totalorder %v19988_v60, 4  ;;  %vm7404_vm13 = vcmp.ge.s32.totalorder %v19991_v29, 4 }
 0x555   : > { %14019 = vmatmul.mubr.msk.bf16.gmra.mrb[124].mxu0 %vm172_vm1, %v7151_v43  ;;  %14121 = vmatmul.mubr.msk.bf16.gmra.mrb[124].mxu1 %vm172_vm1, %v8045_v27  ;;  %v8782_v43 = vsel %vm971_vm0, %v8780_v53, %v18300_v12  ;;  %v19986_v27 = vld [vmem:[#allocation3_spill] sm:$0xff] }
 0x556   : > { %14126 = vmatprep.mubr.msk.bf16.mxu0 %vm172_vm1, %v8335_v21  ;;  %vm7398_vm7 = vcmp.ge.s32.totalorder %v19986_v27, 4  ;;  %v18434_v21 = vld [vmem:[%s19502_s2 + $0x2] ss:$0 sm:$0xff] }
 0x55d   : > { %14127 = vmatmul.mubr.msk.bf16.vlgmr.msra.gmra.mrb[128].mxu0 %vm172_vm1, %v18285_v55 }
 0x55e   : > { %14159 = vmatpush3.bf16.msra.mxu0 %v8611_v9  ;;  %14130 = vmatprep.mubr.msk.bf16.mxu0 %vm172_vm1, %v18293_v51 }
 0x55f   : > { %15262 = vmatprep.subr.msk.bf16.mxu0 %vm971_vm0, %v12520_v17 }
 0x565   : > { %14131 = vmatmul.mubr.msk.bf16.gmra.mrb[132].mxu0 %vm172_vm1, %v8341_v50 }
 0x566   : > { %14134 = vmatprep.mubr.msk.bf16.mxu0 %vm172_vm1, %v8343_v59 }
 0x56d   : > { %14135 = vmatmul.mubr.msk.bf16.gmra.mrb[136].mxu0 %vm172_vm1, %v18311_v20 }
 0x56e   : > { %14138 = vmatprep.mubr.msk.bf16.mxu0 %vm172_vm1, %v18316_v41 }
 0x575   : > { %14139 = vmatmul.mubr.msk.bf16.gmra.mrb[140].mxu0 %vm172_vm1, %v18323_v42 }
 0x576   : > { %14142 = vmatprep.mubr.msk.bf16.mxu0 %vm172_vm1, %v18328_v61 }
 0x57d   : > { %14143 = vmatmul.mubr.msk.bf16.gmra.mrb[144].mxu0 %vm172_vm1, %v18335_v36 }
 0x57e   : > { %14146 = vmatprep.mubr.msk.bf16.mxu0 %vm172_vm1, %v18340_v8 }
 0x585   : > { %14147 = vmatmul.mubr.msk.bf16.gmra.mrb[148].mxu0 %vm172_vm1, %v18347_v45 }
 0x586   : > { %14150 = vmatprep.mubr.msk.bf16.mxu0 %vm172_vm1, %v18352_v2 }
 0x58d   : > { %14151 = vmatmul.mubr.msk.bf16.gmra.mrb[152].mxu0 %vm172_vm1, %v18361_v48 }
 0x58e   : > { %14154 = vmatprep.mubr.msk.bf16.mxu0 %vm172_vm1, %v18367_v4 }
 0x595   : > { %14155 = vmatmul.mubr.msk.bf16.gmra.mrb[156].mxu0 %vm172_vm1, %v8365_v23 }
 0x596   : > { %14160 = vmatprep.mubr.msk.bf16.mxu0 %vm172_vm1, %v8582_v52 }
 0x59d   : > { %14161 = vmatmul.mubr.msk.bf16.vlgmr.msra.gmra.mrb[128].mxu0 %vm172_vm1, %v8584_v0 }
 0x59e   : > { %14193 = vmatpush3.bf16.msra.mxu0 %v8862_v40  ;;  %14164 = vmatprep.mubr.msk.bf16.mxu0 %vm172_vm1, %v8586_v18 }
 0x5a5   : > { %14165 = vmatmul.mubr.msk.bf16.gmra.mrb[132].mxu0 %vm172_vm1, %v8588_v22 }
 0x5a6   : > { %14168 = vmatprep.mubr.msk.bf16.mxu0 %vm172_vm1, %v8589_v3  ;;  %v8803_v3 = vrot.slane %v18235_v44, 6 }
 0x5a8   : > { %v8804_v44 = vsel %vm971_vm0, %v18358_v16, %v8803_v3  ;;  %v8809_v16 = vrot.slane %v18249_v15, 6 }
 0x5ad   : > { %14169 = vmatmul.mubr.msk.bf16.gmra.mrb[136].mxu0 %vm172_vm1, %v18285_v55 }
 0x5ae   : > { %14172 = vmatprep.mubr.msk.bf16.mxu0 %vm172_vm1, %v18293_v51 }
 0x5b5   : > { %14173 = vmatmul.mubr.msk.bf16.gmra.mrb[140].mxu0 %vm172_vm1, %v8341_v50 }
 0x5b6   : > { %14176 = vmatprep.mubr.msk.bf16.mxu0 %vm172_vm1, %v8343_v59 }
 0x5bd   : > { %14177 = vmatmul.mubr.msk.bf16.gmra.mrb[144].mxu0 %vm172_vm1, %v18311_v20 }
 0x5be   : > { %14180 = vmatprep.mubr.msk.bf16.mxu0 %vm172_vm1, %v18316_v41 }
 0x5c5   : > { %14181 = vmatmul.mubr.msk.bf16.gmra.mrb[148].mxu0 %vm172_vm1, %v18323_v42 }
 0x5c6   : > { %14184 = vmatprep.mubr.msk.bf16.mxu0 %vm172_vm1, %v18328_v61 }
 0x5cd   : > { %14185 = vmatmul.mubr.msk.bf16.gmra.mrb[152].mxu0 %vm172_vm1, %v18335_v36 }
 0x5ce   : > { %14188 = vmatprep.mubr.msk.bf16.mxu0 %vm172_vm1, %v18340_v8 }
 0x5d5   : > { %14189 = vmatmul.mubr.msk.bf16.gmra.mrb[156].mxu0 %vm172_vm1, %v8591_v39 }
 0x5d6   : > { %14194 = vmatprep.mubr.msk.bf16.mxu0 %vm172_vm1, %v8782_v43 }
 0x5dd   : > { %14195 = vmatmul.mubr.msk.bf16.vlgmr.msra.gmra.mrb[128].mxu0 %vm172_vm1, %v18311_v20 }
 0x5de   : > { %14198 = vmatprep.mubr.msk.bf16.mxu0 %vm172_vm1, %v18316_v41 }
 0x5e5   : > { %14199 = vmatmul.mubr.msk.bf16.gmra.mrb[132].mxu0 %vm172_vm1, %v18323_v42 }
 0x5e6   : > { %14202 = vmatprep.mubr.msk.bf16.mxu0 %vm172_vm1, %v18328_v61 }
 0x5ed   : > { %14203 = vmatmul.mubr.msk.bf16.gmra.mrb[136].mxu0 %vm172_vm1, %v18335_v36  ;;  %v19989_v36 = vld [vmem:[#allocation6_spill] sm:$0xff] }
 0x5ee   : > { %14206 = vmatprep.mubr.msk.bf16.mxu0 %vm172_vm1, %v18340_v8  ;;  %vm7400_vm11 = vcmp.ge.s32.totalorder %v19989_v36, 4 }
 0x5f0   : > { %v13992_v13 = vpop.f32.mrb[96].mxu0  ;;  %v14094_v9 = vpop.f32.mrb[96].mxu1 }
 0x5f1   : > { %v7494_v55 = vsel %vm7398_vm7, %v13992_v13, 0.0  ;;  %v7237_v17 = vpop.f32.mrb[97].mxu0  ;;  %v8131_v51 = vpop.f32.mrb[97].mxu1  ;;  %v8806_v13 = vsel %vm971_vm0, %v8803_v3, %v8805_v47 }
 0x5f2   : > { %v7526_v25 = vadd.f32 %v18434_v21, %v7494_v55  ;;  %v7492_v12 = vsel %vm7396_vm9, %v7237_v17, 0.0  ;;  %v13993_v50 = vpop.f32.mrb[98].mxu0  ;;  %v14095_v59 = vpop.f32.mrb[98].mxu1  ;;  %v19992_v55 = vld [vmem:[#allocation10_spill] sm:$0xff]  ;;  %v8807_v17 = vrot.slane %v18243_v31, 6 }
 0x5f3   : > { %v7524_v37 = vadd.f32 %v18434_v21, %v7492_v12  ;;  %v7527_v19 = vadd.f32 %v13993_v50, %v18434_v21  ;;  %v7240_v20 = vpop.f32.mrb[99].mxu0  ;;  %v8134_v41 = vpop.f32.mrb[99].mxu1  ;;  %vm7410_vm14 = vcmp.ge.s32.totalorder %v19992_v55, 4 }
 0x5f4   : > { %v18440_v14 = vadd.f32 %v14094_v9, %v7526_v25  ;;  %v7525_v5 = vadd.f32 %v18434_v21, %v7240_v20  ;;  %v8808_v60 = vsel %vm971_vm0, %v8805_v47, %v8807_v17  ;;  %v8810_v15 = vsel %vm971_vm0, %v8807_v17, %v8809_v16 }
 0x5f5   : > { %v18443_v42 = vadd.f32 %v8131_v51, %v7524_v37  ;;  %v18445_v61 = vadd.f32 %v14095_v59, %v7527_v19  ;;  %14207 = vmatmul.mubr.msk.bf16.gmra.mrb[140].mxu0 %vm172_vm1, %v18347_v45  ;;  %v19993_v51 = vld [vmem:[#allocation11_spill] sm:$0xff] }
 0x5f6   : > { %v18449_v57 = vadd.f32 %v8134_v41, %v7525_v5  ;;  %14210 = vmatprep.mubr.msk.bf16.mxu0 %vm172_vm1, %v18352_v2  ;;  %vm7408_vm15 = vcmp.ge.s32.totalorder %v19993_v51, 4 }
 0x5f8   : > { %v13996_v8 = vpop.f32.mrb[100].mxu0  ;;  %v14098_v6 = vpop.f32.mrb[100].mxu1 }
 0x5f9   : > { %v7498_v56 = vsel %vm7402_vm10, %v13996_v8, 0.0  ;;  %v7253_v46 = vpop.f32.mrb[101].mxu0  ;;  %v8147_v7 = vpop.f32.mrb[101].mxu1 }
 0x5fa   : > { %v7530_v35 = vadd.f32 %v18434_v21, %v7498_v56  ;;  %v7496_v58 = vsel %vm7400_vm11, %v7253_v46, 0.0  ;;  %v13997_v11 = vpop.f32.mrb[102].mxu0  ;;  %v14099_v1 = vpop.f32.mrb[102].mxu1  ;;  %v8775_v56 = vld [vmem:[#allocation2 + $0xe0] sm:$0x3f] }
 0x5fb   : > { %v7528_v45 = vadd.f32 %v18434_v21, %v7496_v58  ;;  %v7531_v54 = vadd.f32 %v13997_v11, %v18434_v21  ;;  %v7256_v26 = vpop.f32.mrb[103].mxu0  ;;  %v8150_v2 = vpop.f32.mrb[103].mxu1 }
 0x5fc   : > { %v18458_v24 = vadd.f32 %v14098_v6, %v7530_v35  ;;  %v7529_v33 = vadd.f32 %v18434_v21, %v7256_v26 }
 0x5fd   : > { %v18461_v52 = vadd.f32 %v8147_v7, %v7528_v45  ;;  %v18463_v23 = vadd.f32 %v14099_v1, %v7531_v54  ;;  %14211 = vmatmul.mubr.msk.bf16.gmra.mrb[144].mxu0 %vm172_vm1, %v18361_v48  ;;  %v19994_v1 = vld [vmem:[#allocation12_spill] sm:$0xff]  ;;  %v8811_v45 = vrot.slane %v8775_v56, 6  ;;  %v19995_v54 = vld [vmem:[#allocation13_spill] sm:$0xff] }
 0x5fe   : > { %v18467_v38 = vadd.f32 %v8150_v2, %v7529_v33  ;;  %14214 = vmatprep.mubr.msk.bf16.mxu0 %vm172_vm1, %v18367_v4  ;;  %vm7414_vm5 = vcmp.ge.s32.totalorder %v19994_v1, 4  ;;  %vm7412_vm6 = vcmp.ge.s32.totalorder %v19995_v54, 4 }
 0x600   : > { %v14000_v0 = vpop.f32.mrb[104].mxu0  ;;  %v14102_v40 = vpop.f32.mrb[104].mxu1 }
 0x601   : > { %v7502_v18 = vsel %vm7406_vm12, %v14000_v0, 0.0  ;;  %v7269_v28 = vpop.f32.mrb[105].mxu0  ;;  %v8163_v22 = vpop.f32.mrb[105].mxu1 }
 0x602   : > { %v7534_v48 = vadd.f32 %v18434_v21, %v7502_v18  ;;  %v7500_v34 = vsel %vm7404_vm13, %v7269_v28, 0.0  ;;  %v14001_v30 = vpop.f32.mrb[106].mxu0  ;;  %v14103_v32 = vpop.f32.mrb[106].mxu1 }
 0x603   : > { %v7532_v4 = vadd.f32 %v18434_v21, %v7500_v34  ;;  %v7535_v49 = vadd.f32 %v14001_v30, %v18434_v21  ;;  %v7272_v53 = vpop.f32.mrb[107].mxu0  ;;  %v8166_v39 = vpop.f32.mrb[107].mxu1 }
 0x604   : > { %v18478_v43 = vadd.f32 %v14102_v40, %v7534_v48  ;;  %v7533_v27 = vadd.f32 %v18434_v21, %v7272_v53 }
 0x605   : > { %v18483_v63 = vadd.f32 %v8163_v22, %v7532_v4  ;;  %v18485_v62 = vadd.f32 %v14103_v32, %v7535_v49  ;;  %14215 = vmatmul.mubr.msk.bf16.gmra.mrb[148].mxu0 %vm172_vm1, %v8804_v44  ;;  %v8812_v22 = vsel %vm971_vm0, %v8809_v16, %v8811_v45 }
 0x606   : > { %v18489_v9 = vadd.f32 %v8166_v39, %v7533_v27  ;;  %14218 = vmatprep.mubr.msk.bf16.mxu0 %vm172_vm1, %v8806_v13  ;;  %v19996_v39 = vld [vmem:[#allocation14_spill] sm:$0xff]  ;;  %v19997_v27 = vld [vmem:[#allocation9_spill] sm:$0xff] }
 0x607   : > { %vm7418_vm8 = vcmp.ge.s32.totalorder %v19996_v39, 4  ;;  %vm7416_vm7 = vcmp.ge.s32.totalorder %v19997_v27, 4 }
 0x608   : > { %v14004_v25 = vpop.f32.mrb[108].mxu0  ;;  %v14106_v12 = vpop.f32.mrb[108].mxu1 }
 0x609   : > { %v7506_v50 = vsel %vm7410_vm14, %v14004_v25, 0.0  ;;  %v7285_v59 = vpop.f32.mrb[109].mxu0  ;;  %v8179_v37 = vpop.f32.mrb[109].mxu1 }
 0x60a   : > { %v7538_v19 = vadd.f32 %v18434_v21, %v7506_v50  ;;  %v7504_v20 = vsel %vm7408_vm15, %v7285_v59, 0.0  ;;  %v14005_v41 = vpop.f32.mrb[110].mxu0  ;;  %v14107_v5 = vpop.f32.mrb[110].mxu1 }
 0x60b   : > { %v7536_v36 = vadd.f32 %v18434_v21, %v7504_v20  ;;  %v7539_v31 = vadd.f32 %v14005_v41, %v18434_v21  ;;  %v7288_v8 = vpop.f32.mrb[111].mxu0  ;;  %v8182_v6 = vpop.f32.mrb[111].mxu1 }
 0x60c   : > { %v18501_v46 = vadd.f32 %v14106_v12, %v7538_v19  ;;  %v7537_v7 = vadd.f32 %v18434_v21, %v7288_v8  ;;  %v19998_v8 = vld [vmem:[#allocation15_spill] sm:$0xff] }
 0x60d   : > { %v18504_v35 = vadd.f32 %v8179_v37, %v7536_v36  ;;  %v18506_v58 = vadd.f32 %v14107_v5, %v7539_v31  ;;  %14219 = vmatmul.mubr.msk.bf16.gmra.mrb[152].mxu0 %vm172_vm1, %v8808_v60  ;;  %vm7422_vm9 = vcmp.ge.s32.totalorder %v19998_v8, 4 }
 0x60e   : > { %v18509_v11 = vadd.f32 %v8182_v6, %v7537_v7  ;;  %14222 = vmatprep.mubr.msk.bf16.mxu0 %vm172_vm1, %v8810_v15  ;;  %v19999_v6 = vld [vmem:[#allocation16_spill] sm:$0xff] }
 0x60f   : > { %vm7420_vm10 = vcmp.ge.s32.totalorder %v19999_v6, 4  ;;  %v18573_v6 = vld [vmem:[%s19501_s1 + $0x36] sm:$0x3] }
 0x610   : > { %v14008_v26 = vpop.f32.mrb[112].mxu0  ;;  %v14110_v2 = vpop.f32.mrb[112].mxu1  ;;  %15264 = vmatprep.subr.msk.bf16.mxu1 %vm971_vm0, %v18573_v6 }
 0x611   : > { %v7510_v33 = vsel %vm7414_vm5, %v14008_v26, 0.0  ;;  %v7301_v10 = vpop.f32.mrb[113].mxu0  ;;  %v8195_v29 = vpop.f32.mrb[113].mxu1 }
 0x612   : > { %v7542_v0 = vadd.f32 %v18434_v21, %v7510_v33  ;;  %v7508_v40 = vsel %vm7412_vm6, %v7301_v10, 0.0  ;;  %v14009_v18 = vpop.f32.mrb[114].mxu0  ;;  %v14111_v28 = vpop.f32.mrb[114].mxu1 }
 0x613   : > { %v7540_v3 = vadd.f32 %v18434_v21, %v7508_v40  ;;  %v7543_v47 = vadd.f32 %v14009_v18, %v18434_v21  ;;  %v7304_v48 = vpop.f32.mrb[115].mxu0  ;;  %v8198_v34 = vpop.f32.mrb[115].mxu1 }
 0x614   : > { %v18518_v30 = vadd.f32 %v14110_v2, %v7542_v0  ;;  %v7541_v32 = vadd.f32 %v18434_v21, %v7304_v48  ;;  %v20000_v48 = vld [vmem:[#allocation17_spill] sm:$0xff] }
 0x615   : > { %v18521_v4 = vadd.f32 %v8195_v29, %v7540_v3  ;;  %v18523_v49 = vadd.f32 %v14111_v28, %v7543_v47  ;;  %14223 = vmatmul.mubr.msk.bf16.gmra.mrb[156].mxu0 %vm172_vm1, %v8812_v22  ;;  %vm7426_vm11 = vcmp.ge.s32.totalorder %v20000_v48, 4 }
 0x616   : > { %v18526_v53 = vadd.f32 %v8198_v34, %v7541_v32  ;;  %v20001_v34 = vld [vmem:[#allocation18_spill] sm:$0xff] }
 0x617   : > { %vm7424_vm12 = vcmp.ge.s32.totalorder %v20001_v34, 4  ;;  %v20004_v34 = vld [vmem:[#allocation67_spill] sm:$0xff] }
 0x618   : > { %v14012_v44 = vpop.f32.mrb[116].mxu0  ;;  %v14114_v13 = vpop.f32.mrb[116].mxu1 }
 0x619   : > { %v7514_v55 = vsel %vm7418_vm8, %v14012_v44, 0.0  ;;  %v7317_v17 = vpop.f32.mrb[117].mxu0  ;;  %v8211_v51 = vpop.f32.mrb[117].mxu1 }
 0x61a   : > { %v7546_v16 = vadd.f32 %v18434_v21, %v7514_v55  ;;  %v7512_v25 = vsel %vm7416_vm7, %v7317_v17, 0.0  ;;  %v14013_v12 = vpop.f32.mrb[118].mxu0  ;;  %v14115_v50 = vpop.f32.mrb[118].mxu1 }
 0x61b   : > { %v7544_v59 = vadd.f32 %v18434_v21, %v7512_v25  ;;  %v7547_v37 = vadd.f32 %v14013_v12, %v18434_v21  ;;  %v7320_v19 = vpop.f32.mrb[119].mxu0  ;;  %v8214_v20 = vpop.f32.mrb[119].mxu1 }
 0x61c   : > { %v18533_v41 = vadd.f32 %v14114_v13, %v7546_v16  ;;  %v7545_v5 = vadd.f32 %v18434_v21, %v7320_v19 }
 0x61d   : > { %v18536_v60 = vadd.f32 %v8211_v51, %v7544_v59  ;;  %v18538_v36 = vadd.f32 %v14115_v50, %v7547_v37 }
 0x61e   : > { %v18540_v31 = vadd.f32 %v8214_v20, %v7545_v5 }
 0x620   : > { %v14016_v15 = vpop.f32.mrb[120].mxu0  ;;  %v14118_v56 = vpop.f32.mrb[120].mxu1 }
 0x621   : > { %v7518_v7 = vsel %vm7422_vm9, %v14016_v15, 0.0  ;;  %v7333_v1 = vpop.f32.mrb[121].mxu0  ;;  %v8227_v45 = vpop.f32.mrb[121].mxu1  ;;  %v12591_v15 = vld [vmem:[%s19501_s1 + $0x3e] sm:$0x3] }
 0x622   : > { %v7550_v54 = vadd.f32 %v18434_v21, %v7518_v7  ;;  %v7516_v26 = vsel %vm7420_vm10, %v7333_v1, 0.0  ;;  %v14017_v2 = vpop.f32.mrb[122].mxu0  ;;  %v14119_v33 = vpop.f32.mrb[122].mxu1  ;;  %15266 = vmatprep.subr.msk.bf16.mxu0 %vm971_vm0, %v12591_v15  ;;  %v20002_v1 = vld [vmem:[#allocation19_spill] sm:$0xff] }
 0x623   : > { %v7548_v10 = vadd.f32 %v18434_v21, %v7516_v26  ;;  %v7551_v29 = vadd.f32 %v14017_v2, %v18434_v21  ;;  %v7336_v0 = vpop.f32.mrb[123].mxu0  ;;  %v8230_v40 = vpop.f32.mrb[123].mxu1  ;;  %vm9060_vm13 = vcmp.lt.s32.totalorder %v20002_v1, 12  ;;  %v20003_v26 = vld [vmem:[#allocation20_spill] sm:$0xff] }
 0x624   : > { %v18547_v18 = vadd.f32 %v14118_v56, %v7550_v54  ;;  %v7549_v28 = vadd.f32 %v18434_v21, %v7336_v0  ;;  %v18585_v56 = vld [vmem:[%s19501_s1 + $0x38] sm:$0x3]  ;;  %vm9058_vm14 = vcmp.lt.s32.totalorder %v20003_v26, 12 }
 0x625   : > { %v18550_v22 = vadd.f32 %v8227_v45, %v7548_v10  ;;  %v18552_v3 = vadd.f32 %v14119_v33, %v7551_v29 }
 0x626   : > { %v18554_v47 = vadd.f32 %v8230_v40, %v7549_v28 }
 0x628   : > { %v14020_v32 = vpop.f32.mrb[124].mxu0  ;;  %v14122_v39 = vpop.f32.mrb[124].mxu1 }
 0x629   : > { %v7522_v27 = vsel %vm7426_vm11, %v14020_v32, 0.0  ;;  %v7349_v44 = vpop.f32.mrb[125].mxu0  ;;  %v8243_v13 = vpop.f32.mrb[125].mxu1 }
 0x62a   : > { %v7554_v55 = vadd.f32 %v18434_v21, %v7522_v27  ;;  %v7520_v17 = vsel %vm7424_vm12, %v7349_v44, 0.0  ;;  %v14021_v51 = vpop.f32.mrb[126].mxu0  ;;  %v14123_v16 = vpop.f32.mrb[126].mxu1  ;;  %v20006_v27 = vld [vmem:[#allocation68_spill] sm:$0xff] }
 0x62b   : > { %v7552_v25 = vadd.f32 %v18434_v21, %v7520_v17  ;;  %v7555_v12 = vadd.f32 %v14021_v51, %v18434_v21  ;;  %v7352_v50 = vpop.f32.mrb[127].mxu0  ;;  %v8246_v59 = vpop.f32.mrb[127].mxu1 }
 0x62c   : > { %v18561_v37 = vadd.f32 %v14122_v39, %v7554_v55  ;;  %v7553_v19 = vadd.f32 %v18434_v21, %v7352_v50  ;;  %v10366_v21 = vsel %vm971_vm0, %v12591_v15, 0  ;;  %v20008_v55 = vld [vmem:[#allocation69_spill] sm:$0xff] }
 0x62d   : > { %v18564_v20 = vadd.f32 %v8243_v13, %v7552_v25  ;;  %v18566_v5 = vadd.f32 %v14123_v16, %v7555_v12  ;;  %14329 = vmatpush3.bf16.msra.mxu0 %v10366_v21  ;;  %v20009_v16 = vld [vmem:[#allocation24_spill] sm:$0xff]  ;;  %v20010_v25 = vld [vmem:[#allocation70_spill] sm:$0xff] }
 0x62e   : > { %v18568_v8 = vadd.f32 %v8246_v59, %v7553_v19  ;;  %15267 = vmatprep.subr.msk.bf16.mxu0 %vm971_vm0, %v18585_v56  ;;  %vm9064_vm15 = vcmp.lt.s32.totalorder %v20009_v16, 12  ;;  %v20019_v16 = vld [vmem:[#allocation32_spill] sm:$0xff] }
 0x6b0   : > { %v14196_v7 = vpop.f32.mrb[128].mxu0 }
 0x6b1   : > { %v9187_v45 = vadd.f32 %v14196_v7, %v18440_v14  ;;  %v8898_v54 = vpop.f32.mrb[129].mxu0 }
 0x6b2   : > { %v9185_v2 = vadd.f32 %v8898_v54, %v18443_v42  ;;  %v14197_v33 = vpop.f32.mrb[130].mxu0 }
 0x6b3   : > { %v9219_v10 = vmax.f32 %v9187_v45, 0.0  ;;  %v9156_v29 = vsel %vm9060_vm13, %v14197_v33, 0.0  ;;  %v8901_v0 = vpop.f32.mrb[131].mxu0 }
 0x6b4   : > { %v9217_v40 = vmax.f32 %v9185_v2, 0.0  ;;  %v9188_v28 = vadd.f32 %v9156_v29, %v18445_v61  ;;  %v9154_v48 = vsel %vm9058_vm14, %v8901_v0, 0.0 }
 0x6b5   : > { %v18595_v32 = vadd.f32 %v9219_v10, %v20004_v34  ;;  %v9186_v39 = vadd.f32 %v9154_v48, %v18449_v57  ;;  %v20011_v57 = vld [vmem:[#allocation26_spill] sm:$0xff]  ;;  %v20016_v34 = vld [vmem:[#allocation23_spill] sm:$0xff] }
 0x6b6   : > { %v18599_v14 = vadd.f32 %v9217_v40, %v20006_v27  ;;  %v9220_v44 = vmax.f32 %v9188_v28, 0.0  ;;  %vm9062_vm5 = vcmp.lt.s32.totalorder %v20011_v57, 12 }
 0x6b7   : > { %20005 = vst [vmem:[#allocation63_spill] sm:$0xff] %v18595_v32  ;;  %v9218_v13 = vmax.f32 %v9186_v39, 0.0 }
 0x6b8   : > { %20007 = vst [vmem:[#allocation64_spill] sm:$0xff] %v18599_v14  ;;  %v18602_v42 = vadd.f32 %v9220_v44, %v20008_v55  ;;  %v9282_v17 = vpack.c.bf16 %v9220_v44, %v9219_v10  ;;  %v14200_v51 = vpop.f32.mrb[132].mxu0  ;;  %v20017_v44 = vld [vmem:[#allocation30_spill] sm:$0xff]  ;;  %v18998_v14 = vld [vmem:[#allocation2 + $0x30] sm:$0xff] }
 0x6b9   : > { %v18606_v61 = vadd.f32 %v9218_v13, %v20010_v25  ;;  %v9281_v12 = vpack.c.bf16 %v9218_v13, %v9217_v40  ;;  %v9191_v50 = vadd.f32 %v14200_v51, %v18458_v24  ;;  %v8914_v59 = vpop.f32.mrb[133].mxu0  ;;  %v20012_v24 = vld [vmem:[#allocation21_spill] sm:$0xff]  ;;  %vm9068_vm6 = vcmp.lt.s32.totalorder %v20017_v44, 12 }
 0x6ba   : > { %v9314_v19 = vrot.slane %v9282_v17, 4  ;;  %v9189_v15 = vadd.f32 %v8914_v59, %v18461_v52  ;;  %v14201_v21 = vpop.f32.mrb[134].mxu0  ;;  %v20014_v52 = vld [vmem:[#allocation22_spill] sm:$0xff]  ;;  %v20018_v13 = vld [vmem:[#allocation25_spill] sm:$0xff] }
 0x6bb   : > { %v9313_v7 = vrot.slane %v9281_v12, 4  ;;  %v9223_v1 = vmax.f32 %v9191_v50, 0.0  ;;  %v9160_v45 = vsel %vm9064_vm15, %v14201_v21, 0.0  ;;  %v8917_v54 = vpop.f32.mrb[135].mxu0 }
 0x6bc   : > { %v9221_v26 = vmax.f32 %v9189_v15, 0.0  ;;  %v9192_v2 = vadd.f32 %v9160_v45, %v18463_v23  ;;  %v9158_v33 = vsel %vm9062_vm5, %v8917_v54, 0.0 }
 0x6bd   : > { %v9315_v10 = vsel %vm257_vm4, %v9313_v7, %v9314_v19  ;;  %9361 = vst.msk [vmem:[#allocation2 + $0x40] sm:$0xf0] %vm183_vm3, %v9313_v7  ;;  %v18615_v29 = vadd.f32 %v9223_v1, %v20012_v24  ;;  %v9190_v0 = vadd.f32 %v9158_v33, %v18467_v38  ;;  %vm9066_vm3 = vcmp.lt.s32.totalorder %v20019_v16, 12 }
 0x6be   : > { %9362 = vst.msk [vmem:[#allocation2 + $0x48] sm:$0xff] %vm172_vm1, %v9315_v10  ;;  %v18620_v40 = vadd.f32 %v9221_v26, %v20014_v52  ;;  %v9224_v28 = vmax.f32 %v9192_v2, 0.0 }
 0x6bf   : > { %20013 = vst [vmem:[#allocation65_spill] sm:$0xff] %v18615_v29  ;;  %v9222_v48 = vmax.f32 %v9190_v0, 0.0  ;;  %v18650_v0 = vld [vmem:[%s19501_s1 + $0x42] sm:$0x3] }
 0x6c0   : > { %20015 = vst [vmem:[#allocation66_spill] sm:$0xff] %v18620_v40  ;;  %v18623_v39 = vadd.f32 %v9224_v28, %v20016_v34  ;;  %v9284_v23 = vpack.c.bf16 %v9224_v28, %v9223_v1  ;;  %v14204_v27 = vpop.f32.mrb[136].mxu0  ;;  %v20024_v34 = vld [vmem:[#allocation29_spill] sm:$0xff] }
 0x6c1   : > { %v18627_v55 = vadd.f32 %v9222_v48, %v20018_v13  ;;  %v9283_v17 = vpack.c.bf16 %v9222_v48, %v9221_v26  ;;  %v9195_v38 = vadd.f32 %v14204_v27, %v18478_v43  ;;  %v8930_v51 = vpop.f32.mrb[137].mxu0  ;;  %v9651_v43 = vsel %vm971_vm0, %v18573_v6, 0  ;;  %v20022_v6 = vld [vmem:[#allocation28_spill] sm:$0xff] }
 0x6c2   : > { %v9318_v25 = vrot.slane %v9284_v23, 4  ;;  %v9193_v12 = vadd.f32 %v8930_v51, %v18483_v63  ;;  %v14205_v50 = vpop.f32.mrb[138].mxu0  ;;  %v20020_v63 = vld [vmem:[#allocation27_spill] sm:$0xff] }
 0x6c3   : > { %v9316_v59 = vrot.slane %v9283_v17, 4  ;;  %v9227_v57 = vmax.f32 %v9195_v38, 0.0  ;;  %v9164_v15 = vsel %vm9068_vm6, %v14205_v50, 0.0  ;;  %v8933_v21 = vpop.f32.mrb[139].mxu0  ;;  %v20025_v17 = vld [vmem:[#allocation35_spill] sm:$0xff] }
 0x6c4   : > { %v9225_v7 = vmax.f32 %v9193_v12, 0.0  ;;  %v9196_v1 = vadd.f32 %v9164_v15, %v18485_v62  ;;  %v9162_v45 = vsel %vm9066_vm3, %v8933_v21, 0.0  ;;  %v18633_v54 = vld [vmem:[#allocation2 + $0x40] sm:$0xff]  ;;  %vm9072_vm8 = vcmp.lt.s32.totalorder %v20025_v17, 12  ;;  %v20026_v38 = vld [vmem:[#allocation31_spill] sm:$0xff]  ;;  %v20033_v17 = vld [vmem:[#allocation37_spill] sm:$0xff] }
 0x6c5   : > { %v10255_v26 = vld [vmem:[#allocation2 + $0x40] sm:$0xf0]  ;;  %v9317_v2 = vsel %vm257_vm4, %v9314_v19, %v9316_v59  ;;  %v9319_v33 = vsel %vm257_vm4, %v9316_v59, %v9318_v25  ;;  %v18640_v10 = vadd.f32 %v9227_v57, %v20020_v63  ;;  %v9194_v24 = vadd.f32 %v9162_v45, %v18489_v9  ;;  %14228 = vmatprep.mubr.msk.bf16.mxu1 %vm172_vm1, %v18633_v54  ;;  %v18645_v62 = vld [vmem:[#allocation2 + $0x48] sm:$0xff]  ;;  %v20027_v59 = vld [vmem:[#allocation36_spill] sm:$0xff] }
 0x6c6   : > { %9363 = vst.msk [vmem:[#allocation2 + $0x50] sm:$0xff] %vm172_vm1, %v9317_v2  ;;  %9364 = vst.msk [vmem:[#allocation2 + $0x58] sm:$0xff] %vm172_vm1, %v9319_v33  ;;  %v18655_v19 = vadd.f32 %v9225_v7, %v20022_v6  ;;  %v9228_v52 = vmax.f32 %v9196_v1, 0.0  ;;  %14229 = vmatmul.mubr.msk.bf16.vlgmr.msra.gmra.mrb[128].mxu1 %vm172_vm1, %v18645_v62  ;;  %v10284_v9 = vrot.slane %v10255_v26, 4  ;;  %v18660_v28 = vrot.slane %v18645_v62, 4 }
 0x6c7   : > { %20021 = vst [vmem:[#allocation71_spill] sm:$0xff] %v18640_v10  ;;  %v9226_v48 = vmax.f32 %v9194_v24, 0.0  ;;  %14261 = vmatpush3.bf16.msra.mxu1 %v9651_v43  ;;  %vm9070_vm7 = vcmp.lt.s32.totalorder %v20027_v59, 12  ;;  %v20028_v24 = vld [vmem:[#allocation33_spill] sm:$0xff] }
 0x6c8   : > { %20023 = vst [vmem:[#allocation3_spill] sm:$0xff] %v18655_v19  ;;  %v18663_v23 = vadd.f32 %v9228_v52, %v20024_v34  ;;  %v18665_v27 = vpack.c.bf16 %v9228_v52, %v9227_v57  ;;  %v14208_v44 = vpop.f32.mrb[140].mxu0  ;;  %v10286_v13 = vsel %vm257_vm4, %v10284_v9, %v18660_v28  ;;  %15265 = vmatprep.subr.msk.bf16.mxu1 %vm971_vm0, %v18650_v0 }
 0x6c9   : > { %v18673_v51 = vadd.f32 %v9226_v48, %v20026_v38  ;;  %v9285_v16 = vpack.c.bf16 %v9226_v48, %v9225_v7  ;;  %v9199_v12 = vadd.f32 %v14208_v44, %v18501_v46  ;;  %v8946_v50 = vpop.f32.mrb[141].mxu0  ;;  %14330 = vmatprep.mubr.msk.bf16.mxu0 %vm172_vm1, %v10286_v13  ;;  %v20030_v48 = vld [vmem:[#allocation34_spill] sm:$0xff]  ;;  %v20032_v44 = vld [vmem:[#allocation39_spill] sm:$0xff]  ;;  %v10590_v13 = vsel %vm971_vm0, %v18585_v56, 0 }
 0x6ca   : > { %v9322_v57 = vrot.slane %v18665_v27, 4  ;;  %v9197_v15 = vadd.f32 %v8946_v50, %v18504_v35  ;;  %v14209_v21 = vpop.f32.mrb[142].mxu0  ;;  %vm9076_vm9 = vcmp.lt.s32.totalorder %v20032_v44, 12 }
 0x6cb   : > { %v9320_v1 = vrot.slane %v9285_v16, 4  ;;  %v9231_v45 = vmax.f32 %v9199_v12, 0.0  ;;  %v9168_v43 = vsel %vm9072_vm8, %v14209_v21, 0.0  ;;  %v8949_v26 = vpop.f32.mrb[143].mxu0  ;;  %v20034_v21 = vld [vmem:[#allocation38_spill] sm:$0xff] }
 0x6cc   : > { %v9229_v2 = vmax.f32 %v9197_v15, 0.0  ;;  %v9200_v33 = vadd.f32 %v9168_v43, %v18506_v58  ;;  %v9166_v7 = vsel %vm9070_vm7, %v8949_v26, 0.0  ;;  %v18720_v15 = vld [vmem:[%s19501_s1 + $0x44] sm:$0x3] }
 0x6cd   : > { %v9321_v46 = vsel %vm257_vm4, %v9318_v25, %v9320_v1  ;;  %v9323_v63 = vsel %vm257_vm4, %v9320_v1, %v9322_v57  ;;  %v18684_v6 = vadd.f32 %v9231_v45, %v20028_v24  ;;  %v9198_v52 = vadd.f32 %v9166_v7, %v18509_v11  ;;  %v18687_v9 = vld [vmem:[#allocation2 + $0x50] sm:$0xff]  ;;  %v18689_v35 = vld [vmem:[#allocation2 + $0x58] sm:$0xff]  ;;  %v20035_v26 = vld [vmem:[#allocation42_spill] sm:$0xff] }
 0x6ce   : > { %9365 = vst.msk [vmem:[#allocation2 + $0x60] sm:$0xff] %vm172_vm1, %v9321_v46  ;;  %9366 = vst.msk [vmem:[#allocation2 + $0x68] sm:$0xff] %vm172_vm1, %v9323_v63  ;;  %v18694_v58 = vadd.f32 %v9229_v2, %v20030_v48  ;;  %v9232_v34 = vmax.f32 %v9200_v33, 0.0  ;;  %14232 = vmatprep.mubr.msk.bf16.mxu1 %vm172_vm1, %v18687_v9  ;;  %v10287_v25 = vrot.slane %v18687_v9, 4  ;;  %v10289_v27 = vrot.slane %v18689_v35, 4 }
 0x6cf   : > { %20029 = vst [vmem:[#allocation4_spill] sm:$0xff] %v18684_v6  ;;  %v9230_v11 = vmax.f32 %v9198_v52, 0.0  ;;  %14233 = vmatmul.mubr.msk.bf16.gmra.mrb[132].mxu1 %vm172_vm1, %v18689_v35  ;;  %vm9074_vm10 = vcmp.lt.s32.totalorder %v20035_v26, 12 }
 0x6d0   : > { %20031 = vst [vmem:[#allocation5_spill] sm:$0xff] %v18694_v58  ;;  %v18706_v38 = vadd.f32 %v9232_v34, %v20033_v17  ;;  %v18708_v16 = vpack.c.bf16 %v9232_v34, %v9231_v45  ;;  %v14212_v12 = vpop.f32.mrb[144].mxu0  ;;  %v18712_v50 = vsel %vm257_vm4, %v18660_v28, %v10287_v25  ;;  %v18715_v59 = vsel %vm257_vm4, %v10287_v25, %v10289_v27 }
 0x6d1   : > { %v18723_v56 = vadd.f32 %v9230_v11, %v20034_v21  ;;  %v9287_v1 = vpack.c.bf16 %v9230_v11, %v9229_v2  ;;  %v9203_v45 = vadd.f32 %v14212_v12, %v18518_v30  ;;  %v8962_v43 = vpop.f32.mrb[145].mxu0  ;;  %14331 = vmatmul.mubr.msk.bf16.vlgmr.msra.gmra.mrb[160].mxu0 %vm172_vm1, %v18712_v50  ;;  %v20036_v11 = vld [vmem:[#allocation40_spill] sm:$0xff]  ;;  %v20038_v12 = vld [vmem:[#allocation41_spill] sm:$0xff] }
 0x6d2   : > { %v9326_v33 = vrot.slane %v18708_v16, 4  ;;  %v9201_v7 = vadd.f32 %v8962_v43, %v18521_v4  ;;  %v14213_v46 = vpop.f32.mrb[146].mxu0  ;;  %14334 = vmatprep.mubr.msk.bf16.mxu0 %vm172_vm1, %v18715_v59  ;;  %14363 = vmatpush3.bf16.msra.mxu0 %v10590_v13  ;;  %v20041_v43 = vld [vmem:[#allocation43_spill] sm:$0xff] }
 0x6d3   : > { %v9324_v63 = vrot.slane %v9287_v1, 4  ;;  %v9235_v24 = vmax.f32 %v9203_v45, 0.0  ;;  %v9172_v30 = vsel %vm9076_vm9, %v14213_v46, 0.0  ;;  %v8965_v2 = vpop.f32.mrb[147].mxu0  ;;  %15268 = vmatprep.subr.msk.bf16.mxu0 %vm971_vm0, %v18720_v15  ;;  %v20040_v45 = vld [vmem:[#allocation45_spill] sm:$0xff] }
 0x6d4   : > { %v9233_v52 = vmax.f32 %v9201_v7, 0.0  ;;  %v9204_v48 = vadd.f32 %v9172_v30, %v18523_v49  ;;  %v9170_v34 = vsel %vm9074_vm10, %v8965_v2, 0.0  ;;  %vm9080_vm11 = vcmp.lt.s32.totalorder %v20040_v45, 12  ;;  %v20042_v2 = vld [vmem:[#allocation44_spill] sm:$0xff]  ;;  %v20046_v45 = vld [vmem:[#allocation47_spill] sm:$0xff] }
 0x6d5   : > { %v9325_v4 = vsel %vm257_vm4, %v9322_v57, %v9324_v63  ;;  %v9327_v25 = vsel %vm257_vm4, %v9324_v63, %v9326_v33  ;;  %v18741_v17 = vadd.f32 %v9235_v24, %v20036_v11  ;;  %v9202_v13 = vadd.f32 %v9170_v34, %v18526_v53  ;;  %v18744_v16 = vld [vmem:[#allocation2 + $0x60] sm:$0xff]  ;;  %v18746_v44 = vld [vmem:[#allocation2 + $0x68] sm:$0xff]  ;;  %v20043_v11 = vld [vmem:[#allocation49_spill] sm:$0xff] }
 0x6d6   : > { %9367 = vst.msk [vmem:[#allocation2 + $0x70] sm:$0xff] %vm172_vm1, %v9325_v4  ;;  %9368 = vst.msk [vmem:[#allocation2 + $0x78] sm:$0xff] %vm172_vm1, %v9327_v25  ;;  %v18751_v49 = vadd.f32 %v9233_v52, %v20038_v12  ;;  %v9236_v21 = vmax.f32 %v9204_v48, 0.0  ;;  %14236 = vmatprep.mubr.msk.bf16.mxu1 %vm172_vm1, %v18744_v16  ;;  %v10291_v57 = vrot.slane %v18744_v16, 4  ;;  %v10293_v1 = vrot.slane %v18746_v44, 4 }
 0x6d7   : > { %20037 = vst [vmem:[#allocation6_spill] sm:$0xff] %v18741_v17  ;;  %v9234_v53 = vmax.f32 %v9202_v13, 0.0  ;;  %14237 = vmatmul.mubr.msk.bf16.gmra.mrb[136].mxu1 %vm172_vm1, %v18746_v44  ;;  %vm9078_vm12 = vcmp.lt.s32.totalorder %v20043_v11, 12 }
 0x6d8   : > { %20039 = vst [vmem:[#allocation7_spill] sm:$0xff] %v18751_v49  ;;  %v18761_v26 = vadd.f32 %v9236_v21, %v20041_v43  ;;  %v9290_v7 = vpack.c.bf16 %v9236_v21, %v9235_v24  ;;  %v14216_v46 = vpop.f32.mrb[148].mxu0  ;;  %v18764_v63 = vsel %vm257_vm4, %v10289_v27, %v10291_v57  ;;  %v18767_v30 = vsel %vm257_vm4, %v10291_v57, %v10293_v1 }
 0x6d9   : > { %v18770_v48 = vadd.f32 %v9234_v53, %v20042_v2  ;;  %v9289_v34 = vpack.c.bf16 %v9234_v53, %v9233_v52  ;;  %v9207_v4 = vadd.f32 %v14216_v46, %v18533_v41  ;;  %v8978_v25 = vpop.f32.mrb[149].mxu0  ;;  %14335 = vmatmul.mubr.msk.bf16.gmra.mrb[164].mxu0 %vm172_vm1, %v18764_v63  ;;  %v20044_v2 = vld [vmem:[#allocation46_spill] sm:$0xff] }
 0x6da   : > { %v9330_v24 = vrot.slane %v9290_v7, 4  ;;  %v9205_v13 = vadd.f32 %v8978_v25, %v18536_v60  ;;  %v14217_v27 = vpop.f32.mrb[150].mxu0  ;;  %14338 = vmatprep.mubr.msk.bf16.mxu0 %vm172_vm1, %v18767_v30 }
 0x6db   : > { %v9328_v12 = vrot.slane %v9289_v34, 4  ;;  %v9239_v21 = vmax.f32 %v9207_v4, 0.0  ;;  %v9176_v52 = vsel %vm9080_vm11, %v14217_v27, 0.0  ;;  %v8981_v57 = vpop.f32.mrb[151].mxu0  ;;  %v20048_v27 = vld [vmem:[#allocation52_spill] sm:$0xff] }
 0x6dc   : > { %v9237_v41 = vmax.f32 %v9205_v13, 0.0  ;;  %v9208_v53 = vadd.f32 %v9176_v52, %v18538_v36  ;;  %v9174_v43 = vsel %vm9078_vm12, %v8981_v57, 0.0  ;;  %vm9084_vm13 = vcmp.lt.s32.totalorder %v20048_v27, 12  ;;  %v20054_v27 = vld [vmem:[#allocation53_spill] sm:$0xff] }
 0x6dd   : > { %v9329_v46 = vsel %vm257_vm4, %v9326_v33, %v9328_v12  ;;  %v9331_v7 = vsel %vm257_vm4, %v9328_v12, %v9330_v24  ;;  %v18785_v60 = vadd.f32 %v9239_v21, %v20044_v2  ;;  %v9206_v25 = vadd.f32 %v9174_v43, %v18540_v31  ;;  %v18788_v11 = vld [vmem:[#allocation2 + $0x70] sm:$0xff]  ;;  %v18790_v34 = vld [vmem:[#allocation2 + $0x78] sm:$0xff] }
 0x6de   : > { %9369 = vst.msk [vmem:[#allocation2 + $0x80] sm:$0xff] %vm172_vm1, %v9329_v46  ;;  %9370 = vst.msk [vmem:[#allocation2 + $0x88] sm:$0xff] %vm172_vm1, %v9331_v7  ;;  %v18795_v36 = vadd.f32 %v9237_v41, %v20046_v45  ;;  %v9240_v4 = vmax.f32 %v9208_v53, 0.0  ;;  %14240 = vmatprep.mubr.msk.bf16.mxu1 %vm172_vm1, %v18788_v11  ;;  %v10295_v33 = vrot.slane %v18788_v11, 4  ;;  %v18801_v13 = vrot.slane %v18790_v34, 4  ;;  %v20049_v12 = vld [vmem:[#allocation48_spill] sm:$0xff] }
 0x6df   : > { %20045 = vst [vmem:[#allocation8_spill] sm:$0xff] %v18785_v60  ;;  %v9238_v31 = vmax.f32 %v9206_v25, 0.0  ;;  %14241 = vmatmul.mubr.msk.bf16.gmra.mrb[140].mxu1 %vm172_vm1, %v18790_v34  ;;  %v20050_v7 = vld [vmem:[#allocation50_spill] sm:$0xff] }
 0x6e0   : > { %20047 = vst [vmem:[#allocation10_spill] sm:$0xff] %v18795_v36  ;;  %v18807_v52 = vadd.f32 %v9240_v4, %v20049_v12  ;;  %v9292_v57 = vpack.c.bf16 %v9240_v4, %v9239_v21  ;;  %v14220_v43 = vpop.f32.mrb[152].mxu0  ;;  %v18810_v53 = vsel %vm257_vm4, %v10293_v1, %v10295_v33  ;;  %v18814_v46 = vsel %vm257_vm4, %v10295_v33, %v18801_v13  ;;  %v20051_v12 = vld [vmem:[#allocation55_spill] sm:$0xff] }
 0x6e1   : > { %v18817_v2 = vadd.f32 %v9238_v31, %v20050_v7  ;;  %v9291_v25 = vpack.c.bf16 %v9238_v31, %v9237_v41  ;;  %v9211_v45 = vadd.f32 %v14220_v43, %v18547_v18  ;;  %v8994_v36 = vpop.f32.mrb[153].mxu0  ;;  %14339 = vmatmul.mubr.msk.bf16.gmra.mrb[168].mxu0 %vm172_vm1, %v18810_v53  ;;  %vm9082_vm14 = vcmp.lt.s32.totalorder %v20051_v12, 12  ;;  %v20052_v12 = vld [vmem:[#allocation51_spill] sm:$0xff] }
 0x6e2   : > { %v9334_v21 = vrot.slane %v9292_v57, 4  ;;  %v9209_v1 = vadd.f32 %v8994_v36, %v18550_v22  ;;  %v14221_v4 = vpop.f32.mrb[154].mxu0  ;;  %14342 = vmatprep.mubr.msk.bf16.mxu0 %vm172_vm1, %v18814_v46 }
 0x6e3   : > { %v9332_v33 = vrot.slane %v9291_v25, 4  ;;  %v9243_v60 = vmax.f32 %v9211_v45, 0.0  ;;  %v9180_v41 = vsel %vm9084_vm13, %v14221_v4, 0.0  ;;  %v8997_v31 = vpop.f32.mrb[155].mxu0  ;;  %v20056_v4 = vld [vmem:[#allocation60_spill] sm:$0xff] }
 0x6e4   : > { %v9241_v18 = vmax.f32 %v9209_v1, 0.0  ;;  %v9212_v43 = vadd.f32 %v9180_v41, %v18552_v3  ;;  %v9178_v7 = vsel %vm9082_vm14, %v8997_v31, 0.0  ;;  %vm9088_vm15 = vcmp.lt.s32.totalorder %v20056_v4, 12  ;;  %v20063_v4 = vld [vmem:[#allocation58_spill] sm:$0xff] }
 0x6e5   : > { %v9333_v49 = vsel %vm257_vm4, %v9330_v24, %v9332_v33  ;;  %v9335_v57 = vsel %vm257_vm4, %v9332_v33, %v9334_v21  ;;  %v18832_v22 = vadd.f32 %v9243_v60, %v20052_v12  ;;  %v9210_v36 = vadd.f32 %v9178_v7, %v18554_v47  ;;  %v18835_v17 = vld [vmem:[#allocation2 + $0x80] sm:$0xff]  ;;  %v18837_v25 = vld [vmem:[#allocation2 + $0x88] sm:$0xff] }
 0x6e6   : > { %9371 = vst.msk [vmem:[#allocation2 + $0x90] sm:$0xff] %vm172_vm1, %v9333_v49  ;;  %9372 = vst.msk [vmem:[#allocation2 + $0x98] sm:$0xff] %vm172_vm1, %v9335_v57  ;;  %v18842_v3 = vadd.f32 %v9241_v18, %v20054_v27  ;;  %v9244_v45 = vmax.f32 %v9212_v43, 0.0  ;;  %14244 = vmatprep.mubr.msk.bf16.mxu1 %vm172_vm1, %v18835_v17  ;;  %v10299_v24 = vrot.slane %v18835_v17, 4  ;;  %v18848_v1 = vrot.slane %v18837_v25, 4  ;;  %v20057_v49 = vld [vmem:[#allocation54_spill] sm:$0xff] }
 0x6e7   : > { %20053 = vst [vmem:[#allocation11_spill] sm:$0xff] %v18832_v22  ;;  %v9242_v47 = vmax.f32 %v9210_v36, 0.0  ;;  %14245 = vmatmul.mubr.msk.bf16.gmra.mrb[144].mxu1 %vm172_vm1, %v18837_v25  ;;  %v20058_v57 = vld [vmem:[#allocation56_spill] sm:$0xff]  ;;  %v20060_v22 = vld [vmem:[#allocation62_spill] sm:$0xff] }
 0x6e8   : > { %20055 = vst [vmem:[#allocation12_spill] sm:$0xff] %v18842_v3  ;;  %v18854_v33 = vadd.f32 %v9244_v45, %v20057_v49  ;;  %v9294_v41 = vpack.c.bf16 %v9244_v45, %v9243_v60  ;;  %v14224_v31 = vpop.f32.mrb[156].mxu0  ;;  %v10300_v43 = vsel %vm257_vm4, %v18801_v13, %v10299_v24  ;;  %v10302_v7 = vsel %vm257_vm4, %v10299_v24, %v18848_v1 }
 0x6e9   : > { %v18861_v12 = vadd.f32 %v9242_v47, %v20058_v57  ;;  %v9293_v36 = vpack.c.bf16 %v9242_v47, %v9241_v18  ;;  %v9215_v27 = vadd.f32 %v14224_v31, %v18561_v37  ;;  %v9010_v3 = vpop.f32.mrb[157].mxu0  ;;  %14343 = vmatmul.mubr.msk.bf16.gmra.mrb[172].mxu0 %vm172_vm1, %v10300_v43  ;;  %vm9086_vm5 = vcmp.lt.s32.totalorder %v20060_v22, 12 }
 0x6ea   : > { %v9338_v49 = vrot.slane %v9294_v41, 4  ;;  %v9213_v60 = vadd.f32 %v9010_v3, %v18564_v20  ;;  %v14225_v45 = vpop.f32.mrb[158].mxu0  ;;  %14346 = vmatprep.mubr.msk.bf16.mxu0 %vm172_vm1, %v10302_v7  ;;  %v20061_v41 = vld [vmem:[#allocation57_spill] sm:$0xff] }
 0x6eb   : > { %20059 = vst [vmem:[#allocation13_spill] sm:$0xff] %v18861_v12  ;;  %v9336_v58 = vrot.slane %v9293_v36, 4  ;;  %v9247_v6 = vmax.f32 %v9215_v27, 0.0  ;;  %v9184_v24 = vsel %vm9088_vm15, %v14225_v45, 0.0  ;;  %v9013_v57 = vpop.f32.mrb[159].mxu0  ;;  %v20065_v27 = vld [vmem:[#allocation59_spill] sm:$0xff] }
 0x6ec   : > { %v9245_v18 = vmax.f32 %v9213_v60, 0.0  ;;  %v9216_v37 = vadd.f32 %v9184_v24, %v18566_v5  ;;  %v9182_v47 = vsel %vm9086_vm5, %v9013_v57, 0.0 }
 0x6ed   : > { %v9337_v31 = vsel %vm257_vm4, %v9334_v21, %v9336_v58  ;;  %v9339_v22 = vsel %vm257_vm4, %v9336_v58, %v9338_v49  ;;  %v18874_v43 = vadd.f32 %v9247_v6, %v20061_v41  ;;  %v9214_v20 = vadd.f32 %v9182_v47, %v18568_v8  ;;  %v18877_v3 = vld [vmem:[#allocation2 + $0x90] sm:$0xff]  ;;  %v18879_v7 = vld [vmem:[#allocation2 + $0x98] sm:$0xff] }
 0x6ee   : > { %9373 = vst.msk [vmem:[#allocation2 + $0xa0] sm:$0xff] %vm172_vm1, %v9337_v31  ;;  %9374 = vst.msk [vmem:[#allocation2 + $0xa8] sm:$0xff] %vm172_vm1, %v9339_v22  ;;  %v18884_v5 = vadd.f32 %v9245_v18, %v20063_v4  ;;  %v9248_v36 = vmax.f32 %v9216_v37, 0.0  ;;  %14248 = vmatprep.mubr.msk.bf16.mxu1 %vm172_vm1, %v18877_v3  ;;  %v10303_v58 = vrot.slane %v18877_v3, 4  ;;  %v10305_v21 = vrot.slane %v18879_v7, 4  ;;  %v20067_v37 = vld [vmem:[#allocation61_spill] sm:$0xff] }
 0x6ef   : > { %20062 = vst [vmem:[#allocation14_spill] sm:$0xff] %v18874_v43  ;;  %v9246_v8 = vmax.f32 %v9214_v20, 0.0  ;;  %14249 = vmatmul.mubr.msk.bf16.gmra.mrb[148].mxu1 %vm172_vm1, %v18879_v7  ;;  %v9881_v43 = vsel %vm971_vm0, %v18650_v0, 0  ;;  %v18977_v0 = vld [vmem:[#allocation2 + $0x18] sm:$0xff] }
 0x6f0   : > { %20064 = vst [vmem:[#allocation9_spill] sm:$0xff] %v18884_v5  ;;  %v18893_v60 = vadd.f32 %v9248_v36, %v20065_v27  ;;  %v9296_v45 = vpack.c.bf16 %v9248_v36, %v9247_v6  ;;  %v18897_v24 = vsel %vm257_vm4, %v18848_v1, %v10303_v58  ;;  %v18900_v57 = vsel %vm257_vm4, %v10303_v58, %v10305_v21 }
 0x6f1   : > { %v18903_v47 = vadd.f32 %v9246_v8, %v20067_v37  ;;  %v9295_v31 = vpack.c.bf16 %v9246_v8, %v9245_v18  ;;  %14347 = vmatmul.mubr.msk.bf16.gmra.mrb[176].mxu0 %vm172_vm1, %v18897_v24  ;;  %v9386_v37 = vld [vmem:[#allocation2] sm:$0xff]  ;;  %v10544_v40 = vrot.slane %v18977_v0, 4 }
 0x6f2   : > { %20066 = vst [vmem:[#allocation15_spill] sm:$0xff] %v18893_v60  ;;  %v9342_v22 = vrot.slane %v9296_v45, 4  ;;  %14350 = vmatprep.mubr.msk.bf16.mxu0 %vm172_vm1, %v18900_v57 }
 0x6f3   : > { %20068 = vst [vmem:[#allocation16_spill] sm:$0xff] %v18903_v47  ;;  %v9340_v41 = vrot.slane %v9295_v31, 4 }
 0x6f4   : > { %9377 = vst.msk [vmem:[#allocation2 + $0xc0] sm:$0xf] %vm181_vm2, %v9342_v22 }
 0x6f5   : > { %v9341_v6 = vsel %vm257_vm4, %v9338_v49, %v9340_v41  ;;  %v9343_v20 = vsel %vm257_vm4, %v9340_v41, %v9342_v22  ;;  %v18912_v4 = vld [vmem:[#allocation2 + $0xa0] sm:$0xff]  ;;  %v18914_v36 = vld [vmem:[#allocation2 + $0xa8] sm:$0xff] }
 0x6f6   : > { %9375 = vst.msk [vmem:[#allocation2 + $0xb0] sm:$0xff] %vm172_vm1, %v9341_v6  ;;  %9376 = vst.msk [vmem:[#allocation2 + $0xb8] sm:$0xff] %vm172_vm1, %v9343_v20  ;;  %14252 = vmatprep.mubr.msk.bf16.mxu1 %vm172_vm1, %v18912_v4  ;;  %v10307_v18 = vrot.slane %v18912_v4, 4  ;;  %v10309_v58 = vrot.slane %v18914_v36, 4  ;;  %v10236_v6 = vld [vmem:[#allocation2] sm:$0xf0] }
 0x6f7   : > { %14253 = vmatmul.mubr.msk.bf16.gmra.mrb[152].mxu1 %vm172_vm1, %v18914_v36  ;;  %v18958_v20 = vld [vmem:[#allocation2 + $0x8] sm:$0xff]  ;;  %v10539_v5 = vrot.slane %v10236_v6, 4 }
 0x6f8   : > { %v18925_v49 = vsel %vm257_vm4, %v10305_v21, %v10307_v18  ;;  %v18928_v8 = vsel %vm257_vm4, %v10307_v18, %v10309_v58 }
 0x6f9   : > { %14351 = vmatmul.mubr.msk.bf16.gmra.mrb[180].mxu0 %vm172_vm1, %v18925_v49 }
 0x6fa   : > { %14354 = vmatprep.mubr.msk.bf16.mxu0 %vm172_vm1, %v18928_v8 }
 0x6fb   : > { %v10264_v18 = vld [vmem:[#allocation2 + $0xc0] sm:$0xf] }
 0x6fc   : > { %v10315_v19 = vrot.slane %v10264_v18, 4 }
 0x6fd   : > { %v18934_v27 = vld [vmem:[#allocation2 + $0xb0] sm:$0xff]  ;;  %v18936_v45 = vld [vmem:[#allocation2 + $0xb8] sm:$0xff] }
 0x6fe   : > { %14256 = vmatprep.mubr.msk.bf16.mxu1 %vm172_vm1, %v18934_v27  ;;  %v10311_v21 = vrot.slane %v18934_v27, 4  ;;  %v18942_v31 = vrot.slane %v18936_v45, 4 }
 0x6ff   : > { %14257 = vmatmul.mubr.msk.bf16.gmra.mrb[156].mxu1 %vm172_vm1, %v18936_v45 }
 0x700   : > { %v18947_v22 = vsel %vm257_vm4, %v10309_v58, %v10311_v21  ;;  %v18951_v41 = vsel %vm257_vm4, %v10311_v21, %v18942_v31  ;;  %14262 = vmatprep.mubr.msk.bf16.mxu1 %vm172_vm1, %v9386_v37  ;;  %v10540_v58 = vrot.slane %v18958_v20, 4  ;;  %v18963_v21 = vld [vmem:[#allocation2 + $0x10] sm:$0xff]  ;;  %v12642_v37 = vld [vmem:[%s19501_s1 + $0x40] sm:$0x3]  ;;  %v10316_v6 = vsel %vm257_vm4, %v18942_v31, %v10315_v19 }
 0x701   : > { %14355 = vmatmul.mubr.msk.bf16.gmra.mrb[184].mxu0 %vm172_vm1, %v18947_v22  ;;  %v10542_v18 = vrot.slane %v18963_v21, 4 }
 0x702   : > { %14358 = vmatprep.mubr.msk.bf16.mxu0 %vm172_vm1, %v18951_v41  ;;  %v10541_v10 = vsel %vm257_vm4, %v10539_v5, %v10540_v58  ;;  %v18982_v5 = vld [vmem:[#allocation2 + $0x20] sm:$0xff] }
 0x703   : > { %v10545_v19 = vsel %vm257_vm4, %v10542_v18, %v10544_v40  ;;  %v10546_v29 = vrot.slane %v18982_v5, 4 }
 0x707   : > { %14263 = vmatmul.mubr.msk.bf16.vlgmr.msra.gmra.mrb[160].mxu1 %vm172_vm1, %v18958_v20 }
 0x708   : > { %14295 = vmatpush3.bf16.msra.mxu1 %v9881_v43  ;;  %14266 = vmatprep.mubr.msk.bf16.mxu1 %vm172_vm1, %v18963_v21  ;;  %v10543_v43 = vsel %vm257_vm4, %v10540_v58, %v10542_v18  ;;  %v10547_v18 = vsel %vm257_vm4, %v10544_v40, %v10546_v29 }
 0x709   : > { %14359 = vmatmul.mubr.msk.bf16.gmra.mrb[188].mxu0 %vm172_vm1, %v10316_v6  ;;  %15269 = vmatprep.subr.msk.bf16.mxu1 %vm971_vm0, %v12642_v37  ;;  %v10871_v6 = vsel %vm971_vm0, %v18720_v15, 0 }
 0x70a   : > { %14364 = vmatprep.mubr.msk.bf16.mxu0 %vm172_vm1, %v10541_v10  ;;  %v18993_v10 = vld [vmem:[#allocation2 + $0x28] sm:$0xff] }
 0x70b   : > { %v10548_v58 = vrot.slane %v18993_v10, 4 }
 0x70d   : > { %v10549_v15 = vsel %vm257_vm4, %v10546_v29, %v10548_v58 }
 0x70f   : > { %14267 = vmatmul.mubr.msk.bf16.gmra.mrb[164].mxu1 %vm172_vm1, %v18977_v0 }
 0x710   : > { %14270 = vmatprep.mubr.msk.bf16.mxu1 %vm172_vm1, %v18982_v5 }
 0x711   : > { %14365 = vmatmul.mubr.msk.bf16.vlgmr.msra.gmra.mrb[160].mxu0 %vm172_vm1, %v10543_v43  ;;  %v19007_v43 = vld [vmem:[#allocation2 + $0x38] sm:$0xff] }
 0x712   : > { %14368 = vmatprep.mubr.msk.bf16.mxu0 %vm172_vm1, %v10545_v19  ;;  %14397 = vmatpush3.bf16.msra.mxu0 %v10871_v6  ;;  %v10550_v19 = vrot.slane %v18998_v14, 4  ;;  %v10552_v6 = vrot.slane %v19007_v43, 4 }
 0x714   : > { %v10551_v40 = vsel %vm257_vm4, %v10548_v58, %v10550_v19  ;;  %v10553_v29 = vsel %vm257_vm4, %v10550_v19, %v10552_v6 }
 0x717   : > { %14271 = vmatmul.mubr.msk.bf16.gmra.mrb[168].mxu1 %vm172_vm1, %v18993_v10 }
 0x718   : > { %14274 = vmatprep.mubr.msk.bf16.mxu1 %vm172_vm1, %v18998_v14 }
 0x719   : > { %14369 = vmatmul.mubr.msk.bf16.gmra.mrb[164].mxu0 %vm172_vm1, %v10547_v18  ;;  %v10554_v18 = vrot.slane %v18633_v54, 4 }
 0x71a   : > { %14372 = vmatprep.mubr.msk.bf16.mxu0 %vm172_vm1, %v10549_v15 }
 0x71b   : > { %v10555_v58 = vsel %vm257_vm4, %v10552_v6, %v10554_v18  ;;  %v10556_v15 = vsel %vm257_vm4, %v10554_v18, %v18660_v28  ;;  %v10252_v28 = vld [vmem:[#allocation2 + $0x80] sm:$0xf]  ;;  %v19126_v18 = vld [vmem:[#allocation2 + $0xe8] sm:$0xff] }
 0x71f   : > { %14275 = vmatmul.mubr.msk.bf16.gmra.mrb[172].mxu1 %vm172_vm1, %v19007_v43 }
 0x720   : > { %14278 = vmatprep.mubr.msk.bf16.mxu1 %vm172_vm1, %v18633_v54 }
 0x721   : > { %14373 = vmatmul.mubr.msk.bf16.gmra.mrb[168].mxu0 %vm172_vm1, %v10551_v40  ;;  %v19117_v40 = vld [vmem:[#allocation2 + $0xe0] sm:$0xff] }
 0x722   : > { %14376 = vmatprep.mubr.msk.bf16.mxu0 %vm172_vm1, %v10553_v29 }
 0x727   : > { %14279 = vmatmul.mubr.msk.bf16.gmra.mrb[176].mxu1 %vm172_vm1, %v18645_v62 }
 0x728   : > { %14282 = vmatprep.mubr.msk.bf16.mxu1 %vm172_vm1, %v18687_v9 }
 0x729   : > { %14377 = vmatmul.mubr.msk.bf16.gmra.mrb[172].mxu0 %vm172_vm1, %v10555_v58  ;;  %v10812_v58 = vrot.slane %v19117_v40, 4 }
 0x72a   : > { %14380 = vmatprep.mubr.msk.bf16.mxu0 %vm172_vm1, %v10556_v15  ;;  %v10814_v15 = vrot.slane %v19126_v18, 4 }
 0x72f   : > { %14283 = vmatmul.mubr.msk.bf16.gmra.mrb[180].mxu1 %vm172_vm1, %v18689_v35 }
 0x730   : > { %14286 = vmatprep.mubr.msk.bf16.mxu1 %vm172_vm1, %v18744_v16 }
 0x731   : > { %14381 = vmatmul.mubr.msk.bf16.gmra.mrb[176].mxu0 %vm172_vm1, %v18712_v50  ;;  %v10753_v50 = vld [vmem:[#allocation2 + $0x80] sm:$0xf0] }
 0x732   : > { %14384 = vmatprep.mubr.msk.bf16.mxu0 %vm172_vm1, %v18715_v59  ;;  %v10557_v59 = vrot.slane %v10252_v28, 4  ;;  %v10789_v19 = vrot.slane %v10753_v50, 4  ;;  %v19131_v28 = vld [vmem:[#allocation2 + $0xf0] sm:$0xff] }
 0x737   : > { %14287 = vmatmul.mubr.msk.bf16.gmra.mrb[184].mxu1 %vm172_vm1, %v18746_v44 }
 0x738   : > { %14290 = vmatprep.mubr.msk.bf16.mxu1 %vm172_vm1, %v18788_v11 }
 0x739   : > { %14385 = vmatmul.mubr.msk.bf16.gmra.mrb[180].mxu0 %vm172_vm1, %v18764_v63  ;;  %v11153_v63 = vsel %vm971_vm0, %v12642_v37, 0 }
 0x73a   : > { %14388 = vmatprep.mubr.msk.bf16.mxu0 %vm172_vm1, %v18767_v30  ;;  %v19058_v30 = vld [vmem:[%s19501_s1 + $0x3a] sm:$0x3] }
 0x73f   : > { %14291 = vmatmul.mubr.msk.bf16.gmra.mrb[188].mxu1 %vm172_vm1, %v18790_v34 }
 0x740   : > { %14296 = vmatprep.mubr.msk.bf16.mxu1 %vm172_vm1, %v18835_v17 }
 0x741   : > { %14389 = vmatmul.mubr.msk.bf16.gmra.mrb[184].mxu0 %vm172_vm1, %v18810_v53  ;;  %v10558_v53 = vsel %vm257_vm4, %v18801_v13, %v10557_v59  ;;  %v19090_v13 = vld [vmem:[#allocation2 + $0xc0] sm:$0xff]  ;;  %v10815_v59 = vsel %vm257_vm4, %v10812_v58, %v10814_v15 }
 0x742   : > { %14392 = vmatprep.mubr.msk.bf16.mxu0 %vm172_vm1, %v18814_v46  ;;  %v10791_v46 = vsel %vm257_vm4, %v10789_v19, %v18848_v1  ;;  %v19098_v1 = vld [vmem:[#allocation2 + $0xc8] sm:$0xff]  ;;  %v10816_v19 = vrot.slane %v19131_v28, 4 }
 0x747   : > { %14297 = vmatmul.mubr.msk.bf16.vlgmr.msra.gmra.mrb[192].mxu1 %vm172_vm1, %v18837_v25 }
 0x748   : > { %14431 = vmatpush3.bf16.msra.mxu1 %v11153_v63  ;;  %14300 = vmatprep.mubr.msk.bf16.mxu1 %vm172_vm1, %v18877_v3  ;;  %v19140_v63 = vld [vmem:[#allocation2 + $0xf8] sm:$0xff] }
 0x749   : > { %14393 = vmatmul.mubr.msk.bf16.gmra.mrb[188].mxu0 %vm172_vm1, %v10558_v53  ;;  %15270 = vmatprep.subr.msk.bf16.mxu1 %vm971_vm0, %v19058_v30  ;;  %v10818_v53 = vrot.slane %v19140_v63, 4 }
 0x74a   : > { %14398 = vmatprep.mubr.msk.bf16.mxu0 %vm172_vm1, %v10791_v46  ;;  %v10817_v46 = vsel %vm257_vm4, %v10814_v15, %v10816_v19 }
 0x74f   : > { %14301 = vmatmul.mubr.msk.bf16.gmra.mrb[196].mxu1 %vm172_vm1, %v18879_v7 }
 0x750   : > { %14304 = vmatprep.mubr.msk.bf16.mxu1 %vm172_vm1, %v18912_v4 }
 0x751   : > { %14399 = vmatmul.mubr.msk.bf16.vlgmr.msra.gmra.mrb[160].mxu0 %vm172_vm1, %v18897_v24  ;;  %v10804_v24 = vrot.slane %v19090_v13, 4 }
 0x752   : > { %14402 = vmatprep.mubr.msk.bf16.mxu0 %vm172_vm1, %v18900_v57  ;;  %v10806_v57 = vrot.slane %v19098_v1, 4 }
 0x757   : > { %14305 = vmatmul.mubr.msk.bf16.gmra.mrb[200].mxu1 %vm172_vm1, %v18914_v36 }
 0x758   : > { %14308 = vmatprep.mubr.msk.bf16.mxu1 %vm172_vm1, %v18934_v27 }
 0x759   : > { %14403 = vmatmul.mubr.msk.bf16.gmra.mrb[164].mxu0 %vm172_vm1, %v18925_v49  ;;  %v19102_v49 = vld [vmem:[#allocation2 + $0xd0] sm:$0xff] }
 0x75a   : > { %14406 = vmatprep.mubr.msk.bf16.mxu0 %vm172_vm1, %v18928_v8  ;;  %v10805_v8 = vsel %vm257_vm4, %v18942_v31, %v10804_v24  ;;  %v10808_v37 = vrot.slane %v19102_v49, 4 }
 0x75c   : > { %v10809_v29 = vsel %vm257_vm4, %v10806_v57, %v10808_v37 }
 0x75f   : > { %14309 = vmatmul.mubr.msk.bf16.gmra.mrb[204].mxu1 %vm172_vm1, %v18936_v45 }
 0x760   : > { %14312 = vmatprep.mubr.msk.bf16.mxu1 %vm172_vm1, %v19090_v13 }
 0x761   : > { %14407 = vmatmul.mubr.msk.bf16.gmra.mrb[168].mxu0 %vm172_vm1, %v18947_v22  ;;  %v10807_v22 = vsel %vm257_vm4, %v10804_v24, %v10806_v57  ;;  %v10819_v24 = vsel %vm257_vm4, %v10816_v19, %v10818_v53  ;;  %v10769_v57 = vld [vmem:[#allocation2 + $0x100] sm:$0xf] }
 0x762   : > { %14410 = vmatprep.mubr.msk.bf16.mxu0 %vm172_vm1, %v18951_v41  ;;  %v19113_v41 = vld [vmem:[#allocation2 + $0xd8] sm:$0xff] }
 0x763   : > { %v10810_v6 = vrot.slane %v19113_v41, 4 }
 0x765   : > { %v10811_v31 = vsel %vm257_vm4, %v10808_v37, %v10810_v6  ;;  %v10813_v50 = vsel %vm257_vm4, %v10810_v6, %v10812_v58  ;;  %v12675_v6 = vld [vmem:[%s19501_s1 + $0x46] sm:$0x3] }
 0x766   : > { %v11559_v47 = vsel %vm971_vm0, %v12675_v6, 0 }
 0x767   : > { %14313 = vmatmul.mubr.msk.bf16.gmra.mrb[208].mxu1 %vm172_vm1, %v19098_v1 }
 0x768   : > { %14316 = vmatprep.mubr.msk.bf16.mxu1 %vm172_vm1, %v19102_v49 }
 0x769   : > { %14411 = vmatmul.mubr.msk.bf16.gmra.mrb[172].mxu0 %vm172_vm1, %v10805_v8  ;;  %v10820_v8 = vrot.slane %v10769_v57, 4 }
 0x76a   : > { %14414 = vmatprep.mubr.msk.bf16.mxu0 %vm172_vm1, %v10807_v22  ;;  %v11344_v22 = vsel %vm971_vm0, %v19058_v30, 0 }
 0x76b   : > { %v10821_v37 = vsel %vm257_vm4, %v10818_v53, %v10820_v8 }
 0x76f   : > { %14317 = vmatmul.mubr.msk.bf16.gmra.mrb[212].mxu1 %vm172_vm1, %v19113_v41 }
 0x770   : > { %14320 = vmatprep.mubr.msk.bf16.mxu1 %vm172_vm1, %v19117_v40 }
 0x771   : > { %14415 = vmatmul.mubr.msk.bf16.gmra.mrb[176].mxu0 %vm172_vm1, %v10809_v29 }
 0x772   : > { %14418 = vmatprep.mubr.msk.bf16.mxu0 %vm172_vm1, %v10811_v31 }
 0x777   : > { %14321 = vmatmul.mubr.msk.bf16.gmra.mrb[216].mxu1 %vm172_vm1, %v19126_v18 }
 0x778   : > { %14324 = vmatprep.mubr.msk.bf16.mxu1 %vm172_vm1, %v19131_v28 }
 0x779   : > { %14419 = vmatmul.mubr.msk.bf16.gmra.mrb[180].mxu0 %vm172_vm1, %v10813_v50 }
 0x77a   : > { %14422 = vmatprep.mubr.msk.bf16.mxu0 %vm172_vm1, %v10815_v59 }
 0x77f   : > { %14325 = vmatmul.mubr.msk.bf16.gmra.mrb[220].mxu1 %vm172_vm1, %v19140_v63 }
 0x780   : > { %14432 = vmatprep.mubr.msk.bf16.mxu1 %vm172_vm1, %v18645_v62 }
 0x781   : > { %14423 = vmatmul.mubr.msk.bf16.gmra.mrb[184].mxu0 %vm172_vm1, %v10817_v46 }
 0x782   : > { %14426 = vmatprep.mubr.msk.bf16.mxu0 %vm172_vm1, %v10819_v24 }
 0x787   : > { %14433 = vmatmul.mubr.msk.bf16.vlgmr.msra.gmra.mrb[224].mxu1 %vm172_vm1, %v18687_v9 }
 0x788   : > { %14465 = vmatpush3.bf16.msra.mxu1 %v11344_v22  ;;  %14436 = vmatprep.mubr.msk.bf16.mxu1 %vm172_vm1, %v18689_v35 }
 0x789   : > { %14427 = vmatmul.mubr.msk.bf16.gmra.mrb[188].mxu0 %vm172_vm1, %v10821_v37  ;;  %15271 = vmatprep.subr.msk.bf16.mxu1 %vm971_vm0, %v12675_v6 }
 0x78f   : > { %14437 = vmatmul.mubr.msk.bf16.gmra.mrb[228].mxu1 %vm172_vm1, %v18744_v16 }
 0x790   : > { %14440 = vmatprep.mubr.msk.bf16.mxu1 %vm172_vm1, %v18746_v44 }
 0x797   : > { %14441 = vmatmul.mubr.msk.bf16.gmra.mrb[232].mxu1 %vm172_vm1, %v18788_v11 }
 0x798   : > { %14444 = vmatprep.mubr.msk.bf16.mxu1 %vm172_vm1, %v18790_v34 }
 0x799   : > { %v14230_v30 = vpop.f32.mrb[128].mxu1 }
 0x79a   : > { %v9499_v29 = vpop.f32.mrb[129].mxu1 }
 0x79b   : > { %v14231_v31 = vpop.f32.mrb[130].mxu1 }
 0x79c   : > { %v9502_v58 = vpop.f32.mrb[131].mxu1 }
 0x79f   : > { %14445 = vmatmul.mubr.msk.bf16.gmra.mrb[236].mxu1 %vm172_vm1, %v18835_v17 }
 0x7a0   : > { %14448 = vmatprep.mubr.msk.bf16.mxu1 %vm172_vm1, %v18837_v25 }
 0x7a2   : > { %v14234_v15 = vpop.f32.mrb[132].mxu1 }
 0x7a3   : > { %v9515_v50 = vpop.f32.mrb[133].mxu1 }
 0x7a4   : > { %v14235_v59 = vpop.f32.mrb[134].mxu1 }
 0x7a5   : > { %v9518_v19 = vpop.f32.mrb[135].mxu1 }
 0x7a7   : > { %14449 = vmatmul.mubr.msk.bf16.gmra.mrb[240].mxu1 %vm172_vm1, %v18877_v3 }
 0x7a8   : > { %14452 = vmatprep.mubr.msk.bf16.mxu1 %vm172_vm1, %v18879_v7 }
 0x7aa   : > { %v14238_v53 = vpop.f32.mrb[136].mxu1 }
 0x7ab   : > { %v9531_v46 = vpop.f32.mrb[137].mxu1 }
 0x7ac   : > { %v14239_v24 = vpop.f32.mrb[138].mxu1 }
 0x7ad   : > { %v9534_v57 = vpop.f32.mrb[139].mxu1 }
 0x7af   : > { %14453 = vmatmul.mubr.msk.bf16.gmra.mrb[244].mxu1 %vm172_vm1, %v18912_v4 }
 0x7b0   : > { %14456 = vmatprep.mubr.msk.bf16.mxu1 %vm172_vm1, %v18914_v36 }
 0x7b2   : > { %v14242_v8 = vpop.f32.mrb[140].mxu1 }
 0x7b3   : > { %v9547_v22 = vpop.f32.mrb[141].mxu1 }
 0x7b4   : > { %v14243_v37 = vpop.f32.mrb[142].mxu1 }
 0x7b5   : > { %v9550_v30 = vpop.f32.mrb[143].mxu1 }
 0x7b7   : > { %14457 = vmatmul.mubr.msk.bf16.gmra.mrb[248].mxu1 %vm172_vm1, %v18934_v27 }
 0x7b8   : > { %14460 = vmatprep.mubr.msk.bf16.mxu1 %vm172_vm1, %v18936_v45 }
 0x7ba   : > { %v14246_v29 = vpop.f32.mrb[144].mxu1 }
 0x7bb   : > { %v9563_v15 = vpop.f32.mrb[145].mxu1 }
 0x7bc   : > { %v14247_v50 = vpop.f32.mrb[146].mxu1 }
 0x7bd   : > { %v9566_v53 = vpop.f32.mrb[147].mxu1 }
 0x7bf   : > { %14461 = vmatmul.mubr.msk.bf16.gmra.mrb[252].mxu1 %vm172_vm1, %v19090_v13 }
 0x7c0   : > { %14466 = vmatprep.mubr.msk.bf16.mxu1 %vm172_vm1, %v18958_v20 }
 0x7c2   : > { %v14250_v46 = vpop.f32.mrb[148].mxu1 }
 0x7c3   : > { %v9579_v8 = vpop.f32.mrb[149].mxu1 }
 0x7c4   : > { %v14251_v22 = vpop.f32.mrb[150].mxu1 }
 0x7c5   : > { %v9582_v32 = vpop.f32.mrb[151].mxu1 }
 0x7c7   : > { %14467 = vmatmul.mubr.msk.bf16.vlgmr.msra.gmra.mrb[224].mxu1 %vm172_vm1, %v18963_v21 }
 0x7c8   : > { %14499 = vmatpush3.bf16.msra.mxu1 %v11559_v47  ;;  %14470 = vmatprep.mubr.msk.bf16.mxu1 %vm172_vm1, %v18977_v0 }
 0x7ca   : > { %v14254_v29 = vpop.f32.mrb[152].mxu1 }
 0x7cb   : > { %v9595_v15 = vpop.f32.mrb[153].mxu1 }
 0x7cc   : > { %v14255_v60 = vpop.f32.mrb[154].mxu1 }
 0x7cd   : > { %v9598_v12 = vpop.f32.mrb[155].mxu1 }
 0x7cf   : > { %14471 = vmatmul.mubr.msk.bf16.gmra.mrb[228].mxu1 %vm172_vm1, %v18982_v5 }
 0x7d0   : > { %14474 = vmatprep.mubr.msk.bf16.mxu1 %vm172_vm1, %v18993_v10 }
 0x7d2   : > { %v14258_v20 = vpop.f32.mrb[156].mxu1 }
 0x7d3   : > { %v9611_v46 = vpop.f32.mrb[157].mxu1 }
 0x7d4   : > { %v19202_v6 = vpop.f32.mrb[158].mxu1 }
 0x7d5   : > { %v19204_v8 = vpop.f32.mrb[159].mxu1 }
 0x7d7   : > { %14475 = vmatmul.mubr.msk.bf16.gmra.mrb[232].mxu1 %vm172_vm1, %v18998_v14 }
 0x7d8   : > { %14478 = vmatprep.mubr.msk.bf16.mxu1 %vm172_vm1, %v19007_v43 }
 0x7da   : > { %v14264_v47 = vpop.f32.mrb[160].mxu1 }
 0x7db   : > { %v9687_v21 = vpop.f32.mrb[161].mxu1 }
 0x7dc   : > { %v14265_v0 = vpop.f32.mrb[162].mxu1 }
 0x7dd   : > { %v19210_v29 = vadd.f32 %v14265_v0, %v14231_v31  ;;  %v9690_v5 = vpop.f32.mrb[163].mxu1 }
 0x7de   : > { %v19212_v15 = vadd.f32 %v9690_v5, %v9502_v58 }
 0x7df   : > { %14479 = vmatmul.mubr.msk.bf16.gmra.mrb[236].mxu1 %vm172_vm1, %v18633_v54 }
 0x7e0   : > { %14482 = vmatprep.mubr.msk.bf16.mxu1 %vm172_vm1, %v18645_v62 }
 0x7e2   : > { %v14268_v10 = vpop.f32.mrb[164].mxu1 }
 0x7e3   : > { %v9703_v20 = vpop.f32.mrb[165].mxu1 }
 0x7e4   : > { %v14269_v14 = vpop.f32.mrb[166].mxu1 }
 0x7e5   : > { %v19218_v46 = vadd.f32 %v14269_v14, %v14235_v59  ;;  %v9706_v43 = vpop.f32.mrb[167].mxu1 }
 0x7e6   : > { %v19220_v47 = vadd.f32 %v9706_v43, %v9518_v19 }
 0x7e7   : > { %14483 = vmatmul.mubr.msk.bf16.gmra.mrb[240].mxu1 %vm172_vm1, %v18687_v9 }
 0x7e8   : > { %14486 = vmatprep.mubr.msk.bf16.mxu1 %vm172_vm1, %v18689_v35 }
 0x7ea   : > { %v14272_v31 = vpop.f32.mrb[168].mxu1 }
 0x7eb   : > { %v9719_v58 = vpop.f32.mrb[169].mxu1 }
 0x7ec   : > { %v14273_v54 = vpop.f32.mrb[170].mxu1 }
 0x7ed   : > { %v19226_v21 = vadd.f32 %v14273_v54, %v14239_v24  ;;  %v9722_v62 = vpop.f32.mrb[171].mxu1 }
 0x7ee   : > { %v19228_v0 = vadd.f32 %v9722_v62, %v9534_v57 }
 0x7ef   : > { %14487 = vmatmul.mubr.msk.bf16.gmra.mrb[244].mxu1 %vm172_vm1, %v18744_v16 }
 0x7f0   : > { %14490 = vmatprep.mubr.msk.bf16.mxu1 %vm172_vm1, %v18746_v44 }
 0x7f2   : > { %v14276_v59 = vpop.f32.mrb[172].mxu1 }
 0x7f3   : > { %v9735_v19 = vpop.f32.mrb[173].mxu1 }
 0x7f4   : > { %v14277_v9 = vpop.f32.mrb[174].mxu1 }
 0x7f5   : > { %v19234_v5 = vadd.f32 %v14277_v9, %v14243_v37  ;;  %v9738_v35 = vpop.f32.mrb[175].mxu1 }
 0x7f6   : > { %v19236_v10 = vadd.f32 %v9738_v35, %v9550_v30 }
 0x7f7   : > { %14491 = vmatmul.mubr.msk.bf16.gmra.mrb[248].mxu1 %vm172_vm1, %v18788_v11 }
 0x7f8   : > { %14494 = vmatprep.mubr.msk.bf16.mxu1 %vm172_vm1, %v18790_v34 }
 0x7fa   : > { %v14280_v24 = vpop.f32.mrb[176].mxu1 }
 0x7fb   : > { %v9751_v57 = vpop.f32.mrb[177].mxu1 }
 0x7fc   : > { %v14281_v16 = vpop.f32.mrb[178].mxu1 }
 0x7fd   : > { %v19242_v20 = vadd.f32 %v14281_v16, %v14247_v50  ;;  %v9754_v44 = vpop.f32.mrb[179].mxu1 }
 0x7fe   : > { %v19244_v14 = vadd.f32 %v9754_v44, %v9566_v53 }
 0x7ff   : > { %14495 = vmatmul.mubr.msk.bf16.gmra.mrb[252].mxu1 %vm172_vm1, %v18835_v17 }
 0x800   : > { %14500 = vmatprep.mubr.msk.bf16.mxu1 %vm172_vm1, %v18837_v25 }
 0x802   : > { %v14284_v37 = vpop.f32.mrb[180].mxu1 }
 0x803   : > { %v9767_v30 = vpop.f32.mrb[181].mxu1 }
 0x804   : > { %v14285_v11 = vpop.f32.mrb[182].mxu1 }
 0x805   : > { %v19250_v43 = vadd.f32 %v14285_v11, %v14251_v22  ;;  %v9770_v34 = vpop.f32.mrb[183].mxu1 }
 0x806   : > { %v19252_v31 = vadd.f32 %v9770_v34, %v9582_v32 }
 0x807   : > { %14501 = vmatmul.mubr.msk.bf16.vlgmr.msra.gmra.mrb[224].mxu1 %vm172_vm1, %v18877_v3 }
 0x808   : > { %14504 = vmatprep.mubr.msk.bf16.mxu1 %vm172_vm1, %v18879_v7 }
 0x80a   : > { %v14288_v50 = vpop.f32.mrb[184].mxu1 }
 0x80b   : > { %v9783_v53 = vpop.f32.mrb[185].mxu1 }
 0x80c   : > { %v14289_v17 = vpop.f32.mrb[186].mxu1 }
 0x80d   : > { %v19258_v58 = vadd.f32 %v14289_v17, %v14255_v60  ;;  %v9786_v25 = vpop.f32.mrb[187].mxu1 }
 0x80e   : > { %v19260_v54 = vadd.f32 %v9786_v25, %v9598_v12 }
 0x80f   : > { %14505 = vmatmul.mubr.msk.bf16.gmra.mrb[228].mxu1 %vm172_vm1, %v18912_v4 }
 0x810   : > { %14508 = vmatprep.mubr.msk.bf16.mxu1 %vm172_vm1, %v18914_v36 }
 0x812   : > { %v14292_v32 = vpop.f32.mrb[188].mxu1 }
 0x813   : > { %v9799_v22 = vpop.f32.mrb[189].mxu1 }
 0x814   : > { %v14293_v3 = vpop.f32.mrb[190].mxu1 }
 0x815   : > { %v19267_v62 = vadd.f32 %v14293_v3, %v19202_v6  ;;  %v9802_v7 = vpop.f32.mrb[191].mxu1 }
 0x816   : > { %v19270_v59 = vadd.f32 %v9802_v7, %v19204_v8 }
 0x817   : > { %14509 = vmatmul.mubr.msk.bf16.gmra.mrb[232].mxu1 %vm172_vm1, %v18934_v27  ;;  %v19285_v27 = vld [vmem:[%s19502_s2 + $0x3] ss:$0 sm:$0xff] }
 0x818   : > { %14512 = vmatprep.mubr.msk.bf16.mxu1 %vm172_vm1, %v18936_v45 }
 0x81a   : > { %v14298_v12 = vpop.f32.mrb[192].mxu1 }
 0x81b   : > { %v9917_v60 = vpop.f32.mrb[193].mxu1 }
 0x81c   : > { %v14299_v4 = vpop.f32.mrb[194].mxu1 }
 0x81d   : > { %v10047_v36 = vadd.f32 %v14299_v4, %v19210_v29  ;;  %v9920_v19 = vpop.f32.mrb[195].mxu1 }
 0x81e   : > { %v10045_v9 = vadd.f32 %v9920_v19, %v19212_v15 }
 0x81f   : > { %14513 = vmatmul.mubr.msk.bf16.gmra.mrb[236].mxu1 %vm172_vm1, %v19090_v13  ;;  %v10207_v57 = vadd.f32 %v19285_v27, %v10047_v36 }
 0x820   : > { %14516 = vmatprep.mubr.msk.bf16.mxu1 %vm172_vm1, %v19098_v1  ;;  %v10205_v37 = vadd.f32 %v19285_v27, %v10045_v9 }
 0x822   : > { %v14302_v6 = vpop.f32.mrb[196].mxu1 }
 0x823   : > { %v9933_v45 = vpop.f32.mrb[197].mxu1 }
 0x824   : > { %v14303_v8 = vpop.f32.mrb[198].mxu1  ;;  %v14400_v35 = vpop.f32.mrb[160].mxu0 }
 0x825   : > { %v10051_v29 = vadd.f32 %v14303_v8, %v19218_v46  ;;  %v19289_v15 = vadd.f32 %v14400_v35, %v19285_v27  ;;  %v9936_v24 = vpop.f32.mrb[199].mxu1  ;;  %v10907_v13 = vpop.f32.mrb[161].mxu0 }
 0x826   : > { %v10049_v1 = vadd.f32 %v9936_v24, %v19220_v47  ;;  %v19294_v16 = vadd.f32 %v19285_v27, %v10907_v13  ;;  %v14401_v44 = vpop.f32.mrb[162].mxu0 }
 0x827   : > { %v11069_v30 = vadd.f32 %v14401_v44, %v10207_v57  ;;  %v10910_v11 = vpop.f32.mrb[163].mxu0  ;;  %14517 = vmatmul.mubr.msk.bf16.gmra.mrb[240].mxu1 %vm172_vm1, %v19102_v49  ;;  %v10211_v12 = vadd.f32 %v19285_v27, %v10051_v29 }
 0x828   : > { %v11067_v46 = vadd.f32 %v10910_v11, %v10205_v37  ;;  %14520 = vmatprep.mubr.msk.bf16.mxu1 %vm172_vm1, %v19113_v41  ;;  %v10209_v4 = vadd.f32 %v19285_v27, %v10049_v1 }
 0x829   : > { %v11917_v34 = vmax.f32 %v11069_v30, 0.0 }
 0x82a   : > { %v11915_v47 = vmax.f32 %v11067_v46, 0.0  ;;  %v14306_v50 = vpop.f32.mrb[200].mxu1 }
 0x82b   : > { %v11949_v53 = vadd.f32 %v11917_v34, %v18602_v42  ;;  %v9949_v17 = vpop.f32.mrb[201].mxu1 }
 0x82c   : > { %v11947_v49 = vadd.f32 %v11915_v47, %v18606_v61  ;;  %v14307_v25 = vpop.f32.mrb[202].mxu1  ;;  %v14404_v32 = vpop.f32.mrb[164].mxu0 }
 0x82d   : > { %11981 = vst.msk [vmem:[%s19306_s29 + $0x18] sm:$0xff] %vm172_vm1, %v11949_v53  ;;  %v10055_v41 = vadd.f32 %v14307_v25, %v19226_v21  ;;  %v19314_v22 = vadd.f32 %v14404_v32, %v19285_v27  ;;  %v9952_v3 = vpop.f32.mrb[203].mxu1  ;;  %v10923_v7 = vpop.f32.mrb[165].mxu0  ;;  %v11507_v25 = vld [vmem:[#allocation2 + $0x100] sm:$0xff] }
 0x82e   : > { %11979 = vst.msk [vmem:[%s19306_s29 + $0x8] sm:$0xff] %vm172_vm1, %v11947_v49  ;;  %v10053_v42 = vadd.f32 %v9952_v3, %v19228_v0  ;;  %v19321_v60 = vadd.f32 %v19285_v27, %v10923_v7  ;;  %v14405_v61 = vpop.f32.mrb[166].mxu0 }
 0x82f   : > { %v11073_v36 = vadd.f32 %v14405_v61, %v10211_v12  ;;  %v10926_v21 = vpop.f32.mrb[167].mxu0  ;;  %14521 = vmatmul.mubr.msk.bf16.gmra.mrb[244].mxu1 %vm172_vm1, %v19117_v40 }
 0x830   : > { %v11071_v19 = vadd.f32 %v10926_v21, %v10209_v4  ;;  %14524 = vmatprep.mubr.msk.bf16.mxu1 %vm172_vm1, %v19126_v18  ;;  %v10215_v18 = vadd.f32 %v19285_v27, %v10055_v41  ;;  %v10213_v37 = vadd.f32 %v19285_v27, %v10053_v42 }
 0x831   : > { %v11921_v9 = vmax.f32 %v11073_v36, 0.0 }
 0x832   : > { %v11919_v6 = vmax.f32 %v11071_v19, 0.0  ;;  %v14310_v0 = vpop.f32.mrb[204].mxu1 }
 0x833   : > { %v11953_v45 = vadd.f32 %v11921_v9, %v18623_v39  ;;  %v9965_v8 = vpop.f32.mrb[205].mxu1 }
 0x834   : > { %v11951_v35 = vadd.f32 %v11919_v6, %v18627_v55  ;;  %v14311_v29 = vpop.f32.mrb[206].mxu1  ;;  %v14408_v24 = vpop.f32.mrb[168].mxu0 }
 0x835   : > { %11985 = vst.msk [vmem:[%s19306_s29 + $0x38] sm:$0xff] %vm172_vm1, %v11953_v45  ;;  %v10059_v13 = vadd.f32 %v14311_v29, %v19234_v5  ;;  %v19334_v40 = vadd.f32 %v14408_v24, %v19285_v27  ;;  %v9968_v57 = vpop.f32.mrb[207].mxu1  ;;  %v10939_v1 = vpop.f32.mrb[169].mxu0 }
 0x836   : > { %11983 = vst.msk [vmem:[%s19306_s29 + $0x28] sm:$0xff] %vm172_vm1, %v11951_v35  ;;  %v10057_v39 = vadd.f32 %v9968_v57, %v19236_v10  ;;  %v19341_v44 = vadd.f32 %v19285_v27, %v10939_v1  ;;  %v14409_v55 = vpop.f32.mrb[170].mxu0 }
 0x837   : > { %v11077_v30 = vadd.f32 %v14409_v55, %v10215_v18  ;;  %v10942_v5 = vpop.f32.mrb[171].mxu0  ;;  %14525 = vmatmul.mubr.msk.bf16.gmra.mrb[248].mxu1 %vm172_vm1, %v19131_v28  ;;  %v10219_v3 = vadd.f32 %v19285_v27, %v10059_v13 }
 0x838   : > { %v11075_v11 = vadd.f32 %v10942_v5, %v10213_v37  ;;  %14528 = vmatprep.mubr.msk.bf16.mxu1 %vm172_vm1, %v19140_v63  ;;  %v10217_v12 = vadd.f32 %v19285_v27, %v10057_v39 }
 0x839   : > { %v11925_v46 = vmax.f32 %v11077_v30, 0.0 }
 0x83a   : > { %v11923_v34 = vmax.f32 %v11075_v11, 0.0  ;;  %v14314_v10 = vpop.f32.mrb[208].mxu1 }
 0x83b   : > { %v11957_v47 = vadd.f32 %v11925_v46, %v18663_v23  ;;  %v9981_v50 = vpop.f32.mrb[209].mxu1 }
 0x83c   : > { %v11955_v53 = vadd.f32 %v11923_v34, %v18673_v51  ;;  %v14315_v17 = vpop.f32.mrb[210].mxu1  ;;  %v14412_v49 = vpop.f32.mrb[172].mxu0 }
 0x83d   : > { %11989 = vst.msk [vmem:[%s19306_s29 + $0x58] sm:$0xff] %vm172_vm1, %v11957_v47  ;;  %v10063_v28 = vadd.f32 %v14315_v17, %v19242_v20  ;;  %v19354_v32 = vadd.f32 %v14412_v49, %v19285_v27  ;;  %v9984_v63 = vpop.f32.mrb[211].mxu1  ;;  %v10955_v41 = vpop.f32.mrb[173].mxu0 }
 0x83e   : > { %11987 = vst.msk [vmem:[%s19306_s29 + $0x48] sm:$0xff] %vm172_vm1, %v11955_v53  ;;  %v10061_v23 = vadd.f32 %v9984_v63, %v19244_v14  ;;  %v19361_v51 = vadd.f32 %v19285_v27, %v10955_v41  ;;  %v14413_v7 = vpop.f32.mrb[174].mxu0 }
 0x83f   : > { %v11081_v42 = vadd.f32 %v14413_v7, %v10219_v3  ;;  %v10958_v20 = vpop.f32.mrb[175].mxu0  ;;  %14529 = vmatmul.mubr.msk.bf16.gmra.mrb[252].mxu1 %vm172_vm1, %v11507_v25  ;;  %v10223_v24 = vadd.f32 %v19285_v27, %v10063_v28 }
 0x840   : > { %v11079_v61 = vadd.f32 %v10958_v20, %v10217_v12  ;;  %v10221_v57 = vadd.f32 %v19285_v27, %v10061_v23 }
 0x841   : > { %v11929_v4 = vmax.f32 %v11081_v42, 0.0 }
 0x842   : > { %v11927_v36 = vmax.f32 %v11079_v61, 0.0  ;;  %v14318_v21 = vpop.f32.mrb[212].mxu1 }
 0x843   : > { %v11961_v19 = vadd.f32 %v11929_v4, %v18706_v38  ;;  %v9997_v9 = vpop.f32.mrb[213].mxu1 }
 0x844   : > { %v11959_v14 = vadd.f32 %v11927_v36, %v18723_v56  ;;  %v14319_v6 = vpop.f32.mrb[214].mxu1  ;;  %v14416_v0 = vpop.f32.mrb[176].mxu0 }
 0x845   : > { %11993 = vst.msk [vmem:[%s19306_s29 + $0x78] sm:$0xff] %vm172_vm1, %v11961_v19  ;;  %v10067_v45 = vadd.f32 %v14319_v6, %v19250_v43  ;;  %v19371_v8 = vadd.f32 %v14416_v0, %v19285_v27  ;;  %v10000_v35 = vpop.f32.mrb[215].mxu1  ;;  %v10971_v29 = vpop.f32.mrb[177].mxu0 }
 0x846   : > { %11991 = vst.msk [vmem:[%s19306_s29 + $0x68] sm:$0xff] %vm172_vm1, %v11959_v14  ;;  %v10065_v38 = vadd.f32 %v10000_v35, %v19252_v31  ;;  %v19378_v56 = vadd.f32 %v19285_v27, %v10971_v29  ;;  %v14417_v13 = vpop.f32.mrb[178].mxu0  ;;  %v20069_v29 = vld [vmem:[#allocation13_spill] sm:$0xff] }
 0x847   : > { %v11085_v1 = vadd.f32 %v14417_v13, %v10223_v24  ;;  %v10974_v43 = vpop.f32.mrb[179].mxu0  ;;  %v10227_v53 = vadd.f32 %v19285_v27, %v10067_v45 }
 0x848   : > { %v11083_v18 = vadd.f32 %v10974_v43, %v10221_v57  ;;  %v10225_v49 = vadd.f32 %v19285_v27, %v10065_v38 }
 0x849   : > { %v11933_v39 = vmax.f32 %v11085_v1, 0.0 }
 0x84a   : > { %v11931_v55 = vmax.f32 %v11083_v18, 0.0  ;;  %v14322_v37 = vpop.f32.mrb[216].mxu1 }
 0x84b   : > { %v11965_v30 = vadd.f32 %v11933_v39, %v18761_v26  ;;  %v10013_v5 = vpop.f32.mrb[217].mxu1 }
 0x84c   : > { %v11963_v11 = vadd.f32 %v11931_v55, %v18770_v48  ;;  %v14323_v46 = vpop.f32.mrb[218].mxu1  ;;  %v14420_v31 = vpop.f32.mrb[180].mxu0  ;;  %v20070_v5 = vld [vmem:[#allocation15_spill] sm:$0xff] }
 0x84d   : > { %11997 = vst.msk [vmem:[%s19306_s29 + $0x98] sm:$0xff] %vm172_vm1, %v11965_v30  ;;  %v10071_v34 = vadd.f32 %v14323_v46, %v19258_v58  ;;  %v19387_v10 = vadd.f32 %v14420_v31, %v19285_v27  ;;  %v10016_v47 = vpop.f32.mrb[219].mxu1  ;;  %v10987_v50 = vpop.f32.mrb[181].mxu0  ;;  %v20071_v46 = vld [vmem:[#allocation16_spill] sm:$0xff] }
 0x84e   : > { %11995 = vst.msk [vmem:[%s19306_s29 + $0x88] sm:$0xff] %vm172_vm1, %v11963_v11  ;;  %v10069_v26 = vadd.f32 %v10016_v47, %v19260_v54  ;;  %v19394_v48 = vadd.f32 %v19285_v27, %v10987_v50  ;;  %v14421_v17 = vpop.f32.mrb[182].mxu0 }
 0x84f   : > { %v11089_v25 = vadd.f32 %v14421_v17, %v10227_v53  ;;  %v10990_v58 = vpop.f32.mrb[183].mxu0  ;;  %v10231_v21 = vadd.f32 %v19285_v27, %v10071_v34 }
 0x850   : > { %v11087_v28 = vadd.f32 %v10990_v58, %v10225_v49  ;;  %v10229_v9 = vadd.f32 %v19285_v27, %v10069_v26 }
 0x851   : > { %v11937_v63 = vmax.f32 %v11089_v25, 0.0  ;;  %v20072_v25 = vld [vmem:[#allocation63_spill] sm:$0xff] }
 0x852   : > { %v11935_v41 = vmax.f32 %v11087_v28, 0.0  ;;  %v14326_v3 = vpop.f32.mrb[220].mxu1  ;;  %v20073_v28 = vld [vmem:[#allocation64_spill] sm:$0xff] }
 0x853   : > { %v11969_v23 = vadd.f32 %v11937_v63, %v18807_v52  ;;  %v10029_v7 = vpop.f32.mrb[221].mxu1 }
 0x854   : > { %v11967_v12 = vadd.f32 %v11935_v41, %v18817_v2  ;;  %v14327_v42 = vpop.f32.mrb[222].mxu1  ;;  %v14424_v54 = vpop.f32.mrb[184].mxu0 }
 0x855   : > { %12001 = vst.msk [vmem:[%s19306_s29 + $0xb8] sm:$0xff] %vm172_vm1, %v11969_v23  ;;  %v10075_v20 = vadd.f32 %v14327_v42, %v19267_v62  ;;  %v19403_v61 = vadd.f32 %v14424_v54, %v19285_v27  ;;  %v10032_v4 = vpop.f32.mrb[223].mxu1  ;;  %v11003_v36 = vpop.f32.mrb[185].mxu0  ;;  %v20074_v54 = vld [vmem:[#allocation65_spill] sm:$0xff] }
 0x856   : > { %11999 = vst.msk [vmem:[%s19306_s29 + $0xa8] sm:$0xff] %vm172_vm1, %v11967_v12  ;;  %v10073_v52 = vadd.f32 %v10032_v4, %v19270_v59  ;;  %v19410_v2 = vadd.f32 %v19285_v27, %v11003_v36  ;;  %v14425_v19 = vpop.f32.mrb[186].mxu0  ;;  %v20075_v4 = vld [vmem:[#allocation66_spill] sm:$0xff] }
 0x857   : > { %v11093_v62 = vadd.f32 %v14425_v19, %v10231_v21  ;;  %v11006_v14 = vpop.f32.mrb[187].mxu0  ;;  %v10235_v57 = vadd.f32 %v19285_v27, %v10075_v20 }
 0x858   : > { %v11091_v6 = vadd.f32 %v11006_v14, %v10229_v9 }
 0x859   : > { %v11941_v0 = vmax.f32 %v11093_v62, 0.0 }
 0x85a   : > { %v11939_v45 = vmax.f32 %v11091_v6, 0.0  ;;  %v20076_v6 = vld [vmem:[#allocation71_spill] sm:$0xff] }
 0x85b   : > { %v11973_v35 = vadd.f32 %v11941_v0, %v18854_v33  ;;  %v10233_v33 = vadd.f32 %v19285_v27, %v10073_v52 }
 0x85c   : > { %v11971_v24 = vadd.f32 %v11939_v45, %v20069_v29  ;;  %v14428_v38 = vpop.f32.mrb[188].mxu0  ;;  %v20077_v45 = vld [vmem:[#allocation3_spill] sm:$0xff] }
 0x85d   : > { %12005 = vst.msk [vmem:[%s19306_s29 + $0xd8] sm:$0xff] %vm172_vm1, %v11973_v35  ;;  %v19418_v59 = vadd.f32 %v14428_v38, %v19285_v27  ;;  %v11019_v13 = vpop.f32.mrb[189].mxu0 }
 0x85e   : > { %12003 = vst.msk [vmem:[%s19306_s29 + $0xc8] sm:$0xff] %vm172_vm1, %v11971_v24  ;;  %v19424_v1 = vadd.f32 %v19285_v27, %v11019_v13  ;;  %v14429_v43 = vpop.f32.mrb[190].mxu0 }
 0x85f   : > { %v11097_v18 = vadd.f32 %v14429_v43, %v10235_v57  ;;  %v11022_v39 = vpop.f32.mrb[191].mxu0 }
 0x860   : > { %v11095_v55 = vadd.f32 %v11022_v39, %v10233_v33  ;;  %v20078_v33 = vld [vmem:[#allocation4_spill] sm:$0xff]  ;;  %v20079_v39 = vld [vmem:[#allocation5_spill] sm:$0xff] }
 0x861   : > { %v11945_v37 = vmax.f32 %v11097_v18, 0.0 }
 0x862   : > { %v11943_v30 = vmax.f32 %v11095_v55, 0.0 }
 0x863   : > { %v11977_v11 = vadd.f32 %v11945_v37, %v20070_v5 }
 0x864   : > { %v11975_v31 = vadd.f32 %v11943_v30, %v20071_v46 }
 0x865   : > { %12009 = vst.msk [vmem:[%s19306_s29 + $0xf8] sm:$0xff] %vm172_vm1, %v11977_v11 }
 0x866   : > { %12007 = vst.msk [vmem:[%s19306_s29 + $0xe8] sm:$0xff] %vm172_vm1, %v11975_v31 }
 0x8da   : > { %v14502_v34 = vpop.f32.mrb[224].mxu1 }
 0x8db   : > { %v11884_v47 = vadd.f32 %v14502_v34, %v19289_v15  ;;  %v11595_v50 = vpop.f32.mrb[225].mxu1  ;;  %v20080_v34 = vld [vmem:[#allocation6_spill] sm:$0xff] }
 0x8dc   : > { %v11882_v27 = vadd.f32 %v11595_v50, %v19294_v16  ;;  %v14503_v53 = vpop.f32.mrb[226].mxu1  ;;  %v20081_v50 = vld [vmem:[#allocation7_spill] sm:$0xff] }
 0x8dd   : > { %v11916_v26 = vmax.f32 %v11884_v47, 0.0  ;;  %v11598_v17 = vpop.f32.mrb[227].mxu1 }
 0x8de   : > { %v11914_v49 = vmax.f32 %v11882_v27, 0.0 }
 0x8df   : > { %v11948_v58 = vadd.f32 %v11916_v26, %v20072_v25 }
 0x8e0   : > { %v11946_v63 = vadd.f32 %v11914_v49, %v20073_v28  ;;  %v20082_v28 = vld [vmem:[#allocation8_spill] sm:$0xff] }
 0x8e1   : > { %11980 = vst.msk [vmem:[%s19306_s29 + $0x10] sm:$0xff] %vm172_vm1, %v11948_v58 }
 0x8e2   : > { %11978 = vst.msk [vmem:[%s19306_s29] sm:$0xff] %vm172_vm1, %v11946_v63  ;;  %v14506_v41 = vpop.f32.mrb[228].mxu1 }
 0x8e3   : > { %v11888_v15 = vadd.f32 %v14506_v41, %v19314_v22  ;;  %v11611_v3 = vpop.f32.mrb[229].mxu1  ;;  %v20083_v41 = vld [vmem:[#allocation10_spill] sm:$0xff] }
 0x8e4   : > { %v11886_v16 = vadd.f32 %v11611_v3, %v19321_v60  ;;  %v14507_v23 = vpop.f32.mrb[230].mxu1 }
 0x8e5   : > { %v11920_v7 = vmax.f32 %v11888_v15, 0.0  ;;  %v11614_v12 = vpop.f32.mrb[231].mxu1 }
 0x8e6   : > { %v11918_v42 = vmax.f32 %v11886_v16, 0.0 }
 0x8e7   : > { %v11952_v20 = vadd.f32 %v11920_v7, %v20074_v54  ;;  %v20084_v54 = vld [vmem:[#allocation11_spill] sm:$0xff] }
 0x8e8   : > { %v11950_v36 = vadd.f32 %v11918_v42, %v20075_v4  ;;  %v20085_v4 = vld [vmem:[#allocation12_spill] sm:$0xff] }
 0x8e9   : > { %11984 = vst.msk [vmem:[%s19306_s29 + $0x30] sm:$0xff] %vm172_vm1, %v11952_v20 }
 0x8ea   : > { %11982 = vst.msk [vmem:[%s19306_s29 + $0x20] sm:$0xff] %vm172_vm1, %v11950_v36  ;;  %v14510_v21 = vpop.f32.mrb[232].mxu1 }
 0x8eb   : > { %v11892_v22 = vadd.f32 %v14510_v21, %v19334_v40  ;;  %v11627_v52 = vpop.f32.mrb[233].mxu1 }
 0x8ec   : > { %v11890_v60 = vadd.f32 %v11627_v52, %v19341_v44  ;;  %v14511_v19 = vpop.f32.mrb[234].mxu1 }
 0x8ed   : > { %v11924_v9 = vmax.f32 %v11892_v22, 0.0  ;;  %v11630_v62 = vpop.f32.mrb[235].mxu1 }
 0x8ee   : > { %v11922_v14 = vmax.f32 %v11890_v60, 0.0  ;;  %v20086_v62 = vld [vmem:[#allocation14_spill] sm:$0xff] }
 0x8ef   : > { %v11956_v0 = vadd.f32 %v11924_v9, %v20076_v6  ;;  %v20087_v6 = vld [vmem:[#allocation9_spill] sm:$0xff] }
 0x8f0   : > { %v11954_v35 = vadd.f32 %v11922_v14, %v20077_v45 }
 0x8f1   : > { %11988 = vst.msk [vmem:[%s19306_s29 + $0x50] sm:$0xff] %vm172_vm1, %v11956_v0 }
 0x8f2   : > { %11986 = vst.msk [vmem:[%s19306_s29 + $0x40] sm:$0xff] %vm172_vm1, %v11954_v35  ;;  %v14514_v29 = vpop.f32.mrb[236].mxu1 }
 0x8f3   : > { %v11896_v40 = vadd.f32 %v14514_v29, %v19354_v32  ;;  %v11643_v24 = vpop.f32.mrb[237].mxu1 }
 0x8f4   : > { %v11894_v44 = vadd.f32 %v11643_v24, %v19361_v51  ;;  %v14515_v38 = vpop.f32.mrb[238].mxu1 }
 0x8f5   : > { %v11928_v13 = vmax.f32 %v11896_v40, 0.0  ;;  %v11646_v57 = vpop.f32.mrb[239].mxu1 }
 0x8f6   : > { %v11926_v43 = vmax.f32 %v11894_v44, 0.0 }
 0x8f7   : > { %v11960_v18 = vadd.f32 %v11928_v13, %v20078_v33 }
 0x8f8   : > { %v11958_v55 = vadd.f32 %v11926_v43, %v20079_v39 }
 0x8f9   : > { %11992 = vst.msk [vmem:[%s19306_s29 + $0x70] sm:$0xff] %vm172_vm1, %v11960_v18 }
 0x8fa   : > { %11990 = vst.msk [vmem:[%s19306_s29 + $0x60] sm:$0xff] %vm172_vm1, %v11958_v55  ;;  %v14518_v37 = vpop.f32.mrb[240].mxu1 }
 0x8fb   : > { %v11900_v32 = vadd.f32 %v14518_v37, %v19371_v8  ;;  %v11659_v30 = vpop.f32.mrb[241].mxu1 }
 0x8fc   : > { %v11898_v51 = vadd.f32 %v11659_v30, %v19378_v56  ;;  %v14519_v5 = vpop.f32.mrb[242].mxu1 }
 0x8fd   : > { %v11932_v11 = vmax.f32 %v11900_v32, 0.0  ;;  %v11662_v46 = vpop.f32.mrb[243].mxu1 }
 0x8fe   : > { %v11930_v31 = vmax.f32 %v11898_v51, 0.0 }
 0x8ff   : > { %v11964_v47 = vadd.f32 %v11932_v11, %v20080_v34 }
 0x900   : > { %v11962_v27 = vadd.f32 %v11930_v31, %v20081_v50 }
 0x901   : > { %11996 = vst.msk [vmem:[%s19306_s29 + $0x90] sm:$0xff] %vm172_vm1, %v11964_v47 }
 0x902   : > { %11994 = vst.msk [vmem:[%s19306_s29 + $0x80] sm:$0xff] %vm172_vm1, %v11962_v27  ;;  %v14522_v53 = vpop.f32.mrb[244].mxu1 }
 0x903   : > { %v11904_v8 = vadd.f32 %v14522_v53, %v19387_v10  ;;  %v11675_v26 = vpop.f32.mrb[245].mxu1 }
 0x904   : > { %v11902_v56 = vadd.f32 %v11675_v26, %v19394_v48  ;;  %v14523_v17 = vpop.f32.mrb[246].mxu1 }
 0x905   : > { %v11936_v49 = vmax.f32 %v11904_v8, 0.0  ;;  %v11678_v25 = vpop.f32.mrb[247].mxu1 }
 0x906   : > { %v11934_v58 = vmax.f32 %v11902_v56, 0.0 }
 0x907   : > { %v11968_v63 = vadd.f32 %v11936_v49, %v20082_v28 }
 0x908   : > { %v11966_v15 = vadd.f32 %v11934_v58, %v20083_v41 }
 0x909   : > { %12000 = vst.msk [vmem:[%s19306_s29 + $0xb0] sm:$0xff] %vm172_vm1, %v11968_v63 }
 0x90a   : > { %11998 = vst.msk [vmem:[%s19306_s29 + $0xa0] sm:$0xff] %vm172_vm1, %v11966_v15  ;;  %v14526_v3 = vpop.f32.mrb[248].mxu1 }
 0x90b   : > { %v11908_v10 = vadd.f32 %v14526_v3, %v19403_v61  ;;  %v11691_v16 = vpop.f32.mrb[249].mxu1 }
 0x90c   : > { %v11906_v48 = vadd.f32 %v11691_v16, %v19410_v2  ;;  %v14527_v23 = vpop.f32.mrb[250].mxu1 }
 0x90d   : > { %v11940_v7 = vmax.f32 %v11908_v10, 0.0  ;;  %v11694_v12 = vpop.f32.mrb[251].mxu1 }
 0x90e   : > { %v11938_v42 = vmax.f32 %v11906_v48, 0.0 }
 0x90f   : > { %v11972_v20 = vadd.f32 %v11940_v7, %v20084_v54 }
 0x910   : > { %v11970_v36 = vadd.f32 %v11938_v42, %v20085_v4 }
 0x911   : > { %12004 = vst.msk [vmem:[%s19306_s29 + $0xd0] sm:$0xff] %vm172_vm1, %v11972_v20 }
 0x912   : > { %12002 = vst.msk [vmem:[%s19306_s29 + $0xc0] sm:$0xff] %vm172_vm1, %v11970_v36  ;;  %v14530_v21 = vpop.f32.mrb[252].mxu1 }
 0x913   : > { %v11912_v61 = vadd.f32 %v14530_v21, %v19418_v59  ;;  %v11707_v22 = vpop.f32.mrb[253].mxu1 }
 0x914   : > { %v11910_v2 = vadd.f32 %v11707_v22, %v19424_v1  ;;  %v14531_v52 = vpop.f32.mrb[254].mxu1 }
 0x915   : > { %v11944_v60 = vmax.f32 %v11912_v61, 0.0  ;;  %v11710_v19 = vpop.f32.mrb[255].mxu1 }
 0x916   : > { %v11942_v9 = vmax.f32 %v11910_v2, 0.0 }
 0x917   : > { %v11976_v14 = vadd.f32 %v11944_v60, %v20086_v62 }
 0x918   : > { %v11974_v0 = vadd.f32 %v11942_v9, %v20087_v6 }
 0x919   : > { %12008 = vst.msk [vmem:[%s19306_s29 + $0xf0] sm:$0xff] %vm172_vm1, %v11976_v14 }
 0x91a   : > { %12006 = vst.msk [vmem:[%s19306_s29 + $0xe0] sm:$0xff] %vm172_vm1, %v11974_v0 }
 0x91b PF: > { %s13_s12 = sadd.s32 1, %s15319_s12  }
 0x91c   : > { %p10_p4 = scmp.ge.s32.totalorder %s13_s12, 4  }
 0x91e   :  { %12 = sbr.rel (!%p10_p4) target bundleno = 1 (0x1), region = 100 }

</bundles_post_ra>
